<compile_context>
chip_gen: v5e
topology: v5e:2x2
jax: 0.10.0
libtpu: 0.0.40
codegen_flags: <defaults>
</compile_context>

<pallas_src>
import math
import functools
import numpy as np
import jax
import jax.numpy as jnp
from jax import lax
from jax.experimental import pallas as pl
from jax.experimental.pallas import tpu as pltpu

# ----- model hyper-parameters (small, consistent with the module) -----
HIDDEN = 64
NUM_HEADS = 8
HEAD_DIM = HIDDEN // NUM_HEADS
FFN = 4 * HIDDEN
NGRAM_SIZES = (3, 4)
NGRAM_VOCAB = 128
NEG_INF = -1e30          # plain Python float (never a captured jax array)
ATTN_SCALE = 1.0 / math.sqrt(HEAD_DIM)

# Row indices into the packed (24, HIDDEN) small-parameter table.
(R_B_Q, R_B_K, R_B_V, R_B_AO, R_LN1_G, R_LN1_B, R_LN2_G, R_LN2_B, R_B_FF2,
 R_PQ, R_NQ_G, R_NQ_B, R_NKV_G, R_NKV_B, R_CBQ, R_CBK, R_CBV, R_CBO,
 R_FIN_G, R_FIN_B) = range(20)
N_SMALL = 24  # padded to a multiple of 8 rows


# ----------------------------- kernel helpers -----------------------------
def _ln(x, g, b, eps):
    mu = jnp.mean(x, axis=-1, keepdims=True)
    xc = x - mu
    var = jnp.mean(xc * xc, axis=-1, keepdims=True)
    return xc * lax.rsqrt(var + eps) * g + b


def _softmax_last(s):
    m = jnp.max(s, axis=-1, keepdims=True)
    e = jnp.exp(s - m)
    return e * pl.reciprocal(jnp.sum(e, axis=-1, keepdims=True), approx=True)


def _erf(x):
    # Abramowitz & Stegun 7.1.26 (|err| < 1.5e-7); uses exp only (EUP slot).
    t = 1.0 / (1.0 + 0.3275911 * jnp.abs(x))
    poly = ((((1.061405429 * t - 1.453152027) * t + 1.421413741) * t
             - 0.284496736) * t + 0.254829592) * t
    y = 1.0 - poly * jnp.exp(-x * x)
    return jnp.where(x >= 0.0, y, -y)


def _gelu(x):
    # F.gelu default (erf-based, exact up to the polynomial above)
    return 0.5 * x * (1.0 + _erf(x * 0.7071067811865476))


def _dot(a, b):
    return jnp.dot(a, b, preferred_element_type=jnp.float32)


def _dot_nt(a, b):  # a @ b.T without an explicit transpose
    return lax.dot_general(a, b, (((1,), (1,)), ((), ())),
                           preferred_element_type=jnp.float32)


# ----------------------------- Pallas kernel -----------------------------
def make_kernel(B, S):
    """One grid step = B byte patches: TransformerEncoderLayer (post-norm,
    causal) + cross-attention pooling + final LayerNorm."""
    BS = B * S                       # keys/lanes per step
    BHS = NUM_HEADS * BS             # (head, patch, query-pos) sublane rows
    BNH = NUM_HEADS * B
    H = HIDDEN
    bf16 = jnp.bfloat16

    def kernel(x_ref, kbias_ref,
               w_q_ref, w_k_ref, w_v_ref, w_ao_ref,
               w_ff1_ref, b_ff1_ref, w_ff2_ref,
               cw_q_ref, cw_k_ref, cw_v_ref, cw_o_ref,
               small_ref, qhm_ref, abias_ref, hsel_ref,
               chm_ref, cbias_ref, csel_ref, out_ref):
        xb = x_ref[...]                              # (BS, H) bf16
        x = xb.astype(jnp.float32)                   # residual / LN path in f32
        kb = kbias_ref[0]                            # (1, BS) per-step pad-key bias
        sp = small_ref[...]                          # (24, H) packed small params
        prow = lambda r: sp[r:r + 1, :]              # (1, H)

        # ---- causal multi-head self-attention (dropout = identity) ----
        q = _dot(xb, w_q_ref[...]) + prow(R_B_Q)                 # scale folded into w_q/b_q
        k = (_dot(xb, w_k_ref[...]) + prow(R_B_K)).astype(bf16)
        v = (_dot(xb, w_v_ref[...]) + prow(R_B_V)).astype(bf16)

        # stack (head, patch, query) along sublanes, head-block-diagonal columns
        q_rep = jnp.broadcast_to(q[None, :, :], (NUM_HEADS, BS, H)).reshape(BHS, H)
        q_blk = (q_rep * qhm_ref[...]).astype(bf16)               # (BHS, H)
        s = _dot_nt(q_blk, k) + abias_ref[...] + kb               # (BHS, BS) lane-dense
        p = _softmax_last(s)
        ctx = _dot(p.astype(bf16), v)                             # (BHS, H)
        ctx = (ctx * qhm_ref[...]).astype(bf16)                   # keep own head's columns
        attn = _dot(hsel_ref[...], ctx)                           # head-sum on the MXU -> (BS, H)
        attn = _dot(attn.astype(bf16), w_ao_ref[...]) + prow(R_B_AO)
        x1 = _ln(x + attn, prow(R_LN1_G), prow(R_LN1_B), 1e-5)

        # ---- feed-forward (exact erf GELU), post-norm ----
        h1 = _gelu(_dot(x1.astype(bf16), w_ff1_ref[...]) + b_ff1_ref[...])
        ff = _dot(h1.astype(bf16), w_ff2_ref[...]) + prow(R_B_FF2)
        x2 = _ln(x1 + ff, prow(R_LN2_G), prow(R_LN2_B), 1e-5)

        # ---- cross-attention pooling: patch_query attends to processed bytes ----
        qn = _ln(prow(R_PQ), prow(R_NQ_G), prow(R_NQ_B), 1e-6)            # (1, H)
        kvn = _ln(x2, prow(R_NKV_G), prow(R_NKV_B), 1e-6).astype(bf16)    # (BS, H)
        cq = _dot(qn.astype(bf16), cw_q_ref[...]) + prow(R_CBQ)           # scale folded
        ck = (_dot(kvn, cw_k_ref[...]) + prow(R_CBK)).astype(bf16)
        cv = (_dot(kvn, cw_v_ref[...]) + prow(R_CBV)).astype(bf16)

        cq_blk = (jnp.broadcast_to(cq, (BNH, H)) * chm_ref[...]).astype(bf16)
        cs = _dot_nt(cq_blk, ck) + cbias_ref[...] + kb                     # (BNH, BS)
        cp = _softmax_last(cs)
        cctx = _dot(cp.astype(bf16), cv)                                   # (BNH, H)
        cctx = (cctx * chm_ref[...]).astype(bf16)
        pooled = _dot(csel_ref[...], cctx)                                 # (B, H)
        pooled = _dot(pooled.astype(bf16), cw_o_ref[...]) + prow(R_CBO)

        # ---- final LayerNorm folded into the epilogue ----
        out_ref[...] = _ln(pooled, prow(R_FIN_G), prow(R_FIN_B), 1e-6)

    return kernel


# ----------------------------- host-side tables -----------------------------
def build_mask_tables(B, S):
    """Precomputed resident mask / selector tables (L-independent)."""
    H, NH, HD = HIDDEN, NUM_HEADS, HEAD_DIM
    BS, BHS, BNH = B * S, NUM_HEADS * B * S, NUM_HEADS * B
    col_h = np.arange(H) // HD                                   # owning head per channel
    c = np.arange(BS)
    b_k, kj = c // S, c % S                                      # key patch / key pos

    # self-attention rows: r = h*BS + b*S + qi (head-major)
    r = np.arange(BHS)
    r_h, r_b, r_qi = r // BS, (r % BS) // S, r % S
    qhm = (col_h[None, :] == r_h[:, None]).astype(np.float32)               # (BHS, H)
    ok = (b_k[None, :] == r_b[:, None]) & (kj[None, :] <= r_qi[:, None])
    abias = np.where(ok, 0.0, NEG_INF).astype(np.float32)                   # (BHS, BS)
    hsel = np.tile(np.eye(BS, dtype=np.float32), (1, NH))                   # (BS, BHS)

    # cross-attention rows: r = h*B + b
    rc = np.arange(BNH)
    c_h, c_b = rc // B, rc % B
    chm = (col_h[None, :] == c_h[:, None]).astype(np.float32)               # (BNH, H)
    cbias = np.where(b_k[None, :] == c_b[:, None], 0.0, NEG_INF).astype(np.float32)
    csel = np.tile(np.eye(B, dtype=np.float32), (1, NH))                    # (B, BNH)
    return dict(qhm=qhm, abias=abias, hsel=hsel, chm=chm, cbias=cbias, csel=csel)


def pack_params(p):
    """Matmul weights in bf16 (attention scale folded into Q projections);
    all (1,H) params stacked into one (24,H) f32 table."""
    f32, bf16 = jnp.float32, jnp.bfloat16
    H = HIDDEN
    rows = [p['b_qkv'][:, 0:H] * ATTN_SCALE, p['b_qkv'][:, H:2 * H],
            p['b_qkv'][:, 2 * H:3 * H], p['b_ao'],
            p['ln1_g'], p['ln1_b'], p['ln2_g'], p['ln2_b'], p['b_ff2'],
            p['patch_query'], p['nq_g'], p['nq_b'], p['nkv_g'], p['nkv_b'],
            p['cbq'] * ATTN_SCALE, p['cbk'], p['cbv'], p['cbo'],
            p['final_g'], p['final_b']]
    small = jnp.concatenate(
        rows + [jnp.zeros((N_SMALL - len(rows), H), f32)], axis=0).astype(f32)
    return {
        'w_q': (p['w_qkv'][:, 0:H] * ATTN_SCALE).astype(bf16),
        'w_k': p['w_qkv'][:, H:2 * H].astype(bf16),
        'w_v': p['w_qkv'][:, 2 * H:3 * H].astype(bf16),
        'w_ao': p['w_ao'].astype(bf16),
        'w_ff1': p['w_ff1'].astype(bf16),
        'b_ff1': p['b_ff1'].astype(f32),
        'w_ff2': p['w_ff2'].astype(bf16),
        'cw_q': (p['cwq'] * ATTN_SCALE).astype(bf16),
        'cw_k': p['cwk'].astype(bf16),
        'cw_v': p['cwv'].astype(bf16),
        'cw_o': p['cwo'].astype(bf16),
        'small': small,
    }


# ----------------------------- pallas_call wrapper -----------------------------
def encode_patches_pallas(x2d, kbias, kp, masks, num_steps, B, Smax):
    H = HIDDEN
    BS = B * Smax
    P_pad = num_steps * B

    def const(arr):
        nd = arr.ndim
        return pl.BlockSpec(arr.shape, lambda i, nd=nd: (0,) * nd)  # resident weights

    grid_spec = pltpu.PrefetchScalarGridSpec(
        num_scalar_prefetch=0,
        grid=(num_steps,),
        in_specs=[
            pl.BlockSpec((BS, H), lambda i: (i, 0)),        # B patches of activations
            pl.BlockSpec((1, 1, BS), lambda i: (i, 0, 0)),  # per-step pad-key bias row
            const(kp['w_q']), const(kp['w_k']), const(kp['w_v']), const(kp['w_ao']),
            const(kp['w_ff1']), const(kp['b_ff1']), const(kp['w_ff2']),
            const(kp['cw_q']), const(kp['cw_k']), const(kp['cw_v']), const(kp['cw_o']),
            const(kp['small']),
            const(masks['qhm']), const(masks['abias']), const(masks['hsel']),
            const(masks['chm']), const(masks['cbias']), const(masks['csel']),
        ],
        out_specs=pl.BlockSpec((B, H), lambda i: (i, 0)),
    )
    return pl.pallas_call(
        make_kernel(B, Smax),
        out_shape=jax.ShapeDtypeStruct((P_pad, H), jnp.float32),
        grid_spec=grid_spec,
        compiler_params=pltpu.CompilerParams(
            dimension_semantics=("parallel",)),   # shards steps over TCs on v7x
    )(x2d, kbias,
      kp['w_q'], kp['w_k'], kp['w_v'], kp['w_ao'],
      kp['w_ff1'], kp['b_ff1'], kp['w_ff2'],
      kp['cw_q'], kp['cw_k'], kp['cw_v'], kp['cw_o'],
      kp['small'],
      masks['qhm'], masks['abias'], masks['hsel'],
      masks['chm'], masks['cbias'], masks['csel'])


def embed_patches(ids, lens, p):
    """Byte embedding + rolling n-gram hash embeddings, batched over patches.
    ids: (P_pad, Smax) int32 padded with 0; lens: (P_pad,) -> (P_pad, Smax, H) bf16."""
    P, Smax = ids.shape
    pos = jnp.arange(Smax)
    x = p['byte_emb'][ids]                                   # (P, Smax, H)
    feats = jnp.zeros_like(x)
    for n in NGRAM_SIZES:
        if Smax < n:
            continue
        W = Smax - n + 1
        windows = jnp.stack([ids[:, j:j + W] for j in range(n)], axis=-1)
        hashes = jnp.sum(windows.astype(jnp.int32), axis=-1) % NGRAM_VOCAB
        emb = p[f'ngram_{n}'][hashes]                         # (P, W, H)
        emb = jnp.pad(emb, ((0, 0), (0, n - 1), (0, 0)))
        valid = pos[None, :] < (lens[:, None] - n + 1)        # window fully in patch
        feats = feats + jnp.where(valid[:, :, None], emb, 0.0)
    x = x + feats
    x = jnp.where(pos[None, :, None] < lens[:, None, None], x, 0.0)  # zero pad rows
    return x.astype(jnp.bfloat16)


@functools.partial(jax.jit, static_argnums=(3,))
def _encode_padded(ids, lens, params, B):
    P_pad, Smax = ids.shape
    num_steps = P_pad // B
    x = embed_patches(ids, lens, params)                       # (P_pad, Smax, H) bf16
    x2d = x.reshape(P_pad * Smax, HIDDEN)

    pos = jnp.arange(Smax)
    kvalid = pos[None, :] < lens[:, None]                      # (P_pad, Smax)
    kbias = jnp.where(kvalid, 0.0, NEG_INF).astype(jnp.float32)
    kbias = kbias.reshape(num_steps, 1, B * Smax)              # per-step pad-key bias

    kp = pack_params(params)
    mt = build_mask_tables(B, Smax)                            # numpy -> baked constants
    masks = {
        'qhm': jnp.asarray(mt['qhm'], jnp.float32),
        'abias': jnp.asarray(mt['abias'], jnp.float32),
        'hsel': jnp.asarray(mt['hsel'], jnp.bfloat16),
        'chm': jnp.asarray(mt['chm'], jnp.float32),
        'cbias': jnp.asarray(mt['cbias'], jnp.float32),
        'csel': jnp.asarray(mt['csel'], jnp.bfloat16),
    }
    return encode_patches_pallas(x2d, kbias, kp, masks, num_steps, B, Smax)  # (P_pad, H)


def local_encoder_forward(patches, params):
    """patches: list of int arrays [patch_len] -> (1, num_patches, HIDDEN)."""
    patches = [pb for pb in patches if int(pb.shape[0]) > 0]
    if not patches:
        return jnp.empty((1, 0, HIDDEN), jnp.float32)
    P = len(patches)
    max_len = max(int(pb.shape[0]) for pb in patches)
    smax = max(8, int(pl.next_power_of_2(max_len)))            # length bucketing
    # TODO(synk): patches longer than ~64 bytes would need a KV-tiled variant
    # (the batched score matrix grows as NH*B^2*Smax^2); typical byte patches fit.
    B = max(8, 128 // smax)           # patches per grid step: >=128 key lanes, >=8 out sublanes
    P_pad = ((P + B - 1) // B) * B
    ids = np.zeros((P_pad, smax), np.int32)
    lens = np.zeros((P_pad,), np.int32)
    for j, pb in enumerate(patches):
        L = int(pb.shape[0])
        ids[j, :L] = np.asarray(pb, np.int32)
        lens[j] = L
    out = _encode_padded(jnp.asarray(ids), jnp.asarray(lens), params, B)
    return out[:P][None, :, :]                                  # (1, P, H), no transpose


# ----------------------------- parameters -----------------------------
def init_params(key):
    ks = iter(jax.random.split(key, 16))
    H, std = HIDDEN, 0.02
    p = {}
    p['byte_emb'] = jax.random.normal(next(ks), (256, H)) * (1.0 / math.sqrt(H))
    for n in NGRAM_SIZES:
        p[f'ngram_{n}'] = jax.random.normal(next(ks), (NGRAM_VOCAB, H)) * 0.02
    # nn.TransformerEncoderLayer (weights stored pre-transposed as [in, out])
    p['w_qkv'] = jax.random.normal(next(ks), (H, 3 * H)) * std
    p['b_qkv'] = jnp.zeros((1, 3 * H), jnp.float32)
    p['w_ao'] = jax.random.normal(next(ks), (H, H)) * std
    p['b_ao'] = jnp.zeros((1, H), jnp.float32)
    p['ln1_g'] = jnp.ones((1, H), jnp.float32)
    p['ln1_b'] = jnp.zeros((1, H), jnp.float32)
    p['ln2_g'] = jnp.ones((1, H), jnp.float32)
    p['ln2_b'] = jnp.zeros((1, H), jnp.float32)
    p['w_ff1'] = jax.random.normal(next(ks), (H, FFN)) * std
    p['b_ff1'] = jnp.zeros((1, FFN), jnp.float32)
    p['w_ff2'] = jax.random.normal(next(ks), (FFN, H)) * std
    p['b_ff2'] = jnp.zeros((1, H), jnp.float32)
    # CrossAttentionBlock pooling
    p['patch_query'] = jax.random.normal(next(ks), (1, H))
    p['nq_g'] = jnp.ones((1, H), jnp.float32)
    p['nq_b'] = jnp.zeros((1, H), jnp.float32)
    p['nkv_g'] = jnp.ones((1, H), jnp.float32)
    p['nkv_b'] = jnp.zeros((1, H), jnp.float32)
    for name in ('cwq', 'cwk', 'cwv', 'cwo'):
        p[name] = jax.random.normal(next(ks), (H, H)) * std
    for name in ('cbq', 'cbk', 'cbv', 'cbo'):
        p[name] = jnp.zeros((1, H), jnp.float32)
    # final LayerNorm
    p['final_g'] = jnp.ones((1, H), jnp.float32)
    p['final_b'] = jnp.zeros((1, H), jnp.float32)
    return p


if __name__ == "__main__":
    key = jax.random.PRNGKey(0)
    pkey, bkey = jax.random.split(key)
    params = init_params(pkey)

    # a "batch" of 10 byte patches with different lengths (bucketed to Smax=16,
    # B=8 patches per grid step -> 2 grid steps, tail batch exercised)
    patch_lens = [16, 12, 8, 5, 16, 9, 3, 16, 11, 7]
    bkeys = jax.random.split(bkey, len(patch_lens))
    patches = [jax.random.randint(bkeys[i], (patch_lens[i],), 0, 256, dtype=jnp.int32)
               for i in range(len(patch_lens))]

    out = local_encoder_forward(patches, params)
    out = jax.block_until_ready(out)
    assert out.shape == (1, len(patch_lens), HIDDEN), out.shape
    assert bool(jnp.all(jnp.isfinite(out)))
    print("KERNEL_OK")
</pallas_src>

<mosaic_0001>
module attributes {stable_mosaic.version = 11 : i64} {
  func.func @kernel(%arg0: i32, %arg1: memref<128x64xbf16, #tpu.memory_space<vmem>>, %arg2: memref<1x1x128xf32, #tpu.memory_space<vmem>>, %arg3: memref<64x64xbf16, #tpu.memory_space<vmem>>, %arg4: memref<64x64xbf16, #tpu.memory_space<vmem>>, %arg5: memref<64x64xbf16, #tpu.memory_space<vmem>>, %arg6: memref<64x64xbf16, #tpu.memory_space<vmem>>, %arg7: memref<64x256xbf16, #tpu.memory_space<vmem>>, %arg8: memref<1x256xf32, #tpu.memory_space<vmem>>, %arg9: memref<256x64xbf16, #tpu.memory_space<vmem>>, %arg10: memref<64x64xbf16, #tpu.memory_space<vmem>>, %arg11: memref<64x64xbf16, #tpu.memory_space<vmem>>, %arg12: memref<64x64xbf16, #tpu.memory_space<vmem>>, %arg13: memref<64x64xbf16, #tpu.memory_space<vmem>>, %arg14: memref<24x64xf32, #tpu.memory_space<vmem>>, %arg15: memref<1024x64xf32, #tpu.memory_space<vmem>>, %arg16: memref<1024x128xf32, #tpu.memory_space<vmem>>, %arg17: memref<128x1024xbf16, #tpu.memory_space<vmem>>, %arg18: memref<64x64xf32, #tpu.memory_space<vmem>>, %arg19: memref<64x128xf32, #tpu.memory_space<vmem>>, %arg20: memref<8x64xbf16, #tpu.memory_space<vmem>>, %arg21: memref<8x64xf32, #tpu.memory_space<vmem>>) attributes {dimension_semantics = [#tpu.dimension_semantics<parallel>], iteration_bounds = array<i64: 2>, scalar_prefetch = 0 : i64, scratch_operands = 0 : i64, tpu.core_type = #tpu.core_type<tc>, window_params = [{transform_indices = @transform_0, window_bounds = array<i64: 128, 64>}, {transform_indices = @transform_1, window_bounds = array<i64: 1, 1, 128>}, {pipeline_mode = #tpu.pipeline_mode<synchronous>, transform_indices = @transform_2, window_bounds = array<i64: 64, 64>}, {pipeline_mode = #tpu.pipeline_mode<synchronous>, transform_indices = @transform_3, window_bounds = array<i64: 64, 64>}, {pipeline_mode = #tpu.pipeline_mode<synchronous>, transform_indices = @transform_4, window_bounds = array<i64: 64, 64>}, {pipeline_mode = #tpu.pipeline_mode<synchronous>, transform_indices = @transform_5, window_bounds = array<i64: 64, 64>}, {pipeline_mode = #tpu.pipeline_mode<synchronous>, transform_indices = @transform_6, window_bounds = array<i64: 64, 256>}, {pipeline_mode = #tpu.pipeline_mode<synchronous>, transform_indices = @transform_7, window_bounds = array<i64: 1, 256>}, {pipeline_mode = #tpu.pipeline_mode<synchronous>, transform_indices = @transform_8, window_bounds = array<i64: 256, 64>}, {pipeline_mode = #tpu.pipeline_mode<synchronous>, transform_indices = @transform_9, window_bounds = array<i64: 64, 64>}, {pipeline_mode = #tpu.pipeline_mode<synchronous>, transform_indices = @transform_10, window_bounds = array<i64: 64, 64>}, {pipeline_mode = #tpu.pipeline_mode<synchronous>, transform_indices = @transform_11, window_bounds = array<i64: 64, 64>}, {pipeline_mode = #tpu.pipeline_mode<synchronous>, transform_indices = @transform_12, window_bounds = array<i64: 64, 64>}, {pipeline_mode = #tpu.pipeline_mode<synchronous>, transform_indices = @transform_13, window_bounds = array<i64: 24, 64>}, {pipeline_mode = #tpu.pipeline_mode<synchronous>, transform_indices = @transform_14, window_bounds = array<i64: 1024, 64>}, {pipeline_mode = #tpu.pipeline_mode<synchronous>, transform_indices = @transform_15, window_bounds = array<i64: 1024, 128>}, {pipeline_mode = #tpu.pipeline_mode<synchronous>, transform_indices = @transform_16, window_bounds = array<i64: 128, 1024>}, {pipeline_mode = #tpu.pipeline_mode<synchronous>, transform_indices = @transform_17, window_bounds = array<i64: 64, 64>}, {pipeline_mode = #tpu.pipeline_mode<synchronous>, transform_indices = @transform_18, window_bounds = array<i64: 64, 128>}, {pipeline_mode = #tpu.pipeline_mode<synchronous>, transform_indices = @transform_19, window_bounds = array<i64: 8, 64>}, {transform_indices = @transform_20, window_bounds = array<i64: 8, 64>}]} {
    %c0 = arith.constant 0 : index
    %c0_0 = arith.constant 0 : index
    %0 = vector.load %arg1[%c0, %c0_0] : memref<128x64xbf16, #tpu.memory_space<vmem>>, vector<128x64xbf16>
    %1 = arith.extf %0 : vector<128x64xbf16> to vector<128x64xf32>
    %c0_1 = arith.constant 0 : index
    %c0_2 = arith.constant 0 : index
    %c0_3 = arith.constant 0 : index
    %2 = vector.load %arg2[%c0_1, %c0_2, %c0_3] : memref<1x1x128xf32, #tpu.memory_space<vmem>>, vector<1x1x128xf32>
    %3 = vector.shape_cast %2 : vector<1x1x128xf32> to vector<1x128xf32>
    %c0_4 = arith.constant 0 : index
    %c0_5 = arith.constant 0 : index
    %4 = vector.load %arg14[%c0_4, %c0_5] : memref<24x64xf32, #tpu.memory_space<vmem>>, vector<24x64xf32>
    %c0_6 = arith.constant 0 : index
    %c0_7 = arith.constant 0 : index
    %5 = vector.load %arg3[%c0_6, %c0_7] : memref<64x64xbf16, #tpu.memory_space<vmem>>, vector<64x64xbf16>
    %cst = arith.constant dense<0.000000e+00> : vector<128x64xf32>
    %6 = tpu.matmul %0, %5, %cst {dimension_numbers = #tpu.dot_dimension_numbers<[1], [0], [0], [1], [0, 0, 1, 1], [], []>} : vector<128x64xbf16>, vector<64x64xbf16>, vector<128x64xf32> -> vector<128x64xf32>
    %7 = vector.extract_strided_slice %4 {offsets = [0, 0], sizes = [1, 64], strides = [1, 1]} : vector<24x64xf32> to vector<1x64xf32>
    %8 = vector.broadcast %7 : vector<1x64xf32> to vector<128x64xf32>
    %9 = arith.addf %6, %8 : vector<128x64xf32>
    %c0_8 = arith.constant 0 : index
    %c0_9 = arith.constant 0 : index
    %10 = vector.load %arg4[%c0_8, %c0_9] : memref<64x64xbf16, #tpu.memory_space<vmem>>, vector<64x64xbf16>
    %cst_10 = arith.constant dense<0.000000e+00> : vector<128x64xf32>
    %11 = tpu.matmul %0, %10, %cst_10 {dimension_numbers = #tpu.dot_dimension_numbers<[1], [0], [0], [1], [0, 0, 1, 1], [], []>} : vector<128x64xbf16>, vector<64x64xbf16>, vector<128x64xf32> -> vector<128x64xf32>
    %12 = vector.extract_strided_slice %4 {offsets = [1, 0], sizes = [1, 64], strides = [1, 1]} : vector<24x64xf32> to vector<1x64xf32>
    %13 = vector.broadcast %12 : vector<1x64xf32> to vector<128x64xf32>
    %14 = arith.addf %11, %13 : vector<128x64xf32>
    %15 = arith.truncf %14 : vector<128x64xf32> to vector<128x64xbf16>
    %c0_11 = arith.constant 0 : index
    %c0_12 = arith.constant 0 : index
    %16 = vector.load %arg5[%c0_11, %c0_12] : memref<64x64xbf16, #tpu.memory_space<vmem>>, vector<64x64xbf16>
    %cst_13 = arith.constant dense<0.000000e+00> : vector<128x64xf32>
    %17 = tpu.matmul %0, %16, %cst_13 {dimension_numbers = #tpu.dot_dimension_numbers<[1], [0], [0], [1], [0, 0, 1, 1], [], []>} : vector<128x64xbf16>, vector<64x64xbf16>, vector<128x64xf32> -> vector<128x64xf32>
    %18 = vector.extract_strided_slice %4 {offsets = [2, 0], sizes = [1, 64], strides = [1, 1]} : vector<24x64xf32> to vector<1x64xf32>
    %19 = vector.broadcast %18 : vector<1x64xf32> to vector<128x64xf32>
    %20 = arith.addf %17, %19 : vector<128x64xf32>
    %21 = arith.truncf %20 : vector<128x64xf32> to vector<128x64xbf16>
    %22 = vector.shape_cast %9 : vector<128x64xf32> to vector<1x128x64xf32>
    %23 = vector.shape_cast %22 : vector<1x128x64xf32> to vector<1x128x64xf32>
    %24 = vector.broadcast %23 : vector<1x128x64xf32> to vector<8x128x64xf32>
    %25 = vector.shape_cast %24 : vector<8x128x64xf32> to vector<1024x64xf32>
    %c0_14 = arith.constant 0 : index
    %c0_15 = arith.constant 0 : index
    %26 = vector.load %arg15[%c0_14, %c0_15] : memref<1024x64xf32, #tpu.memory_space<vmem>>, vector<1024x64xf32>
    %27 = arith.mulf %25, %26 : vector<1024x64xf32>
    %28 = arith.truncf %27 : vector<1024x64xf32> to vector<1024x64xbf16>
    %cst_16 = arith.constant dense<0.000000e+00> : vector<1024x128xf32>
    %29 = tpu.matmul %28, %15, %cst_16 {dimension_numbers = #tpu.dot_dimension_numbers<[1], [1], [0], [0], [0, 0, 1, 0], [], []>} : vector<1024x64xbf16>, vector<128x64xbf16>, vector<1024x128xf32> -> vector<1024x128xf32>
    %c0_17 = arith.constant 0 : index
    %c0_18 = arith.constant 0 : index
    %30 = vector.load %arg16[%c0_17, %c0_18] : memref<1024x128xf32, #tpu.memory_space<vmem>>, vector<1024x128xf32>
    %31 = arith.addf %29, %30 : vector<1024x128xf32>
    %32 = vector.broadcast %3 : vector<1x128xf32> to vector<1024x128xf32>
    %33 = arith.addf %31, %32 : vector<1024x128xf32>
    %cst_19 = arith.constant dense<0xFF800000> : vector<1024xf32>
    %34 = vector.multi_reduction <maximumf>, %33, %cst_19 [1] : vector<1024x128xf32> to vector<1024xf32>
    %35 = vector.shape_cast %34 : vector<1024xf32> to vector<1024x1xf32>
    %36 = vector.broadcast %35 : vector<1024x1xf32> to vector<1024x128xf32>
    %37 = arith.subf %33, %36 : vector<1024x128xf32>
    %38 = math.exp %37 : vector<1024x128xf32>
    %cst_20 = arith.constant dense<0.000000e+00> : vector<1024xf32>
    %39 = vector.multi_reduction <add>, %38, %cst_20 [1] : vector<1024x128xf32> to vector<1024xf32>
    %40 = vector.shape_cast %39 : vector<1024xf32> to vector<1024x1xf32>
    %41 = tpu.reciprocal %40 {approx = true} : vector<1024x1xf32> -> vector<1024x1xf32>
    %42 = vector.broadcast %41 : vector<1024x1xf32> to vector<1024x128xf32>
    %43 = arith.mulf %38, %42 : vector<1024x128xf32>
    %44 = arith.truncf %43 : vector<1024x128xf32> to vector<1024x128xbf16>
    %cst_21 = arith.constant dense<0.000000e+00> : vector<1024x64xf32>
    %45 = tpu.matmul %44, %21, %cst_21 {dimension_numbers = #tpu.dot_dimension_numbers<[1], [0], [0], [1], [0, 0, 1, 1], [], []>} : vector<1024x128xbf16>, vector<128x64xbf16>, vector<1024x64xf32> -> vector<1024x64xf32>
    %c0_22 = arith.constant 0 : index
    %c0_23 = arith.constant 0 : index
    %46 = vector.load %arg15[%c0_22, %c0_23] : memref<1024x64xf32, #tpu.memory_space<vmem>>, vector<1024x64xf32>
    %47 = arith.mulf %45, %46 : vector<1024x64xf32>
    %48 = arith.truncf %47 : vector<1024x64xf32> to vector<1024x64xbf16>
    %c0_24 = arith.constant 0 : index
    %c0_25 = arith.constant 0 : index
    %49 = vector.load %arg17[%c0_24, %c0_25] : memref<128x1024xbf16, #tpu.memory_space<vmem>>, vector<128x1024xbf16>
    %cst_26 = arith.constant dense<0.000000e+00> : vector<128x64xf32>
    %50 = tpu.matmul %49, %48, %cst_26 {dimension_numbers = #tpu.dot_dimension_numbers<[1], [0], [0], [1], [0, 0, 1, 1], [], []>} : vector<128x1024xbf16>, vector<1024x64xbf16>, vector<128x64xf32> -> vector<128x64xf32>
    %51 = arith.truncf %50 : vector<128x64xf32> to vector<128x64xbf16>
    %c0_27 = arith.constant 0 : index
    %c0_28 = arith.constant 0 : index
    %52 = vector.load %arg6[%c0_27, %c0_28] : memref<64x64xbf16, #tpu.memory_space<vmem>>, vector<64x64xbf16>
    %cst_29 = arith.constant dense<0.000000e+00> : vector<128x64xf32>
    %53 = tpu.matmul %51, %52, %cst_29 {dimension_numbers = #tpu.dot_dimension_numbers<[1], [0], [0], [1], [0, 0, 1, 1], [], []>} : vector<128x64xbf16>, vector<64x64xbf16>, vector<128x64xf32> -> vector<128x64xf32>
    %54 = vector.extract_strided_slice %4 {offsets = [3, 0], sizes = [1, 64], strides = [1, 1]} : vector<24x64xf32> to vector<1x64xf32>
    %55 = vector.broadcast %54 : vector<1x64xf32> to vector<128x64xf32>
    %56 = arith.addf %53, %55 : vector<128x64xf32>
    %57 = arith.addf %1, %56 : vector<128x64xf32>
    %58 = vector.extract_strided_slice %4 {offsets = [4, 0], sizes = [1, 64], strides = [1, 1]} : vector<24x64xf32> to vector<1x64xf32>
    %59 = vector.extract_strided_slice %4 {offsets = [5, 0], sizes = [1, 64], strides = [1, 1]} : vector<24x64xf32> to vector<1x64xf32>
    %cst_30 = arith.constant dense<0.000000e+00> : vector<128xf32>
    %60 = vector.multi_reduction <add>, %57, %cst_30 [1] : vector<128x64xf32> to vector<128xf32>
    %61 = vector.shape_cast %60 : vector<128xf32> to vector<128x1xf32>
    %cst_31 = arith.constant 6.400000e+01 : f32
    %62 = vector.broadcast %cst_31 : f32 to vector<128x1xf32>
    %63 = arith.divf %61, %62 : vector<128x1xf32>
    %64 = vector.broadcast %63 : vector<128x1xf32> to vector<128x64xf32>
    %65 = arith.subf %57, %64 : vector<128x64xf32>
    %66 = arith.mulf %65, %65 : vector<128x64xf32>
    %cst_32 = arith.constant dense<0.000000e+00> : vector<128xf32>
    %67 = vector.multi_reduction <add>, %66, %cst_32 [1] : vector<128x64xf32> to vector<128xf32>
    %68 = vector.shape_cast %67 : vector<128xf32> to vector<128x1xf32>
    %cst_33 = arith.constant 6.400000e+01 : f32
    %69 = vector.broadcast %cst_33 : f32 to vector<128x1xf32>
    %70 = arith.divf %68, %69 : vector<128x1xf32>
    %cst_34 = arith.constant 9.99999974E-6 : f32
    %71 = vector.broadcast %cst_34 : f32 to vector<128x1xf32>
    %72 = arith.addf %70, %71 : vector<128x1xf32>
    %73 = math.rsqrt %72 : vector<128x1xf32>
    %74 = vector.broadcast %73 : vector<128x1xf32> to vector<128x64xf32>
    %75 = arith.mulf %65, %74 : vector<128x64xf32>
    %76 = vector.broadcast %58 : vector<1x64xf32> to vector<128x64xf32>
    %77 = arith.mulf %75, %76 : vector<128x64xf32>
    %78 = vector.broadcast %59 : vector<1x64xf32> to vector<128x64xf32>
    %79 = arith.addf %77, %78 : vector<128x64xf32>
    %80 = arith.truncf %79 : vector<128x64xf32> to vector<128x64xbf16>
    %c0_35 = arith.constant 0 : index
    %c0_36 = arith.constant 0 : index
    %81 = vector.load %arg7[%c0_35, %c0_36] : memref<64x256xbf16, #tpu.memory_space<vmem>>, vector<64x256xbf16>
    %cst_37 = arith.constant dense<0.000000e+00> : vector<128x256xf32>
    %82 = tpu.matmul %80, %81, %cst_37 {dimension_numbers = #tpu.dot_dimension_numbers<[1], [0], [0], [1], [0, 0, 1, 1], [], []>} : vector<128x64xbf16>, vector<64x256xbf16>, vector<128x256xf32> -> vector<128x256xf32>
    %c0_38 = arith.constant 0 : index
    %c0_39 = arith.constant 0 : index
    %83 = vector.load %arg8[%c0_38, %c0_39] : memref<1x256xf32, #tpu.memory_space<vmem>>, vector<1x256xf32>
    %84 = vector.broadcast %83 : vector<1x256xf32> to vector<128x256xf32>
    %85 = arith.addf %82, %84 : vector<128x256xf32>
    %cst_40 = arith.constant 5.000000e-01 : f32
    %86 = vector.broadcast %cst_40 : f32 to vector<128x256xf32>
    %87 = arith.mulf %86, %85 : vector<128x256xf32>
    %cst_41 = arith.constant 0.707106769 : f32
    %88 = vector.broadcast %cst_41 : f32 to vector<128x256xf32>
    %89 = arith.mulf %85, %88 : vector<128x256xf32>
    %90 = math.absf %89 : vector<128x256xf32>
    %cst_42 = arith.constant 0.327591091 : f32
    %91 = vector.broadcast %cst_42 : f32 to vector<128x256xf32>
    %92 = arith.mulf %91, %90 : vector<128x256xf32>
    %cst_43 = arith.constant 1.000000e+00 : f32
    %93 = vector.broadcast %cst_43 : f32 to vector<128x256xf32>
    %94 = arith.addf %93, %92 : vector<128x256xf32>
    %cst_44 = arith.constant 1.000000e+00 : f32
    %95 = vector.broadcast %cst_44 : f32 to vector<128x256xf32>
    %96 = arith.divf %95, %94 : vector<128x256xf32>
    %cst_45 = arith.constant 1.06140542 : f32
    %97 = vector.broadcast %cst_45 : f32 to vector<128x256xf32>
    %98 = arith.mulf %97, %96 : vector<128x256xf32>
    %cst_46 = arith.constant 1.45315206 : f32
    %99 = vector.broadcast %cst_46 : f32 to vector<128x256xf32>
    %100 = arith.subf %98, %99 : vector<128x256xf32>
    %101 = arith.mulf %100, %96 : vector<128x256xf32>
    %cst_47 = arith.constant 1.42141378 : f32
    %102 = vector.broadcast %cst_47 : f32 to vector<128x256xf32>
    %103 = arith.addf %101, %102 : vector<128x256xf32>
    %104 = arith.mulf %103, %96 : vector<128x256xf32>
    %cst_48 = arith.constant 0.284496725 : f32
    %105 = vector.broadcast %cst_48 : f32 to vector<128x256xf32>
    %106 = arith.subf %104, %105 : vector<128x256xf32>
    %107 = arith.mulf %106, %96 : vector<128x256xf32>
    %cst_49 = arith.constant 0.254829586 : f32
    %108 = vector.broadcast %cst_49 : f32 to vector<128x256xf32>
    %109 = arith.addf %107, %108 : vector<128x256xf32>
    %110 = arith.mulf %109, %96 : vector<128x256xf32>
    %cst_50 = arith.constant 0.000000e+00 : f32
    %111 = vector.broadcast %cst_50 : f32 to vector<128x256xf32>
    %112 = arith.subf %111, %89 : vector<128x256xf32>
    %113 = arith.mulf %112, %89 : vector<128x256xf32>
    %114 = math.exp %113 : vector<128x256xf32>
    %115 = arith.mulf %110, %114 : vector<128x256xf32>
    %cst_51 = arith.constant 1.000000e+00 : f32
    %116 = vector.broadcast %cst_51 : f32 to vector<128x256xf32>
    %117 = arith.subf %116, %115 : vector<128x256xf32>
    %cst_52 = arith.constant 0.000000e+00 : f32
    %118 = vector.broadcast %cst_52 : f32 to vector<128x256xf32>
    %119 = arith.cmpf oge, %89, %118 : vector<128x256xf32>
    %cst_53 = arith.constant 0.000000e+00 : f32
    %120 = vector.broadcast %cst_53 : f32 to vector<128x256xf32>
    %121 = arith.subf %120, %117 : vector<128x256xf32>
    %122 = arith.select %119, %117, %121 : vector<128x256xi1>, vector<128x256xf32>
    %cst_54 = arith.constant 1.000000e+00 : f32
    %123 = vector.broadcast %cst_54 : f32 to vector<128x256xf32>
    %124 = arith.addf %123, %122 : vector<128x256xf32>
    %125 = arith.mulf %87, %124 : vector<128x256xf32>
    %126 = arith.truncf %125 : vector<128x256xf32> to vector<128x256xbf16>
    %c0_55 = arith.constant 0 : index
    %c0_56 = arith.constant 0 : index
    %127 = vector.load %arg9[%c0_55, %c0_56] : memref<256x64xbf16, #tpu.memory_space<vmem>>, vector<256x64xbf16>
    %cst_57 = arith.constant dense<0.000000e+00> : vector<128x64xf32>
    %128 = tpu.matmul %126, %127, %cst_57 {dimension_numbers = #tpu.dot_dimension_numbers<[1], [0], [0], [1], [0, 0, 1, 1], [], []>} : vector<128x256xbf16>, vector<256x64xbf16>, vector<128x64xf32> -> vector<128x64xf32>
    %129 = vector.extract_strided_slice %4 {offsets = [8, 0], sizes = [1, 64], strides = [1, 1]} : vector<24x64xf32> to vector<1x64xf32>
    %130 = vector.broadcast %129 : vector<1x64xf32> to vector<128x64xf32>
    %131 = arith.addf %128, %130 : vector<128x64xf32>
    %132 = arith.addf %79, %131 : vector<128x64xf32>
    %133 = vector.extract_strided_slice %4 {offsets = [6, 0], sizes = [1, 64], strides = [1, 1]} : vector<24x64xf32> to vector<1x64xf32>
    %134 = vector.extract_strided_slice %4 {offsets = [7, 0], sizes = [1, 64], strides = [1, 1]} : vector<24x64xf32> to vector<1x64xf32>
    %cst_58 = arith.constant dense<0.000000e+00> : vector<128xf32>
    %135 = vector.multi_reduction <add>, %132, %cst_58 [1] : vector<128x64xf32> to vector<128xf32>
    %136 = vector.shape_cast %135 : vector<128xf32> to vector<128x1xf32>
    %cst_59 = arith.constant 6.400000e+01 : f32
    %137 = vector.broadcast %cst_59 : f32 to vector<128x1xf32>
    %138 = arith.divf %136, %137 : vector<128x1xf32>
    %139 = vector.broadcast %138 : vector<128x1xf32> to vector<128x64xf32>
    %140 = arith.subf %132, %139 : vector<128x64xf32>
    %141 = arith.mulf %140, %140 : vector<128x64xf32>
    %cst_60 = arith.constant dense<0.000000e+00> : vector<128xf32>
    %142 = vector.multi_reduction <add>, %141, %cst_60 [1] : vector<128x64xf32> to vector<128xf32>
    %143 = vector.shape_cast %142 : vector<128xf32> to vector<128x1xf32>
    %cst_61 = arith.constant 6.400000e+01 : f32
    %144 = vector.broadcast %cst_61 : f32 to vector<128x1xf32>
    %145 = arith.divf %143, %144 : vector<128x1xf32>
    %cst_62 = arith.constant 9.99999974E-6 : f32
    %146 = vector.broadcast %cst_62 : f32 to vector<128x1xf32>
    %147 = arith.addf %145, %146 : vector<128x1xf32>
    %148 = math.rsqrt %147 : vector<128x1xf32>
    %149 = vector.broadcast %148 : vector<128x1xf32> to vector<128x64xf32>
    %150 = arith.mulf %140, %149 : vector<128x64xf32>
    %151 = vector.broadcast %133 : vector<1x64xf32> to vector<128x64xf32>
    %152 = arith.mulf %150, %151 : vector<128x64xf32>
    %153 = vector.broadcast %134 : vector<1x64xf32> to vector<128x64xf32>
    %154 = arith.addf %152, %153 : vector<128x64xf32>
    %155 = vector.extract_strided_slice %4 {offsets = [9, 0], sizes = [1, 64], strides = [1, 1]} : vector<24x64xf32> to vector<1x64xf32>
    %156 = vector.extract_strided_slice %4 {offsets = [10, 0], sizes = [1, 64], strides = [1, 1]} : vector<24x64xf32> to vector<1x64xf32>
    %157 = vector.extract_strided_slice %4 {offsets = [11, 0], sizes = [1, 64], strides = [1, 1]} : vector<24x64xf32> to vector<1x64xf32>
    %cst_63 = arith.constant dense<0.000000e+00> : vector<1xf32>
    %158 = vector.multi_reduction <add>, %155, %cst_63 [1] : vector<1x64xf32> to vector<1xf32>
    %159 = vector.shape_cast %158 : vector<1xf32> to vector<1x1xf32>
    %cst_64 = arith.constant 6.400000e+01 : f32
    %160 = vector.broadcast %cst_64 : f32 to vector<1x1xf32>
    %161 = arith.divf %159, %160 : vector<1x1xf32>
    %162 = vector.broadcast %161 : vector<1x1xf32> to vector<1x64xf32>
    %163 = arith.subf %155, %162 : vector<1x64xf32>
    %164 = arith.mulf %163, %163 : vector<1x64xf32>
    %cst_65 = arith.constant dense<0.000000e+00> : vector<1xf32>
    %165 = vector.multi_reduction <add>, %164, %cst_65 [1] : vector<1x64xf32> to vector<1xf32>
    %166 = vector.shape_cast %165 : vector<1xf32> to vector<1x1xf32>
    %cst_66 = arith.constant 6.400000e+01 : f32
    %167 = vector.broadcast %cst_66 : f32 to vector<1x1xf32>
    %168 = arith.divf %166, %167 : vector<1x1xf32>
    %cst_67 = arith.constant 9.99999997E-7 : f32
    %169 = vector.broadcast %cst_67 : f32 to vector<1x1xf32>
    %170 = arith.addf %168, %169 : vector<1x1xf32>
    %171 = math.rsqrt %170 : vector<1x1xf32>
    %172 = vector.broadcast %171 : vector<1x1xf32> to vector<1x64xf32>
    %173 = arith.mulf %163, %172 : vector<1x64xf32>
    %174 = arith.mulf %173, %156 : vector<1x64xf32>
    %175 = arith.addf %174, %157 : vector<1x64xf32>
    %176 = vector.extract_strided_slice %4 {offsets = [12, 0], sizes = [1, 64], strides = [1, 1]} : vector<24x64xf32> to vector<1x64xf32>
    %177 = vector.extract_strided_slice %4 {offsets = [13, 0], sizes = [1, 64], strides = [1, 1]} : vector<24x64xf32> to vector<1x64xf32>
    %cst_68 = arith.constant dense<0.000000e+00> : vector<128xf32>
    %178 = vector.multi_reduction <add>, %154, %cst_68 [1] : vector<128x64xf32> to vector<128xf32>
    %179 = vector.shape_cast %178 : vector<128xf32> to vector<128x1xf32>
    %cst_69 = arith.constant 6.400000e+01 : f32
    %180 = vector.broadcast %cst_69 : f32 to vector<128x1xf32>
    %181 = arith.divf %179, %180 : vector<128x1xf32>
    %182 = vector.broadcast %181 : vector<128x1xf32> to vector<128x64xf32>
    %183 = arith.subf %154, %182 : vector<128x64xf32>
    %184 = arith.mulf %183, %183 : vector<128x64xf32>
    %cst_70 = arith.constant dense<0.000000e+00> : vector<128xf32>
    %185 = vector.multi_reduction <add>, %184, %cst_70 [1] : vector<128x64xf32> to vector<128xf32>
    %186 = vector.shape_cast %185 : vector<128xf32> to vector<128x1xf32>
    %cst_71 = arith.constant 6.400000e+01 : f32
    %187 = vector.broadcast %cst_71 : f32 to vector<128x1xf32>
    %188 = arith.divf %186, %187 : vector<128x1xf32>
    %cst_72 = arith.constant 9.99999997E-7 : f32
    %189 = vector.broadcast %cst_72 : f32 to vector<128x1xf32>
    %190 = arith.addf %188, %189 : vector<128x1xf32>
    %191 = math.rsqrt %190 : vector<128x1xf32>
    %192 = vector.broadcast %191 : vector<128x1xf32> to vector<128x64xf32>
    %193 = arith.mulf %183, %192 : vector<128x64xf32>
    %194 = vector.broadcast %176 : vector<1x64xf32> to vector<128x64xf32>
    %195 = arith.mulf %193, %194 : vector<128x64xf32>
    %196 = vector.broadcast %177 : vector<1x64xf32> to vector<128x64xf32>
    %197 = arith.addf %195, %196 : vector<128x64xf32>
    %198 = arith.truncf %197 : vector<128x64xf32> to vector<128x64xbf16>
    %199 = arith.truncf %175 : vector<1x64xf32> to vector<1x64xbf16>
    %c0_73 = arith.constant 0 : index
    %c0_74 = arith.constant 0 : index
    %200 = vector.load %arg10[%c0_73, %c0_74] : memref<64x64xbf16, #tpu.memory_space<vmem>>, vector<64x64xbf16>
    %cst_75 = arith.constant dense<0.000000e+00> : vector<1x64xf32>
    %201 = tpu.matmul %199, %200, %cst_75 {dimension_numbers = #tpu.dot_dimension_numbers<[1], [0], [0], [1], [0, 0, 1, 1], [], []>} : vector<1x64xbf16>, vector<64x64xbf16>, vector<1x64xf32> -> vector<1x64xf32>
    %202 = vector.extract_strided_slice %4 {offsets = [14, 0], sizes = [1, 64], strides = [1, 1]} : vector<24x64xf32> to vector<1x64xf32>
    %203 = arith.addf %201, %202 : vector<1x64xf32>
    %c0_76 = arith.constant 0 : index
    %c0_77 = arith.constant 0 : index
    %204 = vector.load %arg11[%c0_76, %c0_77] : memref<64x64xbf16, #tpu.memory_space<vmem>>, vector<64x64xbf16>
    %cst_78 = arith.constant dense<0.000000e+00> : vector<128x64xf32>
    %205 = tpu.matmul %198, %204, %cst_78 {dimension_numbers = #tpu.dot_dimension_numbers<[1], [0], [0], [1], [0, 0, 1, 1], [], []>} : vector<128x64xbf16>, vector<64x64xbf16>, vector<128x64xf32> -> vector<128x64xf32>
    %206 = vector.extract_strided_slice %4 {offsets = [15, 0], sizes = [1, 64], strides = [1, 1]} : vector<24x64xf32> to vector<1x64xf32>
    %207 = vector.broadcast %206 : vector<1x64xf32> to vector<128x64xf32>
    %208 = arith.addf %205, %207 : vector<128x64xf32>
    %209 = arith.truncf %208 : vector<128x64xf32> to vector<128x64xbf16>
    %c0_79 = arith.constant 0 : index
    %c0_80 = arith.constant 0 : index
    %210 = vector.load %arg12[%c0_79, %c0_80] : memref<64x64xbf16, #tpu.memory_space<vmem>>, vector<64x64xbf16>
    %cst_81 = arith.constant dense<0.000000e+00> : vector<128x64xf32>
    %211 = tpu.matmul %198, %210, %cst_81 {dimension_numbers = #tpu.dot_dimension_numbers<[1], [0], [0], [1], [0, 0, 1, 1], [], []>} : vector<128x64xbf16>, vector<64x64xbf16>, vector<128x64xf32> -> vector<128x64xf32>
    %212 = vector.extract_strided_slice %4 {offsets = [16, 0], sizes = [1, 64], strides = [1, 1]} : vector<24x64xf32> to vector<1x64xf32>
    %213 = vector.broadcast %212 : vector<1x64xf32> to vector<128x64xf32>
    %214 = arith.addf %211, %213 : vector<128x64xf32>
    %215 = arith.truncf %214 : vector<128x64xf32> to vector<128x64xbf16>
    %216 = vector.shape_cast %203 : vector<1x64xf32> to vector<1x64xf32>
    %217 = vector.broadcast %216 : vector<1x64xf32> to vector<64x64xf32>
    %c0_82 = arith.constant 0 : index
    %c0_83 = arith.constant 0 : index
    %218 = vector.load %arg18[%c0_82, %c0_83] : memref<64x64xf32, #tpu.memory_space<vmem>>, vector<64x64xf32>
    %219 = arith.mulf %217, %218 : vector<64x64xf32>
    %220 = arith.truncf %219 : vector<64x64xf32> to vector<64x64xbf16>
    %cst_84 = arith.constant dense<0.000000e+00> : vector<64x128xf32>
    %221 = tpu.matmul %220, %209, %cst_84 {dimension_numbers = #tpu.dot_dimension_numbers<[1], [1], [0], [0], [0, 0, 1, 0], [], []>} : vector<64x64xbf16>, vector<128x64xbf16>, vector<64x128xf32> -> vector<64x128xf32>
    %c0_85 = arith.constant 0 : index
    %c0_86 = arith.constant 0 : index
    %222 = vector.load %arg19[%c0_85, %c0_86] : memref<64x128xf32, #tpu.memory_space<vmem>>, vector<64x128xf32>
    %223 = arith.addf %221, %222 : vector<64x128xf32>
    %224 = vector.broadcast %3 : vector<1x128xf32> to vector<64x128xf32>
    %225 = arith.addf %223, %224 : vector<64x128xf32>
    %cst_87 = arith.constant dense<0xFF800000> : vector<64xf32>
    %226 = vector.multi_reduction <maximumf>, %225, %cst_87 [1] : vector<64x128xf32> to vector<64xf32>
    %227 = vector.shape_cast %226 : vector<64xf32> to vector<64x1xf32>
    %228 = vector.broadcast %227 : vector<64x1xf32> to vector<64x128xf32>
    %229 = arith.subf %225, %228 : vector<64x128xf32>
    %230 = math.exp %229 : vector<64x128xf32>
    %cst_88 = arith.constant dense<0.000000e+00> : vector<64xf32>
    %231 = vector.multi_reduction <add>, %230, %cst_88 [1] : vector<64x128xf32> to vector<64xf32>
    %232 = vector.shape_cast %231 : vector<64xf32> to vector<64x1xf32>
    %233 = tpu.reciprocal %232 {approx = true} : vector<64x1xf32> -> vector<64x1xf32>
    %234 = vector.broadcast %233 : vector<64x1xf32> to vector<64x128xf32>
    %235 = arith.mulf %230, %234 : vector<64x128xf32>
    %236 = arith.truncf %235 : vector<64x128xf32> to vector<64x128xbf16>
    %cst_89 = arith.constant dense<0.000000e+00> : vector<64x64xf32>
    %237 = tpu.matmul %236, %215, %cst_89 {dimension_numbers = #tpu.dot_dimension_numbers<[1], [0], [0], [1], [0, 0, 1, 1], [], []>} : vector<64x128xbf16>, vector<128x64xbf16>, vector<64x64xf32> -> vector<64x64xf32>
    %c0_90 = arith.constant 0 : index
    %c0_91 = arith.constant 0 : index
    %238 = vector.load %arg18[%c0_90, %c0_91] : memref<64x64xf32, #tpu.memory_space<vmem>>, vector<64x64xf32>
    %239 = arith.mulf %237, %238 : vector<64x64xf32>
    %240 = arith.truncf %239 : vector<64x64xf32> to vector<64x64xbf16>
    %c0_92 = arith.constant 0 : index
    %c0_93 = arith.constant 0 : index
    %241 = vector.load %arg20[%c0_92, %c0_93] : memref<8x64xbf16, #tpu.memory_space<vmem>>, vector<8x64xbf16>
    %cst_94 = arith.constant dense<0.000000e+00> : vector<8x64xf32>
    %242 = tpu.matmul %241, %240, %cst_94 {dimension_numbers = #tpu.dot_dimension_numbers<[1], [0], [0], [1], [0, 0, 1, 1], [], []>} : vector<8x64xbf16>, vector<64x64xbf16>, vector<8x64xf32> -> vector<8x64xf32>
    %243 = arith.truncf %242 : vector<8x64xf32> to vector<8x64xbf16>
    %c0_95 = arith.constant 0 : index
    %c0_96 = arith.constant 0 : index
    %244 = vector.load %arg13[%c0_95, %c0_96] : memref<64x64xbf16, #tpu.memory_space<vmem>>, vector<64x64xbf16>
    %cst_97 = arith.constant dense<0.000000e+00> : vector<8x64xf32>
    %245 = tpu.matmul %243, %244, %cst_97 {dimension_numbers = #tpu.dot_dimension_numbers<[1], [0], [0], [1], [0, 0, 1, 1], [], []>} : vector<8x64xbf16>, vector<64x64xbf16>, vector<8x64xf32> -> vector<8x64xf32>
    %246 = vector.extract_strided_slice %4 {offsets = [17, 0], sizes = [1, 64], strides = [1, 1]} : vector<24x64xf32> to vector<1x64xf32>
    %247 = vector.broadcast %246 : vector<1x64xf32> to vector<8x64xf32>
    %248 = arith.addf %245, %247 : vector<8x64xf32>
    %249 = vector.extract_strided_slice %4 {offsets = [18, 0], sizes = [1, 64], strides = [1, 1]} : vector<24x64xf32> to vector<1x64xf32>
    %250 = vector.extract_strided_slice %4 {offsets = [19, 0], sizes = [1, 64], strides = [1, 1]} : vector<24x64xf32> to vector<1x64xf32>
    %cst_98 = arith.constant dense<0.000000e+00> : vector<8xf32>
    %251 = vector.multi_reduction <add>, %248, %cst_98 [1] : vector<8x64xf32> to vector<8xf32>
    %252 = vector.shape_cast %251 : vector<8xf32> to vector<8x1xf32>
    %cst_99 = arith.constant 6.400000e+01 : f32
    %253 = vector.broadcast %cst_99 : f32 to vector<8x1xf32>
    %254 = arith.divf %252, %253 : vector<8x1xf32>
    %255 = vector.broadcast %254 : vector<8x1xf32> to vector<8x64xf32>
    %256 = arith.subf %248, %255 : vector<8x64xf32>
    %257 = arith.mulf %256, %256 : vector<8x64xf32>
    %cst_100 = arith.constant dense<0.000000e+00> : vector<8xf32>
    %258 = vector.multi_reduction <add>, %257, %cst_100 [1] : vector<8x64xf32> to vector<8xf32>
    %259 = vector.shape_cast %258 : vector<8xf32> to vector<8x1xf32>
    %cst_101 = arith.constant 6.400000e+01 : f32
    %260 = vector.broadcast %cst_101 : f32 to vector<8x1xf32>
    %261 = arith.divf %259, %260 : vector<8x1xf32>
    %cst_102 = arith.constant 9.99999997E-7 : f32
    %262 = vector.broadcast %cst_102 : f32 to vector<8x1xf32>
    %263 = arith.addf %261, %262 : vector<8x1xf32>
    %264 = math.rsqrt %263 : vector<8x1xf32>
    %265 = vector.broadcast %264 : vector<8x1xf32> to vector<8x64xf32>
    %266 = arith.mulf %256, %265 : vector<8x64xf32>
    %267 = vector.broadcast %249 : vector<1x64xf32> to vector<8x64xf32>
    %268 = arith.mulf %266, %267 : vector<8x64xf32>
    %269 = vector.broadcast %250 : vector<1x64xf32> to vector<8x64xf32>
    %270 = arith.addf %268, %269 : vector<8x64xf32>
    %c0_103 = arith.constant 0 : index
    %c0_104 = arith.constant 0 : index
    %271 = vector.load %arg21[%c0_103, %c0_104] : memref<8x64xf32, #tpu.memory_space<vmem>>, vector<8x64xf32>
    tpu.vector_store %arg21[%c0_103, %c0_104], %270 {strides = array<i32>} : memref<8x64xf32, #tpu.memory_space<vmem>>, vector<8x64xf32>,
    return
  }
  func.func @transform_0(%arg0: i32) -> (i32, i32) {
    %c0_i32 = arith.constant 0 : i32
    %c0_i32_0 = arith.constant 0 : i32
    return %arg0, %c0_i32 : i32, i32
  }
  func.func @transform_1(%arg0: i32) -> (i32, i32, i32) {
    %c0_i32 = arith.constant 0 : i32
    %c0_i32_0 = arith.constant 0 : i32
    %c0_i32_1 = arith.constant 0 : i32
    return %arg0, %c0_i32, %c0_i32_0 : i32, i32, i32
  }
  func.func @transform_2(%arg0: i32) -> (i32, i32) {
    %c0_i32 = arith.constant 0 : i32
    %c0_i32_0 = arith.constant 0 : i32
    %c0_i32_1 = arith.constant 0 : i32
    return %c0_i32, %c0_i32_0 : i32, i32
  }
  func.func @transform_3(%arg0: i32) -> (i32, i32) {
    %c0_i32 = arith.constant 0 : i32
    %c0_i32_0 = arith.constant 0 : i32
    %c0_i32_1 = arith.constant 0 : i32
    return %c0_i32, %c0_i32_0 : i32, i32
  }
  func.func @transform_4(%arg0: i32) -> (i32, i32) {
    %c0_i32 = arith.constant 0 : i32
    %c0_i32_0 = arith.constant 0 : i32
    %c0_i32_1 = arith.constant 0 : i32
    return %c0_i32, %c0_i32_0 : i32, i32
  }
  func.func @transform_5(%arg0: i32) -> (i32, i32) {
    %c0_i32 = arith.constant 0 : i32
    %c0_i32_0 = arith.constant 0 : i32
    %c0_i32_1 = arith.constant 0 : i32
    return %c0_i32, %c0_i32_0 : i32, i32
  }
  func.func @transform_6(%arg0: i32) -> (i32, i32) {
    %c0_i32 = arith.constant 0 : i32
    %c0_i32_0 = arith.constant 0 : i32
    %c0_i32_1 = arith.constant 0 : i32
    return %c0_i32, %c0_i32_0 : i32, i32
  }
  func.func @transform_7(%arg0: i32) -> (i32, i32) {
    %c0_i32 = arith.constant 0 : i32
    %c0_i32_0 = arith.constant 0 : i32
    %c0_i32_1 = arith.constant 0 : i32
    return %c0_i32, %c0_i32_0 : i32, i32
  }
  func.func @transform_8(%arg0: i32) -> (i32, i32) {
    %c0_i32 = arith.constant 0 : i32
    %c0_i32_0 = arith.constant 0 : i32
    %c0_i32_1 = arith.constant 0 : i32
    return %c0_i32, %c0_i32_0 : i32, i32
  }
  func.func @transform_9(%arg0: i32) -> (i32, i32) {
    %c0_i32 = arith.constant 0 : i32
    %c0_i32_0 = arith.constant 0 : i32
    %c0_i32_1 = arith.constant 0 : i32
    return %c0_i32, %c0_i32_0 : i32, i32
  }
  func.func @transform_10(%arg0: i32) -> (i32, i32) {
    %c0_i32 = arith.constant 0 : i32
    %c0_i32_0 = arith.constant 0 : i32
    %c0_i32_1 = arith.constant 0 : i32
    return %c0_i32, %c0_i32_0 : i32, i32
  }
  func.func @transform_11(%arg0: i32) -> (i32, i32) {
    %c0_i32 = arith.constant 0 : i32
    %c0_i32_0 = arith.constant 0 : i32
    %c0_i32_1 = arith.constant 0 : i32
    return %c0_i32, %c0_i32_0 : i32, i32
  }
  func.func @transform_12(%arg0: i32) -> (i32, i32) {
    %c0_i32 = arith.constant 0 : i32
    %c0_i32_0 = arith.constant 0 : i32
    %c0_i32_1 = arith.constant 0 : i32
    return %c0_i32, %c0_i32_0 : i32, i32
  }
  func.func @transform_13(%arg0: i32) -> (i32, i32) {
    %c0_i32 = arith.constant 0 : i32
    %c0_i32_0 = arith.constant 0 : i32
    %c0_i32_1 = arith.constant 0 : i32
    return %c0_i32, %c0_i32_0 : i32, i32
  }
  func.func @transform_14(%arg0: i32) -> (i32, i32) {
    %c0_i32 = arith.constant 0 : i32
    %c0_i32_0 = arith.constant 0 : i32
    %c0_i32_1 = arith.constant 0 : i32
    return %c0_i32, %c0_i32_0 : i32, i32
  }
  func.func @transform_15(%arg0: i32) -> (i32, i32) {
    %c0_i32 = arith.constant 0 : i32
    %c0_i32_0 = arith.constant 0 : i32
    %c0_i32_1 = arith.constant 0 : i32
    return %c0_i32, %c0_i32_0 : i32, i32
  }
  func.func @transform_16(%arg0: i32) -> (i32, i32) {
    %c0_i32 = arith.constant 0 : i32
    %c0_i32_0 = arith.constant 0 : i32
    %c0_i32_1 = arith.constant 0 : i32
    return %c0_i32, %c0_i32_0 : i32, i32
  }
  func.func @transform_17(%arg0: i32) -> (i32, i32) {
    %c0_i32 = arith.constant 0 : i32
    %c0_i32_0 = arith.constant 0 : i32
    %c0_i32_1 = arith.constant 0 : i32
    return %c0_i32, %c0_i32_0 : i32, i32
  }
  func.func @transform_18(%arg0: i32) -> (i32, i32) {
    %c0_i32 = arith.constant 0 : i32
    %c0_i32_0 = arith.constant 0 : i32
    %c0_i32_1 = arith.constant 0 : i32
    return %c0_i32, %c0_i32_0 : i32, i32
  }
  func.func @transform_19(%arg0: i32) -> (i32, i32) {
    %c0_i32 = arith.constant 0 : i32
    %c0_i32_0 = arith.constant 0 : i32
    %c0_i32_1 = arith.constant 0 : i32
    return %c0_i32, %c0_i32_0 : i32, i32
  }
  func.func @transform_20(%arg0: i32) -> (i32, i32) {
    %c0_i32 = arith.constant 0 : i32
    %c0_i32_0 = arith.constant 0 : i32
    return %arg0, %c0_i32 : i32, i32
  }
}

</mosaic_0001>

<bundles_post_ra>
// kernel: _encode_padded.1
= control target key start
LH: loop header
LB: loop body
LE: loop exit
PB: predicated region body
PF: predicated region fallthrough
CT: control target
= control target key end

     0   :  { %s17415_s0 = inlined_call_operand.vmem [shape: bf16[256,64], index: 0, kind: input, shape index: {}]   ;;  %s17416_s1 = inlined_call_operand.vmem [shape: f32[2,1,128], index: 1, kind: input, shape index: {}]   ;;  %s17417_s2 = inlined_call_operand.vmem [shape: bf16[64,64], index: 2, kind: input, shape index: {}]   ;;  %s17418_s3 = inlined_call_operand.vmem [shape: bf16[64,64], index: 3, kind: input, shape index: {}]   ;;  %s17419_s4 = inlined_call_operand.vmem [shape: bf16[64,64], index: 4, kind: input, shape index: {}]   ;;  %s17420_s5 = inlined_call_operand.vmem [shape: bf16[64,64], index: 5, kind: input, shape index: {}]   ;;  %s17421_s6 = inlined_call_operand.vmem [shape: bf16[64,256], index: 6, kind: input, shape index: {}]   ;;  %s17422_s7 = inlined_call_operand.vmem [shape: f32[1,256], index: 7, kind: input, shape index: {}]   ;;  %s17423_s8 = inlined_call_operand.vmem [shape: bf16[256,64], index: 8, kind: input, shape index: {}]   ;;  %s17424_s9 = inlined_call_operand.vmem [shape: bf16[64,64], index: 9, kind: input, shape index: {}]   ;;  %s17425_s10 = inlined_call_operand.vmem [shape: bf16[64,64], index: 10, kind: input, shape index: {}]   ;;  %s17426_s11 = inlined_call_operand.vmem [shape: bf16[64,64], index: 11, kind: input, shape index: {}]   ;;  %s17427_s12 = inlined_call_operand.vmem [shape: bf16[64,64], index: 12, kind: input, shape index: {}]   ;;  %s17428_s13 = inlined_call_operand.vmem [shape: f32[24,64], index: 13, kind: input, shape index: {}]   ;;  %s17429_s14 = inlined_call_operand.vmem [shape: f32[1024,64], index: 14, kind: input, shape index: {}]   ;;  %s17430_s15 = inlined_call_operand.vmem [shape: f32[1024,128], index: 15, kind: input, shape index: {}]   ;;  %s17431_s16 = inlined_call_operand.vmem [shape: bf16[128,1024], index: 16, kind: input, shape index: {}]   ;;  %s17432_s17 = inlined_call_operand.vmem [shape: f32[64,64], index: 17, kind: input, shape index: {}]   ;;  %s17433_s18 = inlined_call_operand.vmem [shape: f32[64,128], index: 18, kind: input, shape index: {}]   ;;  %s17434_s19 = inlined_call_operand.vmem [shape: bf16[8,64], index: 19, kind: input, shape index: {}]   ;;  %s17435_s20 = inlined_call_operand.hbm [shape: f32[16,64], index: 20, kind: output, shape index: {}]  }
   0x1   :  { %17516 = sst [smem:[#allocation61_spill]] %s17415_s0 }
   0x2   :  { %17517 = sst [smem:[#allocation62_spill]] %s17416_s1 }
   0x3   :  { %17518 = sst [smem:[#allocation63_spill]] %s17417_s2 }
   0x4   :  { %17519 = sst [smem:[#allocation64_spill]] %s17418_s3 }
   0x5   :  { %17520 = sst [smem:[#allocation65_spill]] %s17419_s4 }
   0x6   :  { %17521 = sst [smem:[#allocation66_spill]] %s17420_s5 }
   0x7   :  { %17522 = sst [smem:[#allocation67_spill]] %s17421_s6 }
   0x8   :  { %25 = vsyncpa [#allocation3], 0 }
   0x9   :  { %27 = vsyncpa [#allocation3 + $0x1], 0  ;;  %s10327_s1 = smov 0   ;;  %s10329_s22 = smov 0  }
   0xa   :  { %s10331_s23 = smov 0   ;;  %s10333_s24 = smov 0  }
   0xb LB: > { %17523 = sst [smem:[#allocation5_spill]] %s10207_s1  ;;  %s10348_s2 = sadd.s32 4294967295, %s10219_s24   ;;  %s10219_s24 = sphi %s10333_s24, %s17860_s24   ;;  %s10215_s23 = sphi %s10331_s23, %s17862_s23   ;;  %s10211_s22 = sphi %s10329_s22, %s17864_s22   ;;  %s10207_s1 = sphi %s10327_s1, %s17863_s1  }
   0xc   : > { %17524 = sst [smem:[#allocation6_spill]] %s10215_s23  ;;  %s8356_s25 = sadd.s32 4294967294, %s10219_s24  }
   0xd   : > { %17525 = sst [smem:[#allocation7_spill]] %s10219_s24  ;;  %s10352_s3 = sadd.s32 1, %s10219_s24  }
   0xe   : > { %17526 = sst [smem:[#allocation8_spill]] %s10352_s3  ;;  %s470_s26 = sadd.s32 1, %s10215_s23 }
   0xf   : > { %s467_s27 = ssub.s32 %s10219_s24, %s10352_s3  ;;  %p480_p0 = scmp.ne.s32.totalorder %s10215_s23, %s10211_s22 }
  0x10   : > { %p468_p1 = scmp.eq.s32.totalorder %s467_s27, 0  ;;  %p481_p2 = scmp.eq.s32.totalorder %s10348_s2, 1 }
  0x11   : > { %p486_p3 = scmp.ne.s32.totalorder %s10211_s22, %s10207_s1  ;;  %p487_p4 = scmp.eq.s32.totalorder %s8356_s25, 1 }
  0x12   : > { %s10363_s28 = scalar_select %p468_p1, %s10215_s23, %s470_s26  }
  0x13   : > { %p10365_p5 = por %p481_p2, %p480_p0  ;;  %p10369_p6 = por %p487_p4, %p486_p3 }
  0x14   : > { %17527 = sst [smem:[#allocation9_spill]] %s10363_s28  ;;  %p8359_p7 = scmp.ge.s32.totalorder %s10219_s24, 1 }
  0x15   : > { %s17528_s4 = scalar_select %p10365_p5, 1, 0 }
  0x16   : > { %s17530_s29 = scalar_select %p10369_p6, 1, 0 }
  0x17   : > { %17529 = sst [smem:[#allocation10_spill]] %s17528_s4  ;;  %p574_p8 = scmp.lt.s32.totalorder %s10219_s24, 3 }
  0x18   : > { %17531 = sst [smem:[#allocation11_spill]] %s17530_s29 }
  0x19   : > { %p575_p9 = pnand %p8359_p7, %p574_p8 }
  0x1b   : > { %578 = sbr.rel (%p575_p9) target bundleno = 5893 (0x1705), region = 100 }
  0x20   : > { %s17532_s21 = sld [smem:[#allocation64_spill]]  ;;  %s8361_s25 = sshll.u32 %s10348_s2, 4  ;;  %vm754_vm0 = vcmask 523264   ;;  %v10476_v31 = vld [vmem:[%s17428_s13] sm:$0xff]  ;;  %v1025_v55 = vld [vmem:[%s17429_s14 + $0x88] sm:$0xff] }
  0x21   : > { %p636_p10 = scmp.lt.s32.totalorder %s8361_s25, 31  ;;  %s17533_s24 = sld [smem:[#allocation61_spill]]  ;;  %v10479_v32 = vperm.slane %v10476_v31, 1  ;;  %v10492_v46 = vperm.slane %v10476_v31, 0  ;;  %v1024_v54 = vld [vmem:[%s17429_s14 + $0x80] sm:$0xff]  ;;  %v1041_v58 = vld [vmem:[%s17429_s14 + $0x108] sm:$0xff] }
  0x22   : > { %v1040_v57 = vld [vmem:[%s17429_s14 + $0x100] sm:$0xff]  ;;  %p641_p11 = scmp.lt.s32.totalorder %s10348_s2, 1  ;;  %s17579_s29 = sld [smem:[#allocation65_spill]] }
  0x23   : > { %s17866_s25 = smov (!%p636_p10, %s8361_s25), 31  ;;  %v1056_v63 = vld [vmem:[%s17429_s14 + $0x180] sm:$0xff]  ;;  %s17756_s5 = sld [smem:[#allocation66_spill]] }
  0x24   : > { %s8362_s3 = sshll.u32 %s17866_s25, 2  ;;  %s17763_s6 = sld [smem:[#allocation67_spill]] }
  0x25   : > { %s642_s0 = scalar_select %p641_p11, %s10348_s2, 1 }
  0x26   : > { %v9093_v0 = vld [vmem:[%s17532_s21 + $0x18] sm:$0xff]  ;;  %v9092_v1 = vld [vmem:[%s17532_s21 + $0x10] sm:$0xff]  ;;  %v9091_v2 = vld [vmem:[%s17532_s21 + $0x8] sm:$0xff]  ;;  %s632_s1 = sand.u32 1, %s10211_s22   ;;  %s9075_s23 = sshll.u32 %s10348_s2, 3 }
  0x27   : > { %865 = vmatpush.bf16.msra.mxu1 %v9093_v0  ;;  %v9090_v3 = vld [vmem:[%s17532_s21] sm:$0xff]  ;;  %s10391_s4 = scalar_lea.vmem %s17533_s24, %s8362_s3  ;;  %s17534_s24 = sld [smem:[#allocation63_spill]]  ;;  %v1057_v0 = vld [vmem:[%s17429_s14 + $0x188] sm:$0xff] }
  0x28   : > { %v10394_v4 = vld [vmem:[%s10391_s4] sm:$0xff]  ;;  %v10399_v5 = vld [vmem:[%s10391_s4 + $0x8] sm:$0xff]  ;;  %v10404_v6 = vld [vmem:[%s10391_s4 + $0x10] sm:$0xff]  ;;  %s8360_s21 = sshll.u32 %s632_s1, 3  ;;  %s8273_s2 = scalar_lea.sflag [#allocation3], %s632_s1 }
  0x29   : > { %v10409_v7 = vld [vmem:[%s10391_s4 + $0x18] sm:$0xff]  ;;  %v10414_v8 = vld [vmem:[%s10391_s4 + $0x20] sm:$0xff]  ;;  %v10419_v9 = vld [vmem:[%s10391_s4 + $0x28] sm:$0xff]  ;;  %s634_s26 = scalar_lea.vmem [#allocation2], %s8360_s21  ;;  %s10177_s21 = scalar_lea.hbm %s17435_s20, 16 }
  0x2a   : > { %v10424_v10 = vld [vmem:[%s10391_s4 + $0x30] sm:$0xff]  ;;  %v10429_v11 = vld [vmem:[%s10391_s4 + $0x38] sm:$0xff] }
  0x2b   : > { %866 = vmatpush.bf16.msra.mxu1 %v9092_v1  ;;  %v1072_v1 = vld [vmem:[%s17429_s14 + $0x200] sm:$0xff] }
  0x2d   : > { %s17535_s3 = smov %s17534_s24  ;;  %v9089_v12 = vld [vmem:[%s17534_s24 + $0x18] sm:$0xff]  ;;  %s17560_s24 = sld [smem:[#allocation62_spill]] }
  0x2e   : > { %783 = vmatpush.bf16.msra.mxu0 %v9089_v12  ;;  %v9088_v13 = vld [vmem:[%s17535_s3 + $0x10] sm:$0xff]  ;;  %v9087_v15 = vld [vmem:[%s17535_s3 + $0x8] sm:$0xff]  ;;  %v9086_v16 = vld [vmem:[%s17535_s3] sm:$0xff] }
  0x2f   : > { %867 = vmatpush.bf16.msra.mxu1 %v9091_v2 }
  0x32   : > { %784 = vmatpush.bf16.msra.mxu0 %v9088_v13  ;;  %v1073_v13 = vld [vmem:[%s17429_s14 + $0x208] sm:$0xff] }
  0x33   : > { %868 = vmatpush.bf16.msra.mxu1 %v9090_v3  ;;  %s10849_s28 = scalar_lea.vmem %s17560_s24, %s642_s0 }
  0x36   : > { %8435 = vmatmul.msk.bf16.vlgmr.msra.gmra.mxu1 %vm754_vm0, %v10394_v4  ;;  %785 = vmatpush.bf16.msra.mxu0 %v9087_v15 }
  0x3a   : > { %786 = vmatpush.bf16.msra.mxu0 %v9086_v16  ;;  %v1088_v16 = vld [vmem:[%s17429_s14 + $0x280] sm:$0xff] }
  0x3d   : > { %8411 = vmatmul.msk.bf16.vlgmr.msra.gmra.mxu0 %vm754_vm0, %v10394_v4 }
  0x46   : > { %8436 = vmatmul.msk.bf16.gmra.mxu1 %vm754_vm0, %v10399_v5 }
  0x4d   : > { %8412 = vmatmul.msk.bf16.gmra.mxu0 %vm754_vm0, %v10399_v5 }
  0x56   : > { %8437 = vmatmul.msk.bf16.gmra.mxu1 %vm754_vm0, %v10404_v6 }
  0x5d   : > { %8413 = vmatmul.msk.bf16.gmra.mxu0 %vm754_vm0, %v10404_v6 }
  0x66   : > { %8438 = vmatmul.msk.bf16.gmra.mxu1 %vm754_vm0, %v10409_v7 }
  0x6d   : > { %8414 = vmatmul.msk.bf16.gmra.mxu0 %vm754_vm0, %v10409_v7 }
  0x76   : > { %8439 = vmatmul.msk.bf16.gmra.mxu1 %vm754_vm0, %v10414_v8 }
  0x7d   : > { %8415 = vmatmul.msk.bf16.gmra.mxu0 %vm754_vm0, %v10414_v8 }
  0x86   : > { %8440 = vmatmul.msk.bf16.gmra.mxu1 %vm754_vm0, %v10419_v9 }
  0x8d   : > { %8416 = vmatmul.msk.bf16.gmra.mxu0 %vm754_vm0, %v10419_v9 }
  0x96   : > { %8441 = vmatmul.msk.bf16.gmra.mxu1 %vm754_vm0, %v10424_v10 }
  0x9d   : > { %8417 = vmatmul.msk.bf16.gmra.mxu0 %vm754_vm0, %v10424_v10 }
  0xa6   : > { %8442 = vmatmul.msk.bf16.gmra.mxu1 %vm754_vm0, %v10429_v11 }
  0xad   : > { %8418 = vmatmul.msk.bf16.gmra.mxu0 %vm754_vm0, %v10429_v11 }
  0xb3   : > { %v10439_v14 = vpop.f32.mrf.mxu1 }
  0xba   : > { %v788_v43 = vpop.f32.mrf.mxu0 }
  0xbb   : > { %v10447_v17 = vpop.f32.mrf.mxu1  ;;  %v10498_v50 = vadd.f32 %v788_v43, %v10492_v46 }
  0xbd   : > { %v10510_v56 = vmul.f32 %v1024_v54, %v10498_v50  ;;  %v10523_v61 = vmul.f32 %v1040_v57, %v10498_v50  ;;  %v10539_v3 = vmul.f32 %v1056_v63, %v10498_v50  ;;  %v10548_v15 = vmul.f32 %v1072_v1, %v10498_v50  ;;  %v1026_v57 = vld [vmem:[%s17429_s14 + $0x90] sm:$0xff]  ;;  %v1043_v63 = vld [vmem:[%s17429_s14 + $0x118] sm:$0xff] }
  0xbe   : > { %v1058_v1 = vld [vmem:[%s17429_s14 + $0x190] sm:$0xff] }
  0xbf   : > { %17536 = vst [vmem:[#allocation12_spill] sm:$0xff] %v10548_v15 }
  0xc2   : > { %v790_v51 = vpop.f32.mrf.mxu0 }
  0xc3   : > { %v10451_v18 = vpop.f32.mrf.mxu1  ;;  %v10501_v53 = vadd.f32 %v790_v51, %v10492_v46 }
  0xc5   : > { %v10520_v60 = vmul.f32 %v1025_v55, %v10501_v53  ;;  %v10526_v62 = vmul.f32 %v1041_v58, %v10501_v53  ;;  %v10542_v12 = vmul.f32 %v1057_v0, %v10501_v53 }
  0xcb   : > { %v10453_v19 = vpop.f32.mrf.mxu1 }
  0xd3   : > { %v10457_v20 = vpop.f32.mrf.mxu1 }
  0xdb   : > { %v10459_v21 = vpop.f32.mrf.mxu1 }
  0xe3   : > { %v10463_v22 = vpop.f32.mrf.mxu1 }
  0xeb   : > { %v887_v23 = vpop.f32.mrf.mxu1 }
  0xec   : > { %v888_v59 = vadd.f32 %v887_v23, %v10479_v32  ;;  %v1089_v23 = vld [vmem:[%s17429_s14 + $0x288] sm:$0xff] }
  0xf3   : > { %v890_v24 = vpop.f32.mrf.mxu1 }
  0xf4   : > { %v891_v48 = vadd.f32 %v890_v24, %v10479_v32  ;;  %v1124_v24 = vld [vmem:[%s17429_s14 + $0x3a0] sm:$0xff] }
  0xfb   : > { %v892_v25 = vpop.f32.mrf.mxu1 }
  0xfc   : > { %v893_v47 = vadd.f32 %v892_v25, %v10479_v32 }
  0xfe   : > { %v914_v52 = vpack.c.bf16 %v893_v47, %v891_v48  ;;  %v883_v48 = vadd.f32 %v10459_v21, %v10479_v32  ;;  %v1027_v21 = vld [vmem:[%s17429_s14 + $0x98] sm:$0xff] }
 0x100   : > { %v1661_v2 = vsel %vm754_vm0, %v914_v52, 0 }
 0x103   : > { %v895_v26 = vpop.f32.mrf.mxu1 }
 0x104   : > { %v896_v44 = vadd.f32 %v895_v26, %v10479_v32  ;;  %v10561_v26 = vmul.f32 %v1073_v13, %v10501_v53  ;;  %v878_v13 = vadd.f32 %v10453_v19, %v10479_v32  ;;  %v1090_v19 = vld [vmem:[%s17429_s14 + $0x290] sm:$0xff] }
 0x106   : > { %17537 = vst [vmem:[#allocation13_spill] sm:$0xff] %v10561_v26 }
 0x10b   : > { %v897_v27 = vpop.f32.mrf.mxu1 }
 0x10c   : > { %v898_v41 = vadd.f32 %v897_v27, %v10479_v32  ;;  %v10564_v27 = vmul.f32 %v1088_v16, %v10498_v50 }
 0x10e   : > { %v915_v45 = vpack.c.bf16 %v898_v41, %v896_v44  ;;  %17538 = vst [vmem:[#allocation14_spill] sm:$0xff] %v10564_v27  ;;  %v876_v44 = vadd.f32 %v10451_v18, %v10479_v32 }
 0x110   : > { %v1664_v49 = vsel %vm754_vm0, %v915_v45, 0  ;;  %v911_v43 = vpack.c.bf16 %v878_v13, %v876_v44  ;;  %v1028_v44 = vld [vmem:[%s17429_s14 + $0xa0] sm:$0xff]  ;;  %v1045_v13 = vld [vmem:[%s17429_s14 + $0x128] sm:$0xff] }
 0x113   : > { %v900_v28 = vpop.f32.mrf.mxu1 }
 0x114   : > { %v901_v39 = vadd.f32 %v900_v28, %v10479_v32  ;;  %v1104_v28 = vld [vmem:[%s17429_s14 + $0x300] sm:$0xff] }
 0x11b   : > { %v902_v29 = vpop.f32.mrf.mxu1 }
 0x11c   : > { %v903_v37 = vadd.f32 %v902_v29, %v10479_v32  ;;  %v1105_v29 = vld [vmem:[%s17429_s14 + $0x308] sm:$0xff] }
 0x11e   : > { %v916_v40 = vpack.c.bf16 %v903_v37, %v901_v39  ;;  %v1121_v37 = vld [vmem:[%s17429_s14 + $0x388] sm:$0xff]  ;;  %v1092_v39 = vld [vmem:[%s17429_s14 + $0x2a0] sm:$0xff] }
 0x11f   : > { %v10595_v41 = vmul.f32 %v1121_v37, %v10501_v53 }
 0x120   : > { %v1667_v42 = vsel %vm754_vm0, %v916_v40, 0 }
 0x121   : > { %17543 = vst [vmem:[#allocation19_spill] sm:$0xff] %v10595_v41 }
 0x123   : > { %v905_v30 = vpop.f32.mrf.mxu1 }
 0x124   : > { %v906_v34 = vadd.f32 %v905_v30, %v10479_v32  ;;  %v1120_v30 = vld [vmem:[%s17429_s14 + $0x380] sm:$0xff] }
 0x125   : > { %v10592_v40 = vmul.f32 %v1120_v30, %v10498_v50  ;;  %v1075_v30 = vld [vmem:[%s17429_s14 + $0x218] sm:$0xff] }
 0x127   : > { %17542 = vst [vmem:[#allocation18_spill] sm:$0xff] %v10592_v40 }
 0x12b   : > { %v907_v33 = vpop.f32.mrf.mxu1 }
 0x12c   : > { %v908_v35 = vadd.f32 %v907_v33, %v10479_v32  ;;  %v1093_v33 = vld [vmem:[%s17429_s14 + $0x2a8] sm:$0xff] }
 0x12e   : > { %v917_v36 = vpack.c.bf16 %v908_v35, %v906_v34  ;;  %v10578_v34 = vmul.f32 %v1089_v23, %v10501_v53  ;;  %v10581_v35 = vmul.f32 %v1104_v28, %v10498_v50 }
 0x130   : > { %v1670_v38 = vsel %vm754_vm0, %v917_v36, 0  ;;  %17539 = vst [vmem:[#allocation15_spill] sm:$0xff] %v10578_v34  ;;  %v10584_v36 = vmul.f32 %v1105_v29, %v10501_v53  ;;  %v1074_v29 = vld [vmem:[%s17429_s14 + $0x210] sm:$0xff] }
 0x131   : > { %1672 = vmatpush.bf16.xpose.msra.mxu3 %v1670_v38  ;;  %17540 = vst [vmem:[#allocation16_spill] sm:$0xff] %v10581_v35  ;;  %v793_v38 = vpop.f32.mrf.mxu0 }
 0x132   : > { %17541 = vst [vmem:[#allocation17_spill] sm:$0xff] %v10584_v36  ;;  %v1111_v36 = vld [vmem:[%s17429_s14 + $0x338] sm:$0xff] }
 0x139   : > { %1673 = vmatpush.bf16.xpose.msra.mxu3 %v1667_v42  ;;  %v886_v42 = vadd.f32 %v10463_v22, %v10479_v32  ;;  %v10611_v22 = vadd.f32 %v793_v38, %v10492_v46  ;;  %v795_v52 = vpop.f32.mrf.mxu0 }
 0x13a   : > { %v10614_v55 = vadd.f32 %v795_v52, %v10492_v46  ;;  %v1108_v52 = vld [vmem:[%s17429_s14 + $0x320] sm:$0xff] }
 0x13b   : > { %v913_v47 = vpack.c.bf16 %v888_v59, %v886_v42  ;;  %v10626_v58 = vmul.f32 %v1026_v57, %v10611_v22  ;;  %v10649_v23 = vmul.f32 %v1058_v1, %v10611_v22  ;;  %v10667_v42 = vmul.f32 %v1074_v29, %v10611_v22 }
 0x13c   : > { %v10629_v59 = vmul.f32 %v1027_v21, %v10614_v55  ;;  %v10646_v16 = vmul.f32 %v1043_v63, %v10614_v55  ;;  %v10686_v57 = vmul.f32 %v1090_v19, %v10611_v22  ;;  %v1123_v63 = vld [vmem:[%s17429_s14 + $0x398] sm:$0xff] }
 0x13d   : > { %v1658_v51 = vsel %vm754_vm0, %v913_v47, 0  ;;  %17544 = vst [vmem:[#allocation20_spill] sm:$0xff] %v10667_v42  ;;  %v10670_v47 = vmul.f32 %v1075_v30, %v10614_v55  ;;  %v10711_v45 = vmul.f32 %v1123_v63, %v10614_v55 }
 0x13e   : > { %17546 = vst [vmem:[#allocation22_spill] sm:$0xff] %v10686_v57 }
 0x13f   : > { %17545 = vst [vmem:[#allocation21_spill] sm:$0xff] %v10670_v47 }
 0x140   : > { %17551 = vst [vmem:[#allocation27_spill] sm:$0xff] %v10711_v45 }
 0x141   : > { %1674 = vmatpush.bf16.xpose.msra.mxu3 %v1664_v49  ;;  %v881_v49 = vadd.f32 %v10457_v20, %v10479_v32  ;;  %v1042_v20 = vld [vmem:[%s17429_s14 + $0x110] sm:$0xff]  ;;  %v798_v19 = vpop.f32.mrf.mxu0 }
 0x142   : > { %v10635_v0 = vmul.f32 %v1042_v20, %v10611_v22  ;;  %v1122_v20 = vld [vmem:[%s17429_s14 + $0x390] sm:$0xff]  ;;  %v10725_v63 = vadd.f32 %v798_v19, %v10492_v46 }
 0x143   : > { %v912_v54 = vpack.c.bf16 %v883_v48, %v881_v49  ;;  %v1091_v48 = vld [vmem:[%s17429_s14 + $0x298] sm:$0xff]  ;;  %v1106_v49 = vld [vmem:[%s17429_s14 + $0x310] sm:$0xff]  ;;  %v10706_v30 = vmul.f32 %v1122_v20, %v10611_v22  ;;  %v871_v20 = vadd.f32 %v10439_v14, %v10479_v32  ;;  %v1044_v14 = vld [vmem:[%s17429_s14 + $0x120] sm:$0xff] }
 0x144   : > { %v10689_v21 = vmul.f32 %v1091_v48, %v10614_v55  ;;  %v1652_v48 = vsel %vm754_vm0, %v911_v43, 0  ;;  %v10749_v19 = vmul.f32 %v1044_v14, %v10725_v63  ;;  %v1076_v14 = vld [vmem:[%s17429_s14 + $0x220] sm:$0xff]  ;;  %v10818_v25 = vmul.f32 %v1108_v52, %v10725_v63 }
 0x145   : > { %v1655_v37 = vsel %vm754_vm0, %v912_v54, 0  ;;  %17550 = vst [vmem:[#allocation26_spill] sm:$0xff] %v10706_v30  ;;  %v1125_v30 = vld [vmem:[%s17429_s14 + $0x3a8] sm:$0xff] }
 0x146   : > { %17547 = vst [vmem:[#allocation23_spill] sm:$0xff] %v10689_v21 }
 0x147   : > { %17556 = vst [vmem:[#allocation32_spill] sm:$0xff] %v10818_v25 }
 0x149   : > { %1675 = vmatpush.bf16.xpose.msra.mxu3 %v1661_v2  ;;  %v1059_v2 = vld [vmem:[%s17429_s14 + $0x198] sm:$0xff]  ;;  %v800_v18 = vpop.f32.mrf.mxu0 }
 0x14a   : > { %v10652_v28 = vmul.f32 %v1059_v2, %v10614_v55  ;;  %v10700_v2 = vmul.f32 %v1106_v49, %v10611_v22  ;;  %v10728_v49 = vadd.f32 %v800_v18, %v10492_v46 }
 0x14c   : > { %17548 = vst [vmem:[#allocation24_spill] sm:$0xff] %v10700_v2  ;;  %v10761_v18 = vmul.f32 %v1045_v13, %v10728_v49  ;;  %v10807_v38 = vmul.f32 %v1093_v33, %v10728_v49  ;;  %v10824_v33 = vmul.f32 %v1124_v24, %v10725_v63  ;;  %v10829_v41 = vmul.f32 %v1125_v30, %v10728_v49  ;;  %v1078_v2 = vld [vmem:[%s17429_s14 + $0x230] sm:$0xff] }
 0x14e   : > { %17555 = vst [vmem:[#allocation31_spill] sm:$0xff] %v10807_v38 }
 0x14f   : > { %17558 = vst [vmem:[#allocation34_spill] sm:$0xff] %v10824_v33  ;;  %v1079_v33 = vld [vmem:[%s17429_s14 + $0x238] sm:$0xff] }
 0x150   : > { %17559 = vst [vmem:[#allocation35_spill] sm:$0xff] %v10829_v41  ;;  %v1127_v41 = vld [vmem:[%s17429_s14 + $0x3b8] sm:$0xff] }
 0x151   : > { %1676 = vmatpush.bf16.xpose.msra.mxu3 %v1658_v51  ;;  %v1107_v51 = vld [vmem:[%s17429_s14 + $0x318] sm:$0xff]  ;;  %v803_v45 = vpop.f32.mrf.mxu0 }
 0x152   : > { %v10703_v29 = vmul.f32 %v1107_v51, %v10614_v55  ;;  %v1077_v51 = vld [vmem:[%s17429_s14 + $0x228] sm:$0xff] }
 0x153   : > { %v10785_v54 = vmul.f32 %v1077_v51, %v10728_v49 }
 0x154   : > { %17549 = vst [vmem:[#allocation25_spill] sm:$0xff] %v10703_v29  ;;  %v1110_v29 = vld [vmem:[%s17429_s14 + $0x330] sm:$0xff] }
 0x155   : > { %17553 = vst [vmem:[#allocation29_spill] sm:$0xff] %v10785_v54  ;;  %v1129_v54 = vld [vmem:[%s17429_s14 + $0x3c8] sm:$0xff] }
 0x159   : > { %1677 = vmatpush.bf16.xpose.msra.mxu3 %v1655_v37  ;;  %v873_v37 = vadd.f32 %v10447_v17, %v10479_v32  ;;  %v1029_v17 = vld [vmem:[%s17429_s14 + $0xa8] sm:$0xff]  ;;  %v10740_v32 = vmul.f32 %v1028_v44, %v10725_v63  ;;  %v805_v40 = vpop.f32.mrf.mxu0 }
 0x15a   : > { %v10743_v43 = vmul.f32 %v1029_v17, %v10728_v49  ;;  %v10844_v30 = vadd.f32 %v805_v40, %v10492_v46 }
 0x15b   : > { %v910_v1 = vpack.c.bf16 %v873_v37, %v871_v20  ;;  %v1061_v37 = vld [vmem:[%s17429_s14 + $0x1a8] sm:$0xff]  ;;  %v1008_v20 = vld [vmem:[%s17429_s14] sm:$0xff] }
 0x15c   : > { %v10767_v17 = vmul.f32 %v1061_v37, %v10728_v49  ;;  %v10782_v37 = vmul.f32 %v1076_v14, %v10725_v63  ;;  %v1009_v14 = vld [vmem:[%s17429_s14 + $0x8] sm:$0xff]  ;;  %v1136_v51 = vmul.f32 %v1008_v20, %v10498_v50  ;;  %v1030_v50 = vld [vmem:[%s17429_s14 + $0xb0] sm:$0xff]  ;;  %v10949_v34 = vmul.f32 %v1127_v41, %v10844_v30  ;;  %v1032_v41 = vld [vmem:[%s17429_s14 + $0xc0] sm:$0xff] }
 0x15d   : > { %v1649_v13 = vsel %vm754_vm0, %v910_v1, 0  ;;  %v1109_v1 = vld [vmem:[%s17429_s14 + $0x328] sm:$0xff]  ;;  %v1137_v52 = vmul.f32 %v1009_v14, %v10501_v53  ;;  %v1031_v53 = vld [vmem:[%s17429_s14 + $0xb8] sm:$0xff] }
 0x15e   : > { %17552 = vst [vmem:[#allocation28_spill] sm:$0xff] %v10782_v37  ;;  %v10864_v20 = vmul.f32 %v1031_v53, %v10844_v30  ;;  %v1047_v14 = vld [vmem:[%s17429_s14 + $0x138] sm:$0xff] }
 0x15f   : > { %v1264_v24 = vpack.c.bf16 %v1137_v52, %v1136_v51  ;;  %v1062_v52 = vld [vmem:[%s17429_s14 + $0x1b0] sm:$0xff]  ;;  %v10882_v53 = vmul.f32 %v1047_v14, %v10844_v30  ;;  %17568 = vst [vmem:[#allocation43_spill] sm:$0xff] %v10949_v34 }
 0x161   : > { %1678 = vmatpush.bf16.xpose.msra.mxu3 %v1652_v48  ;;  %v1060_v48 = vld [vmem:[%s17429_s14 + $0x1a0] sm:$0xff]  ;;  %v808_v57 = vpop.f32.mrf.mxu0 }
 0x162   : > { %v10764_v44 = vmul.f32 %v1060_v48, %v10725_v63  ;;  %v10804_v48 = vmul.f32 %v1092_v39, %v10725_v63  ;;  %v10821_v39 = vmul.f32 %v1109_v1, %v10728_v49  ;;  %v809_v21 = vadd.f32 %v808_v57, %v10492_v46 }
 0x164   : > { %17554 = vst [vmem:[#allocation30_spill] sm:$0xff] %v10804_v48  ;;  %v1126_v48 = vld [vmem:[%s17429_s14 + $0x3b0] sm:$0xff] }
 0x165   : > { %17557 = vst [vmem:[#allocation33_spill] sm:$0xff] %v10821_v39  ;;  %v1095_v39 = vld [vmem:[%s17429_s14 + $0x2b8] sm:$0xff] }
 0x166   : > { %v10922_v35 = vmul.f32 %v1095_v39, %v10844_v30  ;;  %v10939_v39 = vmul.f32 %v1111_v36, %v10844_v30  ;;  %v1081_v36 = vld [vmem:[%s17429_s14 + $0x248] sm:$0xff] }
 0x168   : > { %17564 = vst [vmem:[#allocation39_spill] sm:$0xff] %v10922_v35 }
 0x169   : > { %1679 = vmatpush.bf16.xpose.msra.mxu3 %v1649_v13  ;;  %v10840_v13 = vadd.f32 %v803_v45, %v10492_v46  ;;  %v1046_v45 = vld [vmem:[%s17429_s14 + $0x130] sm:$0xff]  ;;  %17566 = vst [vmem:[#allocation41_spill] sm:$0xff] %v10939_v39  ;;  %v1113_v39 = vld [vmem:[%s17429_s14 + $0x348] sm:$0xff] }
 0x16b   : > { %v10861_v40 = vmul.f32 %v1030_v50, %v10840_v13  ;;  %v10870_v51 = vmul.f32 %v1046_v45, %v10840_v13  ;;  %v1011_v50 = vld [vmem:[%s17429_s14 + $0x18] sm:$0xff]  ;;  %v10888_v1 = vmul.f32 %v1062_v52, %v10840_v13  ;;  %v10902_v25 = vmul.f32 %v1078_v2, %v10840_v13  ;;  %v1094_v52 = vld [vmem:[%s17429_s14 + $0x2b0] sm:$0xff] }
 0x16c   : > { %v1063_v45 = vld [vmem:[%s17429_s14 + $0x1b8] sm:$0xff]  ;;  %v10919_v2 = vmul.f32 %v1094_v52, %v10840_v13  ;;  %v10936_v52 = vmul.f32 %v1110_v29, %v10840_v13  ;;  %v10942_v38 = vmul.f32 %v1126_v48, %v10840_v13  ;;  %v1139_v29 = vmul.f32 %v1011_v50, %v10614_v55  ;;  %v1048_v55 = vld [vmem:[%s17429_s14 + $0x140] sm:$0xff] }
 0x16d   : > { %v10899_v14 = vmul.f32 %v1063_v45, %v10844_v30  ;;  %17561 = vst [vmem:[#allocation36_spill] sm:$0xff] %v10902_v25  ;;  %v10916_v45 = vmul.f32 %v1079_v33, %v10844_v30  ;;  %v810_v25 = vpop.f32.mrf.mxu0  ;;  %v10976_v57 = vmul.f32 %v1048_v55, %v809_v21  ;;  %v1064_v50 = vld [vmem:[%s17429_s14 + $0x1c0] sm:$0xff] }
 0x16e   : > { %17563 = vst [vmem:[#allocation38_spill] sm:$0xff] %v10919_v2  ;;  %v811_v27 = vadd.f32 %v810_v25, %v10492_v46  ;;  %v1049_v25 = vld [vmem:[%s17429_s14 + $0x148] sm:$0xff]  ;;  %v1080_v55 = vld [vmem:[%s17429_s14 + $0x240] sm:$0xff] }
 0x16f   : > { %17562 = vst [vmem:[#allocation37_spill] sm:$0xff] %v10916_v45  ;;  %v11004_v34 = vmul.f32 %v1080_v55, %v809_v21  ;;  %v1128_v45 = vld [vmem:[%s17429_s14 + $0x3c0] sm:$0xff] }
 0x170   : > { %8467 = vmatmul.msk.bf16.vlgmr.msra.gmra.mxu3 %vm754_vm0, %v1264_v24  ;;  %v1010_v24 = vld [vmem:[%s17429_s14 + $0x10] sm:$0xff]  ;;  %17565 = vst [vmem:[#allocation40_spill] sm:$0xff] %v10936_v52  ;;  %v1112_v52 = vld [vmem:[%s17429_s14 + $0x340] sm:$0xff]  ;;  %v11040_v55 = vmul.f32 %v1128_v45, %v809_v21 }
 0x171   : > { %17567 = vst [vmem:[#allocation42_spill] sm:$0xff] %v10942_v38  ;;  %v1138_v33 = vmul.f32 %v1010_v24, %v10611_v22  ;;  %v1033_v22 = vld [vmem:[%s17429_s14 + $0xc8] sm:$0xff]  ;;  %v10969_v24 = vmul.f32 %v1032_v41, %v809_v21  ;;  %v10987_v41 = vmul.f32 %v1049_v25, %v811_v27  ;;  %v1096_v38 = vld [vmem:[%s17429_s14 + $0x2c0] sm:$0xff]  ;;  %v11036_v47 = vmul.f32 %v1112_v52, %v809_v21  ;;  %v1014_v45 = vld [vmem:[%s17429_s14 + $0x30] sm:$0xff] }
 0x172   : > { %17571 = vst [vmem:[#allocation46_spill] sm:$0xff] %v11004_v34  ;;  %v1013_v25 = vld [vmem:[%s17429_s14 + $0x28] sm:$0xff]  ;;  %v11024_v2 = vmul.f32 %v1096_v38, %v809_v21 }
 0x173   : > { %v1265_v37 = vpack.c.bf16 %v1139_v29, %v1138_v33  ;;  %v1065_v33 = vld [vmem:[%s17429_s14 + $0x1c8] sm:$0xff]  ;;  %v1012_v29 = vld [vmem:[%s17429_s14 + $0x20] sm:$0xff]  ;;  %17575 = vst [vmem:[#allocation50_spill] sm:$0xff] %v11036_v47  ;;  %v1141_v26 = vmul.f32 %v1013_v25, %v10728_v49 }
 0x174   : > { %v10991_v48 = vmul.f32 %v1065_v33, %v811_v27  ;;  %v1097_v33 = vld [vmem:[%s17429_s14 + $0x2c8] sm:$0xff]  ;;  %17573 = vst [vmem:[#allocation48_spill] sm:$0xff] %v11024_v2  ;;  %v1140_v15 = vmul.f32 %v1012_v29, %v10725_v63  ;;  %v1142_v63 = vmul.f32 %v1014_v45, %v10840_v13 }
 0x175   : > { %v11026_v35 = vmul.f32 %v1097_v33, %v811_v27  ;;  %17577 = vst [vmem:[#allocation52_spill] sm:$0xff] %v11040_v55  ;;  %v11044_v33 = vmul.f32 %v1129_v54, %v811_v27  ;;  %v1015_v54 = vld [vmem:[%s17429_s14 + $0x38] sm:$0xff]  ;;  %v813_v29 = vpop.f32.mrf.mxu0 }
 0x176   : > { %17570 = vst [vmem:[#allocation45_spill] sm:$0xff] %v10991_v48  ;;  %v1266_v42 = vpack.c.bf16 %v1141_v26, %v1140_v15  ;;  %v1143_v49 = vmul.f32 %v1015_v54, %v10844_v30  ;;  %v9097_v15 = vld [vmem:[%s17579_s29 + $0x18] sm:$0xff]  ;;  %v1016_v26 = vld [vmem:[%s17429_s14 + $0x40] sm:$0xff]  ;;  %v9096_v54 = vld [vmem:[%s17579_s29 + $0x10] sm:$0xff] }
 0x177   : > { %17574 = vst [vmem:[#allocation49_spill] sm:$0xff] %v11026_v35  ;;  %955 = vmatpush.bf16.msra.mxu2 %v9097_v15  ;;  %v1144_v25 = vmul.f32 %v1016_v26, %v809_v21  ;;  %v9094_v26 = vld [vmem:[%s17579_s29] sm:$0xff] }
 0x178   : > { %17578 = vst [vmem:[#allocation53_spill] sm:$0xff] %v11044_v33 }
 0x17b   : > { %956 = vmatpush.bf16.msra.mxu2 %v9096_v54  ;;  %v1020_v54 = vld [vmem:[%s17429_s14 + $0x60] sm:$0xff] }
 0x17d   : > { %v815_v13 = vpop.f32.mrf.mxu0 }
 0x17e   : > { %v11082_v15 = vadd.f32 %v815_v13, %v10492_v46 }
 0x180   : > { %8468 = vmatmul.msk.bf16.gmra.mxu3 %vm754_vm0, %v1265_v37  ;;  %v10971_v37 = vmul.f32 %v1033_v22, %v811_v27  ;;  %v10989_v22 = vmul.f32 %v1064_v50, %v809_v21  ;;  %v11006_v50 = vmul.f32 %v1081_v36, %v811_v27  ;;  %v11038_v36 = vmul.f32 %v1113_v39, %v811_v27  ;;  %v1019_v21 = vld [vmem:[%s17429_s14 + $0x58] sm:$0xff] }
 0x181   : > { %v1267_v39 = vpack.c.bf16 %v1143_v49, %v1142_v63  ;;  %v9095_v63 = vld [vmem:[%s17579_s29 + $0x8] sm:$0xff] }
 0x182   : > { %17569 = vst [vmem:[#allocation44_spill] sm:$0xff] %v10989_v22  ;;  %957 = vmatpush.bf16.msra.mxu2 %v9095_v63  ;;  %v1021_v63 = vld [vmem:[%s17429_s14 + $0x68] sm:$0xff] }
 0x183   : > { %17572 = vst [vmem:[#allocation47_spill] sm:$0xff] %v11006_v50 }
 0x184   : > { %17576 = vst [vmem:[#allocation51_spill] sm:$0xff] %v11038_v36 }
 0x185   : > { %v818_v49 = vpop.f32.mrf.mxu0 }
 0x186   : > { %958 = vmatpush.bf16.msra.mxu2 %v9094_v26 }
 0x189   : > { %8459 = vmatmul.msk.bf16.vlgmr.msra.gmra.mxu2 %vm754_vm0, %v10394_v4 }
 0x190   : > { %8469 = vmatmul.msk.bf16.gmra.mxu3 %vm754_vm0, %v1266_v42  ;;  %v1017_v42 = vld [vmem:[%s17429_s14 + $0x48] sm:$0xff] }
 0x191   : > { %v1145_v30 = vmul.f32 %v1017_v42, %v811_v27  ;;  %v1018_v27 = vld [vmem:[%s17429_s14 + $0x50] sm:$0xff] }
 0x193   : > { %v1268_v45 = vpack.c.bf16 %v1145_v30, %v1144_v25  ;;  %v820_v25 = vpop.f32.mrf.mxu0  ;;  %v11099_v30 = vadd.f32 %v818_v49, %v10492_v46 }
 0x199   : > { %8460 = vmatmul.msk.bf16.gmra.mxu2 %vm754_vm0, %v10399_v5 }
 0x1a0   : > { %8470 = vmatmul.msk.bf16.gmra.mxu3 %vm754_vm0, %v1267_v39  ;;  %v11079_v39 = vadd.f32 %v813_v29, %v10492_v46  ;;  %v1147_v29 = vmul.f32 %v1019_v21, %v11082_v15  ;;  %v1148_v21 = vmul.f32 %v1020_v54, %v11099_v30 }
 0x1a2   : > { %v1146_v42 = vmul.f32 %v1018_v27, %v11079_v39  ;;  %v823_v27 = vpop.f32.mrf.mxu0 }
 0x1a4   : > { %v1269_v13 = vpack.c.bf16 %v1147_v29, %v1146_v42  ;;  %v11116_v42 = vadd.f32 %v823_v27, %v10492_v46  ;;  %v1328_v27 = vld [vmem:[%s17430_s15] sm:$0xff] }
 0x1a9   : > { %8461 = vmatmul.msk.bf16.gmra.mxu2 %vm754_vm0, %v10404_v6 }
 0x1aa   : > { %v825_v49 = vpop.f32.mrf.mxu0 }
 0x1ab   : > { %v11119_v29 = vadd.f32 %v825_v49, %v10492_v46 }
 0x1b0   : > { %8471 = vmatmul.msk.bf16.gmra.mxu3 %vm754_vm0, %v1268_v45  ;;  %v11102_v45 = vadd.f32 %v820_v25, %v10492_v46  ;;  %v1023_v25 = vld [vmem:[%s17429_s14 + $0x78] sm:$0xff]  ;;  %v17580_v46 = vpack.c.bf16 %v10520_v60, %v10510_v56 }
 0x1b1   : > { %v1151_v5 = vmul.f32 %v1023_v25, %v11119_v29  ;;  %v1330_v25 = vld [vmem:[%s17430_s15 + $0x10] sm:$0xff] }
 0x1b2   : > { %v1149_v4 = vmul.f32 %v1021_v63, %v11102_v45 }
 0x1b4   : > { %v1270_v26 = vpack.c.bf16 %v1149_v4, %v1148_v21  ;;  %v11142_v21 = vld [vmem:[%s10849_s28] ss:$0 sm:$0xff] }
 0x1b9   : > { %8462 = vmatmul.msk.bf16.gmra.mxu2 %vm754_vm0, %v10409_v7  ;;  %v1329_v7 = vld [vmem:[%s17430_s15 + $0x8] sm:$0xff] }
 0x1c0   : > { %8472 = vmatmul.msk.bf16.gmra.mxu3 %vm754_vm0, %v1269_v13  ;;  %v1022_v13 = vld [vmem:[%s17429_s14 + $0x70] sm:$0xff] }
 0x1c1   : > { %v1150_v54 = vmul.f32 %v1022_v13, %v11116_v42  ;;  %v17581_v13 = vpack.c.bf16 %v10629_v59, %v10626_v58 }
 0x1c3   : > { %v1271_v63 = vpack.c.bf16 %v1151_v5, %v1150_v54 }
 0x1c9   : > { %8463 = vmatmul.msk.bf16.gmra.mxu2 %vm754_vm0, %v10414_v8  ;;  %v1331_v8 = vld [vmem:[%s17430_s15 + $0x18] sm:$0xff] }
 0x1d0   : > { %8473 = vmatmul.msk.bf16.gmra.mxu3 %vm754_vm0, %v1270_v26 }
 0x1d9   : > { %8464 = vmatmul.msk.bf16.gmra.mxu2 %vm754_vm0, %v10419_v9  ;;  %v1333_v9 = vld [vmem:[%s17430_s15 + $0x28] sm:$0xff] }
 0x1e0   : > { %8474 = vmatmul.msk.bf16.gmra.mxu3 %vm754_vm0, %v1271_v63 }
 0x1e9   : > { %8465 = vmatmul.msk.bf16.gmra.mxu2 %vm754_vm0, %v10424_v10  ;;  %v1335_v10 = vld [vmem:[%s17430_s15 + $0x38] sm:$0xff] }
 0x1f0   : > { %8475 = vmatmul.msk.bf16.gmra.mxu3 %vm754_vm0, %v17580_v46 }
 0x1f3   : > { %v1681_v4 = vpop.f32.mrf.mxu3 }
 0x1f4   : > { %v1682_v26 = vadd.f32 %v1681_v4, %v1328_v27  ;;  %v17582_v27 = vpack.c.bf16 %v10743_v43, %v10740_v32  ;;  %v1332_v4 = vld [vmem:[%s17430_s15 + $0x20] sm:$0xff] }
 0x1f6   : > { %v11145_v6 = vadd.f32 %v11142_v21, %v1682_v26 }
 0x1f8   : > { %2132 = vmax.xlane.f32.xlu0 %v11145_v6 }
 0x1f9   : > { %8466 = vmatmul.msk.bf16.gmra.mxu2 %vm754_vm0, %v10429_v11  ;;  %v1034_v11 = vld [vmem:[%s17429_s14 + $0xd0] sm:$0xff] }
 0x1fb   : > { %v1683_v56 = vpop.f32.mrf.mxu3 }
 0x1fc   : > { %v1684_v60 = vadd.f32 %v1683_v56, %v1329_v7 }
 0x1fe   : > { %v11154_v49 = vadd.f32 %v11142_v21, %v1684_v60 }
 0x200   : > { %8476 = vmatmul.msk.bf16.gmra.mxu3 %vm754_vm0, %v17581_v13  ;;  %2134 = vmax.xlane.f32.xlu0 %v11154_v49  ;;  %v17583_v13 = vpack.c.bf16 %v10864_v20, %v10861_v40 }
 0x203   : > { %v1686_v54 = vpop.f32.mrf.mxu3 }
 0x204   : > { %v1687_v5 = vadd.f32 %v1686_v54, %v1330_v25  ;;  %v1334_v25 = vld [vmem:[%s17430_s15 + $0x30] sm:$0xff] }
 0x206   : > { %v11165_v63 = vadd.f32 %v11142_v21, %v1687_v5 }
 0x208   : > { %2136 = vmax.xlane.f32.xlu1 %v11165_v63 }
 0x20b   : > { %v1688_v58 = vpop.f32.mrf.mxu3 }
 0x20c   : > { %v1689_v59 = vadd.f32 %v1688_v58, %v1331_v8 }
 0x20e   : > { %v11174_v46 = vadd.f32 %v11142_v21, %v1689_v59  ;;  %v17584_v59 = vpack.c.bf16 %v10971_v37, %v10969_v24  ;;  %v1035_v24 = vld [vmem:[%s17429_s14 + $0xd8] sm:$0xff]  ;;  %v1162_v37 = vmul.f32 %v1034_v11, %v11079_v39  ;;  %v1038_v11 = vld [vmem:[%s17429_s14 + $0xf0] sm:$0xff] }
 0x210   : > { %8477 = vmatmul.msk.bf16.gmra.mxu3 %vm754_vm0, %v17582_v27  ;;  %2138 = vmax.xlane.f32.xlu1 %v11174_v46  ;;  %v1336_v27 = vld [vmem:[%s17430_s15 + $0x40] sm:$0xff] }
 0x213   : > { %v1691_v26 = vpop.f32.mrf.mxu3 }
 0x214   : > { %v1692_v7 = vadd.f32 %v1691_v26, %v1332_v4 }
 0x216   : > { %v11185_v56 = vadd.f32 %v11142_v21, %v1692_v7 }
 0x218   : > { %2140 = vmax.xlane.f32.xlu2 %v11185_v56 }
 0x21b   : > { %v1693_v32 = vpop.f32.mrf.mxu3 }
 0x21c   : > { %v1694_v43 = vadd.f32 %v1693_v32, %v1333_v9  ;;  %v1163_v9 = vmul.f32 %v1035_v24, %v11082_v15  ;;  %v1039_v24 = vld [vmem:[%s17429_s14 + $0xf8] sm:$0xff] }
 0x21e   : > { %v11194_v60 = vadd.f32 %v11142_v21, %v1694_v43  ;;  %v1277_v43 = vpack.c.bf16 %v1163_v9, %v1162_v37  ;;  %v1166_v9 = vmul.f32 %v1038_v11, %v11116_v42  ;;  %v17585_v11 = vpack.c.bf16 %v10526_v62, %v10523_v61 }
 0x220   : > { %8478 = vmatmul.msk.bf16.gmra.mxu3 %vm754_vm0, %v17583_v13  ;;  %2142 = vmax.xlane.f32.xlu2 %v11194_v60  ;;  %v11237_v13 = vpop.f32.mrf.mxu2 }
 0x223   : > { %v1696_v54 = vpop.f32.mrf.mxu3 }
 0x224   : > { %v1697_v5 = vadd.f32 %v1696_v54, %v1334_v25  ;;  %v1036_v54 = vld [vmem:[%s17429_s14 + $0xe0] sm:$0xff] }
 0x226   : > { %v11205_v8 = vadd.f32 %v11142_v21, %v1697_v5  ;;  %v1037_v5 = vld [vmem:[%s17429_s14 + $0xe8] sm:$0xff] }
 0x228   : > { %2144 = vmax.xlane.f32.xlu0 %v11205_v8 }
 0x22b   : > { %v1698_v40 = vpop.f32.mrf.mxu3 }
 0x22c   : > { %v1699_v20 = vadd.f32 %v1698_v40, %v1335_v10  ;;  %v11245_v10 = vpop.f32.mrf.mxu2  ;;  %v1164_v40 = vmul.f32 %v1036_v54, %v11099_v30 }
 0x22e   : > { %v11214_v58 = vadd.f32 %v11142_v21, %v1699_v20  ;;  %v1165_v20 = vmul.f32 %v1037_v5, %v11102_v45 }
 0x230   : > { %8479 = vmatmul.msk.bf16.gmra.mxu3 %vm754_vm0, %v17584_v59  ;;  %2146 = vmax.xlane.f32.xlu1 %v11214_v58 }
 0x233   : > { %v1701_v4 = vpop.f32.mrf.mxu3 }
 0x234   : > { %v1702_v26 = vadd.f32 %v1701_v4, %v1336_v27  ;;  %v1278_v27 = vpack.c.bf16 %v1165_v20, %v1164_v40  ;;  %v11250_v4 = vpop.f32.mrf.mxu2 }
 0x236   : > { %v11225_v7 = vadd.f32 %v11142_v21, %v1702_v26 }
 0x238   : > { %2148 = vmax.xlane.f32.xlu1 %v11225_v7 }
 0x23b   : > { %v1703_v32 = vpop.f32.mrf.mxu3 }
 0x23c   : > { %v11260_v37 = vpop.f32.mrf.mxu2 }
 0x240   : > { %8480 = vmatmul.msk.bf16.gmra.mxu3 %vm754_vm0, %v1277_v43  ;;  %v1167_v43 = vmul.f32 %v1039_v24, %v11119_v29 }
 0x242   : > { %v1279_v5 = vpack.c.bf16 %v1167_v43, %v1166_v9 }
 0x243   : > { %v1706_v25 = vpop.f32.mrf.mxu3 }
 0x244   : > { %v11267_v40 = vpop.f32.mrf.mxu2 }
 0x24b   : > { %v1708_v59 = vpop.f32.mrf.mxu3 }
 0x250   : > { %8481 = vmatmul.msk.bf16.gmra.mxu3 %vm754_vm0, %v1278_v27  ;;  %v11271_v27 = vpop.f32.mrf.mxu2 }
 0x253   : > { %v11252_v26 = vpop.f32.mrf.mxu3 }
 0x258   : > { %v11280_v24 = vpop.f32.mrf.mxu2 }
 0x25b   : > { %v11264_v54 = vpop.f32.mrf.mxu3 }
 0x260   : > { %8482 = vmatmul.msk.bf16.gmra.mxu3 %vm754_vm0, %v1279_v5  ;;  %v11291_v61 = vpop.f32.mrf.mxu2 }
 0x263   : > { %v11269_v20 = vpop.f32.mrf.mxu3 }
 0x26b   : > { %v11273_v52 = vpop.f32.mrf.mxu3  ;;  %v2133_v22 = vpop.xlane.xlu0 %2132 }
 0x26c   : > { %v2388_v38 = vsub.f32 %v11145_v6, %v2133_v22  ;;  %v1337_v22 = vld [vmem:[%s17430_s15 + $0x48] sm:$0xff] }
 0x26d   : > { %v1704_v62 = vadd.f32 %v1703_v32, %v1337_v22  ;;  %v17586_v32 = vpack.c.bf16 %v10646_v16, %v10635_v0 }
 0x26e   : > { %v2516_v55 = vmul.f32 1.442695, %v2388_v38 }
 0x270   : > { %9247 = vpow2.f32 %v2516_v55  ;;  %8483 = vmatmul.msk.bf16.gmra.mxu3 %vm754_vm0, %v17585_v11 }
 0x273   : > { %v11282_v9 = vpop.f32.mrf.mxu3  ;;  %v2135_v43 = vpop.xlane.xlu0 %2134 }
 0x274   : > { %v2389_v5 = vsub.f32 %v11154_v49, %v2135_v43  ;;  %v11297_v49 = vadd.f32 %v11142_v21, %v1704_v62 }
 0x276   : > { %v11285_v33 = vpop.eup %9247  ;;  %v2518_v38 = vmul.f32 1.442695, %v2389_v5  ;;  %v1338_v5 = vld [vmem:[%s17430_s15 + $0x50] sm:$0xff] }
 0x277   : > { %2772 = vadd.xlane.f32.xlu2 %v11285_v33  ;;  %v1707_v22 = vadd.f32 %v1706_v25, %v1338_v5 }
 0x278   : > { %9249 = vpow2.f32 %v2518_v38 }
 0x27b   : > { %v11293_v55 = vpop.f32.mrf.mxu3  ;;  %v2137_v6 = vpop.xlane.xlu1 %2136 }
 0x27c   : > { %v2390_v11 = vsub.f32 %v11165_v63, %v2137_v6  ;;  %v11310_v63 = vpop.f32.mrf.mxu2 }
 0x27e   : > { %v11299_v43 = vpop.eup %9249  ;;  %v2520_v47 = vmul.f32 1.442695, %v2390_v11  ;;  %v11316_v11 = vadd.f32 %v11142_v21, %v1707_v22 }
 0x27f   : > { %2150 = vmax.xlane.f32.xlu2 %v11297_v49  ;;  %2774 = vadd.xlane.f32.xlu0 %v11299_v43 }
 0x280   : > { %9251 = vpow2.f32 %v2520_v47  ;;  %8484 = vmatmul.msk.bf16.gmra.mxu3 %vm754_vm0, %v17586_v32  ;;  %v1339_v47 = vld [vmem:[%s17430_s15 + $0x58] sm:$0xff] }
 0x281   : > { %v1709_v25 = vadd.f32 %v1708_v59, %v1339_v47  ;;  %v17587_v59 = vpack.c.bf16 %v10761_v18, %v10749_v19  ;;  %v1341_v19 = vld [vmem:[%s17430_s15 + $0x68] sm:$0xff] }
 0x283   : > { %v11312_v38 = vpop.f32.mrf.mxu3  ;;  %v2139_v62 = vpop.xlane.xlu1 %2138  ;;  %v11331_v22 = vadd.f32 %v11142_v21, %v1709_v25 }
 0x284   : > { %v2391_v6 = vsub.f32 %v11174_v46, %v2139_v62  ;;  %v11325_v16 = vpop.f32.mrf.mxu2 }
 0x286   : > { %v11318_v36 = vpop.eup %9251  ;;  %v2522_v0 = vmul.f32 1.442695, %v2391_v6  ;;  %v1340_v6 = vld [vmem:[%s17430_s15 + $0x60] sm:$0xff] }
 0x287   : > { %2152 = vmax.xlane.f32.xlu2 %v11316_v11  ;;  %2776 = vadd.xlane.f32.xlu0 %v11318_v36  ;;  %v1712_v47 = vadd.f32 %v11252_v26, %v1340_v6  ;;  %v1714_v26 = vadd.f32 %v11264_v54, %v1341_v19  ;;  %v17588_v54 = vpack.c.bf16 %v10882_v53, %v10870_v51 }
 0x288   : > { %9253 = vpow2.f32 %v2522_v0 }
 0x28b   : > { %v11327_v5 = vpop.f32.mrf.mxu3  ;;  %v2141_v46 = vpop.xlane.xlu2 %2140 }
 0x28c   : > { %v2392_v32 = vsub.f32 %v11185_v56, %v2141_v46  ;;  %v11344_v56 = vpop.f32.mrf.mxu2 }
 0x28e   : > { %v11333_v62 = vpop.eup %9253  ;;  %v2524_v2 = vmul.f32 1.442695, %v2392_v32  ;;  %v11351_v32 = vadd.f32 %v11142_v21, %v1712_v47  ;;  %v11367_v47 = vadd.f32 %v11142_v21, %v1714_v26 }
 0x28f   : > { %2778 = vadd.xlane.f32.xlu1 %v11333_v62  ;;  %2154 = vmax.xlane.f32.xlu0 %v11331_v22 }
 0x290   : > { %9255 = vpow2.f32 %v2524_v2  ;;  %8485 = vmatmul.msk.bf16.gmra.mxu3 %vm754_vm0, %v17587_v59 }
 0x293   : > { %v11347_v0 = vpop.f32.mrf.mxu3  ;;  %v2143_v25 = vpop.xlane.xlu2 %2142 }
 0x294   : > { %v2393_v46 = vsub.f32 %v11194_v60, %v2143_v25  ;;  %v11360_v2 = vpop.f32.mrf.mxu2 }
 0x296   : > { %v11353_v35 = vpop.eup %9255  ;;  %v2526_v18 = vmul.f32 1.442695, %v2393_v46  ;;  %v1342_v46 = vld [vmem:[%s17430_s15 + $0x70] sm:$0xff] }
 0x297   : > { %2780 = vadd.xlane.f32.xlu1 %v11353_v35  ;;  %2156 = vmax.xlane.f32.xlu0 %v11351_v32  ;;  %v1717_v19 = vadd.f32 %v11269_v20, %v1342_v46 }
 0x298   : > { %9257 = vpow2.f32 %v2526_v18 }
 0x29b   : > { %v11363_v60 = vpop.f32.mrf.mxu3  ;;  %v2145_v6 = vpop.xlane.xlu0 %2144 }
 0x29c   : > { %v2394_v59 = vsub.f32 %v11205_v8, %v2145_v6  ;;  %v990_v8 = vpop.f32.mrf.mxu2 }
 0x29e   : > { %v11369_v25 = vpop.eup %9257  ;;  %v2528_v34 = vmul.f32 1.442695, %v2394_v59  ;;  %v11385_v59 = vadd.f32 %v11142_v21, %v1717_v19 }
 0x29f   : > { %2158 = vmax.xlane.f32.xlu1 %v11367_v47  ;;  %2782 = vadd.xlane.f32.xlu2 %v11369_v25 }
 0x2a0   : > { %9259 = vpow2.f32 %v2528_v34  ;;  %8486 = vmatmul.msk.bf16.gmra.mxu3 %vm754_vm0, %v17588_v54  ;;  %v1343_v34 = vld [vmem:[%s17430_s15 + $0x78] sm:$0xff] }
 0x2a1   : > { %v1719_v20 = vadd.f32 %v11273_v52, %v1343_v34  ;;  %v17593_v52 = vpack.c.bf16 %v10987_v41, %v10976_v57  ;;  %v1050_v57 = vld [vmem:[%s17429_s14 + $0x150] sm:$0xff] }
 0x2a3   : > { %v11381_v18 = vpop.f32.mrf.mxu3  ;;  %v2147_v26 = vpop.xlane.xlu1 %2146  ;;  %v11399_v19 = vadd.f32 %v11142_v21, %v1719_v20  ;;  %v926_v20 = vperm.slane %v10476_v31, 2  ;;  %v1051_v31 = vld [vmem:[%s17429_s14 + $0x158] sm:$0xff] }
 0x2a4   : > { %v2395_v6 = vsub.f32 %v11214_v58, %v2147_v26  ;;  %v992_v53 = vpop.f32.mrf.mxu2 }
 0x2a5   : > { %17591 = vst [vmem:[#allocation56_spill] sm:$0xff] %v11399_v19 }
 0x2a6   : > { %v11387_v50 = vpop.eup %9259  ;;  %v2530_v51 = vmul.f32 1.442695, %v2395_v6  ;;  %v1344_v6 = vld [vmem:[%s17430_s15 + $0x80] sm:$0xff] }
 0x2a7   : > { %17589 = vst [vmem:[#allocation54_spill] sm:$0xff] %v11387_v50  ;;  %2160 = vmax.xlane.f32.xlu1 %v11385_v59  ;;  %2784 = vadd.xlane.f32.xlu2 %v11387_v50  ;;  %v1722_v34 = vadd.f32 %v11282_v9, %v1344_v6  ;;  %v991_v50 = vadd.f32 %v990_v8, %v926_v20 }
 0x2a8   : > { %9261 = vpow2.f32 %v2530_v51 }
 0x2ab   : > { %v11395_v46 = vpop.f32.mrf.mxu3  ;;  %v2149_v58 = vpop.xlane.xlu1 %2148 }
 0x2ac   : > { %17590 = vst [vmem:[#allocation55_spill] sm:$0xff] %v11395_v46  ;;  %v2396_v54 = vsub.f32 %v11225_v7, %v2149_v58  ;;  %v995_v7 = vpop.f32.mrf.mxu2  ;;  %v11417_v58 = vadd.f32 %v11142_v21, %v1722_v34  ;;  %v1178_v34 = vmul.f32 %v1050_v57, %v11079_v39  ;;  %v993_v46 = vadd.f32 %v992_v53, %v926_v20 }
 0x2ad   : > { %v996_v41 = vadd.f32 %v995_v7, %v926_v20  ;;  %v1346_v7 = vld [vmem:[%s17430_s15 + $0x90] sm:$0xff]  ;;  %v981_v53 = vadd.f32 %v11310_v63, %v926_v20  ;;  %v978_v63 = vadd.f32 %v11291_v61, %v926_v20  ;;  %v968_v61 = vadd.f32 %v11260_v37, %v926_v20 }
 0x2ae   : > { %v11401_v26 = vpop.eup %9261  ;;  %v2532_v48 = vmul.f32 1.442695, %v2396_v54  ;;  %17595 = vst [vmem:[#allocation59_spill] sm:$0xff] %v11417_v58  ;;  %v1727_v57 = vadd.f32 %v11312_v38, %v1346_v7  ;;  %v976_v38 = vadd.f32 %v11280_v24, %v926_v20  ;;  %v966_v24 = vadd.f32 %v11250_v4, %v926_v20 }
 0x2af   : > { %17592 = vst [vmem:[#allocation57_spill] sm:$0xff] %v11401_v26  ;;  %2786 = vadd.xlane.f32.xlu0 %v11401_v26  ;;  %2162 = vmax.xlane.f32.xlu2 %v11399_v19 }
 0x2b0   : > { %9263 = vpow2.f32 %v2532_v48  ;;  %8487 = vmatmul.msk.bf16.gmra.mxu3 %vm754_vm0, %v17593_v52  ;;  %v1345_v48 = vld [vmem:[%s17430_s15 + $0x88] sm:$0xff] }
 0x2b1   : > { %v1724_v6 = vadd.f32 %v11293_v55, %v1345_v48  ;;  %v986_v55 = vadd.f32 %v11344_v56, %v926_v20  ;;  %v988_v48 = vadd.f32 %v11360_v2, %v926_v20  ;;  %v1052_v56 = vld [vmem:[%s17429_s14 + $0x160] sm:$0xff] }
 0x2b3   : > { %v11413_v51 = vpop.f32.mrf.mxu3  ;;  %v11438_v26 = vadd.f32 %v11142_v21, %v1724_v6  ;;  %v1005_v8 = vpack.c.bf16 %v988_v48, %v986_v55  ;;  %v971_v6 = vadd.f32 %v11267_v40, %v926_v20  ;;  %v961_v48 = vadd.f32 %v11237_v13, %v926_v20  ;;  %v1054_v40 = vld [vmem:[%s17429_s14 + $0x170] sm:$0xff] }
 0x2b4   : > { %17594 = vst [vmem:[#allocation58_spill] sm:$0xff] %v11413_v51  ;;  %v997_v9 = vpop.f32.mrf.mxu2  ;;  %v1179_v51 = vmul.f32 %v1051_v31, %v11082_v15  ;;  %v1006_v31 = vpack.c.bf16 %v993_v46, %v991_v50  ;;  %v1053_v50 = vld [vmem:[%s17429_s14 + $0x168] sm:$0xff]  ;;  %v1182_v37 = vmul.f32 %v1054_v40, %v11116_v42  ;;  %v1347_v40 = vld [vmem:[%s17430_s15 + $0x98] sm:$0xff] }
 0x2b5   : > { %v998_v52 = vadd.f32 %v997_v9, %v926_v20  ;;  %v1181_v46 = vmul.f32 %v1053_v50, %v11102_v45  ;;  %v1003_v9 = vpack.c.bf16 %v978_v63, %v976_v38 }
 0x2b6   : > { %v11419_v54 = vpop.eup %9263  ;;  %v1285_v19 = vpack.c.bf16 %v1179_v51, %v1178_v34  ;;  %v983_v51 = vadd.f32 %v11325_v16, %v926_v20  ;;  %v1180_v16 = vmul.f32 %v1052_v56, %v11099_v30  ;;  %v17597_v56 = vpack.c.bf16 %v10542_v12, %v10539_v3 }
 0x2b7   : > { %17596 = vst [vmem:[#allocation60_spill] sm:$0xff] %v11419_v54  ;;  %2788 = vadd.xlane.f32.xlu0 %v11419_v54  ;;  %2164 = vmax.xlane.f32.xlu2 %v11417_v58  ;;  %v1007_v58 = vpack.c.bf16 %v998_v52, %v996_v41  ;;  %v973_v52 = vadd.f32 %v11271_v27, %v926_v20  ;;  %v1055_v27 = vld [vmem:[%s17429_s14 + $0x178] sm:$0xff] }
 0x2b8   : > { %v1004_v2 = vpack.c.bf16 %v983_v51, %v981_v53  ;;  %v1286_v34 = vpack.c.bf16 %v1181_v46, %v1180_v16 }
 0x2b9   : > { %3348 = vmatpush.bf16.msrb.mxu0 %v1007_v58  ;;  %v11453_v58 = vadd.f32 %v11142_v21, %v1727_v57  ;;  %v1002_v7 = vpack.c.bf16 %v973_v52, %v971_v6  ;;  %v963_v57 = vadd.f32 %v11245_v10, %v926_v20 }
 0x2bb   : > { %v11435_v54 = vpop.f32.mrf.mxu3  ;;  %v1000_v4 = vpack.c.bf16 %v963_v57, %v961_v48  ;;  %v17598_v48 = vpack.c.bf16 %v10652_v28, %v10649_v23  ;;  %v1729_v28 = vadd.f32 %v11327_v5, %v1347_v40  ;;  %v1348_v5 = vld [vmem:[%s17430_s15 + $0xa0] sm:$0xff] }
 0x2bd   : > { %3349 = vmatpush.bf16.msrb.mxu0 %v1006_v31  ;;  %v1001_v31 = vpack.c.bf16 %v968_v61, %v966_v24 }
 0x2bf   : > { %2166 = vmax.xlane.f32.xlu0 %v11438_v26 }
 0x2c0   : > { %8488 = vmatmul.msk.bf16.gmra.mxu3 %vm754_vm0, %v1285_v19 }
 0x2c1   : > { %3350 = vmatpush.bf16.msrb.mxu0 %v1005_v8  ;;  %v1183_v8 = vmul.f32 %v1055_v27, %v11119_v29 }
 0x2c3   : > { %v11448_v41 = vpop.f32.mrf.mxu3  ;;  %v1287_v13 = vpack.c.bf16 %v1183_v8, %v1182_v37 }
 0x2c5   : > { %3351 = vmatpush.bf16.msrb.mxu0 %v1004_v2 }
 0x2c7   : > { %2168 = vmax.xlane.f32.xlu0 %v11453_v58 }
 0x2c9   : > { %3352 = vmatpush.bf16.msrb.mxu0 %v1003_v9 }
 0x2cb   : > { %v11466_v19 = vpop.f32.mrf.mxu3 }
 0x2cd   : > { %3353 = vmatpush.bf16.msrb.mxu0 %v1002_v7 }
 0x2d0   : > { %8489 = vmatmul.msk.bf16.gmra.mxu3 %vm754_vm0, %v1286_v34 }
 0x2d1   : > { %3354 = vmatpush.bf16.msrb.mxu0 %v1001_v31 }
 0x2d3   : > { %v11473_v55 = vpop.f32.mrf.mxu3 }
 0x2d5   : > { %3355 = vmatpush.bf16.msrb.mxu0 %v1000_v4 }
 0x2db   : > { %v11485_v53 = vpop.f32.mrf.mxu3 }
 0x2e0   : > { %8490 = vmatmul.msk.bf16.gmra.mxu3 %vm754_vm0, %v1287_v13 }
 0x2e3   : > { %v11488_v10 = vpop.f32.mrf.mxu3 }
 0x2ea   : > { %v2773_v20 = vpop.xlane.xlu2 %2772 }
 0x2eb   : > { %v11490_v51 = vpop.f32.mrf.mxu3  ;;  %9265 = vrcp.f32 %v2773_v20 }
 0x2f0   : > { %8491 = vmatmul.msk.bf16.gmra.mxu3 %vm754_vm0, %v17597_v56 }
 0x2f1   : > { %v9266_v46 = vpop.eup %9265 }
 0x2f2   : > { %v2151_v50 = vpop.xlane.xlu2 %2150  ;;  %v2775_v38 = vpop.xlane.xlu0 %2774  ;;  %v3156_v34 = vmul.f32 %v9266_v46, %v11285_v33 }
 0x2f3   : > { %v2397_v63 = vsub.f32 %v11297_v49, %v2151_v50  ;;  %9267 = vrcp.f32 %v2775_v38  ;;  %v11497_v2 = vpop.f32.mrf.mxu3  ;;  %v11527_v50 = vadd.f32 %v11142_v21, %v1729_v28 }
 0x2f5   : > { %v2534_v16 = vmul.f32 1.442695, %v2397_v63 }
 0x2f7   : > { %9269 = vpow2.f32 %v2534_v16 }
 0x2f9   : > { %v9268_v9 = vpop.eup %9267 }
 0x2fa   : > { %v2153_v6 = vpop.xlane.xlu2 %2152  ;;  %v2777_v52 = vpop.xlane.xlu0 %2776  ;;  %v3157_v3 = vmul.f32 %v9268_v9, %v11299_v43 }
 0x2fb   : > { %v2398_v12 = vsub.f32 %v11316_v11, %v2153_v6  ;;  %v11502_v24 = vpop.f32.mrf.mxu3 }
 0x2fc   : > { %v3284_v61 = vpack.c.bf16 %v3157_v3, %v3156_v34 }
 0x2fd   : > { %v11504_v7 = vpop.eup %9269  ;;  %v2536_v49 = vmul.f32 1.442695, %v2398_v12 }
 0x2fe   : > { %2790 = vadd.xlane.f32.xlu1 %v11504_v7  ;;  %3356 = vmatmul.bf16.vlgmr.msrb.gmra.mxu0 %v3284_v61 }
 0x2ff   : > { %9271 = vpow2.f32 %v2536_v49 }
 0x300   : > { %8492 = vmatmul.msk.bf16.gmra.mxu3 %vm754_vm0, %v17598_v48  ;;  %9273 = vrcp.f32 %v2777_v52 }
 0x302   : > { %v2779_v33 = vpop.xlane.xlu1 %2778  ;;  %v2155_v43 = vpop.xlane.xlu0 %2154 }
 0x303   : > { %9275 = vrcp.f32 %v2779_v33  ;;  %v2399_v11 = vsub.f32 %v11331_v22, %v2155_v43  ;;  %v11512_v57 = vpop.f32.mrf.mxu3 }
 0x305   : > { %v11514_v31 = vpop.eup %9271  ;;  %v2538_v27 = vmul.f32 1.442695, %v2399_v11 }
 0x306   : > { %2792 = vadd.xlane.f32.xlu1 %v11514_v31  ;;  %v9274_v23 = vpop.eup %9273 }
 0x307   : > { %9277 = vpow2.f32 %v2538_v27  ;;  %v3158_v22 = vmul.f32 %v9274_v23, %v11318_v36  ;;  %v1732_v36 = vadd.f32 %v11347_v0, %v1348_v5 }
 0x309   : > { %v9276_v4 = vpop.eup %9275  ;;  %v11545_v52 = vadd.f32 %v11142_v21, %v1732_v36 }
 0x30a   : > { %v2781_v37 = vpop.xlane.xlu1 %2780  ;;  %v2157_v8 = vpop.xlane.xlu0 %2156  ;;  %v3159_v13 = vmul.f32 %v9276_v4, %v11333_v62  ;;  %v17599_v62 = vpack.c.bf16 %v10767_v17, %v10764_v44  ;;  %v1349_v44 = vld [vmem:[%s17430_s15 + $0xa8] sm:$0xff]  ;;  %v17601_v4 = vld [vmem:[#allocation56_spill] sm:$0xff] }
 0x30b   : > { %v2400_v20 = vsub.f32 %v11351_v32, %v2157_v8  ;;  %v11524_v56 = vpop.f32.mrf.mxu3 }
 0x30c   : > { %v3285_v38 = vpack.c.bf16 %v3159_v13, %v3158_v22  ;;  %v1351_v13 = vld [vmem:[%s17430_s15 + $0xb8] sm:$0xff] }
 0x30d   : > { %v11529_v63 = vpop.eup %9277  ;;  %v2540_v16 = vmul.f32 1.442695, %v2400_v20 }
 0x30e   : > { %2170 = vmax.xlane.f32.xlu1 %v11527_v50  ;;  %3361 = vmatmul.bf16.gmra.mxu0 %v3285_v38 }
 0x30f   : > { %9279 = vpow2.f32 %v2540_v16  ;;  %2794 = vadd.xlane.f32.xlu2 %v11529_v63 }
 0x310   : > { %8493 = vmatmul.msk.bf16.gmra.mxu3 %vm754_vm0, %v17599_v62  ;;  %9281 = vrcp.f32 %v2781_v37  ;;  %v17603_v62 = vld [vmem:[#allocation54_spill] sm:$0xff] }
 0x312   : > { %v2159_v32 = vpop.xlane.xlu1 %2158  ;;  %v2783_v46 = vpop.xlane.xlu2 %2782 }
 0x313   : > { %v2401_v9 = vsub.f32 %v11367_v47, %v2159_v32  ;;  %9283 = vrcp.f32 %v2783_v46  ;;  %v11542_v6 = vpop.f32.mrf.mxu3  ;;  %v1734_v47 = vadd.f32 %v11363_v60, %v1349_v44  ;;  %v1350_v60 = vld [vmem:[%s17430_s15 + $0xb0] sm:$0xff]  ;;  %v17604_v46 = vld [vmem:[#allocation57_spill] sm:$0xff] }
 0x315   : > { %v11547_v34 = vpop.eup %9279  ;;  %v2542_v3 = vmul.f32 1.442695, %v2401_v9  ;;  %v11563_v23 = vadd.f32 %v11142_v21, %v1734_v47 }
 0x316   : > { %2172 = vmax.xlane.f32.xlu1 %v11545_v52  ;;  %v9282_v17 = vpop.eup %9281 }
 0x317   : > { %9285 = vpow2.f32 %v2542_v3  ;;  %2796 = vadd.xlane.f32.xlu2 %v11547_v34  ;;  %v3160_v49 = vmul.f32 %v9282_v17, %v11353_v35  ;;  %v17600_v35 = vpack.c.bf16 %v10899_v14, %v10888_v1  ;;  %v17605_v3 = vld [vmem:[#allocation59_spill] sm:$0xff] }
 0x319   : > { %v9284_v0 = vpop.eup %9283 }
 0x31a   : > { %v2161_v12 = vpop.xlane.xlu1 %2160  ;;  %v2785_v61 = vpop.xlane.xlu2 %2784  ;;  %v3161_v48 = vmul.f32 %v9284_v0, %v11369_v25  ;;  %v1737_v25 = vadd.f32 %v11381_v18, %v1350_v60  ;;  %v17602_v18 = vld [vmem:[#allocation55_spill] sm:$0xff] }
 0x31b   : > { %v2402_v33 = vsub.f32 %v11385_v59, %v2161_v12  ;;  %v11558_v43 = vpop.f32.mrf.mxu3  ;;  %v1739_v38 = vadd.f32 %v17602_v18, %v1351_v13 }
 0x31c   : > { %v3286_v11 = vpack.c.bf16 %v3161_v48, %v3160_v49  ;;  %v11584_v1 = vadd.f32 %v11142_v21, %v1737_v25  ;;  %v17606_v48 = vld [vmem:[#allocation58_spill] sm:$0xff] }
 0x31d   : > { %v11560_v40 = vpop.eup %9285  ;;  %v2544_v27 = vmul.f32 1.442695, %v2402_v33  ;;  %v11597_v0 = vadd.f32 %v11142_v21, %v1739_v38 }
 0x31e   : > { %2798 = vadd.xlane.f32.xlu0 %v11560_v40  ;;  %3366 = vmatmul.bf16.gmra.mxu0 %v3286_v11  ;;  %v17607_v11 = vld [vmem:[#allocation45_spill] sm:$0xff] }
 0x31f   : > { %9287 = vpow2.f32 %v2544_v27  ;;  %2174 = vmax.xlane.f32.xlu2 %v11563_v23  ;;  %v17608_v27 = vld [vmem:[#allocation44_spill] sm:$0xff] }
 0x320   : > { %8494 = vmatmul.msk.bf16.gmra.mxu3 %vm754_vm0, %v17600_v35  ;;  %9289 = vrcp.f32 %v2785_v61  ;;  %v1352_v61 = vld [vmem:[%s17430_s15 + $0xc0] sm:$0xff]  ;;  %v17609_v60 = vpack.c.bf16 %v17607_v11, %v17608_v27 }
 0x321   : > { %v1742_v33 = vadd.f32 %v17606_v48, %v1352_v61  ;;  %v1069_v48 = vld [vmem:[%s17429_s14 + $0x1e8] sm:$0xff] }
 0x322   : > { %v2163_v59 = vpop.xlane.xlu2 %2162  ;;  %v2787_v28 = vpop.xlane.xlu0 %2786  ;;  %v1197_v27 = vmul.f32 %v1069_v48, %v11102_v45 }
 0x323   : > { %v2403_v37 = vsub.f32 %v17601_v4, %v2163_v59  ;;  %9291 = vrcp.f32 %v2787_v28  ;;  %v11576_v8 = vpop.f32.mrf.mxu3  ;;  %v11615_v28 = vadd.f32 %v11142_v21, %v1742_v33 }
 0x325   : > { %v11578_v22 = vpop.eup %9287  ;;  %v2546_v20 = vmul.f32 1.442695, %v2403_v37  ;;  %v1353_v37 = vld [vmem:[%s17430_s15 + $0xc8] sm:$0xff] }
 0x326   : > { %2800 = vadd.xlane.f32.xlu0 %v11578_v22  ;;  %v9290_v14 = vpop.eup %9289 }
 0x327   : > { %9293 = vpow2.f32 %v2546_v20  ;;  %2176 = vmax.xlane.f32.xlu2 %v11584_v1  ;;  %v3162_v32 = vmul.f32 %v9290_v14, %v17603_v62  ;;  %v1067_v20 = vld [vmem:[%s17429_s14 + $0x1d8] sm:$0xff]  ;;  %v1744_v14 = vadd.f32 %v11435_v54, %v1353_v37 }
 0x329   : > { %v9292_v5 = vpop.eup %9291 }
 0x32a   : > { %v2165_v16 = vpop.xlane.xlu2 %2164  ;;  %v11589_v36 = vpop.xlane.xlu0 %2788  ;;  %v3163_v9 = vmul.f32 %v9292_v5, %v17604_v46  ;;  %v1195_v5 = vmul.f32 %v1067_v20, %v11082_v15  ;;  %v1070_v20 = vld [vmem:[%s17429_s14 + $0x1f0] sm:$0xff] }
 0x32b   : > { %v2404_v44 = vsub.f32 %v17605_v3, %v2165_v16  ;;  %v11594_v17 = vpop.f32.mrf.mxu3 }
 0x32c   : > { %v3287_v47 = vpack.c.bf16 %v3163_v9, %v3162_v32  ;;  %v11637_v32 = vadd.f32 %v11142_v21, %v1744_v14  ;;  %v1354_v9 = vld [vmem:[%s17430_s15 + $0xd0] sm:$0xff]  ;;  %v1071_v14 = vld [vmem:[%s17429_s14 + $0x1f8] sm:$0xff] }
 0x32d   : > { %v11599_v12 = vpop.eup %9293  ;;  %v2548_v49 = vmul.f32 1.442695, %v2404_v44 }
 0x32e   : > { %2178 = vmax.xlane.f32.xlu0 %v11597_v0  ;;  %2802 = vadd.xlane.f32.xlu1 %v11599_v12 }
 0x32f   : > { %9295 = vpow2.f32 %v2548_v49  ;;  %3371 = vmatmul.bf16.gmra.mxu0 %v3287_v47  ;;  %v1355_v49 = vld [vmem:[%s17430_s15 + $0xd8] sm:$0xff] }
 0x330   : > { %8495 = vmatmul.msk.bf16.gmra.mxu3 %vm754_vm0, %v17609_v60  ;;  %v1749_v33 = vadd.f32 %v11466_v19, %v1355_v49 }
 0x332   : > { %v2167_v35 = vpop.xlane.xlu0 %2166 }
 0x333   : > { %v2405_v25 = vsub.f32 %v11438_v26, %v2167_v35  ;;  %v11612_v59 = vpop.f32.mrf.mxu3  ;;  %v1066_v26 = vld [vmem:[%s17429_s14 + $0x1d0] sm:$0xff]  ;;  %v11672_v35 = vadd.f32 %v11142_v21, %v1749_v33 }
 0x334   : > { %v1194_v38 = vmul.f32 %v1066_v26, %v11079_v39 }
 0x335   : > { %v11617_v4 = vpop.eup %9295  ;;  %v2550_v13 = vmul.f32 1.442695, %v2405_v25  ;;  %v1356_v25 = vld [vmem:[%s17430_s15 + $0xe0] sm:$0xff] }
 0x336   : > { %2180 = vmax.xlane.f32.xlu0 %v11615_v28  ;;  %2804 = vadd.xlane.f32.xlu1 %v11617_v4  ;;  %v1293_v54 = vpack.c.bf16 %v1195_v5, %v1194_v38 }
 0x337   : > { %9297 = vpow2.f32 %v2550_v13  ;;  %v1752_v13 = vadd.f32 %v11473_v55, %v1356_v25  ;;  %v1199_v55 = vmul.f32 %v1071_v14, %v11119_v29  ;;  %v17615_v14 = vld [vmem:[#allocation20_spill] sm:$0xff] }
 0x339   : > { %v11683_v26 = vadd.f32 %v11142_v21, %v1752_v13 }
 0x33a   : > { %v2169_v18 = vpop.xlane.xlu0 %2168 }
 0x33b   : > { %v2406_v16 = vsub.f32 %v11453_v58, %v2169_v18  ;;  %v11634_v62 = vpop.f32.mrf.mxu3  ;;  %v1747_v58 = vadd.f32 %v11448_v41, %v1354_v9  ;;  %v1068_v41 = vld [vmem:[%s17429_s14 + $0x1e0] sm:$0xff]  ;;  %v1198_v18 = vmul.f32 %v1070_v20, %v11116_v42 }
 0x33c   : > { %v1196_v11 = vmul.f32 %v1068_v41, %v11099_v30 }
 0x33d   : > { %v11639_v46 = vpop.eup %9297  ;;  %v2552_v3 = vmul.f32 1.442695, %v2406_v16  ;;  %v11651_v47 = vadd.f32 %v11142_v21, %v1747_v58  ;;  %v1295_v5 = vpack.c.bf16 %v1199_v55, %v1198_v18 }
 0x33e   : > { %2182 = vmax.xlane.f32.xlu1 %v11637_v32  ;;  %2806 = vadd.xlane.f32.xlu2 %v11639_v46  ;;  %v1294_v37 = vpack.c.bf16 %v1197_v27, %v1196_v11  ;;  %v17613_v27 = vld [vmem:[#allocation60_spill] sm:$0xff] }
 0x33f   : > { %9299 = vpow2.f32 %v2552_v3  ;;  %v17610_v3 = vld [vmem:[#allocation13_spill] sm:$0xff] }
 0x340   : > { %8496 = vmatmul.msk.bf16.gmra.mxu3 %vm754_vm0, %v1293_v54  ;;  %9301 = vrcp.f32 %v11589_v36  ;;  %v17611_v54 = vld [vmem:[#allocation12_spill] sm:$0xff]  ;;  %v17614_v36 = vld [vmem:[#allocation21_spill] sm:$0xff] }
 0x341   : > { %v17612_v58 = vpack.c.bf16 %v17610_v3, %v17611_v54  ;;  %v17616_v18 = vpack.c.bf16 %v17614_v36, %v17615_v14  ;;  %v17618_v14 = vld [vmem:[#allocation29_spill] sm:$0xff] }
 0x343   : > { %v11648_v44 = vpop.f32.mrf.mxu3 }
 0x345   : > { %v11653_v61 = vpop.eup %9299 }
 0x346   : > { %2184 = vmax.xlane.f32.xlu1 %v11651_v47  ;;  %2808 = vadd.xlane.f32.xlu2 %v11653_v61  ;;  %v9302_v48 = vpop.eup %9301 }
 0x347   : > { %v3164_v25 = vmul.f32 %v9302_v48, %v17613_v27 }
 0x34b   : > { %v11669_v60 = vpop.f32.mrf.mxu3 }
 0x34e   : > { %2186 = vmax.xlane.f32.xlu2 %v11672_v35 }
 0x350   : > { %8497 = vmatmul.msk.bf16.gmra.mxu3 %vm754_vm0, %v1294_v37 }
 0x353   : > { %v11680_v19 = vpop.f32.mrf.mxu3 }
 0x356   : > { %2188 = vmax.xlane.f32.xlu2 %v11683_v26 }
 0x35b   : > { %v11694_v38 = vpop.f32.mrf.mxu3 }
 0x360   : > { %8498 = vmatmul.msk.bf16.gmra.mxu3 %vm754_vm0, %v1295_v5 }
 0x363   : > { %v11697_v16 = vpop.f32.mrf.mxu3 }
 0x36b   : > { %v11699_v9 = vpop.f32.mrf.mxu3 }
 0x370   : > { %8499 = vmatmul.msk.bf16.gmra.mxu3 %vm754_vm0, %v17612_v58 }
 0x371   : > { %v2791_v49 = vpop.xlane.xlu1 %2790 }
 0x372   : > { %9303 = vrcp.f32 %v2791_v49 }
 0x373   : > { %v11706_v41 = vpop.f32.mrf.mxu3 }
 0x378   : > { %v9304_v33 = vpop.eup %9303 }
 0x379   : > { %v2793_v11 = vpop.xlane.xlu1 %2792  ;;  %v3165_v37 = vmul.f32 %v9304_v33, %v11504_v7 }
 0x37a   : > { %9305 = vrcp.f32 %v2793_v11 }
 0x37b   : > { %v11710_v13 = vpop.f32.mrf.mxu3  ;;  %v3288_v20 = vpack.c.bf16 %v3165_v37, %v3164_v25 }
 0x37d   : > { %3376 = vmatmul.bf16.gmra.mxu0 %v3288_v20 }
 0x380   : > { %8500 = vmatmul.msk.bf16.gmra.mxu3 %vm754_vm0, %v17616_v18  ;;  %v9306_v7 = vpop.eup %9305  ;;  %v17619_v18 = vld [vmem:[#allocation28_spill] sm:$0xff] }
 0x381   : > { %v2171_v55 = vpop.xlane.xlu1 %2170  ;;  %v3166_v25 = vmul.f32 %v9306_v7, %v11514_v31 }
 0x382   : > { %v2407_v5 = vsub.f32 %v11527_v50, %v2171_v55  ;;  %v2795_v3 = vpop.xlane.xlu2 %2794  ;;  %v17620_v55 = vpack.c.bf16 %v17618_v14, %v17619_v18 }
 0x383   : > { %9307 = vrcp.f32 %v2795_v3  ;;  %v11717_v54 = vpop.f32.mrf.mxu3 }
 0x384   : > { %v2554_v58 = vmul.f32 1.442695, %v2407_v5 }
 0x386   : > { %9309 = vpow2.f32 %v2554_v58  ;;  %v1357_v58 = vld [vmem:[%s17430_s15 + $0xe8] sm:$0xff] }
 0x389   : > { %v9308_v49 = vpop.eup %9307  ;;  %v2173_v48 = vpop.xlane.xlu1 %2172 }
 0x38a   : > { %v2408_v33 = vsub.f32 %v11545_v52, %v2173_v48  ;;  %v2797_v27 = vpop.xlane.xlu2 %2796  ;;  %v3167_v37 = vmul.f32 %v9308_v49, %v11529_v63  ;;  %v1754_v48 = vadd.f32 %v11485_v53, %v1357_v58  ;;  %v1358_v53 = vld [vmem:[%s17430_s15 + $0xf0] sm:$0xff] }
 0x38b   : > { %v11722_v11 = vpop.f32.mrf.mxu3 }
 0x38c   : > { %17617 = vst [vmem:[#allocation56_spill] sm:$0xff] %v11722_v11  ;;  %v11724_v20 = vpop.eup %9309  ;;  %v2556_v50 = vmul.f32 1.442695, %v2408_v33  ;;  %v3289_v36 = vpack.c.bf16 %v3167_v37, %v3166_v25  ;;  %v11747_v14 = vadd.f32 %v11142_v21, %v1754_v48  ;;  %v17623_v21 = vld [vmem:[#allocation37_spill] sm:$0xff] }
 0x38d   : > { %2810 = vadd.xlane.f32.xlu0 %v11724_v20 }
 0x38e   : > { %9311 = vpow2.f32 %v2556_v50  ;;  %3381 = vmatmul.bf16.gmra.mxu0 %v3289_v36 }
 0x38f   : > { %9313 = vrcp.f32 %v2797_v27 }
 0x390   : > { %8501 = vmatmul.msk.bf16.gmra.mxu3 %vm754_vm0, %v17620_v55 }
 0x391   : > { %v2799_v52 = vpop.xlane.xlu0 %2798 }
 0x392   : > { %v2175_v31 = vpop.xlane.xlu2 %2174  ;;  %9315 = vrcp.f32 %v2799_v52 }
 0x393   : > { %v2409_v63 = vsub.f32 %v11563_v23, %v2175_v31  ;;  %v11732_v5 = vpop.f32.mrf.mxu3 }
 0x394   : > { %17621 = vst [vmem:[#allocation55_spill] sm:$0xff] %v11732_v5  ;;  %v11734_v3 = vpop.eup %9311 }
 0x395   : > { %v2558_v7 = vmul.f32 1.442695, %v2409_v63  ;;  %2812 = vadd.xlane.f32.xlu0 %v11734_v3  ;;  %v9314_v49 = vpop.eup %9313 }
 0x396   : > { %v3168_v25 = vmul.f32 %v9314_v49, %v11547_v34  ;;  %v1757_v34 = vadd.f32 %v11488_v10, %v1358_v53  ;;  %v11765_v49 = vld [vmem:[%s10849_s28] ss:$0 sm:$0xff] }
 0x397   : > { %9317 = vpow2.f32 %v2558_v7 }
 0x398   : > { %v9316_v33 = vpop.eup %9315  ;;  %v11768_v48 = vadd.f32 %v11765_v49, %v1757_v34 }
 0x399   : > { %v2801_v27 = vpop.xlane.xlu0 %2800  ;;  %v3169_v23 = vmul.f32 %v9316_v33, %v11560_v40  ;;  %v17624_v40 = vld [vmem:[#allocation36_spill] sm:$0xff] }
 0x39a   : > { %v2177_v37 = vpop.xlane.xlu2 %2176 }
 0x39b   : > { %v2410_v50 = vsub.f32 %v11584_v1, %v2177_v37  ;;  %v11744_v36 = vpop.f32.mrf.mxu3  ;;  %v3290_v18 = vpack.c.bf16 %v3169_v23, %v3168_v25  ;;  %v17625_v1 = vpack.c.bf16 %v17623_v21, %v17624_v40 }
 0x39c   : > { %17622 = vst [vmem:[#allocation54_spill] sm:$0xff] %v11744_v36 }
 0x39d   : > { %v11752_v55 = vpop.eup %9317  ;;  %v2560_v52 = vmul.f32 1.442695, %v2410_v50  ;;  %2190 = vmax.xlane.f32.xlu0 %v11747_v14 }
 0x39e   : > { %2814 = vadd.xlane.f32.xlu1 %v11752_v55  ;;  %3386 = vmatmul.bf16.gmra.mxu0 %v3290_v18 }
 0x39f   : > { %9319 = vpow2.f32 %v2560_v52 }
 0x3a0   : > { %9321 = vrcp.f32 %v2801_v27  ;;  %8502 = vmatmul.msk.bf16.gmra.mxu3 %vm754_vm0, %v17625_v1  ;;  %v1359_v27 = vld [vmem:[%s17430_s15 + $0xf8] sm:$0xff]  ;;  %v11785_v1 = vpop.f32.mrf.mxu0 }
 0x3a1   : > { %v2803_v31 = vpop.xlane.xlu1 %2802  ;;  %v2179_v63 = vpop.xlane.xlu0 %2178  ;;  %v1759_v23 = vadd.f32 %v11490_v51, %v1359_v27  ;;  %v1360_v51 = vld [vmem:[%s17430_s15 + $0x100] sm:$0xff] }
 0x3a2   : > { %9323 = vrcp.f32 %v2803_v31  ;;  %v2411_v58 = vsub.f32 %v11597_v0, %v2179_v63 }
 0x3a3   : > { %v11762_v7 = vpop.f32.mrf.mxu3  ;;  %v11788_v63 = vadd.f32 %v11765_v49, %v1759_v23 }
 0x3a4   : > { %17626 = vst [vmem:[#allocation57_spill] sm:$0xff] %v11762_v7  ;;  %v2562_v10 = vmul.f32 1.442695, %v2411_v58 }
 0x3a5   : > { %v11770_v33 = vpop.eup %9319  ;;  %2192 = vmax.xlane.f32.xlu0 %v11768_v48 }
 0x3a6   : > { %v9322_v25 = vpop.eup %9321  ;;  %9325 = vpow2.f32 %v2562_v10  ;;  %2816 = vadd.xlane.f32.xlu1 %v11770_v33 }
 0x3a7   : > { %v3170_v18 = vmul.f32 %v9322_v25, %v11578_v22  ;;  %v1762_v22 = vadd.f32 %v11497_v2, %v1360_v51 }
 0x3a8   : > { %v9324_v0 = vpop.eup %9323 }
 0x3a9   : > { %v2805_v37 = vpop.xlane.xlu1 %2804  ;;  %v2181_v50 = vpop.xlane.xlu0 %2180  ;;  %v3171_v53 = vmul.f32 %v9324_v0, %v11599_v12  ;;  %v17628_v12 = vld [vmem:[#allocation47_spill] sm:$0xff] }
 0x3aa   : > { %v2412_v52 = vsub.f32 %v11615_v28, %v2181_v50  ;;  %v17629_v28 = vld [vmem:[#allocation46_spill] sm:$0xff]  ;;  %v1361_v50 = vld [vmem:[%s17430_s15 + $0x108] sm:$0xff] }
 0x3ab   : > { %v11781_v34 = vpop.f32.mrf.mxu3  ;;  %v3291_v21 = vpack.c.bf16 %v3171_v53, %v3170_v18  ;;  %v17630_v58 = vpack.c.bf16 %v17628_v12, %v17629_v28  ;;  %v11812_v53 = vpop.f32.mrf.mxu0 }
 0x3ac   : > { %17627 = vst [vmem:[#allocation59_spill] sm:$0xff] %v11781_v34  ;;  %v11783_v40 = vpop.eup %9325  ;;  %v2564_v31 = vmul.f32 1.442695, %v2412_v52  ;;  %v1082_v52 = vld [vmem:[%s17429_s14 + $0x250] sm:$0xff] }
 0x3ad   : > { %2818 = vadd.xlane.f32.xlu2 %v11783_v40 }
 0x3ae   : > { %9327 = vpow2.f32 %v2564_v31  ;;  %2194 = vmax.xlane.f32.xlu1 %v11788_v63  ;;  %3391 = vmatmul.bf16.gmra.mxu0 %v3291_v21  ;;  %v1083_v21 = vld [vmem:[%s17429_s14 + $0x258] sm:$0xff] }
 0x3af   : > { %9329 = vrcp.f32 %v2805_v37  ;;  %v11809_v37 = vadd.f32 %v11765_v49, %v1762_v22 }
 0x3b0   : > { %8503 = vmatmul.msk.bf16.gmra.mxu3 %vm754_vm0, %v17630_v58 }
 0x3b1   : > { %v2183_v10 = vpop.xlane.xlu1 %2182  ;;  %v2807_v27 = vpop.xlane.xlu2 %2806 }
 0x3b2   : > { %v2413_v25 = vsub.f32 %v11637_v32, %v2183_v10  ;;  %9331 = vrcp.f32 %v2807_v27  ;;  %v1764_v32 = vadd.f32 %v11502_v24, %v1361_v50  ;;  %v1210_v24 = vmul.f32 %v1082_v52, %v11079_v39 }
 0x3b3   : > { %v11801_v0 = vpop.f32.mrf.mxu3  ;;  %v1211_v10 = vmul.f32 %v1083_v21, %v11082_v15  ;;  %v11842_v52 = vpop.f32.mrf.mxu0 }
 0x3b4   : > { %17631 = vst [vmem:[#allocation58_spill] sm:$0xff] %v11801_v0  ;;  %v11803_v23 = vpop.eup %9327  ;;  %v2566_v2 = vmul.f32 1.442695, %v2413_v25  ;;  %v11832_v50 = vadd.f32 %v11765_v49, %v1764_v32 }
 0x3b5   : > { %2820 = vadd.xlane.f32.xlu2 %v11803_v23  ;;  %v9330_v18 = vpop.eup %9329 }
 0x3b6   : > { %9333 = vpow2.f32 %v2566_v2  ;;  %2196 = vmax.xlane.f32.xlu1 %v11809_v37  ;;  %v3172_v12 = vmul.f32 %v9330_v18, %v11617_v4  ;;  %v1362_v4 = vld [vmem:[%s17430_s15 + $0x110] sm:$0xff] }
 0x3b8   : > { %v9332_v31 = vpop.eup %9331 }
 0x3b9   : > { %v2185_v51 = vpop.xlane.xlu1 %2184  ;;  %v11822_v22 = vpop.xlane.xlu2 %2808  ;;  %v3173_v28 = vmul.f32 %v9332_v31, %v11639_v46  ;;  %v1301_v46 = vpack.c.bf16 %v1211_v10, %v1210_v24  ;;  %v1085_v24 = vld [vmem:[%s17429_s14 + $0x268] sm:$0xff] }
 0x3ba   : > { %v2414_v58 = vsub.f32 %v11651_v47, %v2185_v51  ;;  %v1767_v47 = vadd.f32 %v11512_v57, %v1362_v4 }
 0x3bb   : > { %v11829_v27 = vpop.f32.mrf.mxu3  ;;  %v3292_v25 = vpack.c.bf16 %v3173_v28, %v3172_v12  ;;  %v1363_v28 = vld [vmem:[%s17430_s15 + $0x118] sm:$0xff] }
 0x3bc   : > { %17632 = vst [vmem:[#allocation45_spill] sm:$0xff] %v11829_v27  ;;  %v11834_v2 = vpop.eup %9333  ;;  %v2568_v18 = vmul.f32 1.442695, %v2414_v58  ;;  %v11849_v51 = vadd.f32 %v11765_v49, %v1767_v47  ;;  %v1769_v57 = vadd.f32 %v11524_v56, %v1363_v28  ;;  %v17640_v27 = vld [vmem:[#allocation14_spill] sm:$0xff] }
 0x3bd   : > { %2822 = vadd.xlane.f32.xlu0 %v11834_v2  ;;  %2198 = vmax.xlane.f32.xlu2 %v11832_v50 }
 0x3be   : > { %9335 = vpow2.f32 %v2568_v18  ;;  %3396 = vmatmul.bf16.gmra.mxu0 %v3292_v25  ;;  %v11865_v25 = vpop.f32.mrf.mxu0  ;;  %v11873_v56 = vadd.f32 %v11765_v49, %v1769_v57 }
 0x3c0   : > { %8504 = vmatmul.msk.bf16.gmra.mxu3 %vm754_vm0, %v1301_v46  ;;  %v1213_v46 = vmul.f32 %v1085_v24, %v11102_v45 }
 0x3c1   : > { %v2187_v32 = vpop.xlane.xlu2 %2186 }
 0x3c2   : > { %v2415_v21 = vsub.f32 %v11672_v35, %v2187_v32  ;;  %v1084_v35 = vld [vmem:[%s17429_s14 + $0x260] sm:$0xff] }
 0x3c3   : > { %v11846_v31 = vpop.f32.mrf.mxu3  ;;  %v1212_v18 = vmul.f32 %v1084_v35, %v11099_v30 }
 0x3c4   : > { %17633 = vst [vmem:[#allocation44_spill] sm:$0xff] %v11846_v31  ;;  %v11851_v12 = vpop.eup %9335  ;;  %v2570_v58 = vmul.f32 1.442695, %v2415_v21  ;;  %v1364_v21 = vld [vmem:[%s17430_s15 + $0x120] sm:$0xff]  ;;  %v17639_v31 = vld [vmem:[#allocation15_spill] sm:$0xff] }
 0x3c5   : > { %2824 = vadd.xlane.f32.xlu0 %v11851_v12  ;;  %2200 = vmax.xlane.f32.xlu2 %v11849_v51  ;;  %v17641_v0 = vpack.c.bf16 %v17639_v31, %v17640_v27 }
 0x3c6   : > { %9337 = vpow2.f32 %v2570_v58  ;;  %v1772_v58 = vadd.f32 %v11542_v6, %v1364_v21 }
 0x3c8   : > { %v11887_v57 = vadd.f32 %v11765_v49, %v1772_v58 }
 0x3c9   : > { %v2189_v10 = vpop.xlane.xlu2 %2188 }
 0x3ca   : > { %v2416_v4 = vsub.f32 %v11683_v26, %v2189_v10  ;;  %v1302_v26 = vpack.c.bf16 %v1213_v46, %v1212_v18  ;;  %v1365_v10 = vld [vmem:[%s17430_s15 + $0x128] sm:$0xff]  ;;  %v1086_v18 = vld [vmem:[%s17429_s14 + $0x270] sm:$0xff]  ;;  %v1087_v46 = vld [vmem:[%s17429_s14 + $0x278] sm:$0xff] }
 0x3cb   : > { %v11870_v47 = vpop.f32.mrf.mxu3  ;;  %v1774_v6 = vadd.f32 %v11558_v43, %v1365_v10  ;;  %v1214_v21 = vmul.f32 %v1086_v18, %v11116_v42  ;;  %v1366_v43 = vld [vmem:[%s17430_s15 + $0x130] sm:$0xff] }
 0x3cc   : > { %17634 = vst [vmem:[#allocation13_spill] sm:$0xff] %v11870_v47  ;;  %v11875_v32 = vpop.eup %9337  ;;  %v2572_v28 = vmul.f32 1.442695, %v2416_v4  ;;  %v11894_v4 = vpop.f32.mrf.mxu0  ;;  %v1777_v47 = vadd.f32 %v11576_v8, %v1366_v43  ;;  %v17645_v43 = vld [vmem:[#allocation22_spill] sm:$0xff] }
 0x3cd   : > { %2202 = vmax.xlane.f32.xlu0 %v11873_v56  ;;  %2826 = vadd.xlane.f32.xlu1 %v11875_v32  ;;  %v11910_v58 = vadd.f32 %v11765_v49, %v1774_v6 }
 0x3ce   : > { %9339 = vpow2.f32 %v2572_v28  ;;  %v1215_v28 = vmul.f32 %v1087_v46, %v11119_v29  ;;  %v11923_v46 = vadd.f32 %v11765_v49, %v1777_v47  ;;  %v17644_v47 = vld [vmem:[#allocation23_spill] sm:$0xff] }
 0x3cf   : > { %9341 = vrcp.f32 %v11822_v22 }
 0x3d0   : > { %8505 = vmatmul.msk.bf16.gmra.mxu3 %vm754_vm0, %v1302_v26 }
 0x3d3   : > { %v11884_v35 = vpop.f32.mrf.mxu3 }
 0x3d4   : > { %17635 = vst [vmem:[#allocation12_spill] sm:$0xff] %v11884_v35  ;;  %v11889_v24 = vpop.eup %9339  ;;  %v11916_v10 = vpop.f32.mrf.mxu0  ;;  %v1303_v35 = vpack.c.bf16 %v1215_v28, %v1214_v21 }
 0x3d5   : > { %2204 = vmax.xlane.f32.xlu0 %v11887_v57  ;;  %2828 = vadd.xlane.f32.xlu1 %v11889_v24  ;;  %v9342_v31 = vpop.eup %9341 }
 0x3d6   : > { %v3174_v7 = vmul.f32 %v9342_v31, %v11653_v61 }
 0x3db   : > { %v11907_v26 = vpop.f32.mrf.mxu3 }
 0x3dc   : > { %17636 = vst [vmem:[#allocation60_spill] sm:$0xff] %v11907_v26  ;;  %v11926_v6 = vpop.f32.mrf.mxu0 }
 0x3dd   : > { %2206 = vmax.xlane.f32.xlu1 %v11910_v58 }
 0x3e0   : > { %8506 = vmatmul.msk.bf16.gmra.mxu3 %vm754_vm0, %v1303_v35 }
 0x3e3   : > { %v11920_v18 = vpop.f32.mrf.mxu3 }
 0x3e4   : > { %17637 = vst [vmem:[#allocation21_spill] sm:$0xff] %v11920_v18  ;;  %v11934_v21 = vpop.f32.mrf.mxu0  ;;  %v17646_v18 = vpack.c.bf16 %v17644_v47, %v17645_v43 }
 0x3e5   : > { %2208 = vmax.xlane.f32.xlu1 %v11923_v46 }
 0x3eb   : > { %v11928_v26 = vpop.f32.mrf.mxu3 }
 0x3ec   : > { %17638 = vst [vmem:[#allocation20_spill] sm:$0xff] %v11928_v26 }
 0x3f0   : > { %8507 = vmatmul.msk.bf16.gmra.mxu3 %vm754_vm0, %v17641_v0 }
 0x3f3   : > { %v11936_v8 = vpop.f32.mrf.mxu3 }
 0x3f4   : > { %17642 = vst [vmem:[#allocation29_spill] sm:$0xff] %v11936_v8 }
 0x3fa   : > { %v11938_v35 = vpop.f32.mrf.mxu0 }
 0x3fb   : > { %v11940_v28 = vpop.f32.mrf.mxu3 }
 0x3fc   : > { %17643 = vst [vmem:[#allocation28_spill] sm:$0xff] %v11940_v28 }
 0x400   : > { %8508 = vmatmul.msk.bf16.gmra.mxu3 %vm754_vm0, %v17646_v18  ;;  %v2811_v26 = vpop.xlane.xlu0 %2810  ;;  %v17649_v18 = vld [vmem:[#allocation31_spill] sm:$0xff] }
 0x401   : > { %9343 = vrcp.f32 %v2811_v26  ;;  %v17650_v26 = vld [vmem:[#allocation30_spill] sm:$0xff] }
 0x402   : > { %v11947_v27 = vpop.f32.mrf.mxu0  ;;  %v17651_v47 = vpack.c.bf16 %v17649_v18, %v17650_v26 }
 0x403   : > { %v11949_v0 = vpop.f32.mrf.mxu3 }
 0x404   : > { %17647 = vst [vmem:[#allocation37_spill] sm:$0xff] %v11949_v0 }
 0x407   : > { %v9344_v34 = vpop.eup %9343 }
 0x408   : > { %v2813_v8 = vpop.xlane.xlu0 %2812  ;;  %v3175_v28 = vmul.f32 %v9344_v34, %v11724_v20 }
 0x409   : > { %9345 = vrcp.f32 %v2813_v8 }
 0x40a   : > { %v3293_v36 = vpack.c.bf16 %v3175_v28, %v3174_v7 }
 0x40b   : > { %v11953_v22 = vpop.f32.mrf.mxu0  ;;  %v11955_v5 = vpop.f32.mrf.mxu3 }
 0x40c   : > { %17648 = vst [vmem:[#allocation36_spill] sm:$0xff] %v11955_v5  ;;  %3401 = vmatmul.bf16.gmra.mxu0 %v3293_v36 }
 0x40f   : > { %v9346_v7 = vpop.eup %9345 }
 0x410   : > { %8509 = vmatmul.msk.bf16.gmra.mxu3 %vm754_vm0, %v17651_v47  ;;  %v2191_v43 = vpop.xlane.xlu0 %2190  ;;  %v3176_v18 = vmul.f32 %v9346_v7, %v11734_v3 }
 0x411   : > { %v2815_v0 = vpop.xlane.xlu1 %2814  ;;  %v2417_v11 = vsub.f32 %v11747_v14, %v2191_v43 }
 0x412   : > { %9347 = vrcp.f32 %v2815_v0 }
 0x413   : > { %v2574_v61 = vmul.f32 1.442695, %v2417_v11  ;;  %v11962_v31 = vpop.f32.mrf.mxu0  ;;  %v11964_v20 = vpop.f32.mrf.mxu3 }
 0x414   : > { %17652 = vst [vmem:[#allocation47_spill] sm:$0xff] %v11964_v20  ;;  %v17655_v20 = vld [vmem:[#allocation38_spill] sm:$0xff] }
 0x415   : > { %9349 = vpow2.f32 %v2574_v61  ;;  %v17654_v61 = vld [vmem:[#allocation39_spill] sm:$0xff] }
 0x418   : > { %v9348_v34 = vpop.eup %9347  ;;  %v2193_v36 = vpop.xlane.xlu0 %2192 }
 0x419   : > { %v2817_v8 = vpop.xlane.xlu1 %2816  ;;  %v2418_v28 = vsub.f32 %v11768_v48, %v2193_v36  ;;  %v3177_v26 = vmul.f32 %v9348_v34, %v11752_v55  ;;  %v17656_v48 = vpack.c.bf16 %v17654_v61, %v17655_v20  ;;  %v1367_v36 = vld [vmem:[%s17430_s15 + $0x138] sm:$0xff] }
 0x41b   : > { %v11969_v47 = vpop.eup %9349  ;;  %v2576_v14 = vmul.f32 1.442695, %v2418_v28  ;;  %v11971_v0 = vpop.f32.mrf.mxu0  ;;  %v3294_v43 = vpack.c.bf16 %v3177_v26, %v3176_v18  ;;  %v1779_v26 = vadd.f32 %v11594_v17, %v1367_v36 }
 0x41c   : > { %v11973_v11 = vpop.f32.mrf.mxu3  ;;  %2830 = vadd.xlane.f32.xlu2 %v11969_v47 }
 0x41d   : > { %17653 = vst [vmem:[#allocation46_spill] sm:$0xff] %v11973_v11  ;;  %9351 = vpow2.f32 %v2576_v14  ;;  %3406 = vmatmul.bf16.gmra.mxu0 %v3294_v43  ;;  %v11994_v11 = vadd.f32 %v11765_v49, %v1779_v26 }
 0x41e   : > { %9353 = vrcp.f32 %v2817_v8 }
 0x420   : > { %8510 = vmatmul.msk.bf16.gmra.mxu3 %vm754_vm0, %v17656_v48  ;;  %v2819_v3 = vpop.xlane.xlu2 %2818 }
 0x421   : > { %v2195_v55 = vpop.xlane.xlu1 %2194  ;;  %9355 = vrcp.f32 %v2819_v3 }
 0x422   : > { %v2419_v7 = vsub.f32 %v11788_v63, %v2195_v55 }
 0x423   : > { %v11981_v34 = vpop.eup %9351  ;;  %v3389_v28 = vpop.f32.mrf.mxu0 }
 0x424   : > { %v11986_v18 = vpop.f32.mrf.mxu3  ;;  %v2578_v8 = vmul.f32 1.442695, %v2419_v7  ;;  %2832 = vadd.xlane.f32.xlu2 %v11981_v34  ;;  %v9354_v20 = vpop.eup %9353  ;;  %v1368_v7 = vld [vmem:[%s17430_s15 + $0x140] sm:$0xff] }
 0x425   : > { %17657 = vst [vmem:[#allocation15_spill] sm:$0xff] %v11986_v18  ;;  %v3178_v63 = vmul.f32 %v9354_v20, %v11770_v33  ;;  %v1782_v33 = vadd.f32 %v11612_v59, %v1368_v7  ;;  %v10022_v7 = vld [vmem:[%s17429_s14 + $0x70] sm:$0xff] }
 0x426   : > { %9357 = vpow2.f32 %v2578_v8 }
 0x427   : > { %v9356_v14 = vpop.eup %9355 }
 0x428   : > { %v2821_v43 = vpop.xlane.xlu2 %2820  ;;  %v3179_v61 = vmul.f32 %v9356_v14, %v11783_v40  ;;  %v17659_v40 = vld [vmem:[#allocation49_spill] sm:$0xff] }
 0x429   : > { %v2197_v48 = vpop.xlane.xlu1 %2196 }
 0x42a   : > { %v2420_v3 = vsub.f32 %v11809_v37, %v2197_v48  ;;  %v3295_v55 = vpack.c.bf16 %v3179_v61, %v3178_v63  ;;  %v17660_v37 = vld [vmem:[#allocation48_spill] sm:$0xff]  ;;  %v12012_v61 = vadd.f32 %v11765_v49, %v1782_v33 }
 0x42b   : > { %v3392_v18 = vpop.f32.mrf.mxu0  ;;  %v17661_v20 = vpack.c.bf16 %v17659_v40, %v17660_v37  ;;  %v10024_v37 = vld [vmem:[%s17429_s14 + $0x68] sm:$0xff] }
 0x42c   : > { %v11999_v17 = vpop.f32.mrf.mxu3  ;;  %v12001_v36 = vpop.eup %9357  ;;  %v2580_v8 = vmul.f32 1.442695, %v2420_v3  ;;  %2210 = vmax.xlane.f32.xlu2 %v11994_v11 }
 0x42d   : > { %17658 = vst [vmem:[#allocation14_spill] sm:$0xff] %v11999_v17  ;;  %2834 = vadd.xlane.f32.xlu0 %v12001_v36  ;;  %3411 = vmatmul.bf16.gmra.mxu0 %v3295_v55 }
 0x42e   : > { %9359 = vpow2.f32 %v2580_v8  ;;  %v3691_v8 = vmul.f32 %v10022_v7, %v3392_v18  ;;  %v1098_v18 = vld [vmem:[%s17429_s14 + $0x2d0] sm:$0xff] }
 0x42f   : > { %9361 = vrcp.f32 %v2821_v43  ;;  %v1369_v43 = vld [vmem:[%s17430_s15 + $0x148] sm:$0xff] }
 0x430   : > { %8511 = vmatmul.msk.bf16.gmra.mxu3 %vm754_vm0, %v17661_v20  ;;  %v2199_v26 = vpop.xlane.xlu2 %2198  ;;  %v2823_v14 = vpop.xlane.xlu0 %2822  ;;  %v3690_v20 = vmul.f32 %v10024_v37, %v3389_v28 }
 0x431   : > { %v2421_v63 = vsub.f32 %v11832_v50, %v2199_v26  ;;  %9363 = vrcp.f32 %v2823_v14  ;;  %v10023_v50 = vld [vmem:[%s17429_s14 + $0x78] sm:$0xff] }
 0x433   : > { %v2582_v48 = vmul.f32 1.442695, %v2421_v63  ;;  %v3394_v3 = vpop.f32.mrf.mxu0  ;;  %v1784_v63 = vadd.f32 %v11634_v62, %v1369_v43  ;;  %v1226_v62 = vmul.f32 %v1098_v18, %v11079_v39  ;;  %v10026_v43 = vld [vmem:[%s17429_s14 + $0x58] sm:$0xff] }
 0x434   : > { %v12014_v55 = vpop.f32.mrf.mxu3  ;;  %v12016_v59 = vpop.eup %9359  ;;  %v3692_v33 = vmul.f32 %v10023_v50, %v3394_v3  ;;  %2212 = vmax.xlane.f32.xlu2 %v12012_v61  ;;  %v1099_v3 = vld [vmem:[%s17429_s14 + $0x2d8] sm:$0xff] }
 0x435   : > { %17662 = vst [vmem:[#allocation23_spill] sm:$0xff] %v12014_v55  ;;  %v9362_v40 = vpop.eup %9361  ;;  %9365 = vpow2.f32 %v2582_v48  ;;  %2836 = vadd.xlane.f32.xlu0 %v12016_v59  ;;  %v10025_v48 = vld [vmem:[%s17429_s14 + $0x60] sm:$0xff]  ;;  %v3688_v55 = vmul.f32 %v10026_v43, %v11962_v31  ;;  %v10027_v31 = vld [vmem:[%s17429_s14 + $0x50] sm:$0xff] }
 0x436   : > { %v3812_v26 = vpack.c.bf16 %v3692_v33, %v3691_v8  ;;  %v3689_v7 = vmul.f32 %v10025_v48, %v11971_v0  ;;  %v3180_v50 = vmul.f32 %v9362_v40, %v11803_v23  ;;  %v1227_v0 = vmul.f32 %v1099_v3, %v11082_v15 }
 0x437   : > { %v9364_v14 = vpop.eup %9363  ;;  %v3687_v40 = vmul.f32 %v10027_v31, %v11953_v22  ;;  %v10029_v22 = vld [vmem:[%s17429_s14 + $0x40] sm:$0xff]  ;;  %v1101_v31 = vld [vmem:[%s17429_s14 + $0x2e8] sm:$0xff] }
 0x438   : > { %4253 = vmatpush.bf16.msrb.mxu1 %v3812_v26  ;;  %v2201_v28 = vpop.xlane.xlu2 %2200  ;;  %v2825_v8 = vpop.xlane.xlu0 %2824  ;;  %v3181_v33 = vmul.f32 %v9364_v14, %v11834_v2  ;;  %v3811_v17 = vpack.c.bf16 %v3690_v20, %v3689_v7  ;;  %v12057_v2 = vadd.f32 %v11765_v49, %v1784_v63  ;;  %v10028_v20 = vld [vmem:[%s17429_s14 + $0x48] sm:$0xff]  ;;  %v1309_v63 = vpack.c.bf16 %v1227_v0, %v1226_v62 }
 0x439   : > { %v2422_v37 = vsub.f32 %v11849_v51, %v2201_v28  ;;  %v1370_v51 = vld [vmem:[%s17430_s15 + $0x150] sm:$0xff]  ;;  %v3686_v18 = vmul.f32 %v10028_v20, %v11947_v27  ;;  %v3810_v14 = vpack.c.bf16 %v3688_v55, %v3687_v40  ;;  %v10030_v27 = vld [vmem:[%s17429_s14 + $0x38] sm:$0xff]  ;;  %v10032_v0 = vld [vmem:[%s17429_s14 + $0x28] sm:$0xff] }
 0x43a   : > { %v3296_v5 = vpack.c.bf16 %v3181_v33, %v3180_v50  ;;  %v1787_v3 = vadd.f32 %v11648_v44, %v1370_v51  ;;  %v3684_v44 = vmul.f32 %v10030_v27, %v11934_v21 }
 0x43b   : > { %v12052_v26 = vpop.eup %9365  ;;  %v2584_v48 = vmul.f32 1.442695, %v2422_v37 }
 0x43c   : > { %v12054_v23 = vpop.f32.mrf.mxu3  ;;  %4254 = vmatpush.bf16.msrb.mxu1 %v3811_v17  ;;  %2838 = vadd.xlane.f32.xlu1 %v12052_v26  ;;  %v3685_v17 = vmul.f32 %v10029_v22, %v11938_v35  ;;  %v1371_v35 = vld [vmem:[%s17430_s15 + $0x158] sm:$0xff]  ;;  %v12091_v37 = vadd.f32 %v11765_v49, %v1787_v3 }
 0x43d   : > { %9367 = vpow2.f32 %v2584_v48  ;;  %2214 = vmax.xlane.f32.xlu0 %v12057_v2  ;;  %3416 = vmatmul.bf16.gmra.mxu0 %v3296_v5  ;;  %v1789_v43 = vadd.f32 %v11669_v60, %v1371_v35  ;;  %v3682_v48 = vmul.f32 %v10032_v0, %v11916_v10  ;;  %v10033_v60 = vld [vmem:[%s17429_s14 + $0x20] sm:$0xff] }
 0x43e   : > { %9369 = vrcp.f32 %v2825_v8  ;;  %v3809_v55 = vpack.c.bf16 %v3686_v18, %v3685_v17  ;;  %v3681_v20 = vmul.f32 %v10033_v60, %v11894_v4  ;;  %v1229_v17 = vmul.f32 %v1101_v31, %v11102_v45  ;;  %v1103_v60 = vld [vmem:[%s17429_s14 + $0x2f8] sm:$0xff] }
 0x440   : > { %4255 = vmatpush.bf16.msrb.mxu1 %v3810_v14  ;;  %8512 = vmatmul.msk.bf16.gmra.mxu3 %vm754_vm0, %v1309_v63  ;;  %v2827_v5 = vpop.xlane.xlu1 %2826  ;;  %v2203_v7 = vpop.xlane.xlu0 %2202 }
 0x441   : > { %9371 = vrcp.f32 %v2827_v5  ;;  %v2423_v28 = vsub.f32 %v11873_v56, %v2203_v7  ;;  %v10031_v56 = vld [vmem:[%s17429_s14 + $0x30] sm:$0xff]  ;;  %v10034_v5 = vld [vmem:[%s17429_s14 + $0x18] sm:$0xff]  ;;  %v3807_v7 = vpack.c.bf16 %v3682_v48, %v3681_v20 }
 0x442   : > { %v3683_v62 = vmul.f32 %v10031_v56, %v11926_v6  ;;  %v1100_v6 = vld [vmem:[%s17429_s14 + $0x2e0] sm:$0xff]  ;;  %v3680_v4 = vmul.f32 %v10034_v5, %v11865_v25 }
 0x443   : > { %v12083_v8 = vpop.eup %9367  ;;  %v2586_v50 = vmul.f32 1.442695, %v2423_v28  ;;  %v1228_v22 = vmul.f32 %v1100_v6, %v11099_v30  ;;  %v12126_v28 = vadd.f32 %v11765_v49, %v1789_v43 }
 0x444   : > { %v12088_v33 = vpop.f32.mrf.mxu3  ;;  %4256 = vmatpush.bf16.msrb.mxu1 %v3809_v55  ;;  %2840 = vadd.xlane.f32.xlu1 %v12083_v8  ;;  %v9370_v21 = vpop.eup %9369  ;;  %v3808_v51 = vpack.c.bf16 %v3684_v44, %v3683_v62  ;;  %v10035_v55 = vld [vmem:[%s17429_s14 + $0x10] sm:$0xff] }
 0x445   : > { %9373 = vpow2.f32 %v2586_v50  ;;  %2216 = vmax.xlane.f32.xlu0 %v12091_v37  ;;  %v3182_v14 = vmul.f32 %v9370_v21, %v11851_v12  ;;  %v3679_v25 = vmul.f32 %v10035_v55, %v11842_v52  ;;  %v10036_v50 = vld [vmem:[%s17429_s14 + $0x8] sm:$0xff]  ;;  %v1310_v21 = vpack.c.bf16 %v1229_v17, %v1228_v22  ;;  %v10037_v52 = vld [vmem:[%s17429_s14] sm:$0xff]  ;;  %v1374_v17 = vld [vmem:[%s17430_s15 + $0x170] sm:$0xff] }
 0x446   : > { %v3678_v56 = vmul.f32 %v10036_v50, %v11812_v53  ;;  %v3677_v43 = vmul.f32 %v10037_v52, %v11785_v1 }
 0x447   : > { %v9372_v40 = vpop.eup %9371  ;;  %v3806_v62 = vpack.c.bf16 %v3680_v4, %v3679_v25  ;;  %v1797_v4 = vadd.f32 %v11697_v16, %v1374_v17  ;;  %v1376_v25 = vld [vmem:[%s17430_s15 + $0x180] sm:$0xff] }
 0x448   : > { %4257 = vmatpush.bf16.msrb.mxu1 %v3808_v51  ;;  %v12114_v18 = vpop.xlane.xlu1 %2828  ;;  %v2205_v10 = vpop.xlane.xlu0 %2204  ;;  %v3183_v63 = vmul.f32 %v9372_v40, %v11875_v32  ;;  %v1372_v32 = vld [vmem:[%s17430_s15 + $0x160] sm:$0xff]  ;;  %v3805_v48 = vpack.c.bf16 %v3678_v56, %v3677_v43  ;;  %v1373_v40 = vld [vmem:[%s17430_s15 + $0x168] sm:$0xff]  ;;  %v17663_v56 = vld [vmem:[#allocation17_spill] sm:$0xff] }
 0x449   : > { %v2424_v3 = vsub.f32 %v11887_v57, %v2205_v10  ;;  %v1792_v35 = vadd.f32 %v11680_v19, %v1372_v32  ;;  %v1794_v1 = vadd.f32 %v11694_v38, %v1373_v40  ;;  %v12194_v32 = vadd.f32 %v11765_v49, %v1797_v4  ;;  %v17667_v43 = vld [vmem:[#allocation25_spill] sm:$0xff] }
 0x44a   : > { %v3297_v27 = vpack.c.bf16 %v3183_v63, %v3182_v14  ;;  %v1231_v63 = vmul.f32 %v1103_v60, %v11119_v29  ;;  %v17672_v40 = vld [vmem:[#allocation33_spill] sm:$0xff] }
 0x44b   : > { %v12128_v12 = vpop.eup %9373  ;;  %v2588_v57 = vmul.f32 1.442695, %v2424_v3  ;;  %v12153_v51 = vadd.f32 %v11765_v49, %v1792_v35  ;;  %v12177_v38 = vadd.f32 %v11765_v49, %v1794_v1  ;;  %v1802_v35 = vadd.f32 %v11706_v41, %v1376_v25  ;;  %v17673_v1 = vld [vmem:[#allocation32_spill] sm:$0xff] }
 0x44c   : > { %v12133_v44 = vpop.f32.mrf.mxu3  ;;  %4258 = vmatpush.bf16.msrb.mxu1 %v3807_v7  ;;  %2218 = vmax.xlane.f32.xlu1 %v12126_v28 }
 0x44d   : > { %9375 = vpow2.f32 %v2588_v57  ;;  %3421 = vmatmul.bf16.gmra.mxu0 %v3297_v27  ;;  %2842 = vadd.xlane.f32.xlu2 %v12128_v12  ;;  %v1375_v27 = vld [vmem:[%s17430_s15 + $0x178] sm:$0xff] }
 0x44e   : > { %v1799_v57 = vadd.f32 %v11699_v9, %v1375_v27  ;;  %v12216_v9 = vadd.f32 %v11765_v49, %v1802_v35  ;;  %v17676_v27 = vld [vmem:[#allocation41_spill] sm:$0xff] }
 0x450   : > { %4259 = vmatpush.bf16.msrb.mxu1 %v3806_v62  ;;  %8513 = vmatmul.msk.bf16.gmra.mxu3 %vm754_vm0, %v1310_v21  ;;  %v2207_v0 = vpop.xlane.xlu1 %2206  ;;  %v12202_v16 = vadd.f32 %v11765_v49, %v1799_v57  ;;  %v17664_v62 = vld [vmem:[#allocation16_spill] sm:$0xff] }
 0x451   : > { %v2425_v19 = vsub.f32 %v11910_v58, %v2207_v0  ;;  %v1102_v58 = vld [vmem:[%s17429_s14 + $0x2f0] sm:$0xff]  ;;  %v17665_v21 = vpack.c.bf16 %v17663_v56, %v17664_v62  ;;  %v12245_v56 = vpop.f32.mrf.mxu0 }
 0x452   : > { %v1230_v14 = vmul.f32 %v1102_v58, %v11116_v42  ;;  %v17668_v0 = vld [vmem:[#allocation24_spill] sm:$0xff]  ;;  %v17674_v58 = vpack.c.bf16 %v17672_v40, %v17673_v1 }
 0x453   : > { %v12155_v6 = vpop.eup %9375  ;;  %v2590_v53 = vmul.f32 1.442695, %v2425_v19  ;;  %v17669_v19 = vpack.c.bf16 %v17667_v43, %v17668_v0  ;;  %v17677_v57 = vld [vmem:[#allocation40_spill] sm:$0xff] }
 0x454   : > { %v12157_v31 = vpop.f32.mrf.mxu3  ;;  %4260 = vmatpush.bf16.msrb.mxu1 %v3805_v48  ;;  %2220 = vmax.xlane.f32.xlu1 %v12153_v51  ;;  %v17678_v25 = vpack.c.bf16 %v17676_v27, %v17677_v57 }
 0x455   : > { %9377 = vpow2.f32 %v2590_v53  ;;  %2844 = vadd.xlane.f32.xlu2 %v12155_v6 }
 0x458   : > { %v2209_v20 = vpop.xlane.xlu1 %2208 }
 0x459   : > { %v2426_v10 = vsub.f32 %v11923_v46, %v2209_v20  ;;  %v1311_v46 = vpack.c.bf16 %v1231_v63, %v1230_v14 }
 0x45b   : > { %v12174_v3 = vpop.eup %9377  ;;  %v2592_v22 = vmul.f32 1.442695, %v2426_v10 }
 0x45c   : > { %v12182_v5 = vpop.f32.mrf.mxu3  ;;  %2846 = vadd.xlane.f32.xlu0 %v12174_v3 }
 0x45d   : > { %9379 = vpow2.f32 %v2592_v22  ;;  %2222 = vmax.xlane.f32.xlu2 %v12177_v38 }
 0x45e   : > { %9381 = vrcp.f32 %v12114_v18 }
 0x460   : > { %8514 = vmatmul.msk.bf16.gmra.mxu3 %vm754_vm0, %v1311_v46 }
 0x463   : > { %v12188_v7 = vpop.eup %9379 }
 0x464   : > { %2848 = vadd.xlane.f32.xlu0 %v12188_v7  ;;  %v12199_v55 = vpop.f32.mrf.mxu3  ;;  %v9382_v60 = vpop.eup %9381 }
 0x465   : > { %2224 = vmax.xlane.f32.xlu2 %v12194_v32  ;;  %v3184_v14 = vmul.f32 %v9382_v60, %v11889_v24  ;;  %v12255_v60 = vpop.f32.mrf.mxu0 }
 0x46c   : > { %2226 = vmax.xlane.f32.xlu0 %v12202_v16  ;;  %v12209_v50 = vpop.f32.mrf.mxu3 }
 0x470   : > { %8515 = vmatmul.msk.bf16.gmra.mxu3 %vm754_vm0, %v17665_v21 }
 0x474   : > { %2228 = vmax.xlane.f32.xlu0 %v12216_v9  ;;  %v12219_v52 = vpop.f32.mrf.mxu3 }
 0x475   : > { %17666 = vst [vmem:[#allocation22_spill] sm:$0xff] %v12219_v52 }
 0x47c   : > { %v12225_v41 = vpop.f32.mrf.mxu3 }
 0x47d   : > { %17670 = vst [vmem:[#allocation31_spill] sm:$0xff] %v12225_v41  ;;  %v17717_v41 = vld [vmem:[#allocation52_spill] sm:$0xff] }
 0x480   : > { %8516 = vmatmul.msk.bf16.gmra.mxu3 %vm754_vm0, %v17669_v19 }
 0x484   : > { %v12228_v48 = vpop.f32.mrf.mxu3 }
 0x485   : > { %17671 = vst [vmem:[#allocation30_spill] sm:$0xff] %v12228_v48 }
 0x489   : > { %v12269_v27 = vpop.f32.mrf.mxu0 }
 0x48c   : > { %v12236_v22 = vpop.f32.mrf.mxu3 }
 0x48d   : > { %17675 = vst [vmem:[#allocation39_spill] sm:$0xff] %v12236_v22 }
 0x48f   : > { %v2831_v53 = vpop.xlane.xlu2 %2830 }
 0x490   : > { %9383 = vrcp.f32 %v2831_v53  ;;  %8517 = vmatmul.msk.bf16.gmra.mxu3 %vm754_vm0, %v17674_v58 }
 0x494   : > { %v12243_v35 = vpop.f32.mrf.mxu3 }
 0x495   : > { %17679 = vst [vmem:[#allocation38_spill] sm:$0xff] %v12243_v35 }
 0x496   : > { %v9384_v20 = vpop.eup %9383 }
 0x497   : > { %v2833_v10 = vpop.xlane.xlu2 %2832  ;;  %v3185_v63 = vmul.f32 %v9384_v20, %v11969_v47 }
 0x498   : > { %9385 = vrcp.f32 %v2833_v10  ;;  %v17681_v10 = vld [vmem:[#allocation51_spill] sm:$0xff] }
 0x499   : > { %v3298_v17 = vpack.c.bf16 %v3185_v63, %v3184_v14 }
 0x49b   : > { %3426 = vmatmul.bf16.gmra.mxu0 %v3298_v17  ;;  %v1377_v17 = vld [vmem:[%s17430_s15 + $0x188] sm:$0xff] }
 0x49c   : > { %v12253_v58 = vpop.f32.mrf.mxu3 }
 0x49d   : > { %17680 = vst [vmem:[#allocation49_spill] sm:$0xff] %v12253_v58 }
 0x49e   : > { %v9386_v47 = vpop.eup %9385 }
 0x49f   : > { %v2211_v18 = vpop.xlane.xlu2 %2210 }
 0x4a0   : > { %v2427_v46 = vsub.f32 %v11994_v11, %v2211_v18  ;;  %v2835_v4 = vpop.xlane.xlu0 %2834  ;;  %8518 = vmatmul.msk.bf16.gmra.mxu3 %vm754_vm0, %v17678_v25  ;;  %v3186_v11 = vmul.f32 %v9386_v47, %v11981_v34  ;;  %v17682_v34 = vld [vmem:[#allocation50_spill] sm:$0xff] }
 0x4a1   : > { %9387 = vrcp.f32 %v2835_v4  ;;  %v17683_v14 = vpack.c.bf16 %v17681_v10, %v17682_v34  ;;  %v1804_v4 = vadd.f32 %v11710_v13, %v1377_v17 }
 0x4a2   : > { %v2594_v24 = vmul.f32 1.442695, %v2427_v46 }
 0x4a4   : > { %9389 = vpow2.f32 %v2594_v24  ;;  %v12271_v25 = vpop.f32.mrf.mxu3 }
 0x4a5   : > { %17684 = vst [vmem:[#allocation48_spill] sm:$0xff] %v12271_v25  ;;  %v17708_v25 = vld [vmem:[#allocation35_spill] sm:$0xff] }
 0x4a7   : > { %v9388_v62 = vpop.eup %9387  ;;  %v2213_v21 = vpop.xlane.xlu2 %2212 }
 0x4a8   : > { %v2428_v43 = vsub.f32 %v12012_v61, %v2213_v21  ;;  %v2837_v0 = vpop.xlane.xlu0 %2836  ;;  %v3187_v19 = vmul.f32 %v9388_v62, %v12001_v36  ;;  %v1114_v62 = vld [vmem:[%s17429_s14 + $0x350] sm:$0xff]  ;;  %v1115_v21 = vld [vmem:[%s17429_s14 + $0x358] sm:$0xff] }
 0x4aa   : > { %v12250_v53 = vpop.eup %9389  ;;  %v2596_v40 = vmul.f32 1.442695, %v2428_v43  ;;  %v3299_v1 = vpack.c.bf16 %v3187_v19, %v3186_v11  ;;  %v1243_v19 = vmul.f32 %v1115_v21, %v11082_v15 }
 0x4ab   : > { %2850 = vadd.xlane.f32.xlu1 %v12250_v53 }
 0x4ac   : > { %9391 = vpow2.f32 %v2596_v40  ;;  %3431 = vmatmul.bf16.gmra.mxu0 %v3299_v1  ;;  %v12297_v34 = vpop.f32.mrf.mxu3 }
 0x4ad   : > { %9393 = vrcp.f32 %v2837_v0  ;;  %v12283_v0 = vadd.f32 %v11765_v49, %v1804_v4  ;;  %17685 = vst [vmem:[#allocation17_spill] sm:$0xff] %v12297_v34  ;;  %v17686_v4 = vld [vmem:[#allocation56_spill] sm:$0xff] }
 0x4af   : > { %v2839_v20 = vpop.xlane.xlu1 %2838 }
 0x4b0   : > { %9395 = vrcp.f32 %v2839_v20  ;;  %v2215_v61 = vpop.xlane.xlu0 %2214  ;;  %8519 = vmatmul.msk.bf16.gmra.mxu3 %vm754_vm0, %v17683_v14 }
 0x4b1   : > { %v2429_v36 = vsub.f32 %v12057_v2, %v2215_v61  ;;  %v12295_v61 = vpop.f32.mrf.mxu0 }
 0x4b2   : > { %v12262_v63 = vpop.eup %9391 }
 0x4b3   : > { %v2598_v18 = vmul.f32 1.442695, %v2429_v36  ;;  %2852 = vadd.xlane.f32.xlu1 %v12262_v63  ;;  %v9394_v46 = vpop.eup %9393 }
 0x4b4   : > { %v3188_v2 = vmul.f32 %v9394_v46, %v12016_v59  ;;  %v1378_v59 = vld [vmem:[%s17430_s15 + $0x190] sm:$0xff] }
 0x4b5   : > { %9397 = vpow2.f32 %v2598_v18 }
 0x4b6   : > { %v9396_v57 = vpop.eup %9395 }
 0x4b7   : > { %v2841_v24 = vpop.xlane.xlu1 %2840  ;;  %v3189_v47 = vmul.f32 %v9396_v57, %v12052_v26  ;;  %v1242_v26 = vmul.f32 %v1114_v62, %v11079_v39  ;;  %v1117_v62 = vld [vmem:[%s17429_s14 + $0x368] sm:$0xff] }
 0x4b8   : > { %v2217_v13 = vpop.xlane.xlu0 %2216 }
 0x4b9   : > { %v2430_v43 = vsub.f32 %v12091_v37, %v2217_v13  ;;  %v3300_v11 = vpack.c.bf16 %v3189_v47, %v3188_v2  ;;  %v1807_v37 = vadd.f32 %v11717_v54, %v1378_v59  ;;  %v1317_v20 = vpack.c.bf16 %v1243_v19, %v1242_v26  ;;  %v1379_v54 = vld [vmem:[%s17430_s15 + $0x198] sm:$0xff]  ;;  %v12324_v19 = vpop.f32.mrf.mxu0 }
 0x4ba   : > { %v1809_v57 = vadd.f32 %v17686_v4, %v1379_v54 }
 0x4bb   : > { %v12290_v40 = vpop.eup %9397  ;;  %v2600_v1 = vmul.f32 1.442695, %v2430_v43  ;;  %2230 = vmax.xlane.f32.xlu1 %v12283_v0  ;;  %v12302_v17 = vadd.f32 %v11765_v49, %v1807_v37 }
 0x4bc   : > { %3436 = vmatmul.bf16.gmra.mxu0 %v3300_v11  ;;  %2854 = vadd.xlane.f32.xlu2 %v12290_v40 }
 0x4bd   : > { %9399 = vpow2.f32 %v2600_v1  ;;  %v12326_v1 = vpop.f32.mrf.mxu3 }
 0x4be   : > { %9401 = vrcp.f32 %v2841_v24  ;;  %v1116_v24 = vld [vmem:[%s17429_s14 + $0x360] sm:$0xff]  ;;  %17687 = vst [vmem:[#allocation16_spill] sm:$0xff] %v12326_v1 }
 0x4bf   : > { %v2219_v10 = vpop.xlane.xlu1 %2218  ;;  %v1244_v59 = vmul.f32 %v1116_v24, %v11099_v30 }
 0x4c0   : > { %v2431_v14 = vsub.f32 %v12126_v28, %v2219_v10  ;;  %v2843_v36 = vpop.xlane.xlu2 %2842  ;;  %8520 = vmatmul.msk.bf16.gmra.mxu3 %vm754_vm0, %v1317_v20  ;;  %v12329_v10 = vadd.f32 %v11765_v49, %v1809_v57  ;;  %v1381_v57 = vld [vmem:[%s17430_s15 + $0x1a8] sm:$0xff] }
 0x4c1   : > { %9403 = vrcp.f32 %v2843_v36 }
 0x4c2   : > { %v2602_v18 = vmul.f32 1.442695, %v2431_v14 }
 0x4c3   : > { %v12304_v46 = vpop.eup %9399  ;;  %2232 = vmax.xlane.f32.xlu1 %v12302_v17 }
 0x4c4   : > { %9405 = vpow2.f32 %v2602_v18  ;;  %2856 = vadd.xlane.f32.xlu2 %v12304_v46  ;;  %v9402_v28 = vpop.eup %9401 }
 0x4c5   : > { %v3190_v43 = vmul.f32 %v9402_v28, %v12083_v8  ;;  %v1380_v8 = vld [vmem:[%s17430_s15 + $0x1a0] sm:$0xff] }
 0x4c7   : > { %v9404_v2 = vpop.eup %9403  ;;  %v2221_v47 = vpop.xlane.xlu1 %2220 }
 0x4c8   : > { %v2432_v21 = vsub.f32 %v12153_v51, %v2221_v47  ;;  %v2845_v13 = vpop.xlane.xlu2 %2844  ;;  %v3191_v11 = vmul.f32 %v9404_v2, %v12128_v12  ;;  %v1245_v51 = vmul.f32 %v1117_v62, %v11102_v45  ;;  %v17688_v12 = vld [vmem:[#allocation55_spill] sm:$0xff]  ;;  %v12349_v62 = vpop.f32.mrf.mxu0 }
 0x4c9   : > { %v1812_v14 = vadd.f32 %v17688_v12, %v1380_v8 }
 0x4ca   : > { %v12322_v26 = vpop.eup %9405  ;;  %v2604_v37 = vmul.f32 1.442695, %v2432_v21  ;;  %v3301_v20 = vpack.c.bf16 %v3191_v11, %v3190_v43  ;;  %v1318_v36 = vpack.c.bf16 %v1245_v51, %v1244_v59  ;;  %v12351_v21 = vpop.f32.mrf.mxu3  ;;  %v1119_v51 = vld [vmem:[%s17429_s14 + $0x378] sm:$0xff] }
 0x4cb   : > { %2858 = vadd.xlane.f32.xlu0 %v12322_v26  ;;  %v12346_v24 = vadd.f32 %v11765_v49, %v1812_v14  ;;  %17689 = vst [vmem:[#allocation25_spill] sm:$0xff] %v12351_v21 }
 0x4cc   : > { %9407 = vpow2.f32 %v2604_v37  ;;  %3441 = vmatmul.bf16.gmra.mxu0 %v3301_v20  ;;  %2234 = vmax.xlane.f32.xlu2 %v12329_v10  ;;  %v1118_v20 = vld [vmem:[%s17429_s14 + $0x370] sm:$0xff] }
 0x4cd   : > { %9409 = vrcp.f32 %v2845_v13 }
 0x4cf   : > { %v2847_v18 = vpop.xlane.xlu0 %2846 }
 0x4d0   : > { %v2223_v54 = vpop.xlane.xlu2 %2222  ;;  %9411 = vrcp.f32 %v2847_v18  ;;  %8521 = vmatmul.msk.bf16.gmra.mxu3 %vm754_vm0, %v1318_v36  ;;  %v1247_v18 = vmul.f32 %v1119_v51, %v11119_v29  ;;  %v1383_v51 = vld [vmem:[%s17430_s15 + $0x1b8] sm:$0xff] }
 0x4d1   : > { %v2433_v28 = vsub.f32 %v12177_v38, %v2223_v54  ;;  %v17690_v38 = vld [vmem:[#allocation54_spill] sm:$0xff] }
 0x4d2   : > { %v12340_v4 = vpop.eup %9407  ;;  %v1814_v13 = vadd.f32 %v17690_v38, %v1381_v57  ;;  %v12379_v57 = vpop.f32.mrf.mxu0 }
 0x4d3   : > { %v2606_v2 = vmul.f32 1.442695, %v2433_v28  ;;  %2860 = vadd.xlane.f32.xlu0 %v12340_v4  ;;  %v9410_v47 = vpop.eup %9409 }
 0x4d4   : > { %2236 = vmax.xlane.f32.xlu2 %v12346_v24  ;;  %v3192_v59 = vmul.f32 %v9410_v47, %v12155_v6  ;;  %v12367_v14 = vadd.f32 %v11765_v49, %v1814_v13  ;;  %v1382_v6 = vld [vmem:[%s17430_s15 + $0x1b0] sm:$0xff]  ;;  %v17691_v49 = vld [vmem:[#allocation57_spill] sm:$0xff] }
 0x4d5   : > { %9413 = vpow2.f32 %v2606_v2  ;;  %v12381_v2 = vpop.f32.mrf.mxu3 }
 0x4d6   : > { %v9412_v43 = vpop.eup %9411  ;;  %17692 = vst [vmem:[#allocation24_spill] sm:$0xff] %v12381_v2  ;;  %v17704_v2 = vld [vmem:[#allocation26_spill] sm:$0xff] }
 0x4d7   : > { %v12355_v11 = vpop.xlane.xlu0 %2848  ;;  %v3193_v37 = vmul.f32 %v9412_v43, %v12174_v3  ;;  %v1246_v3 = vmul.f32 %v1118_v20, %v11116_v42  ;;  %v12386_v43 = vld [vmem:[%s10849_s28] ss:$0 sm:$0xff] }
 0x4d8   : > { %v2225_v8 = vpop.xlane.xlu2 %2224 }
 0x4d9   : > { %v2434_v12 = vsub.f32 %v12194_v32, %v2225_v8  ;;  %v3302_v36 = vpack.c.bf16 %v3193_v37, %v3192_v59  ;;  %v1817_v32 = vadd.f32 %v17691_v49, %v1382_v6  ;;  %v1319_v47 = vpack.c.bf16 %v1247_v18, %v1246_v3 }
 0x4db   : > { %v12374_v54 = vpop.eup %9413  ;;  %v2608_v28 = vmul.f32 1.442695, %v2434_v12  ;;  %2238 = vmax.xlane.f32.xlu0 %v12367_v14  ;;  %v12389_v59 = vadd.f32 %v12386_v43, %v1817_v32  ;;  %v1384_v32 = vld [vmem:[%s17430_s15 + $0x1c0] sm:$0xff] }
 0x4dc   : > { %2862 = vadd.xlane.f32.xlu1 %v12374_v54  ;;  %3446 = vmatmul.bf16.gmra.mxu0 %v3302_v36  ;;  %v12399_v36 = vpop.f32.mrf.mxu0 }
 0x4dd   : > { %9415 = vpow2.f32 %v2608_v28  ;;  %v12401_v6 = vpop.f32.mrf.mxu3 }
 0x4de   : > { %17694 = vst [vmem:[#allocation33_spill] sm:$0xff] %v12401_v6  ;;  %v17703_v6 = vld [vmem:[#allocation27_spill] sm:$0xff] }
 0x4df   : > { %v2227_v38 = vpop.xlane.xlu0 %2226  ;;  %v17705_v21 = vpack.c.bf16 %v17703_v6, %v17704_v2  ;;  %v17712_v6 = vld [vmem:[#allocation43_spill] sm:$0xff] }
 0x4e0   : > { %v2435_v13 = vsub.f32 %v12202_v16, %v2227_v38  ;;  %8522 = vmatmul.msk.bf16.gmra.mxu3 %vm754_vm0, %v1319_v47  ;;  %v17693_v16 = vld [vmem:[#allocation59_spill] sm:$0xff]  ;;  %v17695_v47 = vld [vmem:[#allocation58_spill] sm:$0xff] }
 0x4e1   : > { %v1819_v8 = vadd.f32 %v17693_v16, %v1383_v51  ;;  %v1822_v38 = vadd.f32 %v17695_v47, %v1384_v32  ;;  %v1385_v16 = vld [vmem:[%s17430_s15 + $0x1c8] sm:$0xff] }
 0x4e2   : > { %v2610_v37 = vmul.f32 1.442695, %v2435_v13  ;;  %v17696_v13 = vld [vmem:[#allocation19_spill] sm:$0xff] }
 0x4e3   : > { %v12391_v20 = vpop.eup %9415  ;;  %2240 = vmax.xlane.f32.xlu0 %v12389_v59  ;;  %v12407_v49 = vadd.f32 %v12386_v43, %v1819_v8 }
 0x4e4   : > { %9417 = vpow2.f32 %v2610_v37  ;;  %2864 = vadd.xlane.f32.xlu1 %v12391_v20  ;;  %v17697_v37 = vld [vmem:[#allocation18_spill] sm:$0xff]  ;;  %v12424_v8 = vpop.f32.mrf.mxu0 }
 0x4e7   : > { %v2229_v12 = vpop.xlane.xlu0 %2228 }
 0x4e8   : > { %v2436_v3 = vsub.f32 %v12216_v9, %v2229_v12  ;;  %v17698_v9 = vpack.c.bf16 %v17696_v13, %v17697_v37  ;;  %v12426_v12 = vpop.f32.mrf.mxu3  ;;  %v1386_v13 = vld [vmem:[%s17430_s15 + $0x1d0] sm:$0xff] }
 0x4e9   : > { %17699 = vst [vmem:[#allocation32_spill] sm:$0xff] %v12426_v12 }
 0x4ea   : > { %v12404_v18 = vpop.eup %9417  ;;  %v2612_v28 = vmul.f32 1.442695, %v2436_v3  ;;  %v12429_v3 = vadd.f32 %v12386_v43, %v1822_v38  ;;  %v17702_v38 = vld [vmem:[#allocation44_spill] sm:$0xff] }
 0x4eb   : > { %2866 = vadd.xlane.f32.xlu2 %v12404_v18  ;;  %v1827_v12 = vadd.f32 %v17702_v38, %v1386_v13 }
 0x4ec   : > { %9419 = vpow2.f32 %v2612_v28  ;;  %2242 = vmax.xlane.f32.xlu1 %v12407_v49  ;;  %v17700_v28 = vld [vmem:[#allocation45_spill] sm:$0xff]  ;;  %v12441_v37 = vpop.f32.mrf.mxu0 }
 0x4ed   : > { %v1824_v32 = vadd.f32 %v17700_v28, %v1385_v16  ;;  %v12451_v16 = vadd.f32 %v12386_v43, %v1827_v12  ;;  %9421 = vrcp.f32 %v12355_v11  ;;  %v17713_v12 = vld [vmem:[#allocation42_spill] sm:$0xff] }
 0x4ee   : > { %v17714_v38 = vpack.c.bf16 %v17712_v6, %v17713_v12 }
 0x4ef   : > { %v12435_v47 = vadd.f32 %v12386_v43, %v1824_v32 }
 0x4f0   : > { %8523 = vmatmul.msk.bf16.gmra.mxu3 %vm754_vm0, %v17698_v9  ;;  %v12443_v9 = vpop.f32.mrf.mxu3 }
 0x4f1   : > { %17701 = vst [vmem:[#allocation41_spill] sm:$0xff] %v12443_v9  ;;  %v17709_v9 = vld [vmem:[#allocation34_spill] sm:$0xff] }
 0x4f2   : > { %v12419_v51 = vpop.eup %9419  ;;  %v17710_v58 = vpack.c.bf16 %v17708_v25, %v17709_v9 }
 0x4f3   : > { %2868 = vadd.xlane.f32.xlu2 %v12419_v51  ;;  %v9422_v35 = vpop.eup %9421 }
 0x4f4   : > { %2244 = vmax.xlane.f32.xlu1 %v12429_v3  ;;  %v3422_v28 = vpop.f32.mrf.mxu0 }
 0x4f8   : > { %v12454_v32 = vpop.f32.mrf.mxu3 }
 0x4f9   : > { %17706 = vst [vmem:[#allocation40_spill] sm:$0xff] %v12454_v32 }
 0x4fb   : > { %2246 = vmax.xlane.f32.xlu2 %v12435_v47 }
 0x4fc   : > { %v3424_v1 = vpop.f32.mrf.mxu0 }
 0x500   : > { %8524 = vmatmul.msk.bf16.gmra.mxu3 %vm754_vm0, %v17705_v21  ;;  %v12456_v34 = vpop.f32.mrf.mxu3 }
 0x501   : > { %17707 = vst [vmem:[#allocation51_spill] sm:$0xff] %v12456_v34 }
 0x503   : > { %2248 = vmax.xlane.f32.xlu2 %v12451_v16 }
 0x508   : > { %v12462_v2 = vpop.f32.mrf.mxu3 }
 0x509   : > { %17711 = vst [vmem:[#allocation50_spill] sm:$0xff] %v12462_v2 }
 0x510   : > { %8525 = vmatmul.msk.bf16.gmra.mxu3 %vm754_vm0, %v17710_v58  ;;  %v12469_v34 = vpop.f32.mrf.mxu3  ;;  %v3194_v58 = vmul.f32 %v9422_v35, %v12188_v7 }
 0x511   : > { %17715 = vst [vmem:[#allocation56_spill] sm:$0xff] %v12469_v34 }
 0x518   : > { %v3427_v13 = vpop.f32.mrf.mxu0  ;;  %v12473_v11 = vpop.f32.mrf.mxu3 }
 0x51e   : > { %v2851_v21 = vpop.xlane.xlu1 %2850 }
 0x51f   : > { %9423 = vrcp.f32 %v2851_v21 }
 0x520   : > { %8526 = vmatmul.msk.bf16.gmra.mxu3 %vm754_vm0, %v17714_v38  ;;  %v3429_v32 = vpop.f32.mrf.mxu0  ;;  %v17716_v38 = vld [vmem:[#allocation53_spill] sm:$0xff] }
 0x521   : > { %v17718_v34 = vpack.c.bf16 %v17716_v38, %v17717_v41  ;;  %v10041_v41 = vld [vmem:[%s17429_s14 + $0xe8] sm:$0xff] }
 0x525   : > { %v9424_v22 = vpop.eup %9423 }
 0x526   : > { %v2853_v25 = vpop.xlane.xlu1 %2852  ;;  %v3195_v9 = vmul.f32 %v9424_v22, %v12250_v53  ;;  %v10039_v22 = vld [vmem:[%s17429_s14 + $0xf0] sm:$0xff]  ;;  %v10040_v53 = vld [vmem:[%s17429_s14 + $0xf8] sm:$0xff] }
 0x527   : > { %9425 = vrcp.f32 %v2853_v25  ;;  %v3706_v25 = vmul.f32 %v10041_v41, %v3429_v32  ;;  %v1130_v32 = vld [vmem:[%s17429_s14 + $0x3d0] sm:$0xff] }
 0x528   : > { %v3303_v2 = vpack.c.bf16 %v3195_v9, %v3194_v58  ;;  %v10042_v9 = vld [vmem:[%s17429_s14 + $0xe0] sm:$0xff]  ;;  %v1258_v41 = vmul.f32 %v1130_v32, %v11079_v39 }
 0x529   : > { %v3432_v48 = vpop.f32.mrf.mxu0 }
 0x52a   : > { %3451 = vmatmul.bf16.gmra.mxu0 %v3303_v2  ;;  %v3707_v35 = vmul.f32 %v10039_v22, %v3432_v48 }
 0x52e   : > { %v2231_v21 = vpop.xlane.xlu1 %2230 }
 0x52f   : > { %v2437_v6 = vsub.f32 %v12283_v0, %v2231_v21  ;;  %v2855_v12 = vpop.xlane.xlu2 %2854  ;;  %v9426_v0 = vpop.eup %9425  ;;  %v3705_v21 = vmul.f32 %v10042_v9, %v3427_v13  ;;  %v10043_v13 = vld [vmem:[%s17429_s14 + $0xd8] sm:$0xff] }
 0x530   : > { %9427 = vrcp.f32 %v2855_v12  ;;  %8527 = vmatmul.msk.bf16.gmra.mxu3 %vm754_vm0, %v17718_v34  ;;  %v3704_v22 = vmul.f32 %v10043_v13, %v3424_v1  ;;  %v10045_v1 = vld [vmem:[%s17429_s14 + $0xc8] sm:$0xff] }
 0x531   : > { %v2614_v52 = vmul.f32 1.442695, %v2437_v6  ;;  %v3434_v7 = vpop.f32.mrf.mxu0 }
 0x532   : > { %v3708_v2 = vmul.f32 %v10040_v53, %v3434_v7  ;;  %v1131_v7 = vld [vmem:[%s17429_s14 + $0x3d8] sm:$0xff] }
 0x533   : > { %9429 = vpow2.f32 %v2614_v52  ;;  %v3196_v52 = vmul.f32 %v9426_v0, %v12262_v63 }
 0x534   : > { %v3820_v34 = vpack.c.bf16 %v3708_v2, %v3707_v35  ;;  %v12504_v35 = vpop.f32.mrf.mxu3  ;;  %v10044_v2 = vld [vmem:[%s17429_s14 + $0xd0] sm:$0xff] }
 0x535   : > { %v3703_v0 = vmul.f32 %v10044_v2, %v3422_v28  ;;  %v10046_v28 = vld [vmem:[%s17429_s14 + $0xc0] sm:$0xff] }
 0x536   : > { %v9428_v58 = vpop.eup %9427  ;;  %4302 = vmatpush.bf16.msrb.mxu2 %v3820_v34  ;;  %v2233_v48 = vpop.xlane.xlu1 %2232  ;;  %v1259_v34 = vmul.f32 %v1131_v7, %v11082_v15  ;;  %v3701_v9 = vmul.f32 %v10046_v28, %v12424_v8  ;;  %v1133_v28 = vld [vmem:[%s17429_s14 + $0x3e8] sm:$0xff] }
 0x537   : > { %v2438_v6 = vsub.f32 %v12302_v17, %v2233_v48  ;;  %v2857_v12 = vpop.xlane.xlu2 %2856  ;;  %v3197_v38 = vmul.f32 %v9428_v58, %v12290_v40  ;;  %v3819_v17 = vpack.c.bf16 %v3706_v25, %v3705_v21  ;;  %v3702_v25 = vmul.f32 %v10045_v1, %v12441_v37  ;;  %v1387_v48 = vld [vmem:[%s17430_s15 + $0x1d8] sm:$0xff] }
 0x538   : > { %v3818_v58 = vpack.c.bf16 %v3704_v22, %v3703_v0  ;;  %v1325_v21 = vpack.c.bf16 %v1259_v34, %v1258_v41  ;;  %v10047_v37 = vld [vmem:[%s17429_s14 + $0xb8] sm:$0xff] }
 0x539   : > { %v12506_v53 = vpop.eup %9429  ;;  %v2616_v63 = vmul.f32 1.442695, %v2438_v6  ;;  %v3304_v40 = vpack.c.bf16 %v3197_v38, %v3196_v52  ;;  %v3700_v6 = vmul.f32 %v10047_v37, %v12399_v36  ;;  %v3817_v8 = vpack.c.bf16 %v3702_v25, %v3701_v9  ;;  %v10048_v38 = vld [vmem:[%s17429_s14 + $0xb0] sm:$0xff]  ;;  %v17719_v22 = vld [vmem:[#allocation13_spill] sm:$0xff] }
 0x53a   : > { %4303 = vmatpush.bf16.msrb.mxu2 %v3819_v17  ;;  %2870 = vadd.xlane.f32.xlu0 %v12506_v53  ;;  %v3699_v32 = vmul.f32 %v10048_v38, %v12379_v57  ;;  %v10049_v17 = vld [vmem:[%s17429_s14 + $0xa8] sm:$0xff]  ;;  %v10050_v57 = vld [vmem:[%s17429_s14 + $0xa0] sm:$0xff] }
 0x53b   : > { %9431 = vpow2.f32 %v2616_v63  ;;  %3456 = vmatmul.bf16.gmra.mxu0 %v3304_v40  ;;  %v3698_v63 = vmul.f32 %v10049_v17, %v12349_v62  ;;  %v3697_v0 = vmul.f32 %v10050_v57, %v12324_v19  ;;  %v1132_v62 = vld [vmem:[%s17429_s14 + $0x3e0] sm:$0xff]  ;;  %v10051_v19 = vld [vmem:[%s17429_s14 + $0x98] sm:$0xff]  ;;  %v10053_v38 = vld [vmem:[%s17429_s14 + $0x88] sm:$0xff] }
 0x53c   : > { %9433 = vrcp.f32 %v2857_v12  ;;  %v12537_v7 = vpop.f32.mrf.mxu3  ;;  %v3816_v40 = vpack.c.bf16 %v3700_v6, %v3699_v32  ;;  %v3694_v32 = vmul.f32 %v10053_v38, %v12255_v60  ;;  %v17721_v57 = vld [vmem:[#allocation60_spill] sm:$0xff] }
 0x53d   : > { %v3815_v9 = vpack.c.bf16 %v3698_v63, %v3697_v0 }
 0x53e   : > { %4304 = vmatpush.bf16.msrb.mxu2 %v3818_v58  ;;  %v2859_v39 = vpop.xlane.xlu0 %2858 }
 0x53f   : > { %v2235_v15 = vpop.xlane.xlu2 %2234  ;;  %9435 = vrcp.f32 %v2859_v39 }
 0x540   : > { %v2439_v12 = vsub.f32 %v12329_v10, %v2235_v15  ;;  %8528 = vmatmul.msk.bf16.gmra.mxu3 %vm754_vm0, %v1325_v21  ;;  %v1829_v10 = vadd.f32 %v17719_v22, %v1387_v48  ;;  %v1388_v21 = vld [vmem:[%s17430_s15 + $0x1e0] sm:$0xff]  ;;  %v10052_v48 = vld [vmem:[%s17429_s14 + $0x90] sm:$0xff] }
 0x541   : > { %v12531_v52 = vpop.eup %9431  ;;  %v3695_v37 = vmul.f32 %v10052_v48, %v12269_v27 }
 0x542   : > { %v2618_v13 = vmul.f32 1.442695, %v2439_v12  ;;  %4305 = vmatpush.bf16.msrb.mxu2 %v3817_v8  ;;  %2872 = vadd.xlane.f32.xlu0 %v12531_v52  ;;  %v9434_v36 = vpop.eup %9433  ;;  %v12552_v58 = vadd.f32 %v12386_v43, %v1829_v10  ;;  %v17720_v12 = vld [vmem:[#allocation12_spill] sm:$0xff] }
 0x543   : > { %v3198_v34 = vmul.f32 %v9434_v36, %v12304_v46  ;;  %v3696_v46 = vmul.f32 %v10051_v19, %v12295_v61  ;;  %v1260_v61 = vmul.f32 %v1132_v62, %v11099_v30  ;;  %v1832_v8 = vadd.f32 %v17720_v12, %v1388_v21  ;;  %v10054_v30 = vld [vmem:[%s17429_s14 + $0x80] sm:$0xff] }
 0x544   : > { %9437 = vpow2.f32 %v2618_v13  ;;  %v12583_v27 = vpop.f32.mrf.mxu3 }
 0x545   : > { %v9436_v2 = vpop.eup %9435  ;;  %v3814_v13 = vpack.c.bf16 %v3696_v46, %v3695_v37  ;;  %v12592_v63 = vadd.f32 %v12386_v43, %v1832_v8  ;;  %v1134_v46 = vld [vmem:[%s17429_s14 + $0x3f0] sm:$0xff]  ;;  %v17722_v37 = vld [vmem:[#allocation21_spill] sm:$0xff] }
 0x546   : > { %4306 = vmatpush.bf16.msrb.mxu2 %v3816_v40  ;;  %v2861_v41 = vpop.xlane.xlu0 %2860  ;;  %v3199_v1 = vmul.f32 %v9436_v2, %v12322_v26 }
 0x547   : > { %v2237_v25 = vpop.xlane.xlu2 %2236 }
 0x548   : > { %v2440_v26 = vsub.f32 %v12346_v24, %v2237_v25  ;;  %v3305_v39 = vpack.c.bf16 %v3199_v1, %v3198_v34  ;;  %v1261_v24 = vmul.f32 %v1133_v28, %v11102_v45  ;;  %v3693_v45 = vmul.f32 %v10054_v30, %v12245_v56  ;;  %v1389_v56 = vld [vmem:[%s17430_s15 + $0x1e8] sm:$0xff] }
 0x549   : > { %v1834_v0 = vadd.f32 %v17721_v57, %v1389_v56  ;;  %v1392_v57 = vld [vmem:[%s17430_s15 + $0x200] sm:$0xff] }
 0x54a   : > { %v12568_v15 = vpop.eup %9437  ;;  %v2620_v6 = vmul.f32 1.442695, %v2440_v26  ;;  %4307 = vmatpush.bf16.msrb.mxu2 %v3815_v9  ;;  %2250 = vmax.xlane.f32.xlu0 %v12552_v58  ;;  %v1326_v22 = vpack.c.bf16 %v1261_v24, %v1260_v61  ;;  %v3813_v60 = vpack.c.bf16 %v3694_v32, %v3693_v45  ;;  %v1135_v26 = vld [vmem:[%s17429_s14 + $0x3f8] sm:$0xff]  ;;  %v17723_v45 = vld [vmem:[#allocation20_spill] sm:$0xff] }
 0x54b   : > { %2874 = vadd.xlane.f32.xlu1 %v12568_v15  ;;  %3461 = vmatmul.bf16.gmra.mxu0 %v3305_v39  ;;  %v12616_v21 = vadd.f32 %v12386_v43, %v1834_v0 }
 0x54c   : > { %9439 = vpow2.f32 %v2620_v6  ;;  %v12602_v34 = vpop.f32.mrf.mxu3 }
 0x54d   : > { %9441 = vrcp.f32 %v2861_v41 }
 0x54e   : > { %4308 = vmatpush.bf16.msrb.mxu2 %v3814_v13  ;;  %v2239_v36 = vpop.xlane.xlu0 %2238 }
 0x54f   : > { %v2863_v10 = vpop.xlane.xlu1 %2862  ;;  %v2441_v17 = vsub.f32 %v12367_v14, %v2239_v36 }
 0x550   : > { %9443 = vrcp.f32 %v2863_v10  ;;  %8529 = vmatmul.msk.bf16.gmra.mxu3 %vm754_vm0, %v1326_v22 }
 0x551   : > { %v2622_v40 = vmul.f32 1.442695, %v2441_v17 }
 0x552   : > { %v12594_v2 = vpop.eup %9439  ;;  %4309 = vmatpush.bf16.msrb.mxu2 %v3813_v60  ;;  %2252 = vmax.xlane.f32.xlu0 %v12592_v63 }
 0x553   : > { %9445 = vpow2.f32 %v2622_v40  ;;  %2876 = vadd.xlane.f32.xlu1 %v12594_v2  ;;  %v9442_v14 = vpop.eup %9441 }
 0x554   : > { %v3200_v28 = vmul.f32 %v9442_v14, %v12340_v4  ;;  %v1390_v4 = vld [vmem:[%s17430_s15 + $0x1f0] sm:$0xff]  ;;  %v12626_v8 = vpop.f32.mrf.mxu3 }
 0x555   : > { %v1837_v6 = vadd.f32 %v17722_v37, %v1390_v4 }
 0x556   : > { %v9444_v41 = vpop.eup %9443  ;;  %v2241_v1 = vpop.xlane.xlu0 %2240 }
 0x557   : > { %v2865_v25 = vpop.xlane.xlu1 %2864  ;;  %v2442_v62 = vsub.f32 %v12389_v59, %v2241_v1  ;;  %v3201_v19 = vmul.f32 %v9444_v41, %v12374_v54  ;;  %v1262_v54 = vmul.f32 %v1134_v46, %v11116_v42  ;;  %v1263_v59 = vmul.f32 %v1135_v26, %v11119_v29  ;;  %v1391_v29 = vld [vmem:[%s17430_s15 + $0x1f8] sm:$0xff]  ;;  %v1393_v46 = vld [vmem:[%s17430_s15 + $0x208] sm:$0xff]  ;;  %v17725_v26 = vld [vmem:[#allocation28_spill] sm:$0xff] }
 0x558   : > { %v12636_v32 = vadd.f32 %v12386_v43, %v1837_v6  ;;  %v1839_v36 = vadd.f32 %v17723_v45, %v1391_v29  ;;  %v1394_v6 = vld [vmem:[%s17430_s15 + $0x210] sm:$0xff] }
 0x559   : > { %v12613_v9 = vpop.eup %9445  ;;  %v2624_v39 = vmul.f32 1.442695, %v2442_v62  ;;  %v3306_v48 = vpack.c.bf16 %v3201_v19, %v3200_v28  ;;  %v1327_v24 = vpack.c.bf16 %v1263_v59, %v1262_v54 }
 0x55a   : > { %2878 = vadd.xlane.f32.xlu2 %v12613_v9  ;;  %v12645_v14 = vadd.f32 %v12386_v43, %v1839_v36  ;;  %v1396_v36 = vld [vmem:[%s17430_s15 + $0x220] sm:$0xff] }
 0x55b   : > { %9447 = vpow2.f32 %v2624_v39  ;;  %2254 = vmax.xlane.f32.xlu1 %v12616_v21  ;;  %3466 = vmatmul.bf16.gmra.mxu0 %v3306_v48  ;;  %v1844_v39 = vadd.f32 %v17725_v26, %v1393_v46 }
 0x55c   : > { %9449 = vrcp.f32 %v2865_v25 }
 0x55d   : > { %v12675_v37 = vadd.f32 %v12386_v43, %v1844_v39 }
 0x55e   : > { %v2867_v61 = vpop.xlane.xlu2 %2866 }
 0x55f   : > { %v2243_v12 = vpop.xlane.xlu1 %2242  ;;  %9451 = vrcp.f32 %v2867_v61  ;;  %v17726_v61 = vld [vmem:[#allocation37_spill] sm:$0xff] }
 0x560   : > { %v2443_v38 = vsub.f32 %v12407_v49, %v2243_v12  ;;  %8530 = vmatmul.msk.bf16.gmra.mxu3 %vm754_vm0, %v1327_v24  ;;  %v1847_v24 = vadd.f32 %v17726_v61, %v1394_v6 }
 0x561   : > { %v12630_v42 = vpop.eup %9447 }
 0x562   : > { %v2626_v13 = vmul.f32 1.442695, %v2443_v38  ;;  %2880 = vadd.xlane.f32.xlu2 %v12630_v42  ;;  %v9450_v30 = vpop.eup %9449  ;;  %v12691_v29 = vadd.f32 %v12386_v43, %v1847_v24 }
 0x563   : > { %2256 = vmax.xlane.f32.xlu1 %v12636_v32  ;;  %v3202_v10 = vmul.f32 %v9450_v30, %v12391_v20  ;;  %v17724_v20 = vld [vmem:[#allocation29_spill] sm:$0xff] }
 0x564   : > { %9453 = vpow2.f32 %v2626_v13  ;;  %v17727_v13 = vld [vmem:[#allocation36_spill] sm:$0xff] }
 0x565   : > { %v9452_v49 = vpop.eup %9451 }
 0x566   : > { %v2869_v22 = vpop.xlane.xlu2 %2868  ;;  %v3203_v17 = vmul.f32 %v9452_v49, %v12404_v18  ;;  %v1842_v18 = vadd.f32 %v17724_v20, %v1392_v57 }
 0x567   : > { %v2245_v60 = vpop.xlane.xlu1 %2244 }
 0x568   : > { %v2444_v40 = vsub.f32 %v12429_v3, %v2245_v60  ;;  %v3307_v56 = vpack.c.bf16 %v3203_v17, %v3202_v10  ;;  %v12655_v3 = vpop.f32.mrf.mxu0  ;;  %v12659_v62 = vadd.f32 %v12386_v43, %v1842_v18  ;;  %v17728_v10 = vld [vmem:[#allocation47_spill] sm:$0xff] }
 0x569   : > { %v1852_v17 = vadd.f32 %v17728_v10, %v1396_v36 }
 0x56a   : > { %v12650_v0 = vpop.eup %9453  ;;  %v2628_v41 = vmul.f32 1.442695, %v2444_v40  ;;  %2258 = vmax.xlane.f32.xlu2 %v12645_v14 }
 0x56b   : > { %2882 = vadd.xlane.f32.xlu0 %v12650_v0  ;;  %3471 = vmatmul.bf16.gmra.mxu0 %v3307_v56  ;;  %v12707_v60 = vadd.f32 %v12386_v43, %v1852_v17 }
 0x56c   : > { %9455 = vpow2.f32 %v2628_v41 }
 0x56e   : > { %v2247_v1 = vpop.xlane.xlu2 %2246 }
 0x56f   : > { %v2445_v25 = vsub.f32 %v12435_v47, %v2247_v1 }
 0x570   : > { %v12669_v4 = vpop.f32.mrf.mxu0 }
 0x571   : > { %v2630_v28 = vmul.f32 1.442695, %v2445_v25 }
 0x572   : > { %v12661_v19 = vpop.eup %9455  ;;  %2260 = vmax.xlane.f32.xlu2 %v12659_v62 }
 0x573   : > { %9457 = vpow2.f32 %v2630_v28  ;;  %2884 = vadd.xlane.f32.xlu0 %v12661_v19 }
 0x576   : > { %v2249_v48 = vpop.xlane.xlu2 %2248 }
 0x577   : > { %v2446_v47 = vsub.f32 %v12451_v16, %v2249_v48  ;;  %v1395_v16 = vld [vmem:[%s17430_s15 + $0x218] sm:$0xff] }
 0x578   : > { %v12688_v38 = vpop.f32.mrf.mxu0  ;;  %v1849_v30 = vadd.f32 %v17727_v13, %v1395_v16 }
 0x579   : > { %v12672_v54 = vpop.eup %9457  ;;  %v2632_v59 = vmul.f32 1.442695, %v2446_v47 }
 0x57a   : > { %2886 = vadd.xlane.f32.xlu1 %v12672_v54  ;;  %v12697_v45 = vadd.f32 %v12386_v43, %v1849_v30 }
 0x57b   : > { %9459 = vpow2.f32 %v2632_v59  ;;  %2262 = vmax.xlane.f32.xlu0 %v12675_v37 }
 0x57c   : > { %9461 = vrcp.f32 %v2869_v22 }
 0x580   : > { %v12703_v49 = vpop.f32.mrf.mxu0 }
 0x581   : > { %v12683_v12 = vpop.eup %9459 }
 0x582   : > { %2888 = vadd.xlane.f32.xlu1 %v12683_v12  ;;  %v9462_v18 = vpop.eup %9461 }
 0x583   : > { %2264 = vmax.xlane.f32.xlu0 %v12691_v29  ;;  %v3204_v28 = vmul.f32 %v9462_v18, %v12419_v51 }
 0x588   : > { %v12710_v40 = vpop.f32.mrf.mxu0 }
 0x58a   : > { %2266 = vmax.xlane.f32.xlu1 %v12697_v45 }
 0x590   : > { %v12712_v56 = vpop.f32.mrf.mxu0 }
 0x592   : > { %2268 = vmax.xlane.f32.xlu1 %v12707_v60 }
 0x5a7   : > { %v12714_v57 = vpop.f32.mrf.mxu0 }
 0x5ad   : > { %v2871_v41 = vpop.xlane.xlu0 %2870 }
 0x5ae   : > { %9463 = vrcp.f32 %v2871_v41 }
 0x5af   : > { %v12716_v20 = vpop.f32.mrf.mxu0 }
 0x5b4   : > { %v9464_v1 = vpop.eup %9463 }
 0x5b5   : > { %v2873_v25 = vpop.xlane.xlu0 %2872  ;;  %v3205_v46 = vmul.f32 %v9464_v1, %v12506_v53 }
 0x5b6   : > { %9465 = vrcp.f32 %v2873_v25 }
 0x5b7   : > { %v3308_v26 = vpack.c.bf16 %v3205_v46, %v3204_v28  ;;  %v17729_v46 = vld [vmem:[#allocation46_spill] sm:$0xff] }
 0x5b8   : > { %v12720_v39 = vpop.f32.mrf.mxu0 }
 0x5b9   : > { %3476 = vmatmul.bf16.gmra.mxu0 %v3308_v26 }
 0x5bc   : > { %v9466_v61 = vpop.eup %9465 }
 0x5bd   : > { %v2251_v48 = vpop.xlane.xlu0 %2250  ;;  %v3206_v13 = vmul.f32 %v9466_v61, %v12531_v52  ;;  %v1397_v52 = vld [vmem:[%s17430_s15 + $0x228] sm:$0xff] }
 0x5be   : > { %v2875_v47 = vpop.xlane.xlu1 %2874  ;;  %v2447_v22 = vsub.f32 %v12552_v58, %v2251_v48  ;;  %v1854_v26 = vadd.f32 %v17729_v46, %v1397_v52 }
 0x5bf   : > { %9467 = vrcp.f32 %v2875_v47 }
 0x5c0   : > { %v2634_v59 = vmul.f32 1.442695, %v2447_v22  ;;  %v12723_v6 = vpop.f32.mrf.mxu0 }
 0x5c2   : > { %9469 = vpow2.f32 %v2634_v59 }
 0x5c5   : > { %v9468_v24 = vpop.eup %9467  ;;  %v2253_v16 = vpop.xlane.xlu0 %2252 }
 0x5c6   : > { %v2877_v51 = vpop.xlane.xlu1 %2876  ;;  %v2448_v53 = vsub.f32 %v12592_v63, %v2253_v16  ;;  %v3207_v30 = vmul.f32 %v9468_v24, %v12568_v15  ;;  %v12747_v16 = vadd.f32 %v12386_v43, %v1854_v26 }
 0x5c8   : > { %v12728_v36 = vpop.eup %9469  ;;  %v2636_v10 = vmul.f32 1.442695, %v2448_v53  ;;  %v12730_v17 = vpop.f32.mrf.mxu0  ;;  %v3309_v58 = vpack.c.bf16 %v3207_v30, %v3206_v13 }
 0x5c9   : > { %2890 = vadd.xlane.f32.xlu2 %v12728_v36 }
 0x5ca   : > { %9471 = vpow2.f32 %v2636_v10  ;;  %3481 = vmatmul.bf16.gmra.mxu0 %v3309_v58 }
 0x5cb   : > { %9473 = vrcp.f32 %v2877_v51  ;;  %v1398_v51 = vld [vmem:[%s17430_s15 + $0x230] sm:$0xff] }
 0x5cd   : > { %v2879_v41 = vpop.xlane.xlu2 %2878 }
 0x5ce   : > { %v2255_v18 = vpop.xlane.xlu1 %2254  ;;  %9475 = vrcp.f32 %v2879_v41 }
 0x5cf   : > { %v2449_v63 = vsub.f32 %v12616_v21, %v2255_v18 }
 0x5d0   : > { %v12734_v1 = vpop.eup %9471  ;;  %v12739_v15 = vpop.f32.mrf.mxu0 }
 0x5d1   : > { %v2638_v25 = vmul.f32 1.442695, %v2449_v63  ;;  %2892 = vadd.xlane.f32.xlu2 %v12734_v1  ;;  %v9474_v28 = vpop.eup %9473 }
 0x5d2   : > { %v3208_v22 = vmul.f32 %v9474_v28, %v12594_v2  ;;  %v17730_v2 = vld [vmem:[#allocation15_spill] sm:$0xff] }
 0x5d3   : > { %9477 = vpow2.f32 %v2638_v25  ;;  %v1399_v25 = vld [vmem:[%s17430_s15 + $0x238] sm:$0xff] }
 0x5d4   : > { %v9476_v48 = vpop.eup %9475 }
 0x5d5   : > { %v2881_v47 = vpop.xlane.xlu2 %2880  ;;  %v3209_v21 = vmul.f32 %v9476_v48, %v12613_v9  ;;  %v1857_v9 = vadd.f32 %v17730_v2, %v1398_v51 }
 0x5d6   : > { %v2257_v59 = vpop.xlane.xlu1 %2256 }
 0x5d7   : > { %v2450_v61 = vsub.f32 %v12636_v32, %v2257_v59  ;;  %v3310_v24 = vpack.c.bf16 %v3209_v21, %v3208_v22  ;;  %v12761_v41 = vadd.f32 %v12386_v43, %v1857_v9  ;;  %v1400_v9 = vld [vmem:[%s17430_s15 + $0x240] sm:$0xff] }
 0x5d8   : > { %v12752_v53 = vpop.f32.mrf.mxu0 }
 0x5d9   : > { %v12754_v13 = vpop.eup %9477  ;;  %v2640_v30 = vmul.f32 1.442695, %v2450_v61  ;;  %2270 = vmax.xlane.f32.xlu2 %v12747_v16 }
 0x5da   : > { %2894 = vadd.xlane.f32.xlu0 %v12754_v13  ;;  %3486 = vmatmul.bf16.gmra.mxu0 %v3310_v24 }
 0x5db   : > { %9479 = vpow2.f32 %v2640_v30 }
 0x5dc   : > { %9481 = vrcp.f32 %v2881_v47 }
 0x5dd   : > { %v2259_v32 = vpop.xlane.xlu2 %2258 }
 0x5de   : > { %v2451_v10 = vsub.f32 %v12645_v14, %v2259_v32  ;;  %v2883_v58 = vpop.xlane.xlu0 %2882  ;;  %v17731_v14 = vld [vmem:[#allocation14_spill] sm:$0xff] }
 0x5df   : > { %9483 = vrcp.f32 %v2883_v58  ;;  %v1859_v46 = vadd.f32 %v17731_v14, %v1399_v25  ;;  %v10055_v14 = vld [vmem:[%s17429_s14 + $0x170] sm:$0xff] }
 0x5e0   : > { %v2642_v18 = vmul.f32 1.442695, %v2451_v10  ;;  %v3469_v63 = vpop.f32.mrf.mxu0  ;;  %v1401_v10 = vld [vmem:[%s17430_s15 + $0x248] sm:$0xff] }
 0x5e1   : > { %v12763_v52 = vpop.eup %9479  ;;  %2272 = vmax.xlane.f32.xlu2 %v12761_v41  ;;  %v12777_v30 = vadd.f32 %v12386_v43, %v1859_v46 }
 0x5e2   : > { %9485 = vpow2.f32 %v2642_v18  ;;  %2896 = vadd.xlane.f32.xlu0 %v12763_v52  ;;  %v9482_v28 = vpop.eup %9481 }
 0x5e3   : > { %v3210_v21 = vmul.f32 %v9482_v28, %v12630_v42  ;;  %v17732_v42 = vld [vmem:[#allocation23_spill] sm:$0xff] }
 0x5e5   : > { %v9484_v26 = vpop.eup %9483  ;;  %v2261_v48 = vpop.xlane.xlu2 %2260 }
 0x5e6   : > { %v2452_v47 = vsub.f32 %v12659_v62, %v2261_v48  ;;  %v2885_v22 = vpop.xlane.xlu0 %2884  ;;  %v3211_v59 = vmul.f32 %v9484_v26, %v12650_v0  ;;  %v1862_v0 = vadd.f32 %v17732_v42, %v1400_v9  ;;  %v10056_v48 = vld [vmem:[%s17429_s14 + $0x178] sm:$0xff] }
 0x5e8   : > { %v12774_v61 = vpop.eup %9485  ;;  %v2644_v24 = vmul.f32 1.442695, %v2452_v47  ;;  %v3472_v51 = vpop.f32.mrf.mxu0  ;;  %v3311_v2 = vpack.c.bf16 %v3211_v59, %v3210_v21  ;;  %v12792_v28 = vadd.f32 %v12386_v43, %v1862_v0  ;;  %v10057_v21 = vld [vmem:[%s17429_s14 + $0x168] sm:$0xff] }
 0x5e9   : > { %2898 = vadd.xlane.f32.xlu1 %v12774_v61  ;;  %v3723_v46 = vmul.f32 %v10055_v14, %v3472_v51  ;;  %v3722_v59 = vmul.f32 %v10057_v21, %v3469_v63  ;;  %v10059_v63 = vld [vmem:[%s17429_s14 + $0x158] sm:$0xff] }
 0x5ea   : > { %9487 = vpow2.f32 %v2644_v24  ;;  %2274 = vmax.xlane.f32.xlu0 %v12777_v30  ;;  %3491 = vmatmul.bf16.gmra.mxu0 %v3311_v2  ;;  %v10058_v2 = vld [vmem:[%s17429_s14 + $0x160] sm:$0xff] }
 0x5eb   : > { %9489 = vrcp.f32 %v2885_v22  ;;  %v1864_v22 = vadd.f32 %v12054_v23, %v1401_v10  ;;  %v3721_v9 = vmul.f32 %v10058_v2, %v12752_v53  ;;  %v3720_v10 = vmul.f32 %v10059_v63, %v12739_v15  ;;  %v10061_v15 = vld [vmem:[%s17429_s14 + $0x148] sm:$0xff]  ;;  %v10066_v63 = vld [vmem:[%s17429_s14 + $0x120] sm:$0xff] }
 0x5ed   : > { %v2887_v62 = vpop.xlane.xlu1 %2886 }
 0x5ee   : > { %9491 = vrcp.f32 %v2887_v62  ;;  %v2263_v32 = vpop.xlane.xlu0 %2262 }
 0x5ef   : > { %v2453_v58 = vsub.f32 %v12675_v37, %v2263_v32  ;;  %v12815_v32 = vadd.f32 %v12386_v43, %v1864_v22 }
 0x5f0   : > { %v12789_v18 = vpop.eup %9487  ;;  %v3474_v25 = vpop.f32.mrf.mxu0 }
 0x5f1   : > { %v2646_v26 = vmul.f32 1.442695, %v2453_v58  ;;  %v3724_v47 = vmul.f32 %v10056_v48, %v3474_v25  ;;  %2900 = vadd.xlane.f32.xlu1 %v12789_v18  ;;  %v9490_v37 = vpop.eup %9489  ;;  %v3827_v58 = vpack.c.bf16 %v3722_v59, %v3721_v9  ;;  %v3718_v48 = vmul.f32 %v10061_v15, %v12723_v6 }
 0x5f2   : > { %2276 = vmax.xlane.f32.xlu0 %v12792_v28  ;;  %v3212_v23 = vmul.f32 %v9490_v37, %v12661_v19  ;;  %v1402_v19 = vld [vmem:[%s17430_s15 + $0x250] sm:$0xff] }
 0x5f3   : > { %9493 = vpow2.f32 %v2646_v26  ;;  %v3828_v24 = vpack.c.bf16 %v3724_v47, %v3723_v46 }
 0x5f4   : > { %v9492_v51 = vpop.eup %9491 }
 0x5f5   : > { %4351 = vmatpush.bf16.msra.mxu1 %v3828_v24  ;;  %v12810_v42 = vpop.xlane.xlu1 %2888  ;;  %v3213_v0 = vmul.f32 %v9492_v51, %v12672_v54  ;;  %v10060_v54 = vld [vmem:[%s17429_s14 + $0x150] sm:$0xff] }
 0x5f6   : > { %v2265_v62 = vpop.xlane.xlu0 %2264  ;;  %v3719_v46 = vmul.f32 %v10060_v54, %v12730_v17  ;;  %v10062_v17 = vld [vmem:[%s17429_s14 + $0x140] sm:$0xff] }
 0x5f7   : > { %v2454_v53 = vsub.f32 %v12691_v29, %v2265_v62  ;;  %v3312_v25 = vpack.c.bf16 %v3213_v0, %v3212_v23  ;;  %v1867_v29 = vadd.f32 %v12088_v33, %v1402_v19  ;;  %v3717_v37 = vmul.f32 %v10062_v17, %v12720_v39  ;;  %v10063_v33 = vld [vmem:[%s17429_s14 + $0x138] sm:$0xff] }
 0x5f8   : > { %v3826_v47 = vpack.c.bf16 %v3720_v10, %v3719_v46  ;;  %v3716_v59 = vmul.f32 %v10063_v33, %v12716_v20  ;;  %v1403_v39 = vld [vmem:[%s17430_s15 + $0x258] sm:$0xff]  ;;  %v10065_v20 = vld [vmem:[%s17429_s14 + $0x128] sm:$0xff] }
 0x5f9   : > { %v12825_v14 = vpop.eup %9493  ;;  %v2648_v26 = vmul.f32 1.442695, %v2454_v53  ;;  %4352 = vmatpush.bf16.msra.mxu1 %v3827_v58  ;;  %2278 = vmax.xlane.f32.xlu1 %v12815_v32  ;;  %v3825_v24 = vpack.c.bf16 %v3718_v48, %v3717_v37  ;;  %v12848_v6 = vadd.f32 %v12386_v43, %v1867_v29  ;;  %v3714_v23 = vmul.f32 %v10065_v20, %v12712_v56  ;;  %v10067_v53 = vld [vmem:[%s17429_s14 + $0x118] sm:$0xff]  ;;  %v10070_v48 = vld [vmem:[%s17429_s14 + $0x100] sm:$0xff]  ;;  %v1405_v37 = vld [vmem:[%s17430_s15 + $0x268] sm:$0xff] }
 0x5fa   : > { %3496 = vmatmul.bf16.gmra.mxu0 %v3312_v25  ;;  %2902 = vadd.xlane.f32.xlu2 %v12825_v14  ;;  %v1869_v62 = vadd.f32 %v12133_v44, %v1403_v39  ;;  %v3712_v25 = vmul.f32 %v10067_v53, %v12703_v49  ;;  %v10069_v49 = vld [vmem:[%s17429_s14 + $0x108] sm:$0xff] }
 0x5fb   : > { %9495 = vpow2.f32 %v2648_v26  ;;  %v3710_v26 = vmul.f32 %v10069_v49, %v12669_v4  ;;  %v1406_v4 = vld [vmem:[%s17430_s15 + $0x270] sm:$0xff] }
 0x5fc   : > { %v12878_v54 = vadd.f32 %v12386_v43, %v1869_v62 }
 0x5fd   : > { %4353 = vmatpush.bf16.msra.mxu1 %v3826_v47  ;;  %v2267_v22 = vpop.xlane.xlu1 %2266 }
 0x5fe   : > { %v2455_v21 = vsub.f32 %v12697_v45, %v2267_v22  ;;  %v10064_v45 = vld [vmem:[%s17429_s14 + $0x130] sm:$0xff] }
 0x5ff   : > { %v3715_v9 = vmul.f32 %v10064_v45, %v12714_v57  ;;  %v3713_v57 = vmul.f32 %v10066_v63, %v12710_v40  ;;  %v1404_v40 = vld [vmem:[%s17430_s15 + $0x260] sm:$0xff] }
 0x600   : > { %v2650_v51 = vmul.f32 1.442695, %v2455_v21  ;;  %v1872_v15 = vadd.f32 %v12157_v31, %v1404_v40  ;;  %v1874_v31 = vadd.f32 %v12182_v5, %v1405_v37  ;;  %v1877_v21 = vadd.f32 %v12199_v55, %v1406_v4 }
 0x601   : > { %v12850_v2 = vpop.eup %9495  ;;  %4354 = vmatpush.bf16.msra.mxu1 %v3825_v24  ;;  %2280 = vmax.xlane.f32.xlu1 %v12848_v6  ;;  %v3824_v0 = vpack.c.bf16 %v3716_v59, %v3715_v9  ;;  %v3823_v56 = vpack.c.bf16 %v3714_v23, %v3713_v57 }
 0x602   : > { %9497 = vpow2.f32 %v2650_v51  ;;  %2904 = vadd.xlane.f32.xlu2 %v12850_v2  ;;  %v12904_v22 = vadd.f32 %v12386_v43, %v1872_v15  ;;  %v12918_v33 = vadd.f32 %v12386_v43, %v1877_v21 }
 0x605   : > { %4355 = vmatpush.bf16.msra.mxu1 %v3824_v0  ;;  %v2269_v10 = vpop.xlane.xlu1 %2268 }
 0x606   : > { %v2456_v58 = vsub.f32 %v12707_v60, %v2269_v10  ;;  %v10068_v60 = vld [vmem:[%s17429_s14 + $0x110] sm:$0xff] }
 0x607   : > { %v3711_v46 = vmul.f32 %v10068_v60, %v12688_v38  ;;  %v3709_v38 = vmul.f32 %v10070_v48, %v12655_v3  ;;  %v12910_v3 = vadd.f32 %v12386_v43, %v1874_v31 }
 0x608   : > { %v12875_v19 = vpop.eup %9497  ;;  %v2652_v44 = vmul.f32 1.442695, %v2456_v58 }
 0x609   : > { %4356 = vmatpush.bf16.msra.mxu1 %v3823_v56  ;;  %2906 = vadd.xlane.f32.xlu0 %v12875_v19  ;;  %v3822_v29 = vpack.c.bf16 %v3712_v25, %v3711_v46  ;;  %v3821_v47 = vpack.c.bf16 %v3710_v26, %v3709_v38 }
 0x60a   : > { %9499 = vpow2.f32 %v2652_v44  ;;  %2282 = vmax.xlane.f32.xlu2 %v12878_v54 }
 0x60b   : > { %9501 = vrcp.f32 %v12810_v42 }
 0x60d   : > { %4357 = vmatpush.bf16.msra.mxu1 %v3822_v29 }
 0x610   : > { %v12898_v17 = vpop.eup %9499 }
 0x611   : > { %4358 = vmatpush.bf16.msra.mxu1 %v3821_v47  ;;  %2908 = vadd.xlane.f32.xlu0 %v12898_v17  ;;  %v9502_v5 = vpop.eup %9501 }
 0x612   : > { %2284 = vmax.xlane.f32.xlu2 %v12904_v22  ;;  %v3214_v39 = vmul.f32 %v9502_v5, %v12683_v12 }
 0x619   : > { %2286 = vmax.xlane.f32.xlu0 %v12910_v3 }
 0x621   : > { %2288 = vmax.xlane.f32.xlu0 %v12918_v33 }
 0x636   : > { %v12939_v49 = vpop.f32.mrf.mxu0 }
 0x63c   : > { %v2891_v59 = vpop.xlane.xlu2 %2890 }
 0x63d   : > { %9503 = vrcp.f32 %v2891_v59  ;;  %v12959_v59 = vld [vmem:[%s10849_s28] ss:$0 sm:$0xff] }
 0x63e   : > { %v12955_v4 = vpop.f32.mrf.mxu0 }
 0x643   : > { %v9504_v24 = vpop.eup %9503 }
 0x644   : > { %v2893_v51 = vpop.xlane.xlu2 %2892  ;;  %v3215_v45 = vmul.f32 %v9504_v24, %v12728_v36 }
 0x645   : > { %9505 = vrcp.f32 %v2893_v51 }
 0x646   : > { %v3313_v9 = vpack.c.bf16 %v3215_v45, %v3214_v39  ;;  %v1409_v39 = vld [vmem:[%s17430_s15 + $0x288] sm:$0xff] }
 0x647   : > { %v17734_v45 = vld [vmem:[#allocation31_spill] sm:$0xff] }
 0x648   : > { %3501 = vmatmul.bf16.gmra.mxu0 %v3313_v9  ;;  %v1884_v9 = vadd.f32 %v17734_v45, %v1409_v39  ;;  %v1413_v45 = vld [vmem:[%s17430_s15 + $0x2a8] sm:$0xff] }
 0x64b   : > { %v9506_v42 = vpop.eup %9505 }
 0x64c   : > { %v2271_v55 = vpop.xlane.xlu2 %2270  ;;  %v3216_v12 = vmul.f32 %v9506_v42, %v12734_v1  ;;  %v1407_v1 = vld [vmem:[%s17430_s15 + $0x278] sm:$0xff] }
 0x64d   : > { %v2457_v20 = vsub.f32 %v12747_v16, %v2271_v55  ;;  %v2895_v23 = vpop.xlane.xlu0 %2894  ;;  %v1879_v60 = vadd.f32 %v12209_v50, %v1407_v1  ;;  %v1408_v50 = vld [vmem:[%s17430_s15 + $0x280] sm:$0xff]  ;;  %v1411_v1 = vld [vmem:[%s17430_s15 + $0x298] sm:$0xff] }
 0x64e   : > { %9507 = vrcp.f32 %v2895_v23 }
 0x64f   : > { %v2654_v0 = vmul.f32 1.442695, %v2457_v20  ;;  %v12944_v48 = vadd.f32 %v12386_v43, %v1879_v60 }
 0x651   : > { %9509 = vpow2.f32 %v2654_v0 }
 0x654   : > { %v9508_v62 = vpop.eup %9507  ;;  %v2273_v63 = vpop.xlane.xlu2 %2272 }
 0x655   : > { %v2458_v57 = vsub.f32 %v12761_v41, %v2273_v63  ;;  %v2897_v10 = vpop.xlane.xlu0 %2896  ;;  %v3217_v36 = vmul.f32 %v9508_v62, %v12754_v13 }
 0x657   : > { %v12928_v58 = vpop.eup %9509  ;;  %v2656_v53 = vmul.f32 1.442695, %v2458_v57  ;;  %v3314_v25 = vpack.c.bf16 %v3217_v36, %v3216_v12  ;;  %v12978_v57 = vadd.f32 %v12959_v59, %v1884_v9  ;;  %v17738_v9 = vld [vmem:[#allocation49_spill] sm:$0xff] }
 0x658   : > { %2910 = vadd.xlane.f32.xlu1 %v12928_v58 }
 0x659   : > { %9511 = vpow2.f32 %v2656_v53  ;;  %3506 = vmatmul.bf16.gmra.mxu0 %v3314_v25  ;;  %v1410_v53 = vld [vmem:[%s17430_s15 + $0x290] sm:$0xff] }
 0x65a   : > { %9513 = vrcp.f32 %v2897_v10  ;;  %v12980_v10 = vpop.f32.mrf.mxu0 }
 0x65c   : > { %v2899_v16 = vpop.xlane.xlu1 %2898 }
 0x65d   : > { %9515 = vrcp.f32 %v2899_v16  ;;  %v2275_v56 = vpop.xlane.xlu0 %2274 }
 0x65e   : > { %v2459_v44 = vsub.f32 %v12777_v30, %v2275_v56 }
 0x65f   : > { %v12932_v41 = vpop.eup %9511 }
 0x660   : > { %v2658_v13 = vmul.f32 1.442695, %v2459_v44  ;;  %2912 = vadd.xlane.f32.xlu1 %v12932_v41  ;;  %v9514_v40 = vpop.eup %9513 }
 0x661   : > { %v3218_v29 = vmul.f32 %v9514_v40, %v12763_v52  ;;  %v17733_v52 = vld [vmem:[#allocation22_spill] sm:$0xff] }
 0x662   : > { %9517 = vpow2.f32 %v2658_v13  ;;  %v12998_v60 = vpop.f32.mrf.mxu0 }
 0x663   : > { %v9516_v46 = vpop.eup %9515 }
 0x664   : > { %v2901_v26 = vpop.xlane.xlu1 %2900  ;;  %v3219_v30 = vmul.f32 %v9516_v46, %v12774_v61  ;;  %v1882_v61 = vadd.f32 %v17733_v52, %v1408_v50  ;;  %v17736_v46 = vld [vmem:[#allocation39_spill] sm:$0xff]  ;;  %v1412_v52 = vld [vmem:[%s17430_s15 + $0x2a0] sm:$0xff] }
 0x665   : > { %v2277_v15 = vpop.xlane.xlu0 %2276 }
 0x666   : > { %v2460_v38 = vsub.f32 %v12792_v28, %v2277_v15  ;;  %v3315_v47 = vpack.c.bf16 %v3219_v30, %v3218_v29  ;;  %v12962_v5 = vadd.f32 %v12959_v59, %v1882_v61 }
 0x668   : > { %v12950_v37 = vpop.eup %9517  ;;  %v2660_v31 = vmul.f32 1.442695, %v2460_v38  ;;  %2290 = vmax.xlane.f32.xlu1 %v12944_v48 }
 0x669   : > { %3511 = vmatmul.bf16.gmra.mxu0 %v3315_v47  ;;  %2914 = vadd.xlane.f32.xlu2 %v12950_v37 }
 0x66a   : > { %9519 = vpow2.f32 %v2660_v31 }
 0x66b   : > { %9521 = vrcp.f32 %v2901_v26  ;;  %v1889_v26 = vadd.f32 %v17736_v46, %v1411_v1  ;;  %v17741_v46 = vld [vmem:[#allocation16_spill] sm:$0xff] }
 0x66c   : > { %v2279_v43 = vpop.xlane.xlu1 %2278 }
 0x66d   : > { %v2461_v28 = vsub.f32 %v12815_v32, %v2279_v43  ;;  %v2903_v21 = vpop.xlane.xlu2 %2902  ;;  %v13005_v47 = vadd.f32 %v12959_v59, %v1889_v26 }
 0x66e   : > { %9523 = vrcp.f32 %v2903_v21 }
 0x66f   : > { %v2662_v24 = vmul.f32 1.442695, %v2461_v28  ;;  %v13016_v28 = vpop.f32.mrf.mxu0 }
 0x670   : > { %v12964_v51 = vpop.eup %9519  ;;  %2292 = vmax.xlane.f32.xlu1 %v12962_v5 }
 0x671   : > { %9525 = vpow2.f32 %v2662_v24  ;;  %2916 = vadd.xlane.f32.xlu2 %v12964_v51  ;;  %v9522_v32 = vpop.eup %9521 }
 0x672   : > { %v3220_v42 = vmul.f32 %v9522_v32, %v12789_v18  ;;  %v17735_v18 = vld [vmem:[#allocation30_spill] sm:$0xff] }
 0x674   : > { %v9524_v55 = vpop.eup %9523  ;;  %v2281_v20 = vpop.xlane.xlu1 %2280 }
 0x675   : > { %v2462_v23 = vsub.f32 %v12848_v6, %v2281_v20  ;;  %v2905_v0 = vpop.xlane.xlu2 %2904  ;;  %v3221_v62 = vmul.f32 %v9524_v55, %v12825_v14  ;;  %v1887_v14 = vadd.f32 %v17735_v18, %v1410_v53  ;;  %v1894_v55 = vadd.f32 %v17738_v9, %v1413_v45 }
 0x677   : > { %v12975_v63 = vpop.eup %9525  ;;  %v2664_v12 = vmul.f32 1.442695, %v2462_v23  ;;  %v3316_v36 = vpack.c.bf16 %v3221_v62, %v3220_v42  ;;  %v12992_v44 = vadd.f32 %v12959_v59, %v1887_v14  ;;  %v13030_v23 = vpop.f32.mrf.mxu0  ;;  %v13036_v42 = vadd.f32 %v12959_v59, %v1894_v55  ;;  %v1415_v14 = vld [vmem:[%s17430_s15 + $0x2b8] sm:$0xff] }
 0x678   : > { %2918 = vadd.xlane.f32.xlu0 %v12975_v63 }
 0x679   : > { %9527 = vpow2.f32 %v2664_v12  ;;  %3516 = vmatmul.bf16.gmra.mxu0 %v3316_v36  ;;  %2294 = vmax.xlane.f32.xlu2 %v12978_v57  ;;  %v1414_v12 = vld [vmem:[%s17430_s15 + $0x2b0] sm:$0xff] }
 0x67a   : > { %9529 = vrcp.f32 %v2905_v0  ;;  %v17739_v36 = vld [vmem:[#allocation48_spill] sm:$0xff] }
 0x67b   : > { %v1897_v53 = vadd.f32 %v17739_v36, %v1414_v12 }
 0x67c   : > { %v2907_v6 = vpop.xlane.xlu0 %2906 }
 0x67d   : > { %v2283_v25 = vpop.xlane.xlu2 %2282  ;;  %9531 = vrcp.f32 %v2907_v6 }
 0x67e   : > { %v2463_v16 = vsub.f32 %v12878_v54, %v2283_v25  ;;  %v17740_v25 = vld [vmem:[#allocation17_spill] sm:$0xff] }
 0x67f   : > { %v12989_v56 = vpop.eup %9527  ;;  %v13052_v6 = vpop.f32.mrf.mxu0 }
 0x680   : > { %v2666_v13 = vmul.f32 1.442695, %v2463_v16  ;;  %2920 = vadd.xlane.f32.xlu0 %v12989_v56  ;;  %v9530_v40 = vpop.eup %9529  ;;  %v1899_v16 = vadd.f32 %v17740_v25, %v1415_v14 }
 0x681   : > { %2296 = vmax.xlane.f32.xlu2 %v12992_v44  ;;  %v3222_v30 = vmul.f32 %v9530_v40, %v12850_v2  ;;  %v17737_v2 = vld [vmem:[#allocation38_spill] sm:$0xff] }
 0x682   : > { %9533 = vpow2.f32 %v2666_v13  ;;  %v13058_v1 = vadd.f32 %v12959_v59, %v1899_v16  ;;  %v1416_v13 = vld [vmem:[%s17430_s15 + $0x2c0] sm:$0xff] }
 0x683   : > { %v9532_v54 = vpop.eup %9531  ;;  %v1902_v26 = vadd.f32 %v17741_v46, %v1416_v13 }
 0x684   : > { %v2909_v29 = vpop.xlane.xlu0 %2908  ;;  %v3223_v15 = vmul.f32 %v9532_v54, %v12875_v19  ;;  %v1892_v19 = vadd.f32 %v17737_v2, %v1412_v52 }
 0x685   : > { %v2285_v38 = vpop.xlane.xlu2 %2284  ;;  %v13068_v54 = vadd.f32 %v12959_v59, %v1902_v26 }
 0x686   : > { %v2464_v50 = vsub.f32 %v12904_v22, %v2285_v38  ;;  %v3317_v31 = vpack.c.bf16 %v3223_v15, %v3222_v30  ;;  %v13020_v24 = vadd.f32 %v12959_v59, %v1892_v19 }
 0x687   : > { %v13064_v40 = vpop.f32.mrf.mxu0 }
 0x688   : > { %v13011_v61 = vpop.eup %9533  ;;  %v2668_v43 = vmul.f32 1.442695, %v2464_v50  ;;  %2298 = vmax.xlane.f32.xlu0 %v13005_v47 }
 0x689   : > { %2922 = vadd.xlane.f32.xlu1 %v13011_v61  ;;  %3521 = vmatmul.bf16.gmra.mxu0 %v3317_v31 }
 0x68a   : > { %9535 = vpow2.f32 %v2668_v43 }
 0x68c   : > { %v2287_v21 = vpop.xlane.xlu0 %2286 }
 0x68d   : > { %v2465_v22 = vsub.f32 %v12910_v3, %v2287_v21 }
 0x68f   : > { %v2670_v39 = vmul.f32 1.442695, %v2465_v22  ;;  %v13071_v30 = vpop.f32.mrf.mxu0 }
 0x690   : > { %v13022_v32 = vpop.eup %9535  ;;  %2300 = vmax.xlane.f32.xlu0 %v13020_v24 }
 0x691   : > { %9537 = vpow2.f32 %v2670_v39  ;;  %2924 = vadd.xlane.f32.xlu1 %v13022_v32 }
 0x694   : > { %v2289_v20 = vpop.xlane.xlu0 %2288 }
 0x695   : > { %v2466_v3 = vsub.f32 %v12918_v33, %v2289_v20  ;;  %v13047_v33 = vadd.f32 %v12959_v59, %v1897_v53 }
 0x697   : > { %v13033_v0 = vpop.eup %9537  ;;  %v2672_v62 = vmul.f32 1.442695, %v2466_v3  ;;  %v13073_v15 = vpop.f32.mrf.mxu0 }
 0x698   : > { %2926 = vadd.xlane.f32.xlu2 %v13033_v0 }
 0x699   : > { %9539 = vpow2.f32 %v2672_v62  ;;  %2302 = vmax.xlane.f32.xlu1 %v13036_v42 }
 0x69a   : > { %9541 = vrcp.f32 %v2909_v29 }
 0x69f   : > { %v13044_v18 = vpop.eup %9539 }
 0x6a0   : > { %2928 = vadd.xlane.f32.xlu2 %v13044_v18  ;;  %v9542_v52 = vpop.eup %9541 }
 0x6a1   : > { %2304 = vmax.xlane.f32.xlu1 %v13047_v33  ;;  %v3224_v19 = vmul.f32 %v9542_v52, %v12898_v17 }
 0x6a8   : > { %2306 = vmax.xlane.f32.xlu2 %v13058_v1 }
 0x6b0   : > { %2308 = vmax.xlane.f32.xlu2 %v13068_v54 }
 0x6c5   : > { %v13075_v38 = vpop.f32.mrf.mxu0 }
 0x6cb   : > { %v2911_v50 = vpop.xlane.xlu1 %2910 }
 0x6cc   : > { %9543 = vrcp.f32 %v2911_v50  ;;  %v10072_v50 = vld [vmem:[%s17429_s14 + $0x1f0] sm:$0xff] }
 0x6cd   : > { %v3504_v31 = vpop.f32.mrf.mxu0 }
 0x6d2   : > { %v9544_v43 = vpop.eup %9543 }
 0x6d3   : > { %v2913_v2 = vpop.xlane.xlu1 %2912  ;;  %v3225_v21 = vmul.f32 %v9544_v43, %v12928_v58 }
 0x6d4   : > { %9545 = vrcp.f32 %v2913_v2  ;;  %v10073_v2 = vld [vmem:[%s17429_s14 + $0x1f8] sm:$0xff] }
 0x6d5   : > { %v3318_v22 = vpack.c.bf16 %v3225_v21, %v3224_v19 }
 0x6d6   : > { %v3507_v39 = vpop.f32.mrf.mxu0 }
 0x6d7   : > { %3526 = vmatmul.bf16.gmra.mxu0 %v3318_v22  ;;  %v17742_v22 = vld [vmem:[#allocation25_spill] sm:$0xff] }
 0x6da   : > { %v9546_v3 = vpop.eup %9545 }
 0x6db   : > { %v2291_v45 = vpop.xlane.xlu1 %2290  ;;  %v3226_v58 = vmul.f32 %v9546_v3, %v12932_v41  ;;  %v10075_v3 = vld [vmem:[%s17429_s14 + $0x1e0] sm:$0xff] }
 0x6dc   : > { %v2467_v9 = vsub.f32 %v12944_v48, %v2291_v45  ;;  %v2915_v55 = vpop.xlane.xlu2 %2914 }
 0x6dd   : > { %9547 = vrcp.f32 %v2915_v55 }
 0x6de   : > { %v2674_v29 = vmul.f32 1.442695, %v2467_v9  ;;  %v3509_v20 = vpop.f32.mrf.mxu0 }
 0x6e0   : > { %9549 = vpow2.f32 %v2674_v29 }
 0x6e3   : > { %v9548_v62 = vpop.eup %9547  ;;  %v2293_v12 = vpop.xlane.xlu1 %2292 }
 0x6e4   : > { %v2468_v36 = vsub.f32 %v12962_v5, %v2293_v12  ;;  %v2917_v17 = vpop.xlane.xlu2 %2916  ;;  %v3227_v53 = vmul.f32 %v9548_v62, %v12950_v37  ;;  %v1417_v5 = vld [vmem:[%s17430_s15 + $0x2c8] sm:$0xff]  ;;  %v3737_v62 = vmul.f32 %v10075_v3, %v3507_v39  ;;  %v1418_v39 = vld [vmem:[%s17430_s15 + $0x2d0] sm:$0xff] }
 0x6e5   : > { %v1904_v45 = vadd.f32 %v17742_v22, %v1417_v5 }
 0x6e6   : > { %v13083_v14 = vpop.eup %9549  ;;  %v2676_v25 = vmul.f32 1.442695, %v2468_v36  ;;  %v3512_v16 = vpop.f32.mrf.mxu0  ;;  %v3319_v48 = vpack.c.bf16 %v3227_v53, %v3226_v58 }
 0x6e7   : > { %2930 = vadd.xlane.f32.xlu0 %v13083_v14  ;;  %v3739_v52 = vmul.f32 %v10072_v50, %v3512_v16  ;;  %v13109_v58 = vadd.f32 %v12959_v59, %v1904_v45 }
 0x6e8   : > { %9551 = vpow2.f32 %v2676_v25  ;;  %3531 = vmatmul.bf16.gmra.mxu0 %v3319_v48 }
 0x6e9   : > { %9553 = vrcp.f32 %v2917_v17 }
 0x6eb   : > { %v2919_v13 = vpop.xlane.xlu0 %2918 }
 0x6ec   : > { %v2295_v46 = vpop.xlane.xlu2 %2294  ;;  %9555 = vrcp.f32 %v2919_v13 }
 0x6ed   : > { %v2469_v41 = vsub.f32 %v12978_v57, %v2295_v46  ;;  %v10074_v57 = vld [vmem:[%s17429_s14 + $0x1e8] sm:$0xff] }
 0x6ee   : > { %v13090_v37 = vpop.eup %9551  ;;  %v3514_v26 = vpop.f32.mrf.mxu0  ;;  %v3738_v9 = vmul.f32 %v10074_v57, %v3509_v20  ;;  %v10076_v20 = vld [vmem:[%s17429_s14 + $0x1d8] sm:$0xff] }
 0x6ef   : > { %v2678_v43 = vmul.f32 1.442695, %v2469_v41  ;;  %v3740_v19 = vmul.f32 %v10073_v2, %v3514_v26  ;;  %2932 = vadd.xlane.f32.xlu0 %v13090_v37  ;;  %v9554_v21 = vpop.eup %9553  ;;  %v3736_v25 = vmul.f32 %v10076_v20, %v3504_v31  ;;  %v10078_v41 = vld [vmem:[%s17429_s14 + $0x1c8] sm:$0xff] }
 0x6f0   : > { %v3228_v36 = vmul.f32 %v9554_v21, %v12964_v51  ;;  %v3835_v16 = vpack.c.bf16 %v3738_v9, %v3737_v62  ;;  %v3734_v26 = vmul.f32 %v10078_v41, %v13073_v15  ;;  %v10080_v15 = vld [vmem:[%s17429_s14 + $0x1b8] sm:$0xff] }
 0x6f1   : > { %9557 = vpow2.f32 %v2678_v43  ;;  %v3836_v55 = vpack.c.bf16 %v3740_v19, %v3739_v52  ;;  %v3732_v22 = vmul.f32 %v10080_v15, %v13064_v40 }
 0x6f2   : > { %v9556_v29 = vpop.eup %9555 }
 0x6f3   : > { %4400 = vmatpush.bf16.msra.mxu2 %v3836_v55  ;;  %v2921_v12 = vpop.xlane.xlu0 %2920  ;;  %v3229_v17 = vmul.f32 %v9556_v29, %v12975_v63  ;;  %v10077_v63 = vld [vmem:[%s17429_s14 + $0x1d0] sm:$0xff]  ;;  %v10082_v29 = vld [vmem:[%s17429_s14 + $0x1a8] sm:$0xff] }
 0x6f4   : > { %v2297_v53 = vpop.xlane.xlu2 %2296  ;;  %v3735_v46 = vmul.f32 %v10077_v63, %v13075_v38  ;;  %v10079_v38 = vld [vmem:[%s17429_s14 + $0x1c0] sm:$0xff]  ;;  %v3730_v3 = vmul.f32 %v10082_v29, %v13030_v23  ;;  %v10084_v23 = vld [vmem:[%s17429_s14 + $0x198] sm:$0xff] }
 0x6f5   : > { %v2470_v48 = vsub.f32 %v12992_v44, %v2297_v53  ;;  %v3320_v13 = vpack.c.bf16 %v3229_v17, %v3228_v36  ;;  %v17743_v44 = vld [vmem:[#allocation24_spill] sm:$0xff]  ;;  %v3733_v52 = vmul.f32 %v10079_v38, %v13071_v30  ;;  %v1419_v30 = vld [vmem:[%s17430_s15 + $0x2d8] sm:$0xff] }
 0x6f6   : > { %v1907_v31 = vadd.f32 %v17743_v44, %v1418_v39  ;;  %v3834_v50 = vpack.c.bf16 %v3736_v25, %v3735_v46  ;;  %v3728_v39 = vmul.f32 %v10084_v23, %v12998_v60  ;;  %v10086_v60 = vld [vmem:[%s17429_s14 + $0x188] sm:$0xff] }
 0x6f7   : > { %v13118_v51 = vpop.eup %9557  ;;  %v2680_v5 = vmul.f32 1.442695, %v2470_v48  ;;  %4401 = vmatpush.bf16.msra.mxu2 %v3835_v16  ;;  %2310 = vmax.xlane.f32.xlu0 %v13109_v58  ;;  %v3833_v45 = vpack.c.bf16 %v3734_v26, %v3733_v52  ;;  %v17745_v26 = vld [vmem:[#allocation32_spill] sm:$0xff] }
 0x6f8   : > { %2934 = vadd.xlane.f32.xlu1 %v13118_v51  ;;  %3536 = vmatmul.bf16.gmra.mxu0 %v3320_v13  ;;  %v13137_v21 = vadd.f32 %v12959_v59, %v1907_v31  ;;  %v3726_v31 = vmul.f32 %v10086_v60, %v12955_v4 }
 0x6f9   : > { %9559 = vpow2.f32 %v2680_v5 }
 0x6fa   : > { %9561 = vrcp.f32 %v2921_v12  ;;  %v17744_v12 = vld [vmem:[#allocation33_spill] sm:$0xff] }
 0x6fb   : > { %4402 = vmatpush.bf16.msra.mxu2 %v3834_v50  ;;  %v2299_v43 = vpop.xlane.xlu0 %2298  ;;  %v1909_v36 = vadd.f32 %v17744_v12, %v1419_v30 }
 0x6fc   : > { %v2923_v2 = vpop.xlane.xlu1 %2922  ;;  %v2471_v19 = vsub.f32 %v13005_v47, %v2299_v43  ;;  %v10081_v47 = vld [vmem:[%s17429_s14 + $0x1b0] sm:$0xff] }
 0x6fd   : > { %9563 = vrcp.f32 %v2923_v2  ;;  %v3731_v55 = vmul.f32 %v10081_v47, %v13052_v6  ;;  %v10083_v6 = vld [vmem:[%s17429_s14 + $0x1a0] sm:$0xff] }
 0x6fe   : > { %v2682_v57 = vmul.f32 1.442695, %v2471_v19  ;;  %v3729_v53 = vmul.f32 %v10083_v6, %v13016_v28  ;;  %v13173_v28 = vadd.f32 %v12959_v59, %v1909_v36  ;;  %v1422_v36 = vld [vmem:[%s17430_s15 + $0x2f0] sm:$0xff] }
 0x6ff   : > { %v13143_v9 = vpop.eup %9559  ;;  %4403 = vmatpush.bf16.msra.mxu2 %v3833_v45  ;;  %2312 = vmax.xlane.f32.xlu0 %v13137_v21  ;;  %v3832_v62 = vpack.c.bf16 %v3732_v22, %v3731_v55  ;;  %v1421_v22 = vld [vmem:[%s17430_s15 + $0x2e8] sm:$0xff] }
 0x700   : > { %9565 = vpow2.f32 %v2682_v57  ;;  %2936 = vadd.xlane.f32.xlu1 %v13143_v9  ;;  %v9562_v40 = vpop.eup %9561  ;;  %v3831_v63 = vpack.c.bf16 %v3730_v3, %v3729_v53  ;;  %v17746_v57 = vld [vmem:[#allocation41_spill] sm:$0xff] }
 0x701   : > { %v3230_v48 = vmul.f32 %v9562_v40, %v12989_v56  ;;  %v1420_v56 = vld [vmem:[%s17430_s15 + $0x2e0] sm:$0xff]  ;;  %v1914_v30 = vadd.f32 %v17746_v57, %v1421_v22 }
 0x702   : > { %v1912_v50 = vadd.f32 %v17745_v26, %v1420_v56  ;;  %v1424_v56 = vld [vmem:[%s17430_s15 + $0x300] sm:$0xff] }
 0x703   : > { %v9564_v17 = vpop.eup %9563  ;;  %4404 = vmatpush.bf16.msra.mxu2 %v3832_v62  ;;  %v2301_v20 = vpop.xlane.xlu0 %2300  ;;  %v13208_v3 = vadd.f32 %v12959_v59, %v1914_v30 }
 0x704   : > { %v2925_v25 = vpop.xlane.xlu1 %2924  ;;  %v2472_v16 = vsub.f32 %v13020_v24, %v2301_v20  ;;  %v3231_v13 = vmul.f32 %v9564_v17, %v13011_v61  ;;  %v10085_v61 = vld [vmem:[%s17429_s14 + $0x190] sm:$0xff]  ;;  %v13197_v4 = vadd.f32 %v12959_v59, %v1912_v50 }
 0x705   : > { %v3727_v24 = vmul.f32 %v10085_v61, %v12980_v10  ;;  %v10087_v10 = vld [vmem:[%s17429_s14 + $0x180] sm:$0xff] }
 0x706   : > { %v13170_v46 = vpop.eup %9565  ;;  %v2684_v5 = vmul.f32 1.442695, %v2472_v16  ;;  %v3321_v44 = vpack.c.bf16 %v3231_v13, %v3230_v48  ;;  %v3725_v38 = vmul.f32 %v10087_v10, %v12939_v49  ;;  %v1423_v48 = vld [vmem:[%s17430_s15 + $0x2f8] sm:$0xff]  ;;  %v17748_v13 = vld [vmem:[#allocation51_spill] sm:$0xff]  ;;  %v17749_v61 = vld [vmem:[#allocation50_spill] sm:$0xff] }
 0x707   : > { %4405 = vmatpush.bf16.msra.mxu2 %v3831_v63  ;;  %2938 = vadd.xlane.f32.xlu2 %v13170_v46  ;;  %v3830_v41 = vpack.c.bf16 %v3728_v39, %v3727_v24  ;;  %v1919_v23 = vadd.f32 %v17748_v13, %v1423_v48  ;;  %v1922_v24 = vadd.f32 %v17749_v61, %v1424_v56  ;;  %v1426_v10 = vld [vmem:[%s17430_s15 + $0x310] sm:$0xff] }
 0x708   : > { %9567 = vpow2.f32 %v2684_v5  ;;  %2314 = vmax.xlane.f32.xlu1 %v13173_v28  ;;  %3541 = vmatmul.bf16.gmra.mxu0 %v3321_v44  ;;  %v3829_v2 = vpack.c.bf16 %v3726_v31, %v3725_v38  ;;  %v1425_v31 = vld [vmem:[%s17430_s15 + $0x308] sm:$0xff]  ;;  %v1927_v38 = vadd.f32 %v12473_v11, %v1426_v10 }
 0x709   : > { %9569 = vrcp.f32 %v2925_v25  ;;  %v13235_v5 = vadd.f32 %v12959_v59, %v1919_v23 }
 0x70b   : > { %4406 = vmatpush.bf16.msra.mxu2 %v3830_v41  ;;  %v2927_v52 = vpop.xlane.xlu2 %2926  ;;  %v17750_v41 = vld [vmem:[#allocation56_spill] sm:$0xff] }
 0x70c   : > { %v2303_v43 = vpop.xlane.xlu1 %2302  ;;  %9571 = vrcp.f32 %v2927_v52  ;;  %v1924_v26 = vadd.f32 %v17750_v41, %v1425_v31  ;;  %v13263_v52 = vadd.f32 %v12959_v59, %v1927_v38 }
 0x70d   : > { %v2473_v19 = vsub.f32 %v13036_v42, %v2303_v43 }
 0x70e   : > { %v13194_v15 = vpop.eup %9567  ;;  %v13255_v50 = vadd.f32 %v12959_v59, %v1924_v26 }
 0x70f   : > { %v2686_v45 = vmul.f32 1.442695, %v2473_v19  ;;  %4407 = vmatpush.bf16.msra.mxu2 %v3829_v2  ;;  %2940 = vadd.xlane.f32.xlu2 %v13194_v15  ;;  %v9570_v49 = vpop.eup %9569  ;;  %v13266_v2 = vpop.f32.mrf.mxu0 }
 0x710   : > { %2316 = vmax.xlane.f32.xlu1 %v13197_v4  ;;  %v3232_v55 = vmul.f32 %v9570_v49, %v13022_v32  ;;  %v17747_v32 = vld [vmem:[#allocation40_spill] sm:$0xff] }
 0x711   : > { %9573 = vpow2.f32 %v2686_v45 }
 0x712   : > { %v9572_v42 = vpop.eup %9571 }
 0x713   : > { %v2929_v47 = vpop.xlane.xlu2 %2928  ;;  %v3233_v40 = vmul.f32 %v9572_v42, %v13033_v0  ;;  %v1917_v0 = vadd.f32 %v17747_v32, %v1422_v36 }
 0x714   : > { %v2305_v29 = vpop.xlane.xlu1 %2304 }
 0x715   : > { %v2474_v62 = vsub.f32 %v13047_v33, %v2305_v29  ;;  %v3322_v12 = vpack.c.bf16 %v3233_v40, %v3232_v55  ;;  %v13221_v33 = vadd.f32 %v12959_v59, %v1917_v0 }
 0x717   : > { %v13214_v17 = vpop.eup %9573  ;;  %v2688_v6 = vmul.f32 1.442695, %v2474_v62  ;;  %2318 = vmax.xlane.f32.xlu2 %v13208_v3  ;;  %v13270_v42 = vpop.f32.mrf.mxu0 }
 0x718   : > { %2942 = vadd.xlane.f32.xlu0 %v13214_v17  ;;  %3546 = vmatmul.bf16.gmra.mxu0 %v3322_v12 }
 0x719   : > { %9575 = vpow2.f32 %v2688_v6 }
 0x71b   : > { %v2307_v53 = vpop.xlane.xlu2 %2306 }
 0x71c   : > { %v2475_v20 = vsub.f32 %v13058_v1, %v2307_v53 }
 0x71e   : > { %v2690_v25 = vmul.f32 1.442695, %v2475_v20 }
 0x71f   : > { %v13223_v16 = vpop.eup %9575  ;;  %2320 = vmax.xlane.f32.xlu2 %v13221_v33  ;;  %v13273_v29 = vpop.f32.mrf.mxu0 }
 0x720   : > { %9577 = vpow2.f32 %v2690_v25  ;;  %2944 = vadd.xlane.f32.xlu0 %v13223_v16 }
 0x723   : > { %v2309_v39 = vpop.xlane.xlu2 %2308 }
 0x724   : > { %v2476_v1 = vsub.f32 %v13068_v54, %v2309_v39  ;;  %v13246_v54 = vadd.f32 %v12959_v59, %v1922_v24 }
 0x726   : > { %v13232_v63 = vpop.eup %9577  ;;  %v2692_v44 = vmul.f32 1.442695, %v2476_v1 }
 0x727   : > { %2946 = vadd.xlane.f32.xlu1 %v13232_v63 }
 0x728   : > { %9579 = vpow2.f32 %v2692_v44  ;;  %2322 = vmax.xlane.f32.xlu0 %v13235_v5 }
 0x729   : > { %9581 = vrcp.f32 %v2929_v47 }
 0x72e   : > { %v13243_v60 = vpop.eup %9579 }
 0x72f   : > { %2948 = vadd.xlane.f32.xlu1 %v13243_v60  ;;  %v9582_v19 = vpop.eup %9581 }
 0x730   : > { %2324 = vmax.xlane.f32.xlu0 %v13246_v54  ;;  %v3234_v49 = vmul.f32 %v9582_v19, %v13044_v18 }
 0x737   : > { %2326 = vmax.xlane.f32.xlu1 %v13255_v50 }
 0x73f   : > { %2328 = vmax.xlane.f32.xlu1 %v13263_v52 }
 0x75a   : > { %v2931_v43 = vpop.xlane.xlu0 %2930 }
 0x75b   : > { %9583 = vrcp.f32 %v2931_v43 }
 0x761   : > { %v9584_v22 = vpop.eup %9583 }
 0x762   : > { %v2933_v45 = vpop.xlane.xlu0 %2932  ;;  %v3235_v57 = vmul.f32 %v9584_v22, %v13083_v14 }
 0x763   : > { %9585 = vrcp.f32 %v2933_v45 }
 0x764   : > { %v3323_v30 = vpack.c.bf16 %v3235_v57, %v3234_v49  ;;  %v1429_v57 = vld [vmem:[%s17430_s15 + $0x328] sm:$0xff] }
 0x766   : > { %3551 = vmatmul.bf16.gmra.mxu0 %v3323_v30 }
 0x769   : > { %v9586_v62 = vpop.eup %9585 }
 0x76a   : > { %v2311_v11 = vpop.xlane.xlu0 %2310  ;;  %v3236_v6 = vmul.f32 %v9586_v62, %v13090_v37  ;;  %v1427_v37 = vld [vmem:[%s17430_s15 + $0x318] sm:$0xff] }
 0x76b   : > { %v2935_v55 = vpop.xlane.xlu1 %2934  ;;  %v2477_v47 = vsub.f32 %v13109_v58, %v2311_v11  ;;  %v13281_v58 = vpop.f32.mrf.mxu0  ;;  %v1929_v39 = vadd.f32 %v12504_v35, %v1427_v37  ;;  %v1428_v35 = vld [vmem:[%s17430_s15 + $0x320] sm:$0xff] }
 0x76c   : > { %9587 = vrcp.f32 %v2935_v55 }
 0x76d   : > { %v2694_v40 = vmul.f32 1.442695, %v2477_v47  ;;  %v13296_v31 = vadd.f32 %v12959_v59, %v1929_v39 }
 0x76f   : > { %9589 = vpow2.f32 %v2694_v40 }
 0x772   : > { %v9588_v12 = vpop.eup %9587  ;;  %v2313_v36 = vpop.xlane.xlu0 %2312 }
 0x773   : > { %v2937_v18 = vpop.xlane.xlu1 %2936  ;;  %v2478_v14 = vsub.f32 %v13137_v21, %v2313_v36  ;;  %v3237_v32 = vmul.f32 %v9588_v12, %v13118_v51  ;;  %v13291_v44 = vpop.f32.mrf.mxu0 }
 0x775   : > { %v13278_v0 = vpop.eup %9589  ;;  %v2696_v53 = vmul.f32 1.442695, %v2478_v14  ;;  %v3324_v20 = vpack.c.bf16 %v3237_v32, %v3236_v6 }
 0x776   : > { %2950 = vadd.xlane.f32.xlu2 %v13278_v0 }
 0x777   : > { %9591 = vpow2.f32 %v2696_v53  ;;  %3556 = vmatmul.bf16.gmra.mxu0 %v3324_v20 }
 0x778   : > { %9593 = vrcp.f32 %v2937_v18 }
 0x77a   : > { %v2939_v25 = vpop.xlane.xlu2 %2938 }
 0x77b   : > { %v2315_v48 = vpop.xlane.xlu1 %2314  ;;  %9595 = vrcp.f32 %v2939_v25  ;;  %v13307_v43 = vpop.f32.mrf.mxu0  ;;  %v1431_v25 = vld [vmem:[%s17430_s15 + $0x338] sm:$0xff] }
 0x77c   : > { %v2479_v21 = vsub.f32 %v13173_v28, %v2315_v48  ;;  %v1941_v48 = vpop.f32.mrf.mxu3 }
 0x77d   : > { %v13284_v13 = vpop.eup %9591 }
 0x77e   : > { %v2698_v51 = vmul.f32 1.442695, %v2479_v21  ;;  %2952 = vadd.xlane.f32.xlu2 %v13284_v13  ;;  %v9594_v23 = vpop.eup %9593 }
 0x77f   : > { %v3238_v61 = vmul.f32 %v9594_v23, %v13143_v9  ;;  %v1932_v9 = vadd.f32 %v12537_v7, %v1428_v35 }
 0x780   : > { %9597 = vpow2.f32 %v2698_v51 }
 0x781   : > { %v9596_v1 = vpop.eup %9595  ;;  %v13311_v22 = vadd.f32 %v12959_v59, %v1932_v9 }
 0x782   : > { %v2941_v56 = vpop.xlane.xlu2 %2940  ;;  %v3239_v28 = vmul.f32 %v9596_v1, %v13170_v46 }
 0x783   : > { %v2317_v24 = vpop.xlane.xlu1 %2316  ;;  %v13329_v18 = vpop.f32.mrf.mxu0 }
 0x784   : > { %v2480_v41 = vsub.f32 %v13197_v4, %v2317_v24  ;;  %v3325_v26 = vpack.c.bf16 %v3239_v28, %v3238_v61  ;;  %v1943_v35 = vpop.f32.mrf.mxu3 }
 0x786   : > { %v13302_v10 = vpop.eup %9597  ;;  %v2700_v38 = vmul.f32 1.442695, %v2480_v41  ;;  %2330 = vmax.xlane.f32.xlu2 %v13296_v31  ;;  %v1432_v41 = vld [vmem:[%s17430_s15 + $0x340] sm:$0xff] }
 0x787   : > { %2954 = vadd.xlane.f32.xlu0 %v13302_v10  ;;  %3561 = vmatmul.bf16.gmra.mxu0 %v3325_v26 }
 0x788   : > { %9599 = vpow2.f32 %v2700_v38 }
 0x789   : > { %9601 = vrcp.f32 %v2941_v56 }
 0x78a   : > { %v2319_v46 = vpop.xlane.xlu2 %2318 }
 0x78b   : > { %v2481_v4 = vsub.f32 %v13208_v3, %v2319_v46  ;;  %v2943_v19 = vpop.xlane.xlu0 %2942  ;;  %v1934_v3 = vadd.f32 %v12583_v27, %v1429_v57  ;;  %v1430_v27 = vld [vmem:[%s17430_s15 + $0x330] sm:$0xff]  ;;  %v13347_v37 = vpop.f32.mrf.mxu0 }
 0x78c   : > { %9603 = vrcp.f32 %v2943_v19  ;;  %v1433_v19 = vld [vmem:[%s17430_s15 + $0x348] sm:$0xff]  ;;  %v1946_v57 = vpop.f32.mrf.mxu3 }
 0x78d   : > { %v2702_v45 = vmul.f32 1.442695, %v2481_v4  ;;  %v13327_v36 = vadd.f32 %v12959_v59, %v1934_v3 }
 0x78e   : > { %v13313_v49 = vpop.eup %9599  ;;  %2332 = vmax.xlane.f32.xlu2 %v13311_v22 }
 0x78f   : > { %9605 = vpow2.f32 %v2702_v45  ;;  %2956 = vadd.xlane.f32.xlu0 %v13313_v49  ;;  %v9602_v7 = vpop.eup %9601  ;;  %v1944_v45 = vadd.f32 %v1943_v35, %v1433_v19  ;;  %v10088_v35 = vld [vmem:[%s17429_s14 + $0x270] sm:$0xff] }
 0x790   : > { %v3240_v40 = vmul.f32 %v9602_v7, %v13194_v15  ;;  %v1937_v15 = vadd.f32 %v12602_v34, %v1430_v27 }
 0x792   : > { %v9604_v30 = vpop.eup %9603  ;;  %v2321_v11 = vpop.xlane.xlu2 %2320  ;;  %v13341_v20 = vadd.f32 %v12959_v59, %v1937_v15 }
 0x793   : > { %v2482_v55 = vsub.f32 %v13221_v33, %v2321_v11  ;;  %v2945_v47 = vpop.xlane.xlu0 %2944  ;;  %v3241_v62 = vmul.f32 %v9604_v30, %v13214_v17  ;;  %v13385_v11 = vadd.f32 %v12959_v59, %v1944_v45 }
 0x795   : > { %v13324_v12 = vpop.eup %9605  ;;  %v2704_v14 = vmul.f32 1.442695, %v2482_v55  ;;  %v3326_v6 = vpack.c.bf16 %v3241_v62, %v3240_v40  ;;  %v1948_v62 = vpop.f32.mrf.mxu3 }
 0x796   : > { %2958 = vadd.xlane.f32.xlu1 %v13324_v12 }
 0x797   : > { %9607 = vpow2.f32 %v2704_v14  ;;  %2334 = vmax.xlane.f32.xlu0 %v13327_v36  ;;  %3566 = vmatmul.bf16.gmra.mxu0 %v3326_v6  ;;  %v1435_v6 = vld [vmem:[%s17430_s15 + $0x358] sm:$0xff] }
 0x798   : > { %9609 = vrcp.f32 %v2945_v47  ;;  %v1434_v47 = vld [vmem:[%s17430_s15 + $0x350] sm:$0xff]  ;;  %v1949_v15 = vadd.f32 %v1948_v62, %v1435_v6  ;;  %v10092_v62 = vld [vmem:[%s17429_s14 + $0x258] sm:$0xff] }
 0x799   : > { %v1947_v40 = vadd.f32 %v1946_v57, %v1434_v47 }
 0x79a   : > { %v2947_v17 = vpop.xlane.xlu1 %2946 }
 0x79b   : > { %9611 = vrcp.f32 %v2947_v17  ;;  %v2323_v33 = vpop.xlane.xlu0 %2322  ;;  %v13403_v17 = vadd.f32 %v12959_v59, %v1949_v15 }
 0x79c   : > { %v2483_v32 = vsub.f32 %v13235_v5, %v2323_v33  ;;  %v1939_v5 = vadd.f32 %v12626_v8, %v1431_v25  ;;  %v1436_v33 = vld [vmem:[%s17430_s15 + $0x360] sm:$0xff] }
 0x79d   : > { %v13338_v53 = vpop.eup %9607 }
 0x79e   : > { %v2706_v21 = vmul.f32 1.442695, %v2483_v32  ;;  %2960 = vadd.xlane.f32.xlu1 %v13338_v53  ;;  %v9610_v34 = vpop.eup %9609  ;;  %v13356_v61 = vadd.f32 %v12959_v59, %v1939_v5  ;;  %v1951_v32 = vpop.f32.mrf.mxu3  ;;  %v9102_v5 = vld [vmem:[%s17431_s16 + $0x1c] sm:$0xf0] }
 0x79f   : > { %2336 = vmax.xlane.f32.xlu0 %v13341_v20  ;;  %v3242_v39 = vmul.f32 %v9610_v34, %v13223_v16  ;;  %v1942_v16 = vadd.f32 %v1941_v48, %v1432_v41  ;;  %v1952_v48 = vadd.f32 %v1951_v32, %v1436_v33  ;;  %v8533_v34 = vld [vmem:[%s17431_s16] sm:$0xf]  ;;  %v10093_v32 = vld [vmem:[%s17429_s14 + $0x250] sm:$0xff] }
 0x7a0   : > { %9613 = vpow2.f32 %v2706_v21 }
 0x7a1   : > { %v9612_v51 = vpop.eup %9611  ;;  %v13370_v9 = vadd.f32 %v12959_v59, %v1942_v16  ;;  %v13410_v21 = vadd.f32 %v12959_v59, %v1952_v48 }
 0x7a2   : > { %v13351_v23 = vpop.xlane.xlu1 %2948  ;;  %v3243_v1 = vmul.f32 %v9612_v51, %v13232_v63  ;;  %v13366_v63 = vpop.f32.mrf.mxu0  ;;  %v8534_v51 = vor.u32 %v9102_v5, %v8533_v34  ;;  %v8567_v5 = vld [vmem:[%s17431_s16 + $0x60] sm:$0xf0] }
 0x7a3   : > { %v2325_v56 = vpop.xlane.xlu0 %2324 }
 0x7a4   : > { %v2484_v28 = vsub.f32 %v13246_v54, %v2325_v56  ;;  %v3327_v24 = vpack.c.bf16 %v3243_v1, %v3242_v39  ;;  %4261 = vmatmul.bf16.vlgmr.msrb.gmra.mxu1 %v8534_v51 }
 0x7a6   : > { %v13362_v8 = vpop.eup %9613  ;;  %v2708_v26 = vmul.f32 1.442695, %v2484_v28  ;;  %2338 = vmax.xlane.f32.xlu1 %v13356_v61  ;;  %v8535_v28 = vld [vmem:[%s17431_s16 + $0x20] sm:$0xf0] }
 0x7a7   : > { %3571 = vmatmul.bf16.gmra.mxu0 %v3327_v24  ;;  %2962 = vadd.xlane.f32.xlu2 %v13362_v8 }
 0x7a8   : > { %9615 = vpow2.f32 %v2708_v26 }
 0x7aa   : > { %v2327_v38 = vpop.xlane.xlu1 %2326  ;;  %v13379_v3 = vpop.f32.mrf.mxu0 }
 0x7ab   : > { %v2485_v54 = vsub.f32 %v13255_v50, %v2327_v38  ;;  %v10089_v38 = vld [vmem:[%s17429_s14 + $0x278] sm:$0xff] }
 0x7ad   : > { %v2710_v46 = vmul.f32 1.442695, %v2485_v54 }
 0x7ae   : > { %v13372_v4 = vpop.eup %9615  ;;  %2340 = vmax.xlane.f32.xlu1 %v13370_v9 }
 0x7af   : > { %9617 = vpow2.f32 %v2710_v46  ;;  %2964 = vadd.xlane.f32.xlu2 %v13372_v4 }
 0x7b2   : > { %v2329_v7 = vpop.xlane.xlu1 %2328  ;;  %v3542_v27 = vpop.f32.mrf.mxu0 }
 0x7b3   : > { %v2486_v50 = vsub.f32 %v13263_v52, %v2329_v7  ;;  %v13395_v52 = vadd.f32 %v12959_v59, %v1947_v40  ;;  %v9098_v59 = vld [vmem:[%s17431_s16 + $0x4] sm:$0xf]  ;;  %v3751_v48 = vmul.f32 %v10093_v32, %v3542_v27 }
 0x7b4   : > { %v8538_v24 = vor.u32 %v9098_v59, %v8535_v28  ;;  %v10091_v7 = vld [vmem:[%s17429_s14 + $0x260] sm:$0xff] }
 0x7b5   : > { %v13382_v30 = vpop.eup %9617  ;;  %v2712_v55 = vmul.f32 1.442695, %v2486_v50  ;;  %v10095_v27 = vld [vmem:[%s17429_s14 + $0x240] sm:$0xff] }
 0x7b6   : > { %2966 = vadd.xlane.f32.xlu0 %v13382_v30  ;;  %4310 = vmatmul.bf16.vlgmr.msrb.gmra.mxu2 %v8538_v24  ;;  %v3749_v51 = vmul.f32 %v10095_v27, %v13366_v63  ;;  %v8565_v63 = vld [vmem:[%s17431_s16 + $0x40] sm:$0xf] }
 0x7b7   : > { %9619 = vpow2.f32 %v2712_v55  ;;  %2342 = vmax.xlane.f32.xlu2 %v13385_v11 }
 0x7b8   : > { %9621 = vrcp.f32 %v13351_v23  ;;  %v10090_v23 = vld [vmem:[%s17429_s14 + $0x268] sm:$0xff] }
 0x7ba   : > { %v3544_v25 = vpop.f32.mrf.mxu0 }
 0x7bb   : > { %v3752_v6 = vmul.f32 %v10092_v62, %v3544_v25  ;;  %v9106_v25 = vld [vmem:[%s17431_s16 + $0x44] sm:$0xf] }
 0x7bd   : > { %v13392_v14 = vpop.eup %9619  ;;  %v3842_v34 = vpack.c.bf16 %v3752_v6, %v3751_v48  ;;  %v9114_v48 = vld [vmem:[%s17431_s16 + $0x84] sm:$0xf] }
 0x7be   : > { %2968 = vadd.xlane.f32.xlu0 %v13392_v14  ;;  %v9622_v46 = vpop.eup %9621 }
 0x7bf   : > { %2344 = vmax.xlane.f32.xlu2 %v13395_v52  ;;  %v3244_v47 = vmul.f32 %v9622_v46, %v13243_v60  ;;  %v10094_v60 = vld [vmem:[%s17429_s14 + $0x248] sm:$0xff] }
 0x7c2   : > { %v3547_v39 = vpop.f32.mrf.mxu0 }
 0x7c3   : > { %v3753_v50 = vmul.f32 %v10091_v7, %v3547_v39  ;;  %v8570_v39 = vor.u32 %v9106_v25, %v8567_v5 }
 0x7c6   : > { %2346 = vmax.xlane.f32.xlu0 %v13403_v17  ;;  %4315 = vmatmul.bf16.gmra.mxu2 %v8570_v39  ;;  %v9118_v39 = vld [vmem:[%s17431_s16 + $0x9c] sm:$0xf0] }
 0x7ca   : > { %v3549_v1 = vpop.f32.mrf.mxu0 }
 0x7cb   : > { %v3754_v19 = vmul.f32 %v10090_v23, %v3549_v1 }
 0x7cd   : > { %v3843_v15 = vpack.c.bf16 %v3754_v19, %v3753_v50  ;;  %v10099_v19 = vld [vmem:[%s17429_s14 + $0x220] sm:$0xff] }
 0x7ce   : > { %2348 = vmax.xlane.f32.xlu0 %v13410_v21 }
 0x7e3   : > { %v3552_v56 = vpop.f32.mrf.mxu0 }
 0x7e4   : > { %v3755_v16 = vmul.f32 %v10088_v35, %v3552_v56  ;;  %v10096_v56 = vld [vmem:[%s17429_s14 + $0x238] sm:$0xff]  ;;  %v10097_v35 = vld [vmem:[%s17429_s14 + $0x230] sm:$0xff] }
 0x7e5   : > { %v3748_v59 = vmul.f32 %v10096_v56, %v13347_v37  ;;  %v3747_v37 = vmul.f32 %v10097_v35, %v13329_v18 }
 0x7e7   : > { %v3840_v46 = vpack.c.bf16 %v3748_v59, %v3747_v37 }
 0x7e9   : > { %v2951_v41 = vpop.xlane.xlu2 %2950 }
 0x7ea   : > { %9623 = vrcp.f32 %v2951_v41 }
 0x7eb   : > { %v3554_v26 = vpop.f32.mrf.mxu0 }
 0x7ec   : > { %v3756_v54 = vmul.f32 %v10089_v38, %v3554_v26  ;;  %v9110_v26 = vld [vmem:[%s17431_s16 + $0x5c] sm:$0xf0]  ;;  %v10098_v38 = vld [vmem:[%s17429_s14 + $0x228] sm:$0xff] }
 0x7ee   : > { %v3844_v45 = vpack.c.bf16 %v3756_v54, %v3755_v16  ;;  %v3746_v54 = vmul.f32 %v10098_v38, %v13307_v43 }
 0x7f0   : > { %v9624_v57 = vpop.eup %9623  ;;  %4449 = vmatpush.bf16.msrb.mxu1 %v3844_v45  ;;  %v3745_v45 = vmul.f32 %v10099_v19, %v13291_v44 }
 0x7f1   : > { %v2953_v55 = vpop.xlane.xlu2 %2952  ;;  %v3245_v40 = vmul.f32 %v9624_v57, %v13278_v0  ;;  %v3750_v0 = vmul.f32 %v10094_v60, %v13379_v3  ;;  %v13460_v3 = vpop.f32.mrf.mxu3  ;;  %v10100_v57 = vld [vmem:[%s17429_s14 + $0x218] sm:$0xff] }
 0x7f2   : > { %9625 = vrcp.f32 %v2953_v55  ;;  %v3744_v7 = vmul.f32 %v10100_v57, %v13281_v58  ;;  %v3839_v43 = vpack.c.bf16 %v3746_v54, %v3745_v45 }
 0x7f3   : > { %v3328_v33 = vpack.c.bf16 %v3245_v40, %v3244_v47  ;;  %v3841_v28 = vpack.c.bf16 %v3750_v0, %v3749_v51  ;;  %v10103_v0 = vld [vmem:[%s17429_s14 + $0x200] sm:$0xff] }
 0x7f4   : > { %4450 = vmatpush.bf16.msrb.mxu1 %v3843_v15  ;;  %v10101_v15 = vld [vmem:[%s17429_s14 + $0x210] sm:$0xff]  ;;  %v8597_v51 = vld [vmem:[%s17431_s16 + $0x80] sm:$0xf] }
 0x7f5   : > { %3576 = vmatmul.bf16.gmra.mxu0 %v3328_v33  ;;  %v3743_v33 = vmul.f32 %v10101_v15, %v13273_v29  ;;  %v8599_v29 = vld [vmem:[%s17431_s16 + $0xa0] sm:$0xf0]  ;;  %v8598_v56 = vor.u32 %v9118_v39, %v8597_v51 }
 0x7f6   : > { %v8602_v60 = vor.u32 %v9114_v48, %v8599_v29 }
 0x7f8   : > { %4451 = vmatpush.bf16.msrb.mxu1 %v3842_v34  ;;  %v9626_v23 = vpop.eup %9625  ;;  %v3741_v34 = vmul.f32 %v10103_v0, %v13266_v2  ;;  %4320 = vmatmul.bf16.gmra.mxu2 %v8602_v60  ;;  %v1437_v2 = vld [vmem:[%s17430_s15 + $0x368] sm:$0xff]  ;;  %v13574_v0 = vpop.f32.mrf.mxu0 }
 0x7f9   : > { %v2331_v1 = vpop.xlane.xlu2 %2330  ;;  %v3246_v40 = vmul.f32 %v9626_v23, %v13284_v13  ;;  %v1956_v44 = vpop.f32.mrf.mxu3  ;;  %v10102_v13 = vld [vmem:[%s17429_s14 + $0x208] sm:$0xff] }
 0x7fa   : > { %v2487_v24 = vsub.f32 %v13296_v31, %v2331_v1  ;;  %v2955_v41 = vpop.xlane.xlu0 %2954  ;;  %v8566_v31 = vor.u32 %v9110_v26, %v8565_v63 }
 0x7fb   : > { %9627 = vrcp.f32 %v2955_v41 }
 0x7fc   : > { %v2714_v16 = vmul.f32 1.442695, %v2487_v24  ;;  %4452 = vmatpush.bf16.msrb.mxu1 %v3841_v28  ;;  %v1954_v24 = vadd.f32 %v13460_v3, %v1437_v2  ;;  %v1438_v3 = vld [vmem:[%s17430_s15 + $0x370] sm:$0xff] }
 0x7fd   : > { %4266 = vmatmul.bf16.gmra.mxu1 %v8566_v31 }
 0x7fe   : > { %9629 = vpow2.f32 %v2714_v16  ;;  %v13530_v16 = vld [vmem:[%s10849_s28] ss:$0 sm:$0xff] }
 0x7ff   : > { %v13533_v31 = vadd.f32 %v13530_v16, %v1954_v24  ;;  %v1441_v24 = vld [vmem:[%s17430_s15 + $0x388] sm:$0xff] }
 0x800   : > { %4453 = vmatpush.bf16.msrb.mxu1 %v3840_v46 }
 0x801   : > { %v9628_v18 = vpop.eup %9627  ;;  %v2333_v50 = vpop.xlane.xlu2 %2332 }
 0x802   : > { %v2488_v55 = vsub.f32 %v13311_v22, %v2333_v50  ;;  %v2957_v47 = vpop.xlane.xlu0 %2956  ;;  %v3247_v62 = vmul.f32 %v9628_v18, %v13302_v10  ;;  %v3742_v10 = vmul.f32 %v10102_v13, %v13270_v42  ;;  %v3838_v22 = vpack.c.bf16 %v3744_v7, %v3743_v33  ;;  %v1958_v28 = vpop.f32.mrf.mxu3 }
 0x804   : > { %v13492_v6 = vpop.eup %9629  ;;  %v2716_v32 = vmul.f32 1.442695, %v2488_v55  ;;  %4454 = vmatpush.bf16.msrb.mxu1 %v3839_v43  ;;  %v3329_v58 = vpack.c.bf16 %v3247_v62, %v3246_v40  ;;  %v3837_v25 = vpack.c.bf16 %v3742_v10, %v3741_v34  ;;  %v8629_v43 = vld [vmem:[%s17431_s16 + $0xc0] sm:$0xf] }
 0x805   : > { %2970 = vadd.xlane.f32.xlu1 %v13492_v6  ;;  %v9126_v55 = vld [vmem:[%s17431_s16 + $0xdc] sm:$0xf0] }
 0x806   : > { %9631 = vpow2.f32 %v2716_v32  ;;  %3581 = vmatmul.bf16.gmra.mxu0 %v3329_v58  ;;  %v8630_v40 = vor.u32 %v9126_v55, %v8629_v43  ;;  %v8693_v43 = vld [vmem:[%s17431_s16 + $0x140] sm:$0xf] }
 0x807   : > { %9633 = vrcp.f32 %v2957_v47  ;;  %v9142_v55 = vld [vmem:[%s17431_s16 + $0x15c] sm:$0xf0] }
 0x808   : > { %4455 = vmatpush.bf16.msrb.mxu1 %v3838_v22 }
 0x809   : > { %v2959_v42 = vpop.xlane.xlu1 %2958 }
 0x80a   : > { %9635 = vrcp.f32 %v2959_v42  ;;  %v2335_v5 = vpop.xlane.xlu0 %2334  ;;  %v1961_v19 = vpop.f32.mrf.mxu3 }
 0x80b   : > { %v2489_v27 = vsub.f32 %v13327_v36, %v2335_v5  ;;  %v8661_v5 = vld [vmem:[%s17431_s16 + $0x100] sm:$0xf] }
 0x80c   : > { %v13520_v1 = vpop.eup %9631  ;;  %4456 = vmatpush.bf16.msrb.mxu1 %v3837_v25  ;;  %v1440_v25 = vld [vmem:[%s17430_s15 + $0x380] sm:$0xff] }
 0x80d   : > { %v2718_v59 = vmul.f32 1.442695, %v2489_v27  ;;  %2972 = vadd.xlane.f32.xlu1 %v13520_v1  ;;  %v9634_v36 = vpop.eup %9633  ;;  %4271 = vmatmul.bf16.gmra.mxu1 %v8598_v56  ;;  %v9134_v27 = vld [vmem:[%s17431_s16 + $0x11c] sm:$0xf0]  ;;  %v1962_v51 = vadd.f32 %v1961_v19, %v1440_v25  ;;  %v1442_v19 = vld [vmem:[%s17430_s15 + $0x390] sm:$0xff] }
 0x80e   : > { %v3248_v26 = vmul.f32 %v9634_v36, %v13313_v49  ;;  %v1957_v49 = vadd.f32 %v1956_v44, %v1438_v3  ;;  %v8662_v56 = vor.u32 %v9134_v27, %v8661_v5  ;;  %v8725_v5 = vld [vmem:[%s17431_s16 + $0x180] sm:$0xf] }
 0x80f   : > { %9637 = vpow2.f32 %v2718_v59  ;;  %v9150_v27 = vld [vmem:[%s17431_s16 + $0x19c] sm:$0xf0] }
 0x810   : > { %v9636_v41 = vpop.eup %9635  ;;  %v13551_v50 = vadd.f32 %v13530_v16, %v1957_v49 }
 0x811   : > { %v2961_v63 = vpop.xlane.xlu1 %2960  ;;  %v3249_v35 = vmul.f32 %v9636_v41, %v13324_v12  ;;  %v9122_v12 = vld [vmem:[%s17431_s16 + $0xc4] sm:$0xf] }
 0x812   : > { %v2337_v37 = vpop.xlane.xlu0 %2336  ;;  %v1963_v58 = vpop.f32.mrf.mxu3 }
 0x813   : > { %v2490_v38 = vsub.f32 %v13341_v20, %v2337_v37  ;;  %v3330_v54 = vpack.c.bf16 %v3249_v35, %v3248_v26  ;;  %v8631_v20 = vld [vmem:[%s17431_s16 + $0xe0] sm:$0xf0]  ;;  %v13603_v35 = vpop.f32.mrf.mxu0 }
 0x814   : > { %v8634_v45 = vor.u32 %v9122_v12, %v8631_v20 }
 0x815   : > { %v13539_v46 = vpop.eup %9637  ;;  %v2720_v23 = vmul.f32 1.442695, %v2490_v38  ;;  %2350 = vmax.xlane.f32.xlu1 %v13533_v31 }
 0x816   : > { %3586 = vmatmul.bf16.gmra.mxu0 %v3330_v54  ;;  %2974 = vadd.xlane.f32.xlu2 %v13539_v46 }
 0x817   : > { %9639 = vpow2.f32 %v2720_v23  ;;  %4325 = vmatmul.bf16.gmra.mxu2 %v8634_v45 }
 0x818   : > { %9641 = vrcp.f32 %v2961_v63 }
 0x819   : > { %v2339_v18 = vpop.xlane.xlu1 %2338 }
 0x81a   : > { %v2491_v57 = vsub.f32 %v13356_v61, %v2339_v18  ;;  %v2963_v7 = vpop.xlane.xlu2 %2962  ;;  %v1439_v61 = vld [vmem:[%s17430_s15 + $0x378] sm:$0xff]  ;;  %v1966_v41 = vpop.f32.mrf.mxu3 }
 0x81b   : > { %9643 = vrcp.f32 %v2963_v7  ;;  %v1959_v15 = vadd.f32 %v1958_v28, %v1439_v61  ;;  %v13597_v28 = vadd.f32 %v13530_v16, %v1962_v51  ;;  %v1967_v7 = vadd.f32 %v1966_v41, %v1442_v19 }
 0x81c   : > { %v2722_v47 = vmul.f32 1.442695, %v2491_v57 }
 0x81d   : > { %v13559_v62 = vpop.eup %9639  ;;  %2352 = vmax.xlane.f32.xlu1 %v13551_v50  ;;  %4276 = vmatmul.bf16.gmra.mxu1 %v8630_v40  ;;  %v13572_v60 = vadd.f32 %v13530_v16, %v1959_v15  ;;  %v13637_v15 = vadd.f32 %v13530_v16, %v1967_v7  ;;  %v8543_v7 = vld [vmem:[%s17431_s16 + $0x28] sm:$0xf0] }
 0x81e   : > { %9645 = vpow2.f32 %v2722_v47  ;;  %2976 = vadd.xlane.f32.xlu2 %v13559_v62  ;;  %v9642_v44 = vpop.eup %9641  ;;  %v13633_v47 = vpop.f32.mrf.mxu0 }
 0x81f   : > { %v3250_v22 = vmul.f32 %v9642_v44, %v13338_v53  ;;  %v9130_v53 = vld [vmem:[%s17431_s16 + $0x104] sm:$0xf]  ;;  %v8694_v44 = vor.u32 %v9142_v55, %v8693_v43 }
 0x821   : > { %v9644_v33 = vpop.eup %9643  ;;  %v2341_v32 = vpop.xlane.xlu1 %2340 }
 0x822   : > { %v2492_v13 = vsub.f32 %v13370_v9, %v2341_v32  ;;  %v2965_v10 = vpop.xlane.xlu2 %2964  ;;  %v3251_v48 = vmul.f32 %v9644_v33, %v13362_v8  ;;  %v8663_v8 = vld [vmem:[%s17431_s16 + $0x120] sm:$0xf0]  ;;  %v1968_v57 = vpop.f32.mrf.mxu3 }
 0x823   : > { %v8666_v9 = vor.u32 %v9130_v53, %v8663_v8 }
 0x824   : > { %v13569_v29 = vpop.eup %9645  ;;  %v2724_v34 = vmul.f32 1.442695, %v2492_v13  ;;  %v3331_v42 = vpack.c.bf16 %v3251_v48, %v3250_v22 }
 0x825   : > { %2978 = vadd.xlane.f32.xlu0 %v13569_v29 }
 0x826   : > { %9647 = vpow2.f32 %v2724_v34  ;;  %3591 = vmatmul.bf16.gmra.mxu0 %v3331_v42  ;;  %2354 = vmax.xlane.f32.xlu2 %v13572_v60  ;;  %v13646_v22 = vpop.f32.mrf.mxu0  ;;  %v9146_v34 = vld [vmem:[%s17431_s16 + $0x184] sm:$0xf] }
 0x827   : > { %9649 = vrcp.f32 %v2965_v10  ;;  %4330 = vmatmul.bf16.gmra.mxu2 %v8666_v9  ;;  %v8727_v42 = vld [vmem:[%s17431_s16 + $0x1a0] sm:$0xf0] }
 0x828   : > { %v1444_v9 = vld [vmem:[%s17430_s15 + $0x3a0] sm:$0xff] }
 0x829   : > { %v2967_v39 = vpop.xlane.xlu0 %2966 }
 0x82a   : > { %v2343_v2 = vpop.xlane.xlu2 %2342  ;;  %9651 = vrcp.f32 %v2967_v39 }
 0x82b   : > { %v2493_v59 = vsub.f32 %v13385_v11, %v2343_v2  ;;  %v1964_v11 = vadd.f32 %v1963_v58, %v1441_v24  ;;  %v1443_v58 = vld [vmem:[%s17430_s15 + $0x398] sm:$0xff]  ;;  %v8726_v2 = vor.u32 %v9150_v27, %v8725_v5  ;;  %v1445_v24 = vld [vmem:[%s17430_s15 + $0x3a8] sm:$0xff] }
 0x82c   : > { %v13594_v36 = vpop.eup %9647  ;;  %v1969_v13 = vadd.f32 %v1968_v57, %v1443_v58 }
 0x82d   : > { %v2726_v63 = vmul.f32 1.442695, %v2493_v59  ;;  %2980 = vadd.xlane.f32.xlu0 %v13594_v36  ;;  %v9650_v26 = vpop.eup %9649  ;;  %4281 = vmatmul.bf16.gmra.mxu1 %v8662_v56  ;;  %v13611_v49 = vadd.f32 %v13530_v16, %v1964_v11  ;;  %v1446_v11 = vld [vmem:[%s17430_s15 + $0x3b0] sm:$0xff] }
 0x82e   : > { %2356 = vmax.xlane.f32.xlu2 %v13597_v28  ;;  %v3252_v54 = vmul.f32 %v9650_v26, %v13372_v4  ;;  %v9138_v4 = vld [vmem:[%s17431_s16 + $0x144] sm:$0xf]  ;;  %v13658_v53 = vadd.f32 %v13530_v16, %v1969_v13  ;;  %v13679_v41 = vpop.f32.mrf.mxu0 }
 0x82f   : > { %9653 = vpow2.f32 %v2726_v63 }
 0x830   : > { %v9652_v37 = vpop.eup %9651 }
 0x831   : > { %v13606_v38 = vpop.xlane.xlu0 %2968  ;;  %v3253_v3 = vmul.f32 %v9652_v37, %v13382_v30  ;;  %v8695_v30 = vld [vmem:[%s17431_s16 + $0x160] sm:$0xf0] }
 0x832   : > { %v2345_v23 = vpop.xlane.xlu2 %2344 }
 0x833   : > { %v2494_v12 = vsub.f32 %v13395_v52, %v2345_v23  ;;  %v3332_v20 = vpack.c.bf16 %v3253_v3, %v3252_v54  ;;  %v8698_v52 = vor.u32 %v9138_v4, %v8695_v30  ;;  %v9154_v23 = vld [vmem:[%s17431_s16 + $0x1c4] sm:$0xf]  ;;  %v9158_v4 = vld [vmem:[%s17431_s16 + $0x1dc] sm:$0xf0] }
 0x835   : > { %v13617_v45 = vpop.eup %9653  ;;  %v2728_v18 = vmul.f32 1.442695, %v2494_v12  ;;  %2358 = vmax.xlane.f32.xlu0 %v13611_v49  ;;  %v8759_v12 = vld [vmem:[%s17431_s16 + $0x1e0] sm:$0xf0] }
 0x836   : > { %2982 = vadd.xlane.f32.xlu1 %v13617_v45  ;;  %3596 = vmatmul.bf16.gmra.mxu0 %v3332_v20  ;;  %v13690_v54 = vpop.f32.mrf.mxu0  ;;  %v8762_v20 = vor.u32 %v9154_v23, %v8759_v12 }
 0x837   : > { %9655 = vpow2.f32 %v2728_v18  ;;  %4335 = vmatmul.bf16.gmra.mxu2 %v8698_v52  ;;  %v8757_v18 = vld [vmem:[%s17431_s16 + $0x1c0] sm:$0xf]  ;;  %v9099_v52 = vld [vmem:[%s17431_s16 + $0xc] sm:$0xf] }
 0x838   : > { %v8758_v30 = vor.u32 %v9158_v4, %v8757_v18  ;;  %v8546_v43 = vor.u32 %v9099_v52, %v8543_v7  ;;  %v9115_v52 = vld [vmem:[%s17431_s16 + $0x8c] sm:$0xf] }
 0x839   : > { %v2347_v40 = vpop.xlane.xlu0 %2346  ;;  %v4311_v58 = vpop.f32.mrf.mxu2  ;;  %v8607_v7 = vld [vmem:[%s17431_s16 + $0xa8] sm:$0xf0] }
 0x83a   : > { %v2495_v61 = vsub.f32 %v13403_v17, %v2347_v40  ;;  %v1971_v17 = vpop.f32.mrf.mxu3  ;;  %v4262_v40 = vpop.f32.mrf.mxu1 }
 0x83b   : > { %v1972_v51 = vadd.f32 %v1971_v17, %v1444_v9  ;;  %v13724_v13 = vadd.f32 %v4311_v58, %v4262_v40 }
 0x83c   : > { %v2730_v33 = vmul.f32 1.442695, %v2495_v61  ;;  %v8541_v61 = vld [vmem:[%s17431_s16 + $0x8] sm:$0xf] }
 0x83d   : > { %v13639_v32 = vpop.eup %9655  ;;  %2360 = vmax.xlane.f32.xlu0 %v13637_v15  ;;  %4286 = vmatmul.bf16.gmra.mxu1 %v8694_v44  ;;  %v13674_v59 = vadd.f32 %v13530_v16, %v1972_v51  ;;  %v9103_v44 = vld [vmem:[%s17431_s16 + $0x24] sm:$0xf0] }
 0x83e   : > { %9657 = vpow2.f32 %v2730_v33  ;;  %2984 = vadd.xlane.f32.xlu1 %v13639_v32  ;;  %v13708_v57 = vpop.f32.mrf.mxu0  ;;  %v8542_v33 = vor.u32 %v9103_v44, %v8541_v61  ;;  %v8573_v51 = vld [vmem:[%s17431_s16 + $0x48] sm:$0xf] }
 0x841   : > { %v2349_v10 = vpop.xlane.xlu0 %2348 }
 0x842   : > { %v2496_v48 = vsub.f32 %v13410_v21, %v2349_v10  ;;  %v8730_v21 = vor.u32 %v9146_v34, %v8727_v42  ;;  %v1973_v39 = vpop.f32.mrf.mxu3  ;;  %v4264_v10 = vpop.f32.mrf.mxu1  ;;  %v9107_v42 = vld [vmem:[%s17431_s16 + $0x4c] sm:$0xf] }
 0x843   : > { %v1974_v63 = vadd.f32 %v1973_v39, %v1445_v24 }
 0x844   : > { %v13655_v25 = vpop.eup %9657  ;;  %v2732_v8 = vmul.f32 1.442695, %v2496_v48  ;;  %v4313_v48 = vpop.f32.mrf.mxu2 }
 0x845   : > { %2986 = vadd.xlane.f32.xlu2 %v13655_v25  ;;  %v13684_v26 = vadd.f32 %v13530_v16, %v1974_v63  ;;  %v13728_v34 = vadd.f32 %v4313_v48, %v4264_v10  ;;  %v8605_v10 = vld [vmem:[%s17431_s16 + $0x88] sm:$0xf] }
 0x846   : > { %9659 = vpow2.f32 %v2732_v8  ;;  %2362 = vmax.xlane.f32.xlu1 %v13658_v53  ;;  %v13716_v55 = vpop.f32.mrf.mxu0  ;;  %v8575_v8 = vld [vmem:[%s17431_s16 + $0x68] sm:$0xf0]  ;;  %v9119_v48 = vld [vmem:[%s17431_s16 + $0xa4] sm:$0xf0] }
 0x847   : > { %4340 = vmatmul.bf16.gmra.mxu2 %v8730_v21  ;;  %9661 = vrcp.f32 %v13606_v38  ;;  %v8578_v21 = vor.u32 %v9107_v42, %v8575_v8  ;;  %v9111_v38 = vld [vmem:[%s17431_s16 + $0x64] sm:$0xf0]  ;;  %v8606_v42 = vor.u32 %v9119_v48, %v8605_v10 }
 0x848   : > { %v8574_v39 = vor.u32 %v9111_v38, %v8573_v51  ;;  %v9127_v10 = vld [vmem:[%s17431_s16 + $0xe4] sm:$0xf0] }
 0x84a   : > { %v1976_v37 = vpop.f32.mrf.mxu3 }
 0x84b   : > { %v1977_v3 = vadd.f32 %v1976_v37, %v1446_v11 }
 0x84c   : > { %v13671_v56 = vpop.eup %9659  ;;  %v4316_v24 = vpop.f32.mrf.mxu2 }
 0x84d   : > { %2988 = vadd.xlane.f32.xlu2 %v13671_v56  ;;  %4291 = vmatmul.bf16.gmra.mxu1 %v8726_v2  ;;  %v13699_v19 = vadd.f32 %v13530_v16, %v1977_v3  ;;  %v9662_v2 = vpop.eup %9661 }
 0x84e   : > { %2364 = vmax.xlane.f32.xlu1 %v13674_v59  ;;  %v3254_v3 = vmul.f32 %v9662_v2, %v13392_v14 }
 0x852   : > { %v1978_v61 = vpop.f32.mrf.mxu3 }
 0x854   : > { %v4318_v4 = vpop.f32.mrf.mxu2 }
 0x855   : > { %2366 = vmax.xlane.f32.xlu2 %v13684_v26 }
 0x857   : > { %4345 = vmatmul.bf16.gmra.mxu2 %v8762_v20 }
 0x85d   : > { %2368 = vmax.xlane.f32.xlu2 %v13699_v19  ;;  %4296 = vmatmul.bf16.gmra.mxu1 %v8758_v30 }
 0x867   : > { %4408 = vmatmul.bf16.vlgmr.msra.gmra.mxu2 %v8546_v43  ;;  %v8610_v43 = vor.u32 %v9115_v52, %v8607_v7 }
 0x86d   : > { %4359 = vmatmul.bf16.vlgmr.msra.gmra.mxu1 %v8542_v33 }
 0x872   : > { %v13726_v17 = vpop.f32.mrf.mxu0 }
 0x877   : > { %4413 = vmatmul.bf16.gmra.mxu2 %v8578_v21 }
 0x878   : > { %v2971_v9 = vpop.xlane.xlu1 %2970 }
 0x879   : > { %9663 = vrcp.f32 %v2971_v9 }
 0x87a   : > { %v13737_v5 = vpop.f32.mrf.mxu0  ;;  %v4267_v27 = vpop.f32.mrf.mxu1 }
 0x87b   : > { %v13745_v63 = vadd.f32 %v4316_v24, %v4267_v27  ;;  %v4321_v8 = vpop.f32.mrf.mxu2 }
 0x87d   : > { %4364 = vmatmul.bf16.gmra.mxu1 %v8574_v39 }
 0x87f   : > { %v9664_v11 = vpop.eup %9663 }
 0x880   : > { %v2973_v37 = vpop.xlane.xlu1 %2972  ;;  %v3255_v23 = vmul.f32 %v9664_v11, %v13492_v6 }
 0x881   : > { %9665 = vrcp.f32 %v2973_v37 }
 0x882   : > { %v3333_v12 = vpack.c.bf16 %v3255_v23, %v3254_v3  ;;  %v4269_v18 = vpop.f32.mrf.mxu1 }
 0x883   : > { %v13749_v20 = vpop.f32.mrf.mxu0  ;;  %v13751_v30 = vadd.f32 %v4318_v4, %v4269_v18  ;;  %v4323_v18 = vpop.f32.mrf.mxu2 }
 0x884   : > { %3601 = vmatmul.bf16.gmra.mxu0 %v3333_v12  ;;  %v1981_v12 = vpop.f32.mrf.mxu3 }
 0x887   : > { %4418 = vmatmul.bf16.gmra.mxu2 %v8610_v43 }
 0x888   : > { %v2351_v14 = vpop.xlane.xlu1 %2350 }
 0x889   : > { %v2497_v6 = vsub.f32 %v13533_v31, %v2351_v14  ;;  %v2975_v40 = vpop.xlane.xlu2 %2974  ;;  %v9666_v31 = vpop.eup %9665 }
 0x88a   : > { %9667 = vrcp.f32 %v2975_v40  ;;  %v4272_v58 = vpop.f32.mrf.mxu1  ;;  %v3256_v39 = vmul.f32 %v9666_v31, %v13520_v1  ;;  %v9123_v1 = vld [vmem:[%s17431_s16 + $0xcc] sm:$0xf] }
 0x88b   : > { %v2734_v44 = vmul.f32 1.442695, %v2497_v6  ;;  %v13760_v33 = vpop.f32.mrf.mxu0  ;;  %v13768_v9 = vadd.f32 %v4321_v8, %v4272_v58  ;;  %v1447_v6 = vld [vmem:[%s17430_s15 + $0x3b8] sm:$0xff]  ;;  %v8637_v58 = vld [vmem:[%s17431_s16 + $0xc8] sm:$0xf] }
 0x88c   : > { %v1979_v31 = vadd.f32 %v1978_v61, %v1447_v6  ;;  %v1448_v61 = vld [vmem:[%s17430_s15 + $0x3c0] sm:$0xff] }
 0x88d   : > { %9669 = vpow2.f32 %v2734_v44  ;;  %4369 = vmatmul.bf16.gmra.mxu1 %v8606_v42 }
 0x890   : > { %v9668_v21 = vpop.eup %9667  ;;  %v2353_v27 = vpop.xlane.xlu1 %2352 }
 0x891   : > { %v2498_v51 = vsub.f32 %v13551_v50, %v2353_v27  ;;  %v2977_v38 = vpop.xlane.xlu2 %2976  ;;  %v3257_v2 = vmul.f32 %v9668_v21, %v13539_v46  ;;  %v8639_v46 = vld [vmem:[%s17431_s16 + $0xe8] sm:$0xf0] }
 0x892   : > { %v4274_v23 = vpop.f32.mrf.mxu1  ;;  %v8642_v52 = vor.u32 %v9123_v1, %v8639_v46 }
 0x893   : > { %v13773_v24 = vpop.eup %9669  ;;  %v2736_v11 = vmul.f32 1.442695, %v2498_v51  ;;  %v13775_v37 = vpop.f32.mrf.mxu0  ;;  %v3334_v3 = vpack.c.bf16 %v3257_v2, %v3256_v39  ;;  %v13778_v4 = vadd.f32 %v4323_v18, %v4274_v23 }
 0x894   : > { %2990 = vadd.xlane.f32.xlu0 %v13773_v24  ;;  %v1983_v51 = vpop.f32.mrf.mxu3 }
 0x895   : > { %9671 = vpow2.f32 %v2736_v11  ;;  %3606 = vmatmul.bf16.gmra.mxu0 %v3334_v3  ;;  %v13806_v3 = vadd.f32 %v13530_v16, %v1979_v31  ;;  %v8669_v31 = vld [vmem:[%s17431_s16 + $0x108] sm:$0xf] }
 0x896   : > { %9673 = vrcp.f32 %v2977_v38 }
 0x897   : > { %4423 = vmatmul.bf16.gmra.mxu2 %v8642_v52 }
 0x898   : > { %v2979_v50 = vpop.xlane.xlu0 %2978 }
 0x899   : > { %v2355_v7 = vpop.xlane.xlu2 %2354  ;;  %9675 = vrcp.f32 %v2979_v50 }
 0x89a   : > { %v2499_v14 = vsub.f32 %v13572_v60, %v2355_v7  ;;  %v4277_v44 = vpop.f32.mrf.mxu1  ;;  %v8638_v60 = vor.u32 %v9127_v10, %v8637_v58  ;;  %v4326_v8 = vpop.f32.mrf.mxu2 }
 0x89b   : > { %v13787_v43 = vpop.eup %9671  ;;  %v13792_v40 = vpop.f32.mrf.mxu0  ;;  %v13801_v21 = vadd.f32 %v4326_v8, %v4277_v44 }
 0x89c   : > { %v2738_v48 = vmul.f32 1.442695, %v2499_v14  ;;  %2992 = vadd.xlane.f32.xlu0 %v13787_v43  ;;  %v9674_v42 = vpop.eup %9673  ;;  %v8671_v14 = vld [vmem:[%s17431_s16 + $0x128] sm:$0xf0]  ;;  %v13824_v58 = vpop.f32.mrf.mxu3 }
 0x89d   : > { %4374 = vmatmul.bf16.gmra.mxu1 %v8638_v60  ;;  %v3258_v39 = vmul.f32 %v9674_v42, %v13559_v62 }
 0x89e   : > { %9677 = vpow2.f32 %v2738_v48 }
 0x89f   : > { %v9676_v27 = vpop.eup %9675 }
 0x8a0   : > { %v2981_v38 = vpop.xlane.xlu0 %2980  ;;  %v3259_v2 = vmul.f32 %v9676_v27, %v13569_v29  ;;  %v1982_v29 = vadd.f32 %v1981_v12, %v1448_v61  ;;  %v9135_v27 = vld [vmem:[%s17431_s16 + $0x124] sm:$0xf0] }
 0x8a1   : > { %v2357_v11 = vpop.xlane.xlu2 %2356 }
 0x8a2   : > { %v2500_v23 = vsub.f32 %v13597_v28, %v2357_v11  ;;  %v3335_v18 = vpack.c.bf16 %v3259_v2, %v3258_v39  ;;  %v4279_v46 = vpop.f32.mrf.mxu1  ;;  %v4328_v62 = vpop.f32.mrf.mxu2  ;;  %v9131_v28 = vld [vmem:[%s17431_s16 + $0x10c] sm:$0xf]  ;;  %v13828_v12 = vadd.f32 %v13530_v16, %v1982_v29  ;;  %v10105_v39 = vld [vmem:[%s17429_s14 + $0x2f0] sm:$0xff]  ;;  %v10106_v11 = vld [vmem:[%s17429_s14 + $0x2f8] sm:$0xff] }
 0x8a3   : > { %v3592_v1 = vpop.f32.mrf.mxu0  ;;  %v13816_v7 = vadd.f32 %v4328_v62, %v4279_v46  ;;  %v8674_v44 = vor.u32 %v9131_v28, %v8671_v14 }
 0x8a4   : > { %v13812_v50 = vpop.eup %9677  ;;  %v2740_v52 = vmul.f32 1.442695, %v2500_v23  ;;  %2370 = vmax.xlane.f32.xlu0 %v13806_v3  ;;  %v3771_v2 = vmul.f32 %v10105_v39, %v3592_v1 }
 0x8a5   : > { %2994 = vadd.xlane.f32.xlu1 %v13812_v50  ;;  %3611 = vmatmul.bf16.gmra.mxu0 %v3335_v18  ;;  %v8670_v18 = vor.u32 %v9135_v27, %v8669_v31 }
 0x8a6   : > { %9679 = vpow2.f32 %v2740_v52  ;;  %v10107_v52 = vld [vmem:[%s17429_s14 + $0x2e8] sm:$0xff] }
 0x8a7   : > { %9681 = vrcp.f32 %v2981_v38  ;;  %4428 = vmatmul.bf16.gmra.mxu2 %v8674_v44  ;;  %v3770_v62 = vmul.f32 %v10107_v52, %v13792_v40 }
 0x8a8   : > { %v2359_v6 = vpop.xlane.xlu0 %2358 }
 0x8a9   : > { %v2983_v10 = vpop.xlane.xlu1 %2982  ;;  %v2501_v48 = vsub.f32 %v13611_v49, %v2359_v6  ;;  %v1449_v49 = vld [vmem:[%s17430_s15 + $0x3c8] sm:$0xff]  ;;  %v10108_v6 = vld [vmem:[%s17429_s14 + $0x2e0] sm:$0xff] }
 0x8aa   : > { %9683 = vrcp.f32 %v2983_v10  ;;  %v4282_v8 = vpop.f32.mrf.mxu1  ;;  %v4331_v61 = vpop.f32.mrf.mxu2  ;;  %v1984_v28 = vadd.f32 %v1983_v51, %v1449_v49  ;;  %v3769_v44 = vmul.f32 %v10108_v6, %v13775_v37  ;;  %v10109_v51 = vld [vmem:[%s17429_s14 + $0x2d8] sm:$0xff] }
 0x8ab   : > { %v2742_v60 = vmul.f32 1.442695, %v2501_v48  ;;  %v3594_v42 = vpop.f32.mrf.mxu0  ;;  %v13853_v29 = vadd.f32 %v4331_v61, %v4282_v8  ;;  %v3768_v8 = vmul.f32 %v10109_v51, %v13760_v33  ;;  %v1988_v49 = vpop.f32.mrf.mxu3  ;;  %v8701_v51 = vld [vmem:[%s17431_s16 + $0x148] sm:$0xf] }
 0x8ac   : > { %v13836_v38 = vpop.eup %9679  ;;  %v3772_v23 = vmul.f32 %v10106_v11, %v3594_v42  ;;  %2372 = vmax.xlane.f32.xlu0 %v13828_v12  ;;  %v3851_v31 = vpack.c.bf16 %v3770_v62, %v3769_v44  ;;  %v13869_v37 = vadd.f32 %v13530_v16, %v1984_v28  ;;  %v10112_v28 = vld [vmem:[%s17429_s14 + $0x2c0] sm:$0xff] }
 0x8ad   : > { %9685 = vpow2.f32 %v2742_v60  ;;  %2996 = vadd.xlane.f32.xlu1 %v13836_v38  ;;  %v9682_v46 = vpop.eup %9681  ;;  %4379 = vmatmul.bf16.gmra.mxu1 %v8670_v18  ;;  %v8703_v18 = vld [vmem:[%s17431_s16 + $0x168] sm:$0xf0] }
 0x8ae   : > { %v3852_v1 = vpack.c.bf16 %v3772_v23, %v3771_v2  ;;  %v3260_v42 = vmul.f32 %v9682_v46, %v13594_v36  ;;  %v1450_v36 = vld [vmem:[%s17430_s15 + $0x3d0] sm:$0xff]  ;;  %v9139_v23 = vld [vmem:[%s17431_s16 + $0x14c] sm:$0xf] }
 0x8af   : > { %v8706_v62 = vor.u32 %v9139_v23, %v8703_v18 }
 0x8b0   : > { %v9684_v14 = vpop.eup %9683  ;;  %4498 = vmatpush.bf16.msrb.mxu2 %v3852_v1  ;;  %v2361_v10 = vpop.xlane.xlu0 %2360  ;;  %v1987_v1 = vadd.f32 %v13824_v58, %v1450_v36 }
 0x8b1   : > { %v2985_v48 = vpop.xlane.xlu1 %2984  ;;  %v2502_v60 = vsub.f32 %v13637_v15, %v2361_v10  ;;  %v3261_v40 = vmul.f32 %v9684_v14, %v13617_v45  ;;  %v10110_v45 = vld [vmem:[%s17429_s14 + $0x2d0] sm:$0xff]  ;;  %v3765_v14 = vmul.f32 %v10112_v28, %v13726_v17  ;;  %v10113_v10 = vld [vmem:[%s17429_s14 + $0x2b8] sm:$0xff]  ;;  %v1452_v28 = vld [vmem:[%s17430_s15 + $0x3e0] sm:$0xff] }
 0x8b2   : > { %v4284_v15 = vpop.f32.mrf.mxu1  ;;  %v3767_v33 = vmul.f32 %v10110_v45, %v13749_v20  ;;  %v4333_v11 = vpop.f32.mrf.mxu2  ;;  %v10111_v20 = vld [vmem:[%s17429_s14 + $0x2c8] sm:$0xff]  ;;  %v3764_v58 = vmul.f32 %v10113_v10, %v13716_v55  ;;  %v13908_v17 = vadd.f32 %v13530_v16, %v1987_v1  ;;  %v10114_v55 = vld [vmem:[%s17429_s14 + $0x2b0] sm:$0xff] }
 0x8b3   : > { %v13866_v27 = vpop.eup %9685  ;;  %v2744_v39 = vmul.f32 1.442695, %v2502_v60  ;;  %v3336_v2 = vpack.c.bf16 %v3261_v40, %v3260_v42  ;;  %v3766_v61 = vmul.f32 %v10111_v20, %v13737_v5  ;;  %v13890_v52 = vadd.f32 %v4333_v11, %v4284_v15  ;;  %v1451_v5 = vld [vmem:[%s17430_s15 + $0x3d8] sm:$0xff]  ;;  %v1991_v36 = vpop.f32.mrf.mxu3  ;;  %v10118_v10 = vld [vmem:[%s17429_s14 + $0x290] sm:$0xff] }
 0x8b4   : > { %4499 = vmatpush.bf16.msrb.mxu2 %v3851_v31  ;;  %2998 = vadd.xlane.f32.xlu2 %v13866_v27  ;;  %v3850_v46 = vpack.c.bf16 %v3768_v8, %v3767_v33  ;;  %v9143_v8 = vld [vmem:[%s17431_s16 + $0x164] sm:$0xf0]  ;;  %v1989_v15 = vadd.f32 %v1988_v49, %v1451_v5  ;;  %v10116_v49 = vld [vmem:[%s17429_s14 + $0x2a0] sm:$0xff] }
 0x8b5   : > { %9687 = vpow2.f32 %v2744_v39  ;;  %2374 = vmax.xlane.f32.xlu1 %v13869_v37  ;;  %3616 = vmatmul.bf16.gmra.mxu0 %v3336_v2  ;;  %v8702_v39 = vor.u32 %v9143_v8, %v8701_v51  ;;  %v10115_v33 = vld [vmem:[%s17429_s14 + $0x2a8] sm:$0xff]  ;;  %v3761_v20 = vmul.f32 %v10116_v49, %v13679_v41 }
 0x8b6   : > { %9689 = vrcp.f32 %v2985_v48  ;;  %v3849_v48 = vpack.c.bf16 %v3766_v61, %v3765_v14  ;;  %v3762_v11 = vmul.f32 %v10115_v33, %v13690_v54  ;;  %v13937_v54 = vadd.f32 %v13530_v16, %v1989_v15  ;;  %v10117_v14 = vld [vmem:[%s17429_s14 + $0x298] sm:$0xff] }
 0x8b7   : > { %4433 = vmatmul.bf16.gmra.mxu2 %v8706_v62  ;;  %v3760_v41 = vmul.f32 %v10117_v14, %v13646_v22  ;;  %v9147_v22 = vld [vmem:[%s17431_s16 + $0x18c] sm:$0xf] }
 0x8b8   : > { %4500 = vmatpush.bf16.msrb.mxu2 %v3850_v46  ;;  %v2987_v6 = vpop.xlane.xlu2 %2986 }
 0x8b9   : > { %v2363_v44 = vpop.xlane.xlu1 %2362  ;;  %9691 = vrcp.f32 %v2987_v6  ;;  %v3847_v6 = vpack.c.bf16 %v3762_v11, %v3761_v20 }
 0x8ba   : > { %v2503_v60 = vsub.f32 %v13658_v53, %v2363_v44  ;;  %v4287_v40 = vpop.f32.mrf.mxu1  ;;  %v3763_v53 = vmul.f32 %v10114_v55, %v13708_v57  ;;  %v4336_v45 = vpop.f32.mrf.mxu2 }
 0x8bb   : > { %v13905_v42 = vpop.eup %9687  ;;  %v13926_v57 = vadd.f32 %v4336_v45, %v4287_v40  ;;  %v10119_v40 = vld [vmem:[%s17429_s14 + $0x288] sm:$0xff] }
 0x8bc   : > { %v2746_v31 = vmul.f32 1.442695, %v2503_v60  ;;  %4501 = vmatpush.bf16.msrb.mxu2 %v3849_v48  ;;  %3000 = vadd.xlane.f32.xlu2 %v13905_v42  ;;  %v9690_v2 = vpop.eup %9689  ;;  %v3848_v23 = vpack.c.bf16 %v3764_v58, %v3763_v53  ;;  %v3759_v58 = vmul.f32 %v10118_v10, %v13633_v47  ;;  %v1992_v60 = vadd.f32 %v1991_v36, %v1452_v28  ;;  %v8767_v10 = vld [vmem:[%s17431_s16 + $0x1e8] sm:$0xf0] }
 0x8bd   : > { %2376 = vmax.xlane.f32.xlu1 %v13908_v17  ;;  %4384 = vmatmul.bf16.gmra.mxu1 %v8702_v39  ;;  %v3262_v46 = vmul.f32 %v9690_v2, %v13639_v32  ;;  %v3758_v51 = vmul.f32 %v10119_v40, %v13603_v35  ;;  %v8733_v39 = vld [vmem:[%s17431_s16 + $0x188] sm:$0xf]  ;;  %v10120_v35 = vld [vmem:[%s17429_s14 + $0x280] sm:$0xff] }
 0x8be   : > { %9693 = vpow2.f32 %v2746_v31  ;;  %v3846_v8 = vpack.c.bf16 %v3760_v41, %v3759_v58  ;;  %v1993_v31 = vpop.f32.mrf.mxu3  ;;  %v9151_v2 = vld [vmem:[%s17431_s16 + $0x1a4] sm:$0xf0]  ;;  %v3757_v15 = vmul.f32 %v10120_v35, %v13574_v0  ;;  %v13979_v33 = vadd.f32 %v13530_v16, %v1992_v60  ;;  %v1454_v58 = vld [vmem:[%s17430_s15 + $0x3f0] sm:$0xff] }
 0x8bf   : > { %v9692_v18 = vpop.eup %9691  ;;  %v8765_v60 = vld [vmem:[%s17431_s16 + $0x1c8] sm:$0xf] }
 0x8c0   : > { %4502 = vmatpush.bf16.msrb.mxu2 %v3848_v23  ;;  %v13932_v61 = vpop.xlane.xlu2 %2988  ;;  %v3263_v62 = vmul.f32 %v9692_v18, %v13655_v25  ;;  %v3845_v11 = vpack.c.bf16 %v3758_v51, %v3757_v15  ;;  %v8734_v23 = vor.u32 %v9151_v2, %v8733_v39  ;;  %v9159_v40 = vld [vmem:[%s17431_s16 + $0x1e4] sm:$0xf0] }
 0x8c1   : > { %v2365_v1 = vpop.xlane.xlu1 %2364  ;;  %v8766_v51 = vor.u32 %v9159_v40, %v8765_v60  ;;  %v8581_v60 = vld [vmem:[%s17431_s16 + $0x50] sm:$0xf] }
 0x8c2   : > { %v2504_v44 = vsub.f32 %v13674_v59, %v2365_v1  ;;  %v3337_v32 = vpack.c.bf16 %v3263_v62, %v3262_v46  ;;  %v4289_v5 = vpop.f32.mrf.mxu1  ;;  %v8735_v59 = vld [vmem:[%s17431_s16 + $0x1a8] sm:$0xf0]  ;;  %v4338_v47 = vpop.f32.mrf.mxu2 }
 0x8c3   : > { %v13965_v55 = vadd.f32 %v4338_v47, %v4289_v5  ;;  %v8738_v53 = vor.u32 %v9147_v22, %v8735_v59  ;;  %v1453_v46 = vld [vmem:[%s17430_s15 + $0x3e8] sm:$0xff] }
 0x8c4   : > { %v13947_v25 = vpop.eup %9693  ;;  %v2748_v48 = vmul.f32 1.442695, %v2504_v44  ;;  %4503 = vmatpush.bf16.msrb.mxu2 %v3847_v6  ;;  %2378 = vmax.xlane.f32.xlu2 %v13937_v54  ;;  %v1994_v62 = vadd.f32 %v1993_v31, %v1453_v46  ;;  %v9155_v5 = vld [vmem:[%s17431_s16 + $0x1cc] sm:$0xf] }
 0x8c5   : > { %3002 = vadd.xlane.f32.xlu0 %v13947_v25  ;;  %3621 = vmatmul.bf16.gmra.mxu0 %v3337_v32  ;;  %v8770_v22 = vor.u32 %v9155_v5, %v8767_v10 }
 0x8c6   : > { %9695 = vpow2.f32 %v2748_v48  ;;  %v1996_v28 = vpop.f32.mrf.mxu3  ;;  %v13994_v6 = vadd.f32 %v13530_v16, %v1994_v62  ;;  %v9104_v62 = vld [vmem:[%s17431_s16 + $0x2c] sm:$0xf0] }
 0x8c7   : > { %4438 = vmatmul.bf16.gmra.mxu2 %v8738_v53  ;;  %v1997_v59 = vadd.f32 %v1996_v28, %v1454_v58  ;;  %v1455_v53 = vld [vmem:[%s17430_s15 + $0x3f8] sm:$0xff] }
 0x8c8   : > { %4504 = vmatpush.bf16.msrb.mxu2 %v3846_v8  ;;  %v2367_v36 = vpop.xlane.xlu2 %2366 }
 0x8c9   : > { %v2505_v45 = vsub.f32 %v13684_v26, %v2367_v36  ;;  %v14018_v8 = vadd.f32 %v13530_v16, %v1997_v59 }
 0x8ca   : > { %v4292_v49 = vpop.f32.mrf.mxu1  ;;  %v4341_v0 = vpop.f32.mrf.mxu2 }
 0x8cb   : > { %v2750_v18 = vmul.f32 1.442695, %v2505_v45  ;;  %v13988_v26 = vadd.f32 %v4341_v0, %v4292_v49  ;;  %v8551_v49 = vld [vmem:[%s17431_s16 + $0x30] sm:$0xf0] }
 0x8cc   : > { %v13981_v20 = vpop.eup %9695  ;;  %4505 = vmatpush.bf16.msrb.mxu2 %v3845_v11  ;;  %2380 = vmax.xlane.f32.xlu2 %v13979_v33 }
 0x8cd   : > { %9697 = vpow2.f32 %v2750_v18  ;;  %3004 = vadd.xlane.f32.xlu0 %v13981_v20  ;;  %4389 = vmatmul.bf16.gmra.mxu1 %v8734_v23  ;;  %v9100_v18 = vld [vmem:[%s17431_s16 + $0x14] sm:$0xf] }
 0x8ce   : > { %v1998_v31 = vpop.f32.mrf.mxu3  ;;  %v8554_v46 = vor.u32 %v9100_v18, %v8551_v49  ;;  %v9116_v18 = vld [vmem:[%s17431_s16 + $0x94] sm:$0xf] }
 0x8cf   : > { %v1999_v35 = vadd.f32 %v1998_v31, %v1455_v53 }
 0x8d0   : > { %v2369_v1 = vpop.xlane.xlu2 %2368 }
 0x8d1   : > { %v2506_v14 = vsub.f32 %v13699_v19, %v2369_v1  ;;  %v14028_v36 = vadd.f32 %v13530_v16, %v1999_v35  ;;  %v8549_v16 = vld [vmem:[%s17431_s16 + $0x10] sm:$0xf] }
 0x8d2   : > { %v4294_v32 = vpop.f32.mrf.mxu1  ;;  %v4343_v19 = vpop.f32.mrf.mxu2  ;;  %v8550_v28 = vor.u32 %v9104_v62, %v8549_v16 }
 0x8d3   : > { %v13991_v41 = vpop.eup %9697  ;;  %v2752_v44 = vmul.f32 1.442695, %v2506_v14  ;;  %v14007_v48 = vadd.f32 %v4343_v19, %v4294_v32  ;;  %v9108_v19 = vld [vmem:[%s17431_s16 + $0x54] sm:$0xf] }
 0x8d4   : > { %3006 = vadd.xlane.f32.xlu1 %v13991_v41 }
 0x8d5   : > { %9699 = vpow2.f32 %v2752_v44  ;;  %2382 = vmax.xlane.f32.xlu0 %v13994_v6 }
 0x8d6   : > { %9701 = vrcp.f32 %v13932_v61  ;;  %v9120_v61 = vld [vmem:[%s17431_s16 + $0xac] sm:$0xf0] }
 0x8d7   : > { %4443 = vmatmul.bf16.gmra.mxu2 %v8770_v22  ;;  %v8583_v22 = vld [vmem:[%s17431_s16 + $0x70] sm:$0xf0] }
 0x8da   : > { %v4297_v39 = vpop.f32.mrf.mxu1  ;;  %v4346_v2 = vpop.f32.mrf.mxu2 }
 0x8db   : > { %v14015_v47 = vpop.eup %9699  ;;  %v14025_v15 = vadd.f32 %v4346_v2, %v4297_v39 }
 0x8dc   : > { %3008 = vadd.xlane.f32.xlu1 %v14015_v47 }
 0x8dd   : > { %2384 = vmax.xlane.f32.xlu0 %v14018_v8  ;;  %4394 = vmatmul.bf16.gmra.mxu1 %v8766_v51 }
 0x8e2   : > { %v4299_v45 = vpop.f32.mrf.mxu1  ;;  %v4348_v11 = vpop.f32.mrf.mxu2 }
 0x8e3   : > { %v14031_v23 = vadd.f32 %v4348_v11, %v4299_v45 }
 0x8e4   : > { %2386 = vmax.xlane.f32.xlu1 %v14028_v36 }
 0x8e5   : > { %17751 = vst [vmem:[#allocation55_spill] sm:$0xff] %v14031_v23 }
 0x8e7   : > { %4506 = vmatmul.bf16.vlgmr.msrb.gmra.mxu2 %v8554_v46 }
 0x8ea   : > { %v4360_v0 = vpop.f32.mrf.mxu1  ;;  %v4409_v14 = vpop.f32.mrf.mxu2 }
 0x8eb   : > { %v4361_v1 = vadd.f32 %v4360_v0, %v13724_v13  ;;  %v8586_v13 = vor.u32 %v9108_v19, %v8583_v22  ;;  %v9702_v0 = vpop.eup %9701 }
 0x8ed   : > { %v14046_v44 = vadd.f32 %v4409_v14, %v4361_v1  ;;  %4457 = vmatmul.bf16.vlgmr.msrb.gmra.mxu1 %v8550_v28 }
 0x8f2   : > { %v4362_v32 = vpop.f32.mrf.mxu1  ;;  %v4411_v10 = vpop.f32.mrf.mxu2 }
 0x8f3   : > { %v4363_v5 = vadd.f32 %v4362_v32, %v13728_v34  ;;  %v9112_v34 = vld [vmem:[%s17431_s16 + $0x6c] sm:$0xf0]  ;;  %v3264_v32 = vmul.f32 %v9702_v0, %v13671_v56  ;;  %v8647_v56 = vld [vmem:[%s17431_s16 + $0xf0] sm:$0xf0] }
 0x8f4   : > { %v8582_v40 = vor.u32 %v9112_v34, %v8581_v60 }
 0x8f5   : > { %v14049_v58 = vadd.f32 %v4411_v10, %v4363_v5 }
 0x8f7   : > { %4511 = vmatmul.bf16.gmra.mxu2 %v8586_v13 }
 0x8fa   : > { %v4365_v59 = vpop.f32.mrf.mxu1  ;;  %v4414_v53 = vpop.f32.mrf.mxu2 }
 0x8fb   : > { %v4366_v51 = vadd.f32 %v4365_v59, %v13745_v63  ;;  %v8615_v63 = vld [vmem:[%s17431_s16 + $0xb0] sm:$0xf0] }
 0x8fc   : > { %v8618_v49 = vor.u32 %v9116_v18, %v8615_v63 }
 0x8fd   : > { %4462 = vmatmul.bf16.gmra.mxu1 %v8582_v40  ;;  %v14064_v31 = vadd.f32 %v4414_v53, %v4366_v51 }
 0x902   : > { %v4367_v39 = vpop.f32.mrf.mxu1  ;;  %v4416_v35 = vpop.f32.mrf.mxu2 }
 0x903   : > { %v4368_v2 = vadd.f32 %v4367_v39, %v13751_v30  ;;  %v8613_v30 = vld [vmem:[%s17431_s16 + $0x90] sm:$0xf] }
 0x904   : > { %v8614_v16 = vor.u32 %v9120_v61, %v8613_v30  ;;  %v8645_v39 = vld [vmem:[%s17431_s16 + $0xd0] sm:$0xf] }
 0x905   : > { %v14068_v45 = vadd.f32 %v4416_v35, %v4368_v2  ;;  %v9128_v2 = vld [vmem:[%s17431_s16 + $0xec] sm:$0xf0]  ;;  %v14103_v35 = vpop.f32.mrf.mxu0 }
 0x907   : > { %v2991_v11 = vpop.xlane.xlu0 %2990  ;;  %4516 = vmatmul.bf16.gmra.mxu2 %v8618_v49 }
 0x908   : > { %9703 = vrcp.f32 %v2991_v11  ;;  %v8646_v11 = vor.u32 %v9128_v2, %v8645_v39 }
 0x90a   : > { %v4370_v46 = vpop.f32.mrf.mxu1  ;;  %v4419_v1 = vpop.f32.mrf.mxu2 }
 0x90b   : > { %v4371_v62 = vadd.f32 %v4370_v46, %v13768_v9  ;;  %v9124_v9 = vld [vmem:[%s17431_s16 + $0xd4] sm:$0xf] }
 0x90c   : > { %v8650_v51 = vor.u32 %v9124_v9, %v8647_v56 }
 0x90d   : > { %4467 = vmatmul.bf16.gmra.mxu1 %v8614_v16  ;;  %v14085_v10 = vadd.f32 %v4419_v1, %v4371_v62 }
 0x90e   : > { %v9704_v28 = vpop.eup %9703 }
 0x90f   : > { %v2993_v14 = vpop.xlane.xlu0 %2992  ;;  %v3265_v5 = vmul.f32 %v9704_v28, %v13773_v24 }
 0x910   : > { %9705 = vrcp.f32 %v2993_v14 }
 0x911   : > { %v3338_v19 = vpack.c.bf16 %v3265_v5, %v3264_v32 }
 0x912   : > { %v4372_v22 = vpop.f32.mrf.mxu1  ;;  %v4421_v59 = vpop.f32.mrf.mxu2 }
 0x913   : > { %3626 = vmatmul.bf16.gmra.mxu0 %v3338_v19  ;;  %v4373_v13 = vadd.f32 %v4372_v22, %v13778_v4  ;;  %v14115_v19 = vpop.f32.mrf.mxu0  ;;  %v8679_v22 = vld [vmem:[%s17431_s16 + $0x130] sm:$0xf0] }
 0x915   : > { %v14088_v34 = vadd.f32 %v4421_v59, %v4373_v13 }
 0x916   : > { %v9706_v18 = vpop.eup %9705 }
 0x917   : > { %v2371_v60 = vpop.xlane.xlu0 %2370  ;;  %4521 = vmatmul.bf16.gmra.mxu2 %v8650_v51  ;;  %v3266_v16 = vmul.f32 %v9706_v18, %v13787_v43 }
 0x918   : > { %v2995_v24 = vpop.xlane.xlu1 %2994  ;;  %v2507_v40 = vsub.f32 %v13806_v3, %v2371_v60 }
 0x919   : > { %9707 = vrcp.f32 %v2995_v24  ;;  %v8677_v24 = vld [vmem:[%s17431_s16 + $0x110] sm:$0xf] }
 0x91a   : > { %v2754_v53 = vmul.f32 1.442695, %v2507_v40  ;;  %v4375_v4 = vpop.f32.mrf.mxu1  ;;  %v4424_v63 = vpop.f32.mrf.mxu2  ;;  %v9136_v40 = vld [vmem:[%s17431_s16 + $0x12c] sm:$0xf0] }
 0x91b   : > { %v4376_v3 = vadd.f32 %v4375_v4, %v13801_v21  ;;  %v14136_v2 = vpop.f32.mrf.mxu0 }
 0x91c   : > { %9709 = vpow2.f32 %v2754_v53  ;;  %v8678_v53 = vor.u32 %v9136_v40, %v8677_v24 }
 0x91d   : > { %4472 = vmatmul.bf16.gmra.mxu1 %v8646_v11  ;;  %v14106_v30 = vadd.f32 %v4424_v63, %v4376_v3 }
 0x91f   : > { %v9708_v49 = vpop.eup %9707  ;;  %v2373_v46 = vpop.xlane.xlu0 %2372 }
 0x920   : > { %v2997_v61 = vpop.xlane.xlu1 %2996  ;;  %v2508_v0 = vsub.f32 %v13828_v12, %v2373_v46  ;;  %v3267_v62 = vmul.f32 %v9708_v49, %v13812_v50  ;;  %v9132_v50 = vld [vmem:[%s17431_s16 + $0x114] sm:$0xf] }
 0x921   : > { %v8682_v59 = vor.u32 %v9132_v50, %v8679_v22  ;;  %v8709_v22 = vld [vmem:[%s17431_s16 + $0x150] sm:$0xf] }
 0x922   : > { %v14111_v1 = vpop.eup %9709  ;;  %v2756_v28 = vmul.f32 1.442695, %v2508_v0  ;;  %v3339_v14 = vpack.c.bf16 %v3267_v62, %v3266_v16  ;;  %v4377_v21 = vpop.f32.mrf.mxu1 }
 0x923   : > { %3010 = vadd.xlane.f32.xlu2 %v14111_v1  ;;  %v4378_v32 = vadd.f32 %v4377_v21, %v13816_v7  ;;  %v4426_v5 = vpop.f32.mrf.mxu2 }
 0x924   : > { %9711 = vpow2.f32 %v2756_v28  ;;  %3631 = vmatmul.bf16.gmra.mxu0 %v3339_v14  ;;  %v14156_v28 = vpop.f32.mrf.mxu0 }
 0x925   : > { %9713 = vrcp.f32 %v2997_v61  ;;  %v14117_v12 = vadd.f32 %v4426_v5, %v4378_v32 }
 0x927   : > { %v2999_v43 = vpop.xlane.xlu2 %2998  ;;  %4526 = vmatmul.bf16.gmra.mxu2 %v8682_v59 }
 0x928   : > { %v2375_v13 = vpop.xlane.xlu1 %2374  ;;  %9715 = vrcp.f32 %v2999_v43 }
 0x929   : > { %v2509_v7 = vsub.f32 %v13869_v37, %v2375_v13  ;;  %v9144_v13 = vld [vmem:[%s17431_s16 + $0x16c] sm:$0xf0] }
 0x92a   : > { %v14126_v60 = vpop.eup %9711  ;;  %v4380_v56 = vpop.f32.mrf.mxu1  ;;  %v8710_v59 = vor.u32 %v9144_v13, %v8709_v22 }
 0x92b   : > { %v2758_v9 = vmul.f32 1.442695, %v2509_v7  ;;  %3012 = vadd.xlane.f32.xlu2 %v14126_v60  ;;  %v9714_v51 = vpop.eup %9713  ;;  %v4381_v37 = vadd.f32 %v4380_v56, %v13853_v29  ;;  %v4429_v4 = vpop.f32.mrf.mxu2 }
 0x92c   : > { %v3268_v18 = vmul.f32 %v9714_v51, %v13836_v38 }
 0x92d   : > { %9717 = vpow2.f32 %v2758_v9  ;;  %4477 = vmatmul.bf16.gmra.mxu1 %v8678_v53  ;;  %v14140_v63 = vadd.f32 %v4429_v4, %v4381_v37 }
 0x92e   : > { %v9716_v39 = vpop.eup %9715 }
 0x92f   : > { %v3001_v11 = vpop.xlane.xlu2 %3000  ;;  %v3269_v3 = vmul.f32 %v9716_v39, %v13866_v27  ;;  %v9140_v27 = vld [vmem:[%s17431_s16 + $0x154] sm:$0xf] }
 0x930   : > { %v2377_v49 = vpop.xlane.xlu1 %2376 }
 0x931   : > { %v2510_v46 = vsub.f32 %v13908_v17, %v2377_v49  ;;  %v3340_v61 = vpack.c.bf16 %v3269_v3, %v3268_v18  ;;  %v8711_v17 = vld [vmem:[%s17431_s16 + $0x170] sm:$0xf0] }
 0x932   : > { %v14145_v29 = vpop.f32.mrf.mxu1  ;;  %v8714_v32 = vor.u32 %v9140_v27, %v8711_v17  ;;  %v9148_v49 = vld [vmem:[%s17431_s16 + $0x194] sm:$0xf] }
 0x933   : > { %v14143_v0 = vpop.eup %9717  ;;  %v2760_v16 = vmul.f32 1.442695, %v2510_v46  ;;  %v14148_v62 = vpop.f32.mrf.mxu2 }
 0x934   : > { %3014 = vadd.xlane.f32.xlu0 %v14143_v0  ;;  %3636 = vmatmul.bf16.gmra.mxu0 %v3340_v61  ;;  %v8741_v61 = vld [vmem:[%s17431_s16 + $0x190] sm:$0xf] }
 0x935   : > { %9719 = vpow2.f32 %v2760_v16  ;;  %v9152_v16 = vld [vmem:[%s17431_s16 + $0x1ac] sm:$0xf0] }
 0x936   : > { %9721 = vrcp.f32 %v3001_v11  ;;  %v14176_v11 = vpop.f32.mrf.mxu0 }
 0x937   : > { %v2379_v38 = vpop.xlane.xlu2 %2378  ;;  %4531 = vmatmul.bf16.gmra.mxu2 %v8714_v32 }
 0x938   : > { %v2511_v14 = vsub.f32 %v13937_v54, %v2379_v38  ;;  %v3003_v21 = vpop.xlane.xlu0 %3002 }
 0x939   : > { %9723 = vrcp.f32 %v3003_v21 }
 0x93a   : > { %v2762_v5 = vmul.f32 1.442695, %v2511_v14  ;;  %v4385_v50 = vpop.f32.mrf.mxu1  ;;  %v8742_v14 = vor.u32 %v9152_v16, %v8741_v61 }
 0x93b   : > { %v14159_v43 = vpop.eup %9719  ;;  %v4386_v54 = vadd.f32 %v4385_v50, %v13926_v57  ;;  %v4434_v9 = vpop.f32.mrf.mxu2 }
 0x93c   : > { %9725 = vpow2.f32 %v2762_v5  ;;  %3016 = vadd.xlane.f32.xlu1 %v14159_v43  ;;  %v9722_v7 = vpop.eup %9721 }
 0x93d   : > { %v14169_v56 = vadd.f32 %v4434_v9, %v4386_v54  ;;  %4482 = vmatmul.bf16.gmra.mxu1 %v8710_v59  ;;  %v3270_v37 = vmul.f32 %v9722_v7, %v13905_v42  ;;  %v8743_v42 = vld [vmem:[%s17431_s16 + $0x1b0] sm:$0xf0] }
 0x93e   : > { %v14199_v50 = vpop.f32.mrf.mxu0 }
 0x93f   : > { %v9724_v24 = vpop.eup %9723  ;;  %v2381_v40 = vpop.xlane.xlu2 %2380 }
 0x940   : > { %v2512_v51 = vsub.f32 %v13979_v33, %v2381_v40  ;;  %v3005_v53 = vpop.xlane.xlu0 %3004  ;;  %v3271_v4 = vmul.f32 %v9724_v24, %v13947_v25  ;;  %v8746_v33 = vor.u32 %v9148_v49, %v8743_v42  ;;  %v8773_v49 = vld [vmem:[%s17431_s16 + $0x1d0] sm:$0xf] }
 0x941   : > { %v9160_v42 = vld [vmem:[%s17431_s16 + $0x1ec] sm:$0xf0] }
 0x942   : > { %v14174_v39 = vpop.eup %9725  ;;  %v2764_v57 = vmul.f32 1.442695, %v2512_v51  ;;  %v3341_v18 = vpack.c.bf16 %v3271_v4, %v3270_v37  ;;  %v14179_v3 = vpop.f32.mrf.mxu1  ;;  %v8774_v61 = vor.u32 %v9160_v42, %v8773_v49 }
 0x943   : > { %3018 = vadd.xlane.f32.xlu2 %v14174_v39  ;;  %v14187_v25 = vpop.f32.mrf.mxu2 }
 0x944   : > { %9727 = vpow2.f32 %v2764_v57  ;;  %3641 = vmatmul.bf16.gmra.mxu0 %v3341_v18  ;;  %v8775_v57 = vld [vmem:[%s17431_s16 + $0x1f0] sm:$0xf0] }
 0x945   : > { %9729 = vrcp.f32 %v3005_v53 }
 0x947   : > { %v3007_v46 = vpop.xlane.xlu1 %3006  ;;  %4536 = vmatmul.bf16.gmra.mxu2 %v8746_v33 }
 0x948   : > { %9731 = vrcp.f32 %v3007_v46  ;;  %v2383_v38 = vpop.xlane.xlu0 %2382 }
 0x949   : > { %v2513_v27 = vsub.f32 %v13994_v6, %v2383_v38 }
 0x94a   : > { %v14196_v17 = vpop.eup %9727  ;;  %v4390_v32 = vpop.f32.mrf.mxu1 }
 0x94b   : > { %v2766_v21 = vmul.f32 1.442695, %v2513_v27  ;;  %3020 = vadd.xlane.f32.xlu0 %v14196_v17  ;;  %v9730_v5 = vpop.eup %9729  ;;  %v4391_v22 = vadd.f32 %v4390_v32, %v13988_v26  ;;  %v4439_v13 = vpop.f32.mrf.mxu2  ;;  %v9156_v26 = vld [vmem:[%s17431_s16 + $0x1d4] sm:$0xf] }
 0x94c   : > { %v3272_v7 = vmul.f32 %v9730_v5, %v13981_v20 }
 0x94d   : > { %9733 = vpow2.f32 %v2766_v21  ;;  %v14202_v59 = vadd.f32 %v4439_v13, %v4391_v22  ;;  %4487 = vmatmul.bf16.gmra.mxu1 %v8742_v14 }
 0x94e   : > { %v9732_v54 = vpop.eup %9731 }
 0x94f   : > { %v3009_v6 = vpop.xlane.xlu1 %3008  ;;  %v3273_v9 = vmul.f32 %v9732_v54, %v13991_v41  ;;  %v14220_v41 = vpop.f32.mrf.mxu0 }
 0x950   : > { %v2385_v24 = vpop.xlane.xlu0 %2384 }
 0x951   : > { %v2514_v40 = vsub.f32 %v14018_v8, %v2385_v24  ;;  %v3342_v51 = vpack.c.bf16 %v3273_v9, %v3272_v7  ;;  %v8778_v8 = vor.u32 %v9156_v26, %v8775_v57 }
 0x952   : > { %v14209_v4 = vpop.f32.mrf.mxu1 }
 0x953   : > { %v14207_v53 = vpop.eup %9733  ;;  %v2768_v37 = vmul.f32 1.442695, %v2514_v40  ;;  %17752 = vst [vmem:[#allocation54_spill] sm:$0xff] %v14209_v4  ;;  %v14218_v20 = vpop.f32.mrf.mxu2 }
 0x954   : > { %3646 = vmatmul.bf16.gmra.mxu0 %v3342_v51  ;;  %3022 = vadd.xlane.f32.xlu1 %v14207_v53  ;;  %17753 = vst [vmem:[#allocation57_spill] sm:$0xff] %v14218_v20 }
 0x955   : > { %9735 = vpow2.f32 %v2768_v37 }
 0x957   : > { %v2387_v18 = vpop.xlane.xlu1 %2386  ;;  %4541 = vmatmul.bf16.gmra.mxu2 %v8778_v8  ;;  %v14235_v32 = vpop.f32.mrf.mxu0 }
 0x958   : > { %v2515_v33 = vsub.f32 %v14028_v36, %v2387_v18 }
 0x95a   : > { %v2770_v46 = vmul.f32 1.442695, %v2515_v33  ;;  %v4395_v38 = vpop.f32.mrf.mxu1 }
 0x95b   : > { %v14229_v16 = vpop.eup %9735  ;;  %v4396_v27 = vadd.f32 %v4395_v38, %v14025_v15  ;;  %v4444_v14 = vpop.f32.mrf.mxu2 }
 0x95c   : > { %9737 = vpow2.f32 %v2770_v46  ;;  %3024 = vadd.xlane.f32.xlu2 %v14229_v16 }
 0x95d   : > { %v14233_v21 = vadd.f32 %v4444_v14, %v4396_v27  ;;  %4492 = vmatmul.bf16.gmra.mxu1 %v8774_v61  ;;  %9739 = vrcp.f32 %v3009_v6 }
 0x95f   : > { %v14244_v13 = vpop.f32.mrf.mxu0 }
 0x962   : > { %v14237_v5 = vpop.eup %9737  ;;  %v14240_v36 = vpop.f32.mrf.mxu1 }
 0x963   : > { %3026 = vadd.xlane.f32.xlu0 %v14237_v5  ;;  %17754 = vst [vmem:[#allocation59_spill] sm:$0xff] %v14240_v36  ;;  %v14242_v22 = vpop.f32.mrf.mxu2 }
 0x964   : > { %17755 = vst [vmem:[#allocation58_spill] sm:$0xff] %v14242_v22 }
 0x967   : > { %v14251_v40 = vpop.f32.mrf.mxu0 }
 0x96a   : > { %v4458_v54 = vpop.f32.mrf.mxu1 }
 0x96b   : > { %v4459_v7 = vadd.f32 %v4458_v54, %v14046_v44  ;;  %v4507_v15 = vpop.f32.mrf.mxu2 }
 0x96d   : > { %v14247_v9 = vadd.f32 %v4507_v15, %v4459_v7  ;;  %v9740_v15 = vpop.eup %9739 }
 0x96f   : > { %v3622_v8 = vpop.f32.mrf.mxu0 }
 0x972   : > { %v14249_v24 = vpop.f32.mrf.mxu1 }
 0x973   : > { %v14253_v51 = vpop.f32.mrf.mxu2 }
 0x977   : > { %v3624_v44 = vpop.f32.mrf.mxu0 }
 0x97a   : > { %v4463_v37 = vpop.f32.mrf.mxu1 }
 0x97b   : > { %v4464_v26 = vadd.f32 %v4463_v37, %v14064_v31  ;;  %v4512_v57 = vpop.f32.mrf.mxu2 }
 0x97d   : > { %v14256_v18 = vadd.f32 %v4512_v57, %v4464_v26 }
 0x982   : > { %v14258_v49 = vpop.f32.mrf.mxu1 }
 0x983   : > { %v14260_v42 = vpop.f32.mrf.mxu2 }
 0x98a   : > { %v4468_v33 = vpop.f32.mrf.mxu1 }
 0x98b   : > { %v4469_v46 = vadd.f32 %v4468_v33, %v14085_v10  ;;  %v4517_v61 = vpop.f32.mrf.mxu2  ;;  %v3274_v10 = vmul.f32 %v9740_v15, %v14015_v47  ;;  %v10121_v47 = vld [vmem:[%s17429_s14 + $0x370] sm:$0xff] }
 0x98d   : > { %v14263_v38 = vadd.f32 %v4517_v61, %v4469_v46 }
 0x990   : > { %v3627_v27 = vpop.f32.mrf.mxu0 }
 0x992   : > { %v14265_v14 = vpop.f32.mrf.mxu1 }
 0x993   : > { %v14267_v31 = vpop.f32.mrf.mxu2 }
 0x996   : > { %v3011_v54 = vpop.xlane.xlu2 %3010 }
 0x997   : > { %9741 = vrcp.f32 %v3011_v54 }
 0x998   : > { %v3629_v7 = vpop.f32.mrf.mxu0 }
 0x99a   : > { %v4473_v37 = vpop.f32.mrf.mxu1 }
 0x99b   : > { %v4474_v26 = vadd.f32 %v4473_v37, %v14106_v30  ;;  %v4522_v22 = vpop.f32.mrf.mxu2 }
 0x99d   : > { %v9742_v57 = vpop.eup %9741  ;;  %v14272_v46 = vadd.f32 %v4522_v22, %v4474_v26 }
 0x99e   : > { %v3275_v33 = vmul.f32 %v9742_v57, %v14111_v1  ;;  %v3013_v6 = vpop.xlane.xlu2 %3012  ;;  %v10122_v1 = vld [vmem:[%s17429_s14 + $0x378] sm:$0xff]  ;;  %v10123_v57 = vld [vmem:[%s17429_s14 + $0x368] sm:$0xff] }
 0x99f   : > { %9743 = vrcp.f32 %v3013_v6 }
 0x9a0   : > { %v3343_v61 = vpack.c.bf16 %v3275_v33, %v3274_v10  ;;  %v3786_v10 = vmul.f32 %v10123_v57, %v3629_v7  ;;  %v10125_v7 = vld [vmem:[%s17429_s14 + $0x358] sm:$0xff]  ;;  %v10126_v57 = vld [vmem:[%s17429_s14 + $0x350] sm:$0xff] }
 0x9a1   : > { %v3632_v36 = vpop.f32.mrf.mxu0 }
 0x9a2   : > { %3651 = vmatmul.bf16.gmra.mxu0 %v3343_v61  ;;  %v14274_v23 = vpop.f32.mrf.mxu1  ;;  %v3787_v15 = vmul.f32 %v10121_v47, %v3632_v36  ;;  %v10124_v36 = vld [vmem:[%s17429_s14 + $0x360] sm:$0xff] }
 0x9a3   : > { %v14276_v54 = vpop.f32.mrf.mxu2  ;;  %v3785_v47 = vmul.f32 %v10124_v36, %v3627_v27  ;;  %v3783_v27 = vmul.f32 %v10126_v57, %v3622_v8  ;;  %v10133_v57 = vld [vmem:[%s17429_s14 + $0x328] sm:$0xff] }
 0x9a5   : > { %v9744_v26 = vpop.eup %9743 }
 0x9a7   : > { %v3015_v20 = vpop.xlane.xlu0 %3014 }
 0x9a8   : > { %9745 = vrcp.f32 %v3015_v20 }
 0x9a9   : > { %v3634_v30 = vpop.f32.mrf.mxu0 }
 0x9aa   : > { %v3788_v22 = vmul.f32 %v10122_v1, %v3634_v30  ;;  %v4478_v37 = vpop.f32.mrf.mxu1  ;;  %v3276_v30 = vmul.f32 %v9744_v26, %v14126_v60  ;;  %v10127_v60 = vld [vmem:[%s17429_s14 + $0x348] sm:$0xff] }
 0x9ab   : > { %v4479_v20 = vadd.f32 %v4478_v37, %v14140_v63  ;;  %v4527_v61 = vpop.f32.mrf.mxu2  ;;  %v3859_v63 = vpack.c.bf16 %v3786_v10, %v3785_v47  ;;  %v10128_v10 = vld [vmem:[%s17429_s14 + $0x340] sm:$0xff] }
 0x9ac   : > { %v3860_v33 = vpack.c.bf16 %v3788_v22, %v3787_v15  ;;  %v3784_v15 = vmul.f32 %v10125_v7, %v3624_v44  ;;  %v3781_v8 = vmul.f32 %v10128_v10, %v14244_v13  ;;  %v10131_v13 = vld [vmem:[%s17429_s14 + $0x380] sm:$0xff] }
 0x9ad   : > { %v14291_v4 = vadd.f32 %v4527_v61, %v4479_v20 }
 0x9ae   : > { %v9746_v6 = vpop.eup %9745  ;;  %4547 = vmatpush.bf16.msra.mxu1 %v3860_v33  ;;  %v3858_v44 = vpack.c.bf16 %v3784_v15, %v3783_v27  ;;  %v10132_v15 = vld [vmem:[%s17429_s14 + $0x388] sm:$0xff] }
 0x9af   : > { %v3277_v1 = vmul.f32 %v9746_v6, %v14143_v0  ;;  %v3017_v33 = vpop.xlane.xlu1 %3016  ;;  %v3782_v0 = vmul.f32 %v10127_v60, %v14251_v40  ;;  %v10129_v6 = vld [vmem:[%s17429_s14 + $0x338] sm:$0xff] }
 0x9b0   : > { %9747 = vrcp.f32 %v3017_v33  ;;  %v3780_v36 = vmul.f32 %v10129_v6, %v14235_v32  ;;  %v10135_v6 = vld [vmem:[%s17429_s14 + $0x318] sm:$0xff] }
 0x9b1   : > { %v3637_v22 = vpop.f32.mrf.mxu0  ;;  %v3344_v37 = vpack.c.bf16 %v3277_v1, %v3276_v30  ;;  %v3857_v40 = vpack.c.bf16 %v3782_v0, %v3781_v8  ;;  %v10130_v30 = vld [vmem:[%s17429_s14 + $0x330] sm:$0xff] }
 0x9b2   : > { %4548 = vmatpush.bf16.msra.mxu1 %v3859_v63  ;;  %v14301_v20 = vpop.f32.mrf.mxu1  ;;  %v3779_v1 = vmul.f32 %v10130_v30, %v14220_v41  ;;  %v14324_v7 = vmul.f32 %v10131_v13, %v3637_v22  ;;  %v3778_v41 = vmul.f32 %v10133_v57, %v14199_v50  ;;  %v9105_v57 = vld [vmem:[%s17431_s16 + $0x34] sm:$0xf0] }
 0x9b3   : > { %3656 = vmatmul.bf16.gmra.mxu0 %v3344_v37  ;;  %v14307_v26 = vpop.f32.mrf.mxu2 }
 0x9b4   : > { %v3856_v27 = vpack.c.bf16 %v3780_v36, %v3779_v1  ;;  %v10137_v1 = vld [vmem:[%s17429_s14 + $0x308] sm:$0xff] }
 0x9b6   : > { %4549 = vmatpush.bf16.msra.mxu1 %v3858_v44  ;;  %v3019_v61 = vpop.xlane.xlu2 %3018  ;;  %v9748_v32 = vpop.eup %9747  ;;  %v10134_v44 = vld [vmem:[%s17429_s14 + $0x320] sm:$0xff] }
 0x9b7   : > { %9749 = vrcp.f32 %v3019_v61  ;;  %v3777_v10 = vmul.f32 %v10134_v44, %v14176_v11  ;;  %v3278_v8 = vmul.f32 %v9748_v32, %v14159_v43  ;;  %v10136_v11 = vld [vmem:[%s17429_s14 + $0x310] sm:$0xff]  ;;  %v10138_v32 = vld [vmem:[%s17429_s14 + $0x300] sm:$0xff] }
 0x9b8   : > { %v3775_v30 = vmul.f32 %v10136_v11, %v14136_v2  ;;  %v3773_v2 = vmul.f32 %v10138_v32, %v14103_v35  ;;  %v9113_v32 = vld [vmem:[%s17431_s16 + $0x74] sm:$0xf0] }
 0x9b9   : > { %v3639_v47 = vpop.f32.mrf.mxu0  ;;  %v3855_v36 = vpack.c.bf16 %v3778_v41, %v3777_v10 }
 0x9ba   : > { %v14329_v63 = vmul.f32 %v10132_v15, %v3639_v47  ;;  %4550 = vmatpush.bf16.msra.mxu1 %v3857_v40  ;;  %v4483_v37 = vpop.f32.mrf.mxu1 }
 0x9bb   : > { %v4484_v33 = vadd.f32 %v4483_v37, %v14169_v56  ;;  %v4532_v0 = vpop.f32.mrf.mxu2  ;;  %v3776_v56 = vmul.f32 %v10135_v6, %v14156_v28  ;;  %v3774_v28 = vmul.f32 %v10137_v1, %v14115_v19  ;;  %v8557_v37 = vld [vmem:[%s17431_s16 + $0x18] sm:$0xf] }
 0x9bc   : > { %v3861_v22 = vpack.c.bf16 %v14329_v63, %v14324_v7  ;;  %v8623_v7 = vld [vmem:[%s17431_s16 + $0xb8] sm:$0xf0] }
 0x9bd   : > { %v9750_v60 = vpop.eup %9749  ;;  %v14344_v50 = vadd.f32 %v4532_v0, %v4484_v33  ;;  %v3854_v13 = vpack.c.bf16 %v3776_v56, %v3775_v30  ;;  %v3853_v41 = vpack.c.bf16 %v3774_v28, %v3773_v2  ;;  %v8558_v33 = vor.u32 %v9105_v57, %v8557_v37  ;;  %v10140_v0 = vld [vmem:[%s17429_s14 + $0x398] sm:$0xff] }
 0x9be   : > { %4551 = vmatpush.bf16.msra.mxu1 %v3856_v27  ;;  %v3279_v61 = vmul.f32 %v9750_v60, %v14174_v39  ;;  %v3021_v43 = vpop.xlane.xlu0 %3020  ;;  %v10139_v60 = vld [vmem:[%s17429_s14 + $0x390] sm:$0xff] }
 0x9bf   : > { %9751 = vrcp.f32 %v3021_v43 }
 0x9c0   : > { %v3345_v40 = vpack.c.bf16 %v3279_v61, %v3278_v8 }
 0x9c1   : > { %v3642_v47 = vpop.f32.mrf.mxu0 }
 0x9c2   : > { %4552 = vmatpush.bf16.msra.mxu1 %v3855_v36  ;;  %v14354_v39 = vpop.f32.mrf.mxu1  ;;  %v14375_v35 = vmul.f32 %v10139_v60, %v3642_v47 }
 0x9c3   : > { %3661 = vmatmul.bf16.gmra.mxu0 %v3345_v40  ;;  %v14360_v15 = vpop.f32.mrf.mxu2 }
 0x9c5   : > { %v9752_v8 = vpop.eup %9751 }
 0x9c6   : > { %4553 = vmatpush.bf16.msra.mxu1 %v3854_v13  ;;  %v3280_v47 = vmul.f32 %v9752_v8, %v14196_v17 }
 0x9c7   : > { %v3023_v19 = vpop.xlane.xlu1 %3022 }
 0x9c8   : > { %9753 = vrcp.f32 %v3023_v19 }
 0x9c9   : > { %v3644_v27 = vpop.f32.mrf.mxu0 }
 0x9ca   : > { %v14380_v44 = vmul.f32 %v10140_v0, %v3644_v27  ;;  %4554 = vmatpush.bf16.msra.mxu1 %v3853_v41  ;;  %v4488_v10 = vpop.f32.mrf.mxu1  ;;  %v8621_v0 = vld [vmem:[%s17431_s16 + $0x98] sm:$0xf] }
 0x9cb   : > { %v4489_v6 = vadd.f32 %v4488_v10, %v14202_v59  ;;  %v4537_v56 = vpop.f32.mrf.mxu2  ;;  %v8589_v59 = vld [vmem:[%s17431_s16 + $0x58] sm:$0xf] }
 0x9cc   : > { %v3862_v61 = vpack.c.bf16 %v14380_v44, %v14375_v35  ;;  %v8590_v17 = vor.u32 %v9113_v32, %v8589_v59  ;;  %v9121_v10 = vld [vmem:[%s17431_s16 + $0xb4] sm:$0xf0]  ;;  %v8591_v35 = vld [vmem:[%s17431_s16 + $0x78] sm:$0xf0] }
 0x9cd   : > { %4555 = vmatmul.bf16.vlgmr.msra.gmra.mxu1 %v8558_v33  ;;  %v14385_v40 = vadd.f32 %v4537_v56, %v4489_v6  ;;  %v8685_v6 = vld [vmem:[%s17431_s16 + $0x118] sm:$0xf] }
 0x9ce   : > { %v9754_v36 = vpop.eup %9753  ;;  %v9137_v56 = vld [vmem:[%s17431_s16 + $0x134] sm:$0xf0] }
 0x9cf   : > { %v3281_v11 = vmul.f32 %v9754_v36, %v14207_v53  ;;  %v3025_v43 = vpop.xlane.xlu2 %3024  ;;  %v8686_v36 = vor.u32 %v9137_v56, %v8685_v6  ;;  %v8749_v32 = vld [vmem:[%s17431_s16 + $0x198] sm:$0xf] }
 0x9d0   : > { %9755 = vrcp.f32 %v3025_v43 }
 0x9d1   : > { %v3346_v30 = vpack.c.bf16 %v3281_v11, %v3280_v47  ;;  %v3647_v47 = vpop.f32.mrf.mxu0  ;;  %v8717_v11 = vld [vmem:[%s17431_s16 + $0x158] sm:$0xf] }
 0x9d2   : > { %v14389_v1 = vpop.f32.mrf.mxu1 }
 0x9d3   : > { %3666 = vmatmul.bf16.gmra.mxu0 %v3346_v30  ;;  %v14391_v28 = vpop.f32.mrf.mxu2  ;;  %v9145_v30 = vld [vmem:[%s17431_s16 + $0x174] sm:$0xf0] }
 0x9d6   : > { %v3027_v13 = vpop.xlane.xlu0 %3026  ;;  %v9756_v53 = vpop.eup %9755 }
 0x9d7   : > { %9757 = vrcp.f32 %v3027_v13  ;;  %v3282_v41 = vmul.f32 %v9756_v53, %v14229_v16  ;;  %v8653_v16 = vld [vmem:[%s17431_s16 + $0xd8] sm:$0xf]  ;;  %v8718_v13 = vor.u32 %v9145_v30, %v8717_v11  ;;  %v10143_v30 = vld [vmem:[%s17429_s14 + $0x3f0] sm:$0xff] }
 0x9d9   : > { %v3649_v43 = vpop.f32.mrf.mxu0 }
 0x9da   : > { %v4493_v2 = vpop.f32.mrf.mxu1 }
 0x9db   : > { %v4494_v37 = vadd.f32 %v4493_v2, %v14233_v21  ;;  %v4542_v19 = vpop.f32.mrf.mxu2  ;;  %v8622_v21 = vor.u32 %v9121_v10, %v8621_v0  ;;  %v10141_v2 = vld [vmem:[%s17429_s14 + $0x3b0] sm:$0xff]  ;;  %v8781_v0 = vld [vmem:[%s17431_s16 + $0x1d8] sm:$0xf] }
 0x9dc   : > { %v9161_v10 = vld [vmem:[%s17431_s16 + $0x1f4] sm:$0xf0] }
 0x9dd   : > { %v9758_v57 = vpop.eup %9757  ;;  %4560 = vmatmul.bf16.gmra.mxu1 %v8590_v17  ;;  %v14402_v33 = vadd.f32 %v4542_v19, %v4494_v37  ;;  %v9153_v17 = vld [vmem:[%s17431_s16 + $0x1b4] sm:$0xf0] }
 0x9de   : > { %v3283_v27 = vmul.f32 %v9758_v57, %v14237_v5  ;;  %v9129_v5 = vld [vmem:[%s17431_s16 + $0xf4] sm:$0xf0] }
 0x9df   : > { %v8654_v8 = vor.u32 %v9129_v5, %v8653_v16  ;;  %v10142_v57 = vld [vmem:[%s17429_s14 + $0x3b8] sm:$0xff]  ;;  %v8782_v16 = vor.u32 %v9161_v10, %v8781_v0  ;;  %v10148_v10 = vld [vmem:[%s17429_s14 + $0x3d0] sm:$0xff] }
 0x9e0   : > { %v3347_v60 = vpack.c.bf16 %v3283_v27, %v3282_v41  ;;  %v8750_v41 = vor.u32 %v9153_v17, %v8749_v32  ;;  %v10145_v17 = vld [vmem:[%s17429_s14 + $0x3e8] sm:$0xff] }
 0x9e3   : > { %3671 = vmatmul.bf16.gmra.mxu0 %v3347_v60 }
 0x9ed   : > { %4565 = vmatmul.bf16.gmra.mxu1 %v8622_v21 }
 0x9fd   : > { %4570 = vmatmul.bf16.gmra.mxu1 %v8654_v8 }
 0xa0d   : > { %4575 = vmatmul.bf16.gmra.mxu1 %v8686_v36 }
 0xa1d   : > { %4580 = vmatmul.bf16.gmra.mxu1 %v8718_v13 }
 0xa1f   : > { %v3652_v59 = vpop.f32.mrf.mxu0 }
 0xa20   : > { %v3795_v37 = vmul.f32 %v10141_v2, %v3652_v59  ;;  %v10144_v59 = vld [vmem:[%s17429_s14 + $0x3f8] sm:$0xff] }
 0xa27   : > { %v3654_v53 = vpop.f32.mrf.mxu0 }
 0xa28   : > { %v3796_v19 = vmul.f32 %v10142_v57, %v3654_v53 }
 0xa2a   : > { %v3864_v27 = vpack.c.bf16 %v3796_v19, %v3795_v37  ;;  %v10146_v37 = vld [vmem:[%s17429_s14 + $0x3e0] sm:$0xff]  ;;  %v10147_v19 = vld [vmem:[%s17429_s14 + $0x3d8] sm:$0xff] }
 0xa2d   : > { %4585 = vmatmul.bf16.gmra.mxu1 %v8750_v41 }
 0xa30   : > { %v3657_v60 = vpop.f32.mrf.mxu0 }
 0xa38   : > { %v3659_v21 = vpop.f32.mrf.mxu0 }
 0xa3d   : > { %4590 = vmatmul.bf16.gmra.mxu1 %v8782_v16 }
 0xa40   : > { %v3662_v5 = vpop.f32.mrf.mxu0 }
 0xa41   : > { %v3799_v16 = vmul.f32 %v10148_v10, %v3662_v5  ;;  %v9165_v10 = vld [vmem:[%s17756_s5 + $0x18] sm:$0xff] }
 0xa42   : > { %4714 = vmatpush.bf16.msrb.mxu1 %v9165_v10 }
 0xa48   : > { %v3664_v8 = vpop.f32.mrf.mxu0 }
 0xa49   : > { %v3800_v41 = vmul.f32 %v10147_v19, %v3664_v8  ;;  %v9141_v19 = vld [vmem:[%s17431_s16 + $0x15c] sm:$0xf] }
 0xa50   : > { %v3667_v6 = vpop.f32.mrf.mxu0 }
 0xa51   : > { %v3801_v57 = vmul.f32 %v10146_v37, %v3667_v6  ;;  %v10150_v6 = vld [vmem:[%s17429_s14 + $0x3c0] sm:$0xff]  ;;  %v8687_v37 = vld [vmem:[%s17431_s16 + $0x138] sm:$0xf0] }
 0xa58   : > { %v3669_v56 = vpop.f32.mrf.mxu0 }
 0xa59   : > { %v3802_v53 = vmul.f32 %v10145_v17, %v3669_v56  ;;  %v10149_v56 = vld [vmem:[%s17429_s14 + $0x3c8] sm:$0xff] }
 0xa5b   : > { %v3867_v0 = vpack.c.bf16 %v3802_v53, %v3801_v57 }
 0xa60   : > { %v3672_v36 = vpop.f32.mrf.mxu0 }
 0xa61   : > { %v3803_v13 = vmul.f32 %v10143_v30, %v3672_v36  ;;  %v3798_v36 = vmul.f32 %v10149_v56, %v3659_v21  ;;  %v3797_v30 = vmul.f32 %v10150_v6, %v3657_v60  ;;  %v9101_v60 = vld [vmem:[%s17431_s16 + $0x1c] sm:$0xf] }
 0xa62   : > { %v9149_v56 = vld [vmem:[%s17431_s16 + $0x19c] sm:$0xf] }
 0xa63   : > { %v3865_v8 = vpack.c.bf16 %v3798_v36, %v3797_v30  ;;  %v8751_v36 = vld [vmem:[%s17431_s16 + $0x1b8] sm:$0xf0]  ;;  %v9164_v30 = vld [vmem:[%s17756_s5 + $0x10] sm:$0xff] }
 0xa64   : > { %4715 = vmatpush.bf16.msrb.mxu1 %v9164_v30 }
 0xa68   : > { %v3674_v11 = vpop.f32.mrf.mxu0 }
 0xa69   : > { %v3804_v32 = vmul.f32 %v10144_v59, %v3674_v11  ;;  %v3866_v11 = vpack.c.bf16 %v3800_v41, %v3799_v16  ;;  %v10152_v59 = vld [vmem:[%s17429_s14 + $0x3a0] sm:$0xff]  ;;  %v8719_v41 = vld [vmem:[%s17431_s16 + $0x178] sm:$0xf0]  ;;  %v14521_v16 = vpop.f32.mrf.mxu1 }
 0xa6b   : > { %v3868_v2 = vpack.c.bf16 %v3804_v32, %v3803_v13  ;;  %v10151_v13 = vld [vmem:[%s17429_s14 + $0x3a8] sm:$0xff]  ;;  %v3793_v32 = vmul.f32 %v10152_v59, %v3647_v47  ;;  %v9109_v47 = vld [vmem:[%s17431_s16 + $0x5c] sm:$0xf] }
 0xa6c   : > { %v3794_v5 = vmul.f32 %v10151_v13, %v3649_v43  ;;  %v8559_v43 = vld [vmem:[%s17431_s16 + $0x38] sm:$0xf0]  ;;  %v8594_v44 = vor.u32 %v9109_v47, %v8591_v35  ;;  %v4461_v35 = vadd.f32 %v14249_v24, %v14049_v58 }
 0xa6d   : > { %4596 = vmatpush.bf16.msra.mxu2 %v3868_v2  ;;  %v8562_v17 = vor.u32 %v9101_v60, %v8559_v43  ;;  %v9133_v2 = vld [vmem:[%s17431_s16 + $0x11c] sm:$0xf]  ;;  %v14544_v43 = vpop.f32.mrf.mxu2 }
 0xa6e   : > { %v3863_v21 = vpack.c.bf16 %v3794_v5, %v3793_v32  ;;  %v8690_v57 = vor.u32 %v9133_v2, %v8687_v37  ;;  %v9157_v13 = vld [vmem:[%s17431_s16 + $0x1dc] sm:$0xf]  ;;  %v9162_v32 = vld [vmem:[%s17756_s5] sm:$0xff] }
 0xa6f   : > { %v8783_v5 = vld [vmem:[%s17431_s16 + $0x1f8] sm:$0xf0] }
 0xa71   : > { %4597 = vmatpush.bf16.msra.mxu2 %v3867_v0  ;;  %v8722_v0 = vor.u32 %v9141_v19, %v8719_v41  ;;  %v4556_v6 = vpop.f32.mrf.mxu1  ;;  %v4466_v19 = vadd.f32 %v14258_v49, %v14068_v45 }
 0xa73   : > { %v4515_v41 = vadd.f32 %v14260_v42, %v4466_v19 }
 0xa75   : > { %4598 = vmatpush.bf16.msra.mxu2 %v3866_v11  ;;  %v8754_v11 = vor.u32 %v9149_v56, %v8751_v36 }
 0xa79   : > { %4599 = vmatpush.bf16.msra.mxu2 %v3865_v8  ;;  %v9163_v8 = vld [vmem:[%s17756_s5 + $0x8] sm:$0xff]  ;;  %v4558_v59 = vpop.f32.mrf.mxu1 }
 0xa7a   : > { %4716 = vmatpush.bf16.msrb.mxu1 %v9163_v8 }
 0xa7d   : > { %4600 = vmatpush.bf16.msra.mxu2 %v3864_v27  ;;  %v8655_v27 = vld [vmem:[%s17431_s16 + $0xf8] sm:$0xf0] }
 0xa7e   : > { %4717 = vmatpush.bf16.msrb.mxu1 %v9162_v32  ;;  %v4476_v32 = vadd.f32 %v14274_v23, %v14117_v12 }
 0xa81   : > { %4601 = vmatpush.bf16.msra.mxu2 %v3863_v21  ;;  %v8786_v21 = vor.u32 %v9157_v13, %v8783_v5  ;;  %v4561_v60 = vpop.f32.mrf.mxu1 }
 0xa82   : > { %v4562_v58 = vadd.f32 %v4561_v60, %v14256_v18 }
 0xa85   : > { %4602 = vmatpush.bf16.msra.mxu2 %v3862_v61  ;;  %v9117_v61 = vld [vmem:[%s17431_s16 + $0x9c] sm:$0xf] }
 0xa86   : > { %v8626_v63 = vor.u32 %v9117_v61, %v8623_v7  ;;  %v4557_v7 = vadd.f32 %v4556_v6, %v14247_v9 }
 0xa89   : > { %4603 = vmatpush.bf16.msra.mxu2 %v3861_v22  ;;  %v9125_v22 = vld [vmem:[%s17431_s16 + $0xdc] sm:$0xf] }
 0xa8a   : > { %v8658_v53 = vor.u32 %v9125_v22, %v8655_v27 }
 0xa8c   : > { %4604 = vmatmul.bf16.vlgmr.msra.gmra.mxu2 %v8562_v17  ;;  %v4563_v17 = vpop.f32.mrf.mxu1 }
 0xa8d   : > { %v4564_v24 = vadd.f32 %v4563_v17, %v4515_v41 }
 0xa94   : > { %v4566_v61 = vpop.f32.mrf.mxu1 }
 0xa95   : > { %v4567_v45 = vadd.f32 %v4566_v61, %v14263_v38  ;;  %v4383_v38 = vadd.f32 %v14145_v29, %v13890_v52  ;;  %v4388_v52 = vadd.f32 %v14179_v3, %v13965_v55  ;;  %v17757_v55 = vld [vmem:[#allocation54_spill] sm:$0xff] }
 0xa96   : > { %v4393_v3 = vadd.f32 %v17757_v55, %v14007_v48 }
 0xa9c   : > { %4609 = vmatmul.bf16.gmra.mxu2 %v8594_v44  ;;  %v4510_v44 = vadd.f32 %v14253_v51, %v4461_v35  ;;  %v4568_v37 = vpop.f32.mrf.mxu1 }
 0xaa4   : > { %v4571_v10 = vpop.f32.mrf.mxu1 }
 0xaac   : > { %4614 = vmatmul.bf16.gmra.mxu2 %v8626_v63  ;;  %v4559_v63 = vadd.f32 %v4558_v59, %v4510_v44  ;;  %v4573_v6 = vpop.f32.mrf.mxu1  ;;  %v4432_v44 = vadd.f32 %v14148_v62, %v4383_v38  ;;  %v4437_v62 = vadd.f32 %v14187_v25, %v4388_v52 }
 0xaae   : > { %v4481_v23 = vadd.f32 %v14301_v20, %v4432_v44  ;;  %v4486_v20 = vadd.f32 %v14354_v39, %v4437_v62  ;;  %v649_v62 = vld [vmem:[%s10391_s4 + $0x10] sm:$0xff]  }
 0xab4   : > { %v4576_v5 = vpop.f32.mrf.mxu1 }
 0xabc   : > { %4619 = vmatmul.bf16.gmra.mxu2 %v8658_v53 }
 0xacc   : > { %4624 = vmatmul.bf16.gmra.mxu2 %v8690_v57 }
 0xadc   : > { %4629 = vmatmul.bf16.gmra.mxu2 %v8722_v0 }
 0xaec   : > { %4634 = vmatmul.bf16.gmra.mxu2 %v8754_v11  ;;  %v4471_v11 = vadd.f32 %v14265_v14, %v14088_v34  ;;  %v4572_v34 = vadd.f32 %v4571_v10, %v14272_v46  ;;  %v4577_v46 = vadd.f32 %v4576_v5, %v14291_v4 }
 0xaee   : > { %v4520_v30 = vadd.f32 %v14267_v31, %v4471_v11  ;;  %v4578_v31 = vpop.f32.mrf.mxu1  ;;  %v17760_v11 = vld [vmem:[#allocation59_spill] sm:$0xff] }
 0xaf0   : > { %v4569_v49 = vadd.f32 %v4568_v37, %v4520_v30 }
 0xaf6   : > { %v4581_v12 = vpop.f32.mrf.mxu1 }
 0xaf7   : > { %v4582_v4 = vadd.f32 %v4581_v12, %v14344_v50 }
 0xafc   : > { %4639 = vmatmul.bf16.gmra.mxu2 %v8786_v21  ;;  %v4525_v21 = vadd.f32 %v14276_v54, %v4476_v32  ;;  %v4530_v54 = vadd.f32 %v14307_v26, %v4481_v23  ;;  %v4535_v26 = vadd.f32 %v14360_v15, %v4486_v20  ;;  %v647_v23 = vld [vmem:[%s10391_s4 + $0x8] sm:$0xff]   ;;  %v665_v20 = vunpack.c.l.bf16 %v649_v62 }
 0xafe   : > { %v4574_v14 = vadd.f32 %v4573_v6, %v4525_v21 }
 0xb0f   : > { %v4605_v47 = vpop.f32.mrf.mxu2 }
 0xb10   : > { %v4606_v27 = vadd.f32 %v4605_v47, %v4557_v7  ;;  %v4579_v7 = vadd.f32 %v4578_v31, %v4530_v54  ;;  %v14598_v31 = vld [vmem:[%s17428_s13] sm:$0xff]  ;;  %v663_v54 = vunpack.c.l.bf16 %v647_v23 }
 0xb17   : > { %v4607_v22 = vpop.f32.mrf.mxu2 }
 0xb18   : > { %v4608_v53 = vadd.f32 %v4607_v22, %v4559_v63 }
 0xb1a   : > { %v4645_v2 = vpack.c.bf16 %v4608_v53, %v4606_v27  ;;  %v4583_v53 = vpop.f32.mrf.mxu1 }
 0xb1c   : > { %8803 = vmatmul.msk.bf16.vlgmr.msrb.gmra.mxu1 %vm754_vm0, %v4645_v2 }
 0xb1f   : > { %v4610_v57 = vpop.f32.mrf.mxu2 }
 0xb20   : > { %v4611_v0 = vadd.f32 %v4610_v57, %v4562_v58  ;;  %v4584_v57 = vadd.f32 %v4583_v53, %v4535_v26 }
 0xb22   : > { %v4586_v37 = vpop.f32.mrf.mxu1 }
 0xb23   : > { %v4587_v50 = vadd.f32 %v4586_v37, %v14385_v40 }
 0xb27   : > { %v4612_v51 = vpop.f32.mrf.mxu2 }
 0xb28   : > { %v4613_v9 = vadd.f32 %v4612_v51, %v4564_v24  ;;  %v17758_v51 = vld [vmem:[#allocation57_spill] sm:$0xff] }
 0xb29   : > { %v4442_v25 = vadd.f32 %v17758_v51, %v4393_v3 }
 0xb2a   : > { %v4646_v56 = vpack.c.bf16 %v4613_v9, %v4611_v0  ;;  %v4588_v0 = vpop.f32.mrf.mxu1 }
 0xb2b   : > { %v4491_v39 = vadd.f32 %v14389_v1, %v4442_v25 }
 0xb2c   : > { %8804 = vmatmul.msk.bf16.gmra.mxu1 %vm754_vm0, %v4646_v56 }
 0xb2d   : > { %v4540_v15 = vadd.f32 %v14391_v28, %v4491_v39 }
 0xb2f   : > { %v4615_v36 = vpop.f32.mrf.mxu2  ;;  %v4589_v10 = vadd.f32 %v4588_v0, %v4540_v15  ;;  %v10221_v15 = vmov 64.0  }
 0xb30   : > { %v4616_v18 = vadd.f32 %v4615_v36, %v4567_v45  ;;  %v17759_v36 = vld [vmem:[#allocation55_spill] sm:$0xff]  ;;  %9759 = vrcp.f32 %v10221_v15 }
 0xb31   : > { %v4398_v48 = vadd.f32 %v17760_v11, %v17759_v36 }
 0xb32   : > { %v4591_v45 = vpop.f32.mrf.mxu1 }
 0xb37   : > { %v4617_v42 = vpop.f32.mrf.mxu2 }
 0xb38   : > { %v4618_v8 = vadd.f32 %v4617_v42, %v4569_v49  ;;  %v17761_v42 = vld [vmem:[#allocation58_spill] sm:$0xff] }
 0xb3a   : > { %v4647_v13 = vpack.c.bf16 %v4618_v8, %v4616_v18  ;;  %v4447_v18 = vadd.f32 %v17761_v42, %v4398_v48  ;;  %v4593_v28 = vpop.f32.mrf.mxu1 }
 0xb3c   : > { %8805 = vmatmul.msk.bf16.gmra.mxu1 %vm754_vm0, %v4647_v13  ;;  %v4496_v1 = vadd.f32 %v14521_v16, %v4447_v18  ;;  %v4592_v13 = vadd.f32 %v4591_v45, %v14402_v33  ;;  %v14601_v16 = vperm.slane %v14598_v31, 3 }
 0xb3e   : > { %v4545_v40 = vadd.f32 %v14544_v43, %v4496_v1 }
 0xb3f   : > { %v4620_v59 = vpop.f32.mrf.mxu2 }
 0xb40   : > { %v4621_v17 = vadd.f32 %v4620_v59, %v4572_v34  ;;  %v4594_v5 = vadd.f32 %v4593_v28, %v4545_v40 }
 0xb47   : > { %v4622_v60 = vpop.f32.mrf.mxu2 }
 0xb48   : > { %v4623_v47 = vadd.f32 %v4622_v60, %v4574_v14  ;;  %v645_v14 = vld [vmem:[%s10391_s4] sm:$0xff]  }
 0xb49   : > { %v661_v43 = vunpack.c.l.bf16 %v645_v14 }
 0xb4a   : > { %v4648_v35 = vpack.c.bf16 %v4623_v47, %v4621_v17  ;;  %v662_v47 = vunpack.c.h.bf16 %v645_v14 }
 0xb4c   : > { %8806 = vmatmul.msk.bf16.gmra.mxu1 %vm754_vm0, %v4648_v35 }
 0xb4f   : > { %v4625_v61 = vpop.f32.mrf.mxu2 }
 0xb50   : > { %v4626_v29 = vadd.f32 %v4625_v61, %v4577_v46 }
 0xb57   : > { %v4627_v63 = vpop.f32.mrf.mxu2 }
 0xb58   : > { %v4628_v22 = vadd.f32 %v4627_v63, %v4579_v7 }
 0xb5a   : > { %v4649_v27 = vpack.c.bf16 %v4628_v22, %v4626_v29  ;;  %v664_v29 = vunpack.c.h.bf16 %v647_v23 }
 0xb5c   : > { %8807 = vmatmul.msk.bf16.gmra.mxu1 %vm754_vm0, %v4649_v27 }
 0xb5f   : > { %v4630_v2 = vpop.f32.mrf.mxu2 }
 0xb60   : > { %v4631_v41 = vadd.f32 %v4630_v2, %v4582_v4 }
 0xb67   : > { %v4632_v19 = vpop.f32.mrf.mxu2 }
 0xb68   : > { %v4633_v58 = vadd.f32 %v4632_v19, %v4584_v57  ;;  %v666_v19 = vunpack.c.h.bf16 %v649_v62 }
 0xb6a   : > { %v4650_v24 = vpack.c.bf16 %v4633_v58, %v4631_v41  ;;  %v651_v58 = vld [vmem:[%s10391_s4 + $0x18] sm:$0xff]  }
 0xb6b   : > { %v667_v51 = vunpack.c.l.bf16 %v651_v58  ;;  %v668_v28 = vunpack.c.h.bf16 %v651_v58 }
 0xb6c   : > { %8808 = vmatmul.msk.bf16.gmra.mxu1 %vm754_vm0, %v4650_v24 }
 0xb6f   : > { %v4635_v9 = vpop.f32.mrf.mxu2 }
 0xb70   : > { %v4636_v6 = vadd.f32 %v4635_v9, %v4587_v50  ;;  %v9760_v50 = vpop.eup %9759 }
 0xb71   : > { %vm4828_vm1 = vweird.f32 %v9760_v50 }
 0xb77   : > { %v4637_v56 = vpop.f32.mrf.mxu2 }
 0xb78   : > { %v4638_v30 = vadd.f32 %v4637_v56, %v4589_v10  ;;  %v4824_v10 = vmul.f32 64.0, %v9760_v50 }
 0xb7a   : > { %v4651_v49 = vpack.c.bf16 %v4638_v30, %v4636_v6  ;;  %v4825_v56 = vsub.f32 1.0, %v4824_v10  ;;  %v657_v10 = vld [vmem:[%s10391_s4 + $0x30] sm:$0xff]  }
 0xb7c   : > { %8809 = vmatmul.msk.bf16.gmra.mxu1 %vm754_vm0, %v4651_v49  ;;  %v4826_v11 = vmul.f32 %v9760_v50, %v4825_v56 }
 0xb7e   : > { %v4827_v48 = vadd.f32 %v9760_v50, %v4826_v11 }
 0xb7f   : > { %v4640_v8 = vpop.f32.mrf.mxu2 }
 0xb80   : > { %v4641_v32 = vadd.f32 %v4640_v8, %v4592_v13  ;;  %v14635_v6 = vsel %vm4828_vm1, %v9760_v50, %v4827_v48 }
 0xb81   : > { %17762 = vst [vmem:[#allocation19_spill] sm:$0xff] %v14635_v6 }
 0xb87   : > { %v4642_v59 = vpop.f32.mrf.mxu2 }
 0xb88   : > { %v4643_v21 = vadd.f32 %v4642_v59, %v4594_v5 }
 0xb8a   : > { %v4652_v34 = vpack.c.bf16 %v4643_v21, %v4641_v32  ;;  %v653_v21 = vld [vmem:[%s10391_s4 + $0x20] sm:$0xff]  }
 0xb8b   : > { %v669_v14 = vunpack.c.l.bf16 %v653_v21 }
 0xb8c   : > { %8810 = vmatmul.msk.bf16.gmra.mxu1 %vm754_vm0, %v4652_v34 }
 0xb99   : > { %v4719_v60 = vpop.f32.mrf.mxu1 }
 0xb9a   : > { %v4720_v33 = vadd.f32 %v4719_v60, %v14601_v16 }
 0xb9c   : > { %v4759_v38 = vadd.f32 %v4720_v33, %v661_v43 }
 0xb9e   : > { %v4775_v17 = vsel %vm754_vm0, %v4759_v38, 0.0 }
 0xb9f   : > { %4776 = vadd.xlane.f32.xlu1 %v4775_v17 }
 0xba1   : > { %v4721_v35 = vpop.f32.mrf.mxu1 }
 0xba2   : > { %v4722_v44 = vadd.f32 %v4721_v35, %v14601_v16 }
 0xba4   : > { %v4760_v61 = vadd.f32 %v4722_v44, %v662_v47 }
 0xba6   : > { %v4778_v12 = vsel %vm754_vm0, %v4760_v61, 0.0 }
 0xba7   : > { %4779 = vadd.xlane.f32.xlu2 %v4778_v12 }
 0xba9   : > { %v4724_v46 = vpop.f32.mrf.mxu1 }
 0xbaa   : > { %v4725_v7 = vadd.f32 %v4724_v46, %v14601_v16  ;;  %v670_v46 = vunpack.c.h.bf16 %v653_v21 }
 0xbac   : > { %v14609_v63 = vadd.f32 %v4725_v7, %v663_v54 }
 0xbae   : > { %v4781_v52 = vsel %vm754_vm0, %v14609_v63, 0.0 }
 0xbaf   : > { %4782 = vadd.xlane.f32.xlu0 %v4781_v52 }
 0xbb1   : > { %v4726_v22 = vpop.f32.mrf.mxu1 }
 0xbb2   : > { %v4727_v27 = vadd.f32 %v4726_v22, %v14601_v16  ;;  %v655_v22 = vld [vmem:[%s10391_s4 + $0x28] sm:$0xff]  }
 0xbb4   : > { %v14614_v53 = vadd.f32 %v4727_v27, %v664_v29 }
 0xbb6   : > { %v4784_v2 = vsel %vm754_vm0, %v14614_v53, 0.0 }
 0xbb7   : > { %4785 = vadd.xlane.f32.xlu1 %v4784_v2  ;;  %v671_v2 = vunpack.c.l.bf16 %v655_v22 }
 0xbb9   : > { %v4729_v26 = vpop.f32.mrf.mxu1 }
 0xbba   : > { %v4730_v37 = vadd.f32 %v4729_v26, %v14601_v16 }
 0xbbc   : > { %v14620_v4 = vadd.f32 %v4730_v37, %v665_v20 }
 0xbbe   : > { %v4787_v57 = vsel %vm754_vm0, %v14620_v4, 0.0 }
 0xbbf   : > { %4788 = vadd.xlane.f32.xlu2 %v4787_v57 }
 0xbc1   : > { %v4731_v55 = vpop.f32.mrf.mxu1 }
 0xbc2   : > { %v4732_v3 = vadd.f32 %v4731_v55, %v14601_v16 }
 0xbc4   : > { %v14625_v41 = vadd.f32 %v4732_v3, %v666_v19 }
 0xbc6   : > { %v4790_v24 = vsel %vm754_vm0, %v14625_v41, 0.0 }
 0xbc7   : > { %4791 = vadd.xlane.f32.xlu0 %v4790_v24 }
 0xbc9   : > { %v4734_v25 = vpop.f32.mrf.mxu1 }
 0xbca   : > { %v4735_v0 = vadd.f32 %v4734_v25, %v14601_v16  ;;  %v672_v25 = vunpack.c.h.bf16 %v655_v22 }
 0xbcc   : > { %v14631_v9 = vadd.f32 %v4735_v0, %v667_v51 }
 0xbce   : > { %v4793_v39 = vsel %vm754_vm0, %v14631_v9, 0.0 }
 0xbcf   : > { %4794 = vadd.xlane.f32.xlu0 %v4793_v39 }
 0xbd1   : > { %v4736_v36 = vpop.f32.mrf.mxu1 }
 0xbd2   : > { %v4737_v8 = vadd.f32 %v4736_v36, %v14601_v16  ;;  %v673_v36 = vunpack.c.l.bf16 %v657_v10 }
 0xbd4   : > { %v14647_v32 = vadd.f32 %v4737_v8, %v668_v28 }
 0xbd6   : > { %v4796_v33 = vsel %vm754_vm0, %v14647_v32, 0.0 }
 0xbd9   : > { %v4739_v30 = vpop.f32.mrf.mxu1 }
 0xbda   : > { %v4740_v43 = vadd.f32 %v4739_v30, %v14601_v16 }
 0xbdc   : > { %v14657_v47 = vadd.f32 %v4740_v43, %v669_v14 }
 0xbde   : > { %v4799_v54 = vsel %vm754_vm0, %v14657_v47, 0.0 }
 0xbe1   : > { %v4741_v5 = vpop.f32.mrf.mxu1 }
 0xbe2   : > { %v4742_v23 = vadd.f32 %v4741_v5, %v14601_v16  ;;  %v674_v5 = vunpack.c.h.bf16 %v657_v10 }
 0xbe4   : > { %v14672_v29 = vadd.f32 %v4742_v23, %v670_v46  ;;  %v8829_v46 = vld [vmem:[%s17763_s6 + $0x20] sm:$0xf] }
 0xbe6   : > { %v4802_v26 = vsel %vm754_vm0, %v14672_v29, 0.0 }
 0xbe9   : > { %v4744_v44 = vpop.f32.mrf.mxu1 }
 0xbea   : > { %v4745_v20 = vadd.f32 %v4744_v44, %v14601_v16  ;;  %v9173_v44 = vld [vmem:[%s17763_s6 + $0x34] sm:$0xf0] }
 0xbec   : > { %v14682_v19 = vadd.f32 %v4745_v20, %v671_v2  ;;  %v8821_v2 = vld [vmem:[%s17763_s6 + $0x10] sm:$0xf]  ;;  %v9169_v20 = vld [vmem:[%s17763_s6 + $0x14] sm:$0xf0] }
 0xbee   : > { %v4805_v24 = vsel %vm754_vm0, %v14682_v19, 0.0 }
 0xbf1   : > { %v4746_v62 = vpop.f32.mrf.mxu1 }
 0xbf2   : > { %v4747_v58 = vadd.f32 %v4746_v62, %v14601_v16 }
 0xbf4   : > { %v14697_v50 = vadd.f32 %v4747_v58, %v672_v25  ;;  %v9166_v25 = vld [vmem:[%s17763_s6 + $0x4] sm:$0xf] }
 0xbf6   : > { %v4808_v30 = vsel %vm754_vm0, %v14697_v50, 0.0 }
 0xbf9   : > { %v4749_v0 = vpop.f32.mrf.mxu1 }
 0xbfa   : > { %v4750_v11 = vadd.f32 %v4749_v0, %v14601_v16 }
 0xc12   : > { %v4777_v45 = vpop.xlane.xlu1 %4776 }
 0xc13   : > { %v4830_v49 = vmul.f32 %v14635_v6, %v4777_v45 }
 0xc15   : > { %v14638_v42 = vsub.f32 %v4759_v38, %v4830_v49  ;;  %v4751_v49 = vpop.f32.mrf.mxu1 }
 0xc16   : > { %v4752_v28 = vadd.f32 %v4751_v49, %v14601_v16 }
 0xc17   : > { %v4862_v18 = vmul.f32 %v14638_v42, %v14638_v42 }
 0xc18   : > { %v14718_v21 = vadd.f32 %v4752_v28, %v674_v5 }
 0xc19   : > { %v4878_v1 = vsel %vm754_vm0, %v4862_v18, 0.0  ;;  %v14707_v18 = vadd.f32 %v4750_v11, %v673_v36 }
 0xc1a   : > { %v4780_v40 = vpop.xlane.xlu2 %4779  ;;  %4879 = vadd.xlane.f32.xlu1 %v4878_v1 }
 0xc1b   : > { %v4831_v13 = vmul.f32 %v14635_v6, %v4780_v40 }
 0xc1d   : > { %v14645_v59 = vsub.f32 %v4760_v61, %v4831_v13  ;;  %v4811_v13 = vsel %vm754_vm0, %v14707_v18, 0.0  ;;  %v4754_v14 = vpop.f32.mrf.mxu1 }
 0xc1e   : > { %v4755_v43 = vadd.f32 %v4754_v14, %v14601_v16 }
 0xc1f   : > { %v4863_v34 = vmul.f32 %v14645_v59, %v14645_v59 }
 0xc21   : > { %v4881_v60 = vsel %vm754_vm0, %v4863_v34, 0.0  ;;  %v14721_v34 = vld [vmem:[%s10391_s4 + $0x38] sm:$0xff]   ;;  %s8285_s4 = sshll.u32 %s634_s26, 4  ;;  %s8286_s4 = int_to_ptr.vmem [resolvable:$true] %s8285_s4 }
 0xc22   : > { %v4783_v38 = vpop.xlane.xlu0 %4782  ;;  %4882 = vadd.xlane.f32.xlu2 %v4881_v60  ;;  %4797 = vadd.xlane.f32.xlu1 %v4796_v33  ;;  %v4814_v60 = vsel %vm754_vm0, %v14718_v21, 0.0 }
 0xc23   : > { %v4832_v17 = vmul.f32 %v14635_v6, %v4783_v38 }
 0xc25   : > { %v14660_v35 = vsub.f32 %v14609_v63, %v4832_v17  ;;  %v8837_v17 = vld [vmem:[%s17763_s6 + $0x30] sm:$0xf] }
 0xc26   : > { %v8838_v23 = vor.u32 %v9173_v44, %v8837_v17 }
 0xc27   : > { %v4864_v61 = vmul.f32 %v14660_v35, %v14660_v35 }
 0xc28   : > { %5258 = vmatpush.bf16.msrb.mxu2 %v8838_v23 }
 0xc29   : > { %v4884_v12 = vsel %vm754_vm0, %v4864_v61, 0.0  ;;  %v9172_v61 = vld [vmem:[%s17763_s6 + $0x34] sm:$0xf] }
 0xc2a   : > { %4885 = vadd.xlane.f32.xlu2 %v4884_v12  ;;  %4800 = vadd.xlane.f32.xlu1 %v4799_v54  ;;  %v4786_v7 = vpop.xlane.xlu1 %4785  ;;  %v8839_v12 = vld [vmem:[%s17763_s6 + $0x38] sm:$0xf0] }
 0xc2b   : > { %v4833_v52 = vmul.f32 %v14635_v6, %v4786_v7  ;;  %v8842_v54 = vor.u32 %v9172_v61, %v8839_v12  ;;  %v9171_v7 = vld [vmem:[%s17763_s6 + $0x24] sm:$0xf0] }
 0xc2c   : > { %v8830_v22 = vor.u32 %v9171_v7, %v8829_v46  ;;  %v676_v7 = vunpack.c.h.bf16 %v14721_v34 }
 0xc2d   : > { %v14670_v63 = vsub.f32 %v14614_v53, %v4833_v52  ;;  %5307 = vmatpush.bf16.msra.mxu1 %v8842_v54  ;;  %v9170_v52 = vld [vmem:[%s17763_s6 + $0x24] sm:$0xf] }
 0xc2e   : > { %5259 = vmatpush.bf16.msrb.mxu2 %v8830_v22 }
 0xc2f   : > { %v4865_v27 = vmul.f32 %v14670_v63, %v14670_v63 }
 0xc31   : > { %v4887_v37 = vsel %vm754_vm0, %v4865_v27, 0.0  ;;  %v8831_v27 = vld [vmem:[%s17763_s6 + $0x28] sm:$0xf0] }
 0xc32   : > { %4803 = vadd.xlane.f32.xlu2 %v4802_v26  ;;  %v4789_v57 = vpop.xlane.xlu2 %4788  ;;  %4888 = vadd.xlane.f32.xlu0 %v4887_v37  ;;  %v8834_v62 = vor.u32 %v9170_v52, %v8831_v27  ;;  %v9168_v26 = vld [vmem:[%s17763_s6 + $0x14] sm:$0xf]  ;;  %v8822_v37 = vor.u32 %v9169_v20, %v8821_v2 }
 0xc33   : > { %v4834_v53 = vmul.f32 %v14635_v6, %v4789_v57  ;;  %v8823_v57 = vld [vmem:[%s17763_s6 + $0x18] sm:$0xf0] }
 0xc34   : > { %5308 = vmatpush.bf16.msra.mxu1 %v8834_v62  ;;  %5260 = vmatpush.bf16.msrb.mxu2 %v8822_v37 }
 0xc35   : > { %v14685_v55 = vsub.f32 %v14620_v4, %v4834_v53  ;;  %v8826_v53 = vor.u32 %v9168_v26, %v8823_v57  ;;  %v14806_v57 = vperm.slane %v14598_v31, 4 }
 0xc37   : > { %v4866_v3 = vmul.f32 %v14685_v55, %v14685_v55 }
 0xc38   : > { %5309 = vmatpush.bf16.msra.mxu1 %v8826_v53 }
 0xc39   : > { %v4890_v51 = vsel %vm754_vm0, %v4866_v3, 0.0 }
 0xc3a   : > { %v4792_v39 = vpop.xlane.xlu0 %4791  ;;  %4806 = vadd.xlane.f32.xlu2 %v4805_v24  ;;  %4891 = vadd.xlane.f32.xlu0 %v4890_v51  ;;  %v8813_v24 = vld [vmem:[%s17763_s6] sm:$0xf]  ;;  %v9167_v51 = vld [vmem:[%s17763_s6 + $0x4] sm:$0xf0] }
 0xc3b   : > { %v4835_v15 = vmul.f32 %v14635_v6, %v4792_v39  ;;  %v8814_v0 = vor.u32 %v9167_v51, %v8813_v24  ;;  %v8815_v39 = vld [vmem:[%s17763_s6 + $0x8] sm:$0xf0] }
 0xc3c   : > { %v8818_v10 = vor.u32 %v9166_v25, %v8815_v39 }
 0xc3d   : > { %v14695_v4 = vsub.f32 %v14625_v41, %v4835_v15  ;;  %5261 = vmatpush.bf16.msrb.mxu2 %v8814_v0 }
 0xc3e   : > { %5310 = vmatpush.bf16.msra.mxu1 %v8818_v10 }
 0xc3f   : > { %v4867_v56 = vmul.f32 %v14695_v4, %v14695_v4 }
 0xc41   : > { %v4893_v48 = vsel %vm754_vm0, %v4867_v56, 0.0 }
 0xc42   : > { %v4795_v45 = vpop.xlane.xlu0 %4794  ;;  %4894 = vadd.xlane.f32.xlu1 %v4893_v48  ;;  %4809 = vadd.xlane.f32.xlu0 %v4808_v30 }
 0xc43   : > { %v4836_v41 = vmul.f32 %v14635_v6, %v4795_v45 }
 0xc45   : > { %v14710_v8 = vsub.f32 %v14631_v9, %v4836_v41  ;;  %v675_v9 = vunpack.c.l.bf16 %v14721_v34 }
 0xc47   : > { %v4868_v1 = vmul.f32 %v14710_v8, %v14710_v8  ;;  %v14727_v33 = vadd.f32 %v4755_v43, %v675_v9 }
 0xc49   : > { %v4896_v40 = vsel %vm754_vm0, %v4868_v1, 0.0  ;;  %v4817_v38 = vsel %vm754_vm0, %v14727_v33, 0.0 }
 0xc4a   : > { %4897 = vadd.xlane.f32.xlu1 %v4896_v40  ;;  %4812 = vadd.xlane.f32.xlu0 %v4811_v13 }
 0xc52   : > { %4815 = vadd.xlane.f32.xlu1 %v4814_v60 }
 0xc5a   : > { %4818 = vadd.xlane.f32.xlu1 %v4817_v38 }
 0xc8d   : > { %v4880_v3 = vpop.xlane.xlu1 %4879 }
 0xc8e   : > { %v4926_v58 = vmul.f32 %v4880_v3, %v14635_v6 }
 0xc90   : > { %v4942_v15 = vadd.f32 1e-05, %v4926_v58 }
 0xc92   : > { %9761 = vrsqrt.f32 %v4942_v15  ;;  %vm4964_vm3 = vweird.f32 %v4942_v15 }
 0xc95   : > { %v4883_v56 = vpop.xlane.xlu2 %4882  ;;  %v4798_v36 = vpop.xlane.xlu1 %4797 }
 0xc96   : > { %v4927_v11 = vmul.f32 %v4883_v56, %v14635_v6  ;;  %v4837_v48 = vmul.f32 %v14635_v6, %v4798_v36 }
 0xc98   : > { %v9762_v30 = vpop.eup %9761  ;;  %v4943_v45 = vadd.f32 1e-05, %v4927_v11  ;;  %v14783_v41 = vsub.f32 %v14647_v32, %v4837_v48  ;;  %v4756_v32 = vpop.f32.mrf.mxu1 }
 0xc99   : > { %v4959_v49 = vmul.f32 %v9762_v30, %v4942_v15  ;;  %vm4965_vm2 = vweird.f32 %v9762_v30  ;;  %v4757_v54 = vadd.f32 %v4756_v32, %v14601_v16 }
 0xc9a   : > { %9763 = vrsqrt.f32 %v4943_v45  ;;  %v4869_v1 = vmul.f32 %v14783_v41, %v14783_v41  ;;  %vm4966_vm4 = vmor %vm4964_vm3, %vm4965_vm2  ;;  %vm4974_vm6 = vweird.f32 %v4943_v45 }
 0xc9b   : > { %v4960_v28 = vmul.f32 %v9762_v30, %v4959_v49  ;;  %v14803_v37 = vadd.f32 %v4757_v54, %v676_v7 }
 0xc9c   : > { %v4899_v40 = vsel %vm754_vm0, %v4869_v1, 0.0 }
 0xc9d   : > { %v4961_v13 = vmul.f32 0.5, %v4960_v28  ;;  %v4886_v5 = vpop.xlane.xlu2 %4885  ;;  %4900 = vadd.xlane.f32.xlu2 %v4899_v40  ;;  %v4801_v14 = vpop.xlane.xlu1 %4800  ;;  %v4820_v39 = vsel %vm754_vm0, %v14803_v37, 0.0 }
 0xc9e   : > { %v4928_v9 = vmul.f32 %v4886_v5, %v14635_v6  ;;  %v4838_v43 = vmul.f32 %v14635_v6, %v4801_v14 }
 0xc9f   : > { %v4962_v60 = vsub.f32 1.5, %v4961_v13 }
 0xca0   : > { %v9764_v38 = vpop.eup %9763  ;;  %v14790_v17 = vadd.f32 1e-05, %v4928_v9  ;;  %v14793_v44 = vsub.f32 %v14657_v47, %v4838_v43 }
 0xca1   : > { %v4963_v61 = vmul.f32 %v9762_v30, %v4962_v60  ;;  %v4969_v23 = vmul.f32 %v9764_v38, %v4943_v45  ;;  %vm4975_vm5 = vweird.f32 %v9764_v38 }
 0xca2   : > { %9765 = vrsqrt.f32 %v14790_v17  ;;  %v4870_v12 = vmul.f32 %v14793_v44, %v14793_v44  ;;  %vm4976_vm7 = vmor %vm4974_vm6, %vm4975_vm5  ;;  %vm4984_vm9 = vweird.f32 %v14790_v17 }
 0xca3   : > { %v4970_v46 = vmul.f32 %v9764_v38, %v4969_v23  ;;  %v4967_v22 = vsel %vm4966_vm4, %v9762_v30, %v4963_v61 }
 0xca4   : > { %v4902_v52 = vsel %vm754_vm0, %v4870_v12, 0.0  ;;  %v5118_v34 = vmul.f32 %v4967_v22, %v14638_v42  ;;  %v14818_v42 = vperm.slane %v14598_v31, 5 }
 0xca5   : > { %v4971_v47 = vmul.f32 0.5, %v4970_v46  ;;  %v4804_v27 = vpop.xlane.xlu2 %4803  ;;  %v4889_v62 = vpop.xlane.xlu0 %4888  ;;  %4903 = vadd.xlane.f32.xlu2 %v4902_v52 }
 0xca6   : > { %v4839_v2 = vmul.f32 %v14635_v6, %v4804_v27  ;;  %v4929_v20 = vmul.f32 %v4889_v62, %v14635_v6 }
 0xca7   : > { %v4972_v26 = vsub.f32 1.5, %v4971_v47 }
 0xca8   : > { %v9766_v16 = vpop.eup %9765  ;;  %v14810_v53 = vsub.f32 %v14672_v29, %v4839_v2  ;;  %v4945_v3 = vadd.f32 1e-05, %v4929_v20  ;;  %v5135_v29 = vmul.f32 %v14806_v57, %v5118_v34 }
 0xca9   : > { %v4973_v58 = vmul.f32 %v9764_v38, %v4972_v26  ;;  %v4979_v24 = vmul.f32 %v9766_v16, %v14790_v17  ;;  %vm4985_vm8 = vweird.f32 %v9766_v16 }
 0xcaa   : > { %9767 = vrsqrt.f32 %v4945_v3  ;;  %v4871_v51 = vmul.f32 %v14810_v53, %v14810_v53  ;;  %v14827_v1 = vadd.f32 %v14818_v42, %v5135_v29  ;;  %vm4986_vm10 = vmor %vm4984_vm9, %vm4985_vm8  ;;  %vm4994_vm12 = vweird.f32 %v4945_v3 }
 0xcab   : > { %v4977_v25 = vsel %vm4976_vm7, %v9764_v38, %v4973_v58  ;;  %v4980_v0 = vmul.f32 %v9766_v16, %v4979_v24 }
 0xcac   : > { %v5119_v15 = vmul.f32 %v4977_v25, %v14645_v59  ;;  %v4905_v10 = vsel %vm754_vm0, %v4871_v51, 0.0  ;;  %17764 = vst [vmem:[#allocation18_spill] sm:$0xff] %v14827_v1 }
 0xcad   : > { %v4981_v56 = vmul.f32 0.5, %v4980_v0  ;;  %v4807_v36 = vpop.xlane.xlu2 %4806  ;;  %4906 = vadd.xlane.f32.xlu0 %v4905_v10  ;;  %v4892_v11 = vpop.xlane.xlu0 %4891  ;;  %4821 = vadd.xlane.f32.xlu2 %v4820_v39 }
 0xcae   : > { %v5136_v48 = vmul.f32 %v14806_v57, %v5119_v15  ;;  %v4840_v30 = vmul.f32 %v14635_v6, %v4807_v36  ;;  %v4930_v45 = vmul.f32 %v4892_v11, %v14635_v6 }
 0xcaf   : > { %v4982_v49 = vsub.f32 1.5, %v4981_v56 }
 0xcb0   : > { %v9768_v31 = vpop.eup %9767  ;;  %v14830_v59 = vadd.f32 %v14818_v42, %v5136_v48  ;;  %v14833_v28 = vsub.f32 %v14682_v19, %v4840_v30  ;;  %v4946_v40 = vadd.f32 1e-05, %v4930_v45 }
 0xcb1   : > { %v4983_v13 = vmul.f32 %v9766_v16, %v4982_v49  ;;  %v4989_v5 = vmul.f32 %v9768_v31, %v4945_v3  ;;  %vm4995_vm11 = vweird.f32 %v9768_v31 }
 0xcb2   : > { %17765 = vst [vmem:[#allocation45_spill] sm:$0xff] %v14830_v59  ;;  %v5168_v14 = vpack.c.bf16 %v14830_v59, %v14827_v1  ;;  %9769 = vrsqrt.f32 %v4946_v40  ;;  %v4872_v9 = vmul.f32 %v14833_v28, %v14833_v28  ;;  %vm4996_vm13 = vmor %vm4994_vm12, %vm4995_vm11  ;;  %vm5004_vm15 = vweird.f32 %v4946_v40 }
 0xcb3   : > { %v4990_v43 = vmul.f32 %v9768_v31, %v4989_v5  ;;  %v4987_v60 = vsel %vm4986_vm10, %v9766_v16, %v4983_v13 }
 0xcb4   : > { %8843 = vmatmul.msk.bf16.vlgmr.msrb.gmra.mxu2 %vm754_vm0, %v5168_v14  ;;  %8851 = vmatmul.msk.bf16.vlgmr.msra.gmra.mxu1 %vm754_vm0, %v5168_v14  ;;  %v4908_v19 = vsel %vm754_vm0, %v4872_v9, 0.0  ;;  %v5120_v46 = vmul.f32 %v4987_v60, %v14660_v35 }
 0xcb5   : > { %v4991_v38 = vmul.f32 0.5, %v4990_v43  ;;  %4909 = vadd.xlane.f32.xlu0 %v4908_v19  ;;  %v4810_v32 = vpop.xlane.xlu0 %4809  ;;  %v4895_v61 = vpop.xlane.xlu1 %4894 }
 0xcb6   : > { %v4841_v23 = vmul.f32 %v14635_v6, %v4810_v32  ;;  %v4931_v12 = vmul.f32 %v4895_v61, %v14635_v6  ;;  %v5137_v35 = vmul.f32 %v14806_v57, %v5120_v46 }
 0xcb7   : > { %v4992_v54 = vsub.f32 1.5, %v4991_v38 }
 0xcb8   : > { %v9770_v17 = vpop.eup %9769  ;;  %v14847_v7 = vsub.f32 %v14697_v50, %v4841_v23  ;;  %v4947_v52 = vadd.f32 1e-05, %v4931_v12  ;;  %v14860_v0 = vadd.f32 %v14818_v42, %v5137_v35 }
 0xcb9   : > { %v4993_v22 = vmul.f32 %v9768_v31, %v4992_v54  ;;  %v4999_v47 = vmul.f32 %v9770_v17, %v4946_v40  ;;  %vm5005_vm14 = vweird.f32 %v9770_v17 }
 0xcba   : > { %9771 = vrsqrt.f32 %v4947_v52  ;;  %v4873_v27 = vmul.f32 %v14847_v7, %v14847_v7  ;;  %17766 = vst [vmem:[#allocation44_spill] sm:$0xff] %v14860_v0  ;;  %vm5006_vm1 = vmor %vm5004_vm15, %vm5005_vm14  ;;  %vm5014_vm3 = vweird.f32 %v4947_v52 }
 0xcbb   : > { %v4997_v62 = vsel %vm4996_vm13, %v9768_v31, %v4993_v22  ;;  %v5000_v2 = vmul.f32 %v9770_v17, %v4999_v47 }
 0xcbc   : > { %v5121_v20 = vmul.f32 %v4997_v62, %v14670_v63  ;;  %v4911_v26 = vsel %vm754_vm0, %v4873_v27, 0.0 }
 0xcbd   : > { %v5001_v16 = vmul.f32 0.5, %v5000_v2  ;;  %4912 = vadd.xlane.f32.xlu1 %v4911_v26  ;;  %v4813_v50 = vpop.xlane.xlu0 %4812  ;;  %v4898_v34 = vpop.xlane.xlu1 %4897 }
 0xcbe   : > { %v4842_v3 = vmul.f32 %v14635_v6, %v4813_v50  ;;  %v5138_v58 = vmul.f32 %v14806_v57, %v5121_v20 }
 0xcbf   : > { %v5002_v24 = vsub.f32 1.5, %v5001_v16 }
 0xcc0   : > { %v9772_v51 = vpop.eup %9771  ;;  %v14857_v25 = vsub.f32 %v14707_v18, %v4842_v3  ;;  %v14863_v63 = vadd.f32 %v14818_v42, %v5138_v58 }
 0xcc1   : > { %v5003_v39 = vmul.f32 %v9770_v17, %v5002_v24  ;;  %v5009_v29 = vmul.f32 %v9772_v51, %v4947_v52  ;;  %vm5015_vm2 = vweird.f32 %v9772_v51 }
 0xcc2   : > { %17767 = vst [vmem:[#allocation27_spill] sm:$0xff] %v14863_v63  ;;  %v5169_v15 = vpack.c.bf16 %v14863_v63, %v14860_v0  ;;  %v4874_v10 = vmul.f32 %v14857_v25, %v14857_v25  ;;  %vm5016_vm4 = vmor %vm5014_vm3, %vm5015_vm2 }
 0xcc3   : > { %v5010_v56 = vmul.f32 %v9772_v51, %v5009_v29  ;;  %v5007_v36 = vsel %vm5006_vm1, %v9770_v17, %v5003_v39 }
 0xcc4   : > { %8844 = vmatmul.msk.bf16.gmra.mxu2 %vm754_vm0, %v5169_v15  ;;  %8852 = vmatmul.msk.bf16.gmra.mxu1 %vm754_vm0, %v5169_v15  ;;  %v4914_v18 = vsel %vm754_vm0, %v4874_v10, 0.0  ;;  %v5122_v49 = vmul.f32 %v5007_v36, %v14685_v55 }
 0xcc5   : > { %v5011_v11 = vmul.f32 0.5, %v5010_v56  ;;  %4915 = vadd.xlane.f32.xlu2 %v4914_v18  ;;  %v4816_v48 = vpop.xlane.xlu1 %4815 }
 0xcc6   : > { %v4843_v30 = vmul.f32 %v14635_v6, %v4816_v48  ;;  %v5139_v43 = vmul.f32 %v14806_v57, %v5122_v49 }
 0xcc7   : > { %v5012_v45 = vsub.f32 1.5, %v5011_v11 }
 0xcc8   : > { %v14875_v31 = vsub.f32 %v14718_v21, %v4843_v30  ;;  %v14888_v38 = vadd.f32 %v14818_v42, %v5139_v43 }
 0xcc9   : > { %v5013_v40 = vmul.f32 %v9772_v51, %v5012_v45 }
 0xcca   : > { %v4875_v13 = vmul.f32 %v14875_v31, %v14875_v31  ;;  %17768 = vst [vmem:[#allocation26_spill] sm:$0xff] %v14888_v38 }
 0xccb   : > { %v5017_v5 = vsel %vm5016_vm4, %v9772_v51, %v5013_v40 }
 0xccc   : > { %v5123_v14 = vmul.f32 %v5017_v5, %v14695_v4  ;;  %v4917_v9 = vsel %vm754_vm0, %v4875_v13, 0.0 }
 0xccd   : > { %4918 = vadd.xlane.f32.xlu0 %v4917_v9  ;;  %v4819_v19 = vpop.xlane.xlu1 %4818 }
 0xcce   : > { %v4844_v55 = vmul.f32 %v14635_v6, %v4819_v19  ;;  %v5140_v21 = vmul.f32 %v14806_v57, %v5123_v14 }
 0xcd0   : > { %v14885_v60 = vsub.f32 %v14727_v33, %v4844_v55  ;;  %v14891_v32 = vadd.f32 %v14818_v42, %v5140_v21  ;;  %v4932_v33 = vmul.f32 %v4898_v34, %v14635_v6  ;;  %v5184_v55 = vld [vmem:[%s17422_s7] sm:$0x3] }
 0xcd2   : > { %17769 = vst [vmem:[#allocation35_spill] sm:$0xff] %v14891_v32  ;;  %v5170_v4 = vpack.c.bf16 %v14891_v32, %v14888_v38  ;;  %v4876_v61 = vmul.f32 %v14885_v60, %v14885_v60  ;;  %v4948_v12 = vadd.f32 1e-05, %v4932_v33 }
 0xcd4   : > { %8845 = vmatmul.msk.bf16.gmra.mxu2 %vm754_vm0, %v5170_v4  ;;  %8853 = vmatmul.msk.bf16.gmra.mxu1 %vm754_vm0, %v5170_v4  ;;  %v4920_v23 = vsel %vm754_vm0, %v4876_v61, 0.0  ;;  %9773 = vrsqrt.f32 %v4948_v12  ;;  %vm5024_vm6 = vweird.f32 %v4948_v12  ;;  %v14928_v61 = vperm.slane %v5184_v55, 1 }
 0xcd5   : > { %4921 = vadd.xlane.f32.xlu1 %v4920_v23 }
 0xcda   : > { %v9774_v54 = vpop.eup %9773 }
 0xcdb   : > { %v5019_v17 = vmul.f32 %v9774_v54, %v4948_v12  ;;  %vm5025_vm5 = vweird.f32 %v9774_v54 }
 0xcdc   : > { %vm5026_vm7 = vmor %vm5024_vm6, %vm5025_vm5 }
 0xcdd   : > { %v5020_v46 = vmul.f32 %v9774_v54, %v5019_v17  ;;  %v14933_v17 = vperm.slane %v5184_v55, 0 }
 0xcdf   : > { %v5021_v27 = vmul.f32 0.5, %v5020_v46 }
 0xce1   : > { %v5022_v62 = vsub.f32 1.5, %v5021_v27 }
 0xce3   : > { %v5023_v26 = vmul.f32 %v9774_v54, %v5022_v62 }
 0xce5   : > { %v5027_v34 = vsel %vm5026_vm7, %v9774_v54, %v5023_v26 }
 0xce6   : > { %v5124_v10 = vmul.f32 %v5027_v34, %v14710_v8 }
 0xce8   : > { %v5141_v49 = vmul.f32 %v14806_v57, %v5124_v10 }
 0xcea   : > { %v14916_v13 = vadd.f32 %v14818_v42, %v5141_v49 }
 0xcec   : > { %17770 = vst [vmem:[#allocation34_spill] sm:$0xff] %v14916_v13 }
 0xd10   : > { %v4901_v52 = vpop.xlane.xlu2 %4900 }
 0xd11   : > { %v4933_v22 = vmul.f32 %v4901_v52, %v14635_v6 }
 0xd13   : > { %v4949_v47 = vadd.f32 1e-05, %v4933_v22 }
 0xd15   : > { %9775 = vrsqrt.f32 %v4949_v47  ;;  %vm5034_vm9 = vweird.f32 %v4949_v47 }
 0xd18   : > { %v4904_v2 = vpop.xlane.xlu2 %4903 }
 0xd19   : > { %v4934_v16 = vmul.f32 %v4904_v2, %v14635_v6 }
 0xd1b   : > { %v9776_v20 = vpop.eup %9775  ;;  %v4950_v58 = vadd.f32 1e-05, %v4934_v16 }
 0xd1c   : > { %v5029_v35 = vmul.f32 %v9776_v20, %v4949_v47  ;;  %vm5035_vm8 = vweird.f32 %v9776_v20 }
 0xd1d   : > { %9777 = vrsqrt.f32 %v4950_v58  ;;  %vm5036_vm10 = vmor %vm5034_vm9, %vm5035_vm8  ;;  %vm5044_vm15 = vweird.f32 %v4950_v58 }
 0xd1e   : > { %v5030_v50 = vmul.f32 %v9776_v20, %v5029_v35 }
 0xd20   : > { %v5031_v3 = vmul.f32 0.5, %v5030_v50  ;;  %v4907_v24 = vpop.xlane.xlu0 %4906  ;;  %v4822_v51 = vpop.xlane.xlu2 %4821 }
 0xd21   : > { %v4935_v39 = vmul.f32 %v4907_v24, %v14635_v6  ;;  %v4845_v29 = vmul.f32 %v14635_v6, %v4822_v51 }
 0xd22   : > { %v5032_v15 = vsub.f32 1.5, %v5031_v3 }
 0xd23   : > { %v4951_v56 = vadd.f32 1e-05, %v4935_v39  ;;  %v14907_v18 = vsub.f32 %v14803_v37, %v4845_v29  ;;  %v9778_v37 = vpop.eup %9777 }
 0xd24   : > { %v5033_v36 = vmul.f32 %v9776_v20, %v5032_v15  ;;  %v5039_v9 = vmul.f32 %v9778_v37, %v4950_v58  ;;  %vm5045_vm12 = vweird.f32 %v9778_v37 }
 0xd25   : > { %9779 = vrsqrt.f32 %v4951_v56  ;;  %v4877_v11 = vmul.f32 %v14907_v18, %v14907_v18  ;;  %vm5054_vm13 = vweird.f32 %v4951_v56  ;;  %vm5046_vm1 = vmor %vm5044_vm15, %vm5045_vm12 }
 0xd26   : > { %v5037_v48 = vsel %vm5036_vm10, %v9776_v20, %v5033_v36  ;;  %v5040_v19 = vmul.f32 %v9778_v37, %v5039_v9 }
 0xd27   : > { %v5125_v30 = vmul.f32 %v5037_v48, %v14783_v41  ;;  %v4923_v45 = vsel %vm754_vm0, %v4877_v11, 0.0 }
 0xd28   : > { %4924 = vadd.xlane.f32.xlu2 %v4923_v45  ;;  %v5041_v4 = vmul.f32 0.5, %v5040_v19  ;;  %v4910_v11 = vpop.xlane.xlu0 %4909 }
 0xd29   : > { %v5142_v8 = vmul.f32 %v14806_v57, %v5125_v30 }
 0xd2a   : > { %v5042_v12 = vsub.f32 1.5, %v5041_v4 }
 0xd2b   : > { %v9780_v40 = vpop.eup %9779  ;;  %v14919_v5 = vadd.f32 %v14818_v42, %v5142_v8  ;;  %v4936_v8 = vmul.f32 %v4910_v11, %v14635_v6 }
 0xd2c   : > { %v5049_v14 = vmul.f32 %v9780_v40, %v4951_v56  ;;  %vm5055_vm11 = vweird.f32 %v9780_v40  ;;  %v5043_v22 = vmul.f32 %v9778_v37, %v5042_v12 }
 0xd2d   : > { %17771 = vst [vmem:[#allocation43_spill] sm:$0xff] %v14919_v5  ;;  %v5171_v41 = vpack.c.bf16 %v14919_v5, %v14916_v13  ;;  %vm5056_vm14 = vmor %vm5054_vm13, %vm5055_vm11 }
 0xd2e   : > { %v5050_v43 = vmul.f32 %v9780_v40, %v5049_v14  ;;  %v5047_v2 = vsel %vm5046_vm1, %v9778_v37, %v5043_v22 }
 0xd2f   : > { %8846 = vmatmul.msk.bf16.gmra.mxu2 %vm754_vm0, %v5171_v41  ;;  %8854 = vmatmul.msk.bf16.gmra.mxu1 %vm754_vm0, %v5171_v41  ;;  %v5126_v16 = vmul.f32 %v5047_v2, %v14793_v44  ;;  %v14978_v41 = vadd.f32 1e-05, %v4936_v8 }
 0xd30   : > { %v5051_v21 = vmul.f32 0.5, %v5050_v43  ;;  %v4913_v48 = vpop.xlane.xlu1 %4912 }
 0xd31   : > { %v5312_v23 = vpop.f32.mrf.mxu1  ;;  %v5143_v58 = vmul.f32 %v14806_v57, %v5126_v16  ;;  %v4937_v37 = vmul.f32 %v4913_v48, %v14635_v6  ;;  %vm5064_vm15 = vweird.f32 %v14978_v41 }
 0xd32   : > { %v5052_v33 = vsub.f32 1.5, %v5051_v21  ;;  %v14931_v54 = vadd.f32 %v5312_v23, %v14928_v61 }
 0xd33   : > { %v14957_v15 = vadd.f32 %v14818_v42, %v5143_v58  ;;  %v14980_v19 = vadd.f32 1e-05, %v4937_v37 }
 0xd34   : > { %v5053_v46 = vmul.f32 %v9780_v40, %v5052_v33  ;;  %v14936_v47 = vmul.f32 0.70710677, %v14931_v54 }
 0xd35   : > { %17773 = vst [vmem:[#allocation53_spill] sm:$0xff] %v14957_v15 }
 0xd36   : > { %v5057_v62 = vsel %vm5056_vm14, %v9780_v40, %v5053_v46  ;;  %v5417_v20 = vand.u32 2147483647, %v14936_v47 }
 0xd37   : > { %v5263_v52 = vpop.f32.mrf.mxu2  ;;  %v5127_v26 = vmul.f32 %v5057_v62, %v14810_v53 }
 0xd38   : > { %v14939_v27 = vadd.f32 %v5263_v52, %v14933_v17  ;;  %v5449_v50 = vmul.f32 0.3275911, %v5417_v20 }
 0xd39   : > { %v5314_v3 = vpop.f32.mrf.mxu1  ;;  %v5144_v24 = vmul.f32 %v14806_v57, %v5127_v26 }
 0xd3a   : > { %v14944_v35 = vmul.f32 0.70710677, %v14939_v27  ;;  %v5481_v51 = vadd.f32 1.0, %v5449_v50  ;;  %v14951_v39 = vadd.f32 %v5314_v3, %v14928_v61 }
 0xd3b   : > { %v14954_v53 = vadd.f32 %v14818_v42, %v5144_v24 }
 0xd3c   : > { %v5416_v34 = vand.u32 2147483647, %v14944_v35  ;;  %9781 = vrcp.f32 %v5481_v51  ;;  %v14960_v44 = vmul.f32 0.70710677, %v14951_v39  ;;  %v5538_v26 = vand.u32 2147483648, %v5481_v51 }
 0xd3d   : > { %17772 = vst [vmem:[#allocation42_spill] sm:$0xff] %v14954_v53  ;;  %v5172_v56 = vpack.c.bf16 %v14954_v53, %v14957_v15  ;;  %vm5532_vm3 = vweird.f32 %v5481_v51  ;;  %v5536_v50 = vand.u32 2147483647, %v5481_v51 }
 0xd3e   : > { %v5448_v29 = vmul.f32 0.3275911, %v5416_v34  ;;  %v5419_v30 = vand.u32 2147483647, %v14960_v44 }
 0xd3f   : > { %v5265_v36 = vpop.f32.mrf.mxu2  ;;  %8847 = vmatmul.msk.bf16.gmra.mxu2 %vm754_vm0, %v5172_v56  ;;  %8855 = vmatmul.msk.bf16.gmra.mxu1 %vm754_vm0, %v5172_v56  ;;  %vm5537_vm6 = vcmp.eq.f32.partialorder %v5536_v50, 8.507059e+37 }
 0xd40   : > { %v14962_v10 = vadd.f32 1.0, %v5448_v29  ;;  %v14971_v45 = vadd.f32 %v5265_v36, %v14933_v17  ;;  %v5451_v40 = vmul.f32 0.3275911, %v5419_v30  ;;  %v5539_v29 = vor.u32 1.1754944e-38, %v5538_v26 }
 0xd42   : > { %9783 = vrcp.f32 %v14962_v10  ;;  %v9782_v49 = vpop.eup %9781  ;;  %v14976_v9 = vmul.f32 0.70710677, %v14971_v45  ;;  %v14982_v55 = vadd.f32 1.0, %v5451_v40  ;;  %v5523_v36 = vand.u32 2147483648, %v14962_v10  ;;  %v4916_v40 = vpop.xlane.xlu2 %4915 }
 0xd43   : > { %v5528_v14 = vmul.f32 %v9782_v49, %v5481_v51  ;;  %9785 = vrsqrt.f32 %v14978_v41  ;;  %vm5533_vm2 = vweird.f32 %v9782_v49  ;;  %v5317_v51 = vpop.f32.mrf.mxu1  ;;  %vm5517_vm7 = vweird.f32 %v14962_v10 }
 0xd44   : > { %v5418_v4 = vand.u32 2147483647, %v14976_v9  ;;  %9787 = vrsqrt.f32 %v14980_v19  ;;  %vm5534_vm4 = vmor %vm5532_vm3, %vm5533_vm2  ;;  %v5521_v30 = vand.u32 2147483647, %v14962_v10  ;;  %vm5562_vm11 = vweird.f32 %v14982_v55 }
 0xd45   : > { %v5529_v21 = vsub.f32 1.0, %v5528_v14  ;;  %9789 = vrcp.f32 %v14982_v55  ;;  %v15012_v14 = vadd.f32 %v5317_v51, %v14928_v61  ;;  %vm5074_vm2 = vweird.f32 %v14980_v19 }
 0xd46   : > { %v5450_v12 = vmul.f32 0.3275911, %v5418_v4  ;;  %vm5522_vm9 = vcmp.eq.f32.partialorder %v5521_v30, 8.507059e+37 }
 0xd47   : > { %v5530_v33 = vmul.f32 %v9782_v49, %v5529_v21  ;;  %v15024_v26 = vmul.f32 0.70710677, %v15012_v14 }
 0xd48   : > { %v9784_v43 = vpop.eup %9783  ;;  %v14993_v2 = vadd.f32 1.0, %v5450_v12 }
 0xd49   : > { %v5513_v23 = vmul.f32 %v9784_v43, %v14962_v10  ;;  %v14989_v52 = vpop.eup %9785  ;;  %v5531_v62 = vadd.f32 %v9782_v49, %v5530_v33  ;;  %vm5518_vm5 = vweird.f32 %v9784_v43  ;;  %v4938_v10 = vmul.f32 %v4916_v40, %v14635_v6 }
 0xd4a   : > { %v14991_v22 = vpop.eup %9787  ;;  %v5059_v34 = vmul.f32 %v14989_v52, %v14978_v41  ;;  %9791 = vrcp.f32 %v14993_v2  ;;  %vm5519_vm8 = vmor %vm5517_vm7, %vm5518_vm5  ;;  %vm5065_vm12 = vweird.f32 %v14989_v52 }
 0xd4b   : > { %v5514_v46 = vsub.f32 1.0, %v5513_v23  ;;  %v14995_v20 = vpop.eup %9789  ;;  %v5069_v3 = vmul.f32 %v14991_v22, %v14980_v19  ;;  %v5535_v24 = vsel %vm5534_vm4, %v9782_v49, %v5531_v62  ;;  %v5524_v23 = vor.u32 1.1754944e-38, %v5523_v36  ;;  %vm5066_vm1 = vmor %vm5064_vm15, %vm5065_vm12 }
 0xd4c   : > { %v5558_v58 = vmul.f32 %v14995_v20, %v14982_v55  ;;  %v5060_v11 = vmul.f32 %v14989_v52, %v5059_v34  ;;  %v15006_v48 = vsel %vm5537_vm6, %v5539_v29, %v5535_v24  ;;  %v15027_v24 = vadd.f32 1e-05, %v4938_v10 }
 0xd4d   : > { %v5515_v16 = vmul.f32 %v9784_v43, %v5514_v46  ;;  %v5070_v49 = vmul.f32 %v14991_v22, %v5069_v3  ;;  %v5993_v4 = vmul.f32 1.0614054, %v15006_v48  ;;  %vm5563_vm10 = vweird.f32 %v14995_v20 }
 0xd4e   : > { %v5559_v8 = vsub.f32 1.0, %v5558_v58  ;;  %v5061_v33 = vmul.f32 0.5, %v5060_v11  ;;  %v5568_v29 = vand.u32 2147483648, %v14982_v55  ;;  %v5421_v36 = vand.u32 2147483647, %v15024_v26  ;;  %vm15038_vm13 = vmor %vm5562_vm11, %vm5563_vm10 }
 0xd4f   : > { %v5516_v56 = vadd.f32 %v9784_v43, %v5515_v16  ;;  %v5071_v12 = vmul.f32 0.5, %v5070_v49  ;;  %v8860_v16 = vadd.f32 -1.4531521, %v5993_v4  ;;  %v5566_v11 = vand.u32 2147483647, %v14982_v55 }
 0xd50   : > { %v15014_v21 = vpop.eup %9791  ;;  %v5560_v62 = vmul.f32 %v14995_v20, %v5559_v8  ;;  %v5062_v50 = vsub.f32 1.5, %v5061_v33  ;;  %vm5075_vm14 = vweird.f32 %v14991_v22  ;;  %9793 = vrsqrt.f32 %v15027_v24 }
 0xd51   : > { %v5520_v37 = vsel %vm5519_vm8, %v9784_v43, %v5516_v56  ;;  %v5543_v43 = vmul.f32 %v15014_v21, %v14993_v2  ;;  %v5072_v3 = vsub.f32 1.5, %v5071_v12  ;;  %v6057_v51 = vmul.f32 %v8860_v16, %v15006_v48  ;;  %vm5076_vm4 = vmor %vm5074_vm2, %vm5075_vm14 }
 0xd52   : > { %v15017_v46 = vsel %vm5522_vm9, %v5524_v23, %v5520_v37  ;;  %v5561_v58 = vadd.f32 %v14995_v20, %v5560_v62  ;;  %v5063_v30 = vmul.f32 %v14989_v52, %v5062_v50  ;;  %v5569_v55 = vor.u32 1.1754944e-38, %v5568_v29  ;;  %v4919_v23 = vpop.xlane.xlu0 %4918 }
 0xd53   : > { %v5992_v34 = vmul.f32 1.0614054, %v15017_v46  ;;  %v5544_v56 = vsub.f32 1.0, %v5543_v43  ;;  %v5073_v37 = vmul.f32 %v14991_v22, %v5072_v3  ;;  %v5453_v33 = vmul.f32 0.3275911, %v5421_v36 }
 0xd54   : > { %v5565_v40 = vsel %vm15038_vm13, %v14995_v20, %v5561_v58  ;;  %v6089_v12 = vadd.f32 1.4214138, %v6057_v51  ;;  %vm5567_vm3 = vcmp.eq.f32.partialorder %v5566_v11, 8.507059e+37  ;;  %v5067_v10 = vsel %vm5066_vm1, %v14989_v52, %v5063_v30  ;;  %v5268_v51 = vpop.f32.mrf.mxu2 }
 0xd55   : > { %v8859_v49 = vadd.f32 -1.4531521, %v5992_v34  ;;  %v5545_v4 = vmul.f32 %v15014_v21, %v5544_v56  ;;  %v15053_v43 = vsel %vm5567_vm3, %v5569_v55, %v5565_v40  ;;  %v5077_v20 = vsel %vm5076_vm4, %v14991_v22, %v5073_v37  ;;  %v5319_v55 = vpop.f32.mrf.mxu1 }
 0xd56   : > { %v4939_v41 = vmul.f32 %v4919_v23, %v14635_v6  ;;  %v6281_v16 = vsub.f32 0.0, %v14936_v47  ;;  %vm5548_vm5 = vweird.f32 %v15014_v21  ;;  %v15060_v19 = vadd.f32 1.0, %v5453_v33  ;;  %v15062_v34 = vpop.eup %9793 }
 0xd57   : > { %v6056_v62 = vmul.f32 %v8859_v49, %v15017_v46  ;;  %v5546_v50 = vadd.f32 %v15014_v21, %v5545_v4  ;;  %v5128_v52 = vmul.f32 %v5067_v10, %v14833_v28  ;;  %v6121_v3 = vmul.f32 %v6089_v12, %v15006_v48 }
 0xd58   : > { %v5995_v58 = vmul.f32 1.0614054, %v15053_v43  ;;  %v5553_v22 = vand.u32 2147483648, %v14993_v2  ;;  %v5129_v29 = vmul.f32 %v5077_v20, %v14847_v7  ;;  %vm5547_vm6 = vweird.f32 %v14993_v2 }
 0xd59   : > { %v6088_v56 = vadd.f32 1.4214138, %v6056_v62  ;;  %v5551_v36 = vand.u32 2147483647, %v14993_v2  ;;  %vm15071_vm7 = vmor %vm5547_vm6, %vm5548_vm5  ;;  %v15075_v30 = vadd.f32 1e-05, %v4939_v41  ;;  %v6313_v28 = vmul.f32 %v6281_v16, %v14936_v47 }
 0xd5a   : > { %v5079_v49 = vmul.f32 %v15062_v34, %v15027_v24  ;;  %v5550_v7 = vsel %vm15071_vm7, %v15014_v21, %v5546_v50  ;;  %9795 = vrcp.f32 %v15060_v19  ;;  %v8892_v8 = vadd.f32 -0.28449672, %v6121_v3 }
 0xd5b   : > { %v8862_v2 = vadd.f32 -1.4531521, %v5995_v58  ;;  %v5554_v37 = vor.u32 1.1754944e-38, %v5553_v22  ;;  %v15085_v40 = vadd.f32 %v5268_v51, %v14933_v17  ;;  %v6120_v4 = vmul.f32 %v6088_v56, %v15017_v46 }
 0xd5c   : > { %vm5552_vm8 = vcmp.eq.f32.partialorder %v5551_v36, 8.507059e+37  ;;  %v5145_v23 = vmul.f32 %v14806_v57, %v5128_v52  ;;  %v5146_v33 = vmul.f32 %v14806_v57, %v5129_v29  ;;  %v6280_v12 = vsub.f32 0.0, %v14944_v35 }
 0xd5d   : > { %v15091_v10 = vsel %vm5552_vm8, %v5554_v37, %v5550_v7  ;;  %9797 = vrsqrt.f32 %v15075_v30  ;;  %v5080_v21 = vmul.f32 %v15062_v34, %v5079_v49  ;;  %v6185_v62 = vmul.f32 %v8892_v8, %v15006_v48 }
 0xd5e   : > { %v6346_v20 = vmul.f32 1.442695, %v6313_v28  ;;  %v6059_v41 = vmul.f32 %v8862_v2, %v15053_v43  ;;  %v15098_v16 = vmul.f32 0.70710677, %v15085_v40  ;;  %v8891_v52 = vadd.f32 -0.28449672, %v6120_v4  ;;  %v5270_v2 = vpop.f32.mrf.mxu2 }
 0xd5f   : > { %v5994_v3 = vmul.f32 1.0614054, %v15091_v10  ;;  %v15104_v58 = vadd.f32 %v14818_v42, %v5145_v23  ;;  %v15107_v22 = vadd.f32 %v14818_v42, %v5146_v33  ;;  %v6312_v29 = vmul.f32 %v6280_v12, %v14944_v35 }
 0xd60   : > { %v15100_v50 = vpop.eup %9795  ;;  %v6283_v56 = vsub.f32 0.0, %v14960_v44  ;;  %v15112_v36 = vadd.f32 %v5319_v55, %v14928_v61  ;;  %v5081_v51 = vmul.f32 0.5, %v5080_v21  ;;  %v6217_v49 = vadd.f32 0.2548296, %v6185_v62  ;;  %v5322_v62 = vpop.f32.mrf.mxu1 }
 0xd61   : > { %17778 = vst [vmem:[#allocation52_spill] sm:$0xff] %v15104_v58  ;;  %v5173_v11 = vpack.c.bf16 %v15107_v22, %v15104_v58  ;;  %v6091_v7 = vadd.f32 1.4214138, %v6059_v41  ;;  %v5588_v8 = vmul.f32 %v15100_v50, %v15060_v19  ;;  %9799 = vpow2.f32 %v6346_v20 }
 0xd62   : > { %17779 = vst [vmem:[#allocation13_spill] sm:$0xff] %v15107_v22  ;;  %v6184_v37 = vmul.f32 %v8891_v52, %v15017_v46  ;;  %v8861_v4 = vadd.f32 -1.4531521, %v5994_v3  ;;  %v5420_v23 = vand.u32 2147483647, %v15098_v16  ;;  %v6315_v33 = vmul.f32 %v6283_v56, %v14960_v44 }
 0xd63   : > { %v15116_v28 = vpop.eup %9797  ;;  %8848 = vmatmul.msk.bf16.gmra.mxu2 %vm754_vm0, %v5173_v11  ;;  %8856 = vmatmul.msk.bf16.gmra.mxu1 %vm754_vm0, %v5173_v11  ;;  %v6344_v55 = vmul.f32 1.442695, %v6312_v29  ;;  %v6282_v12 = vsub.f32 0.0, %v14976_v9  ;;  %v15127_v21 = vmul.f32 0.70710677, %v15112_v36  ;;  %v5082_v41 = vsub.f32 1.5, %v5081_v51 }
 0xd64   : > { %v5089_v20 = vmul.f32 %v15116_v28, %v15075_v30  ;;  %v15132_v52 = vadd.f32 %v5270_v2, %v14933_v17  ;;  %v15135_v3 = vmul.f32 0.5, %v14931_v54  ;;  %v6249_v29 = vmul.f32 %v6217_v49, %v15006_v48 }
 0xd65   : > { %v6123_v56 = vmul.f32 %v6091_v7, %v15053_v43  ;;  %v5589_v11 = vsub.f32 1.0, %v5588_v8  ;;  %v15140_v22 = vmul.f32 0.5, %v14939_v27  ;;  %v6216_v58 = vadd.f32 0.2548296, %v6184_v37 }
 0xd66   : > { %v6058_v51 = vmul.f32 %v8861_v4, %v15091_v10  ;;  %v5452_v53 = vmul.f32 0.3275911, %v5420_v23  ;;  %9801 = vpow2.f32 %v6344_v55  ;;  %v6350_v15 = vmul.f32 1.442695, %v6315_v33 }
 0xd67   : > { %v6314_v2 = vmul.f32 %v6282_v12, %v14976_v9  ;;  %v5423_v5 = vand.u32 2147483647, %v15127_v21  ;;  %v9800_v54 = vpop.eup %9799  ;;  %v5083_v13 = vmul.f32 %v15062_v34, %v5082_v41  ;;  %vm5085_vm9 = vweird.f32 %v15062_v34 }
 0xd68   : > { %v5090_v48 = vmul.f32 %v15116_v28, %v5089_v20  ;;  %v15149_v27 = vmul.f32 0.70710677, %v15132_v52  ;;  %v15151_v49 = vmul.f32 %v9800_v54, %v6249_v29  ;;  %vm5084_vm10 = vweird.f32 %v15027_v24  ;;  %v5273_v20 = vpop.f32.mrf.mxu2 }
 0xd69   : > { %v8894_v7 = vadd.f32 -0.28449672, %v6123_v56  ;;  %v5590_v8 = vmul.f32 %v15100_v50, %v5589_v11  ;;  %v6248_v37 = vmul.f32 %v6216_v58, %v15017_v46  ;;  %v15157_v4 = vmul.f32 0.5, %v14951_v39  ;;  %vm15161_vm11 = vmor %vm5084_vm10, %vm5085_vm9 }
 0xd6a   : > { %v6090_v23 = vadd.f32 1.4214138, %v6058_v51  ;;  %v15159_v55 = vadd.f32 1.0, %v5452_v53  ;;  %9803 = vpow2.f32 %v6350_v15  ;;  %v15166_v12 = vmul.f32 0.5, %v14971_v45 }
 0xd6b   : > { %v6348_v24 = vmul.f32 1.442695, %v6314_v2  ;;  %v5455_v41 = vmul.f32 0.3275911, %v5423_v5  ;;  %v5087_v46 = vsel %vm15161_vm11, %v15062_v34, %v5083_v13  ;;  %v5091_v58 = vmul.f32 0.5, %v5090_v48  ;;  %v5324_v5 = vpop.f32.mrf.mxu1 }
 0xd6c   : > { %v5598_v39 = vand.u32 2147483648, %v15060_v19  ;;  %v5422_v53 = vand.u32 2147483647, %v15149_v27  ;;  %v9802_v29 = vpop.eup %9801  ;;  %v6441_v56 = vsub.f32 1.0, %v15151_v49  ;;  %vm6473_vm12 = vcmp.ge.f32.partialorder %v14936_v47, 0.0 }
 0xd6d   : > { %v6187_v15 = vmul.f32 %v8894_v7, %v15053_v43  ;;  %v5591_v45 = vadd.f32 %v15100_v50, %v5590_v8  ;;  %vm5593_vm13 = vweird.f32 %v15100_v50  ;;  %v6408_v11 = vmul.f32 %v9802_v29, %v6248_v37 }
 0xd6e   : > { %v6122_v13 = vmul.f32 %v6090_v23, %v15091_v10  ;;  %9805 = vrcp.f32 %v15159_v55  ;;  %v15181_v34 = vadd.f32 %v5322_v62, %v14928_v61  ;;  %vm5592_vm14 = vweird.f32 %v15060_v19 }
 0xd6f   : > { %v5596_v51 = vand.u32 2147483647, %v15060_v19  ;;  %v15185_v2 = vadd.f32 1.0, %v5455_v41  ;;  %v15188_v54 = vadd.f32 %v5273_v20, %v14933_v17  ;;  %9807 = vpow2.f32 %v6348_v24  ;;  %vm15190_vm15 = vmor %vm5592_vm14, %vm5593_vm13 }
 0xd70   : > { %v6285_v49 = vsub.f32 0.0, %v15024_v26  ;;  %v5454_v7 = vmul.f32 0.3275911, %v5422_v53  ;;  %v15196_v62 = vadd.f32 %v5324_v5, %v14928_v61  ;;  %v9804_v8 = vpop.eup %9803  ;;  %vm6472_vm1 = vcmp.ge.f32.partialorder %v14944_v35, 0.0 }
 0xd71   : > { %v6219_v19 = vadd.f32 0.2548296, %v6187_v15  ;;  %v5092_v37 = vsub.f32 1.5, %v5091_v58  ;;  %v5595_v23 = vsel %vm15190_vm15, %v15100_v50, %v5591_v45  ;;  %v5599_v33 = vor.u32 1.1754944e-38, %v5598_v39 }
 0xd72   : > { %17784 = vst [vmem:[#allocation12_spill] sm:$0xff] %v15196_v62  ;;  %v6505_v24 = vsub.f32 0.0, %v6441_v56  ;;  %v6440_v41 = vsub.f32 1.0, %v6408_v11  ;;  %v8893_v20 = vadd.f32 -0.28449672, %v6122_v13  ;;  %v15206_v53 = vmul.f32 %v5087_v46, %v14857_v25  ;;  %v4922_v11 = vpop.xlane.xlu1 %4921 }
 0xd73   : > { %v15203_v29 = vmul.f32 0.70710677, %v15181_v34  ;;  %vm5597_vm2 = vcmp.eq.f32.partialorder %v5596_v51, 8.507059e+37  ;;  %9809 = vrcp.f32 %v15185_v2  ;;  %v15210_v15 = vmul.f32 0.70710677, %v15188_v54 }
 0xd74   : > { %v15212_v58 = vpop.eup %9805  ;;  %v15214_v5 = vsel %vm5597_vm2, %v5599_v33, %v5595_v23  ;;  %v6317_v50 = vmul.f32 %v6285_v49, %v15024_v26  ;;  %v15217_v39 = vadd.f32 1.0, %v5454_v7  ;;  %v15220_v45 = vmul.f32 0.70710677, %v15196_v62 }
 0xd75   : > { %v6251_v25 = vmul.f32 %v6219_v19, %v15053_v43  ;;  %v5093_v46 = vmul.f32 %v15116_v28, %v5092_v37  ;;  %vm5094_vm3 = vweird.f32 %v15075_v30  ;;  %vm5095_vm4 = vweird.f32 %v15116_v28  ;;  %v9808_v13 = vpop.eup %9807 }
 0xd76   : > { %v6537_v51 = vsel %vm6473_vm12, %v6441_v56, %v6505_v24  ;;  %v6504_v48 = vsub.f32 0.0, %v6440_v41  ;;  %v6186_v49 = vmul.f32 %v8893_v20, %v15091_v10  ;;  %v5425_v7 = vand.u32 2147483647, %v15203_v29  ;;  %vm15237_vm5 = vmor %vm5094_vm3, %vm5095_vm4 }
 0xd77   : > { %v15231_v23 = vmul.f32 0.5, %v15012_v14  ;;  %v5997_v43 = vmul.f32 1.0614054, %v15214_v5  ;;  %v5573_v30 = vmul.f32 %v15212_v58, %v15159_v55  ;;  %v5424_v19 = vand.u32 2147483647, %v15210_v15  ;;  %v5275_v14 = vpop.f32.mrf.mxu2 }
 0xd78   : > { %v6354_v47 = vmul.f32 1.442695, %v6317_v50  ;;  %v4940_v56 = vmul.f32 %v4922_v11, %v14635_v6  ;;  %9811 = vrcp.f32 %v15217_v39  ;;  %v5427_v33 = vand.u32 2147483647, %v15220_v45 }
 0xd79   : > { %17785 = vst [vmem:[#allocation60_spill] sm:$0xff] %v15231_v23  ;;  %v15244_v24 = vpop.eup %9809  ;;  %v6569_v20 = vadd.f32 1.0, %v6537_v51  ;;  %v6411_v32 = vmul.f32 %v9804_v8, %v6251_v25  ;;  %v5097_v38 = vsel %vm15237_vm5, %v15116_v28, %v5093_v46  ;;  %v6284_v63 = vsub.f32 0.0, %v15098_v16 }
 0xd7a   : > { %v6536_v50 = vsel %vm6472_vm1, %v6440_v41, %v6504_v48  ;;  %v6218_v0 = vadd.f32 0.2548296, %v6186_v49  ;;  %v15253_v11 = vmul.f32 0.5, %v15085_v40  ;;  %v5457_v59 = vmul.f32 0.3275911, %v5425_v7 }
 0xd7b   : > { %v8864_v1 = vadd.f32 -1.4531521, %v5997_v43  ;;  %v5574_v62 = vsub.f32 1.0, %v5573_v30  ;;  %v5456_v23 = vmul.f32 0.3275911, %v5424_v19  ;;  %v15256_v51 = vadd.f32 %v5275_v14, %v14933_v17 }
 0xd7c   : > { %v5131_v8 = vmul.f32 %v5097_v38, %v14875_v31  ;;  %9813 = vpow2.f32 %v6354_v47  ;;  %v5618_v28 = vmul.f32 %v15244_v24, %v15185_v2  ;;  %v5459_v25 = vmul.f32 0.3275911, %v5427_v33 }
 0xd7d   : > { %17788 = vst [vmem:[#allocation21_spill] sm:$0xff] %v15256_v51  ;;  %v15262_v35 = vmul.f32 %v6569_v20, %v15135_v3  ;;  %v6443_v41 = vsub.f32 1.0, %v6411_v32  ;;  %vm6475_vm6 = vcmp.ge.f32.partialorder %v14960_v44, 0.0  ;;  %v6316_v40 = vmul.f32 %v6284_v63, %v15098_v16 }
 0xd7e   : > { %v15266_v46 = vadd.f32 1e-05, %v4940_v56  ;;  %v15268_v48 = vpop.eup %9811  ;;  %v6568_v49 = vadd.f32 1.0, %v6536_v50  ;;  %v6250_v31 = vmul.f32 %v6218_v0, %v15091_v10  ;;  %v5581_v38 = vand.u32 2147483647, %v15159_v55 }
 0xd7f   : > { %v15272_v7 = vadd.f32 1.0, %v5457_v59  ;;  %v6061_v43 = vmul.f32 %v8864_v1, %v15214_v5  ;;  %v5575_v3 = vmul.f32 %v15212_v58, %v5574_v62  ;;  %v15276_v32 = vadd.f32 1.0, %v5456_v23 }
 0xd80   : > { %v15279_v30 = vmul.f32 0.70710677, %v15256_v51  ;;  %v5583_v63 = vand.u32 2147483648, %v15159_v55  ;;  %v5619_v19 = vsub.f32 1.0, %v5618_v28  ;;  %v15282_v37 = vadd.f32 1.0, %v5459_v25 }
 0xd81   : > { %v5147_v0 = vmul.f32 %v14806_v57, %v15206_v53  ;;  %v6507_v10 = vsub.f32 0.0, %v6443_v41  ;;  %9815 = vrsqrt.f32 %v15266_v46  ;;  %v6287_v1 = vsub.f32 0.0, %v15127_v21 }
 0xd82   : > { %v5603_v59 = vmul.f32 %v15268_v48, %v15217_v39  ;;  %v15290_v62 = vpop.eup %9813  ;;  %v15292_v23 = vmul.f32 %v9808_v13, %v6250_v31  ;;  %vm5578_vm7 = vweird.f32 %v15212_v58  ;;  %9817 = vrcp.f32 %v15272_v7 }
 0xd83   : > { %v5148_v47 = vmul.f32 %v14806_v57, %v5131_v8  ;;  %v6093_v56 = vadd.f32 1.4214138, %v6061_v43  ;;  %v5576_v53 = vadd.f32 %v15212_v58, %v5575_v3  ;;  %9819 = vrcp.f32 %v15276_v32 }
 0xd84   : > { %v5426_v33 = vand.u32 2147483647, %v15279_v30  ;;  %v5620_v14 = vmul.f32 %v15244_v24, %v5619_v19  ;;  %9821 = vrcp.f32 %v15282_v37  ;;  %v15303_v13 = vadd.f32 %v14818_v42, %v5147_v0 }
 0xd85   : > { %v15306_v20 = vadd.f32 %v14818_v42, %v5148_v47  ;;  %v15309_v50 = vmul.f32 %v6568_v49, %v15140_v22  ;;  %vm5577_vm8 = vweird.f32 %v15159_v55  ;;  %v6352_v8 = vmul.f32 1.442695, %v6316_v40 }
 0xd86   : > { %17789 = vst [vmem:[#allocation20_spill] sm:$0xff] %v15303_v13  ;;  %v5604_v28 = vsub.f32 1.0, %v5603_v59  ;;  %v6539_v25 = vsel %vm6475_vm6, %v6443_v41, %v6507_v10  ;;  %vm15316_vm9 = vmor %vm5577_vm8, %vm5578_vm7  ;;  %vm15320_vm10 = vcmp.eq.f32.partialorder %v5581_v38, 8.507059e+37  ;;  %v5584_v3 = vor.u32 1.1754944e-38, %v5583_v63 }
 0xd87   : > { %17790 = vst [vmem:[#allocation29_spill] sm:$0xff] %v15306_v20  ;;  %v5174_v22 = vpack.c.bf16 %v15306_v20, %v15303_v13  ;;  %v15326_v55 = vpop.eup %9815  ;;  %v6442_v40 = vsub.f32 1.0, %v15292_v23  ;;  %vm6474_vm11 = vcmp.ge.f32.partialorder %v14976_v9, 0.0  ;;  %v5580_v44 = vsel %vm15316_vm9, %v15212_v58, %v5576_v53 }
 0xd88   : > { %v6319_v41 = vmul.f32 %v6287_v1, %v15127_v21  ;;  %v5458_v49 = vmul.f32 0.3275911, %v5426_v33  ;;  %v15334_v38 = vpop.eup %9817  ;;  %v6125_v63 = vmul.f32 %v6093_v56, %v15214_v5  ;;  %v5621_v19 = vadd.f32 %v15244_v24, %v5620_v14 }
 0xd89   : > { %vm5623_vm12 = vweird.f32 %v15244_v24  ;;  %v5628_v0 = vand.u32 2147483648, %v15185_v2  ;;  %8849 = vmatmul.msk.bf16.gmra.mxu2 %vm754_vm0, %v5174_v22  ;;  %8857 = vmatmul.msk.bf16.gmra.mxu1 %vm754_vm0, %v5174_v22  ;;  %v15342_v10 = vpop.eup %9819  ;;  %v6571_v58 = vadd.f32 1.0, %v6539_v25  ;;  %9823 = vpow2.f32 %v6352_v8  ;;  %v9189_v22 = vld [vmem:[%s17423_s8 + $0x78] sm:$0xff] }
 0xd8a   : > { %v15345_v1 = vmul.f32 0.5, %v15112_v36  ;;  %v5605_v59 = vmul.f32 %v15268_v48, %v5604_v28  ;;  %v15348_v23 = vpop.eup %9821  ;;  %v15352_v47 = vsel %vm15320_vm10, %v5584_v3, %v5580_v44  ;;  %v5099_v56 = vmul.f32 %v15326_v55, %v15266_v46  ;;  %v9181_v3 = vld [vmem:[%s17423_s8 + $0x38] sm:$0xff]  ;;  %6826 = vmatpush.bf16.msrb.mxu1 %v9189_v22 }
 0xd8b   : > { %vm5622_vm13 = vweird.f32 %v15185_v2  ;;  %v5626_v53 = vand.u32 2147483647, %v15185_v2  ;;  %v6506_v33 = vsub.f32 0.0, %v6442_v40  ;;  %v6358_v14 = vmul.f32 1.442695, %v6319_v41  ;;  %6777 = vmatpush.bf16.msra.mxu2 %v9181_v3 }
 0xd8c   : > { %vm15360_vm14 = vmor %vm5622_vm13, %vm5623_vm12  ;;  %v5648_v8 = vmul.f32 %v15334_v38, %v15272_v7  ;;  %v15366_v28 = vadd.f32 1.0, %v5458_v49  ;;  %v8896_v25 = vadd.f32 -0.28449672, %v6125_v63  ;;  %v5629_v43 = vor.u32 1.1754944e-38, %v5628_v0 }
 0xd8d   : > { %v5625_v31 = vsel %vm15360_vm14, %v15244_v24, %v5621_v19  ;;  %v5633_v2 = vmul.f32 %v15342_v10, %v15276_v32  ;;  %v5996_v41 = vmul.f32 1.0614054, %v15352_v47  ;;  %v5606_v49 = vadd.f32 %v15268_v48, %v5605_v59 }
 0xd8e   : > { %vm5608_vm15 = vweird.f32 %v15268_v48  ;;  %v5678_v24 = vmul.f32 %v15348_v23, %v15282_v37  ;;  %vm5627_vm1 = vcmp.eq.f32.partialorder %v5626_v53, 8.507059e+37  ;;  %vm5607_vm2 = vweird.f32 %v15217_v39 }
 0xd8f   : > { %v5613_v63 = vand.u32 2147483648, %v15217_v39  ;;  %v15389_v0 = vpop.eup %9823  ;;  %v15391_v36 = vsel %vm5627_vm1, %v5629_v43, %v5625_v31  ;;  %v5611_v59 = vand.u32 2147483647, %v15217_v39  ;;  %v5649_v20 = vsub.f32 1.0, %v5648_v8  ;;  %vm15400_vm3 = vmor %vm5607_vm2, %vm5608_vm15 }
 0xd90   : > { %9825 = vrcp.f32 %v15366_v28  ;;  %v6538_v53 = vsel %vm6474_vm11, %v6442_v40, %v6506_v33  ;;  %v5100_v13 = vmul.f32 %v15326_v55, %v5099_v56  ;;  %v5634_v22 = vsub.f32 1.0, %v5633_v2 }
 0xd91   : > { %v6189_v39 = vmul.f32 %v8896_v25, %v15214_v5  ;;  %v8863_v8 = vadd.f32 -1.4531521, %v5996_v41  ;;  %v5610_v9 = vsel %vm15400_vm3, %v15268_v48, %v5606_v49  ;;  %v5679_v40 = vsub.f32 1.0, %v5678_v24 }
 0xd92   : > { %v15412_v56 = vmul.f32 %v6571_v58, %v15157_v4  ;;  %v5999_v33 = vmul.f32 1.0614054, %v15391_v36  ;;  %v5614_v43 = vor.u32 1.1754944e-38, %v5613_v63  ;;  %v15416_v2 = vadd.f32 1.0, %v6538_v53 }
 0xd93   : > { %vm5612_vm4 = vcmp.eq.f32.partialorder %v5611_v59, 8.507059e+37  ;;  %v5650_v25 = vmul.f32 %v15334_v38, %v5649_v20  ;;  %v15422_v41 = vmul.f32 0.5, %v5100_v13  ;;  %v5635_v4 = vmul.f32 %v15342_v10, %v5634_v22 }
 0xd94   : > { %v15424_v48 = vsel %vm5612_vm4, %v5614_v43, %v5610_v9  ;;  %v6221_v24 = vadd.f32 0.2548296, %v6189_v39  ;;  %v6060_v63 = vmul.f32 %v8863_v8, %v15352_v47  ;;  %9827 = vpow2.f32 %v6358_v14 }
 0xd95   : > { %v5680_v53 = vmul.f32 %v15348_v23, %v5679_v40  ;;  %vm5652_vm5 = vweird.f32 %v15272_v7  ;;  %v5656_v20 = vand.u32 2147483647, %v15272_v7  ;;  %v5998_v3 = vmul.f32 1.0614054, %v15424_v48 }
 0xd96   : > { %v15427_v49 = vpop.eup %9825  ;;  %v5651_v22 = vadd.f32 %v15334_v38, %v5650_v25  ;;  %vm5653_vm6 = vweird.f32 %v15334_v38  ;;  %v5658_v39 = vand.u32 2147483648, %v15272_v7  ;;  %v5636_v14 = vadd.f32 %v15342_v10, %v5635_v4 }
 0xd97   : > { %vm5638_vm7 = vweird.f32 %v15342_v10  ;;  %v5663_v8 = vmul.f32 %v15427_v49, %v15366_v28  ;;  %v5643_v9 = vand.u32 2147483648, %v15276_v32  ;;  %v5681_v40 = vadd.f32 %v15348_v23, %v5680_v53  ;;  %vm15450_vm9 = vmor %vm5652_vm5, %vm5653_vm6 }
 0xd98   : > { %vm5683_vm8 = vweird.f32 %v15348_v23  ;;  %v6092_v43 = vadd.f32 1.4214138, %v6060_v63  ;;  %vm5637_vm10 = vweird.f32 %v15276_v32  ;;  %v5641_v25 = vand.u32 2147483647, %v15276_v32 }
 0xd99   : > { %v5688_v4 = vand.u32 2147483648, %v15282_v37  ;;  %v5655_v63 = vsel %vm15450_vm9, %v15334_v38, %v5651_v22  ;;  %vm15465_vm11 = vmor %vm5637_vm10, %vm5638_vm7  ;;  %vm5682_vm12 = vweird.f32 %v15282_v37  ;;  %v5686_v32 = vand.u32 2147483647, %v15282_v37 }
 0xd9a   : > { %vm15476_vm13 = vmor %vm5682_vm12, %vm5683_vm8  ;;  %v5664_v22 = vsub.f32 1.0, %v5663_v8  ;;  %vm5657_vm14 = vcmp.eq.f32.partialorder %v5656_v20, 8.507059e+37  ;;  %vm5642_vm15 = vcmp.eq.f32.partialorder %v5641_v25, 8.507059e+37  ;;  %v6124_v7 = vmul.f32 %v6092_v43, %v15352_v47 }
 0xd9b   : > { %v4925_v13 = vpop.xlane.xlu2 %4924  ;;  %vm5687_vm1 = vcmp.eq.f32.partialorder %v5686_v32, 8.507059e+37  ;;  %vm5105_vm2 = vweird.f32 %v15326_v55  ;;  %vm5104_vm3 = vweird.f32 %v15266_v46  ;;  %vm5668_vm4 = vweird.f32 %v15427_v49 }
 0xd9c   : > { %v5671_v38 = vand.u32 2147483647, %v15366_v28  ;;  %vm5667_vm5 = vweird.f32 %v15366_v28  ;;  %vm6477_vm9 = vcmp.ge.f32.partialorder %v15024_v26, 0.0  ;;  %vm15569_vm10 = vmor %vm5104_vm3, %vm5105_vm2  ;;  %vm6476_vm3 = vcmp.ge.f32.partialorder %v15098_v16, 0.0 }
 0xd9d   : > { %vm15541_vm6 = vmor %vm5667_vm5, %vm5668_vm4  ;;  %vm6479_vm4 = vcmp.ge.f32.partialorder %v15127_v21, 0.0 }
 0xd9e   : > { %vm5672_vm7 = vcmp.eq.f32.partialorder %v5671_v38, 8.507059e+37 }
 0xdac   : > { %v5327_v44 = vpop.f32.mrf.mxu1 }
 0xdad   : > { %v15387_v19 = vadd.f32 %v5327_v44, %v14928_v61 }
 0xdaf   : > { %17797 = vst [vmem:[#allocation28_spill] sm:$0xff] %v15387_v19  ;;  %v15405_v31 = vmul.f32 0.70710677, %v15387_v19  ;;  %v15419_v19 = vmul.f32 0.5, %v15132_v52  ;;  %v8866_v52 = vadd.f32 -1.4531521, %v5999_v33  ;;  %v4941_v33 = vmul.f32 %v4925_v13, %v14635_v6 }
 0xdb0   : > { %v8865_v13 = vadd.f32 -1.4531521, %v5998_v3  ;;  %v5659_v6 = vor.u32 1.1754944e-38, %v5658_v39  ;;  %v6253_v39 = vmul.f32 %v6221_v24, %v15214_v5  ;;  %v15506_v24 = vmul.f32 %v15416_v2, %v15166_v12  ;;  %v9180_v2 = vld [vmem:[%s17423_s8 + $0x30] sm:$0xff] }
 0xdb1   : > { %v5429_v44 = vand.u32 2147483647, %v15405_v31  ;;  %17800 = vst [vmem:[#allocation37_spill] sm:$0xff] %v15419_v19  ;;  %v6063_v53 = vmul.f32 %v8866_v52, %v15391_v36  ;;  %v5640_v52 = vsel %vm15465_vm11, %v15342_v10, %v5636_v14  ;;  %v5685_v19 = vsel %vm15476_vm13, %v15348_v23, %v5681_v40  ;;  %6778 = vmatpush.bf16.msra.mxu2 %v9180_v2 }
 0xdb2   : > { %v15483_v37 = vadd.f32 1e-05, %v4941_v33  ;;  %v15488_v10 = vsel %vm5657_vm14, %v5659_v6, %v5655_v63  ;;  %v5689_v14 = vor.u32 1.1754944e-38, %v5688_v4  ;;  %v6062_v23 = vmul.f32 %v8865_v13, %v15424_v48 }
 0xdb3   : > { %v5461_v58 = vmul.f32 0.3275911, %v5429_v44  ;;  %v5644_v44 = vor.u32 1.1754944e-38, %v5643_v9  ;;  %v6095_v8 = vadd.f32 1.4214138, %v6063_v53  ;;  %v5665_v40 = vmul.f32 %v15427_v49, %v5664_v22 }
 0xdb4   : > { %v15496_v9 = vsel %vm5687_vm1, %v5689_v14, %v5685_v19  ;;  %v6001_v5 = vmul.f32 1.0614054, %v15488_v10  ;;  %v5102_v33 = vsub.f32 1.5, %v15422_v41  ;;  %v15511_v25 = vmul.f32 %v15290_v62, %v6253_v39  ;;  %v9188_v62 = vld [vmem:[%s17423_s8 + $0x70] sm:$0xff]  ;;  %v5278_v41 = vpop.f32.mrf.mxu2 }
 0xdb5   : > { %v15433_v59 = vadd.f32 1.0, %v5461_v58  ;;  %v15457_v58 = vpop.eup %9827  ;;  %v15491_v51 = vsel %vm5642_vm15, %v5644_v44, %v5640_v52  ;;  %v8895_v4 = vadd.f32 -0.28449672, %v6124_v7  ;;  %v6286_v53 = vsub.f32 0.0, %v15149_v27  ;;  %6827 = vmatpush.bf16.msrb.mxu1 %v9188_v62 }
 0xdb6   : > { %v6000_v19 = vmul.f32 1.0614054, %v15491_v51  ;;  %v6003_v63 = vmul.f32 1.0614054, %v15496_v9  ;;  %v6127_v32 = vmul.f32 %v6095_v8, %v15391_v36  ;;  %v6094_v13 = vadd.f32 1.4214138, %v6062_v23 }
 0xdb7   : > { %9829 = vrcp.f32 %v15433_v59  ;;  %v5666_v12 = vadd.f32 %v15427_v49, %v5665_v40  ;;  %v8868_v52 = vadd.f32 -1.4531521, %v6001_v5  ;;  %v5673_v22 = vand.u32 2147483648, %v15366_v28 }
 0xdb8   : > { %9831 = vrsqrt.f32 %v15483_v37  ;;  %v15528_v44 = vadd.f32 %v5278_v41, %v14933_v17  ;;  %v15531_v39 = vmul.f32 %v15326_v55, %v5102_v33  ;;  %v8867_v14 = vadd.f32 -1.4531521, %v6000_v19 }
 0xdb9   : > { %v6445_v8 = vsub.f32 1.0, %v15511_v25  ;;  %v6318_v23 = vmul.f32 %v6286_v53, %v15149_v27  ;;  %v8870_v40 = vadd.f32 -1.4531521, %v6003_v63  ;;  %v6188_v28 = vmul.f32 %v8895_v4, %v15352_v47 }
 0xdba   : > { %17807 = vst [vmem:[#allocation36_spill] sm:$0xff] %v15528_v44  ;;  %v15546_v33 = vmul.f32 0.70710677, %v15528_v44  ;;  %v8898_v19 = vadd.f32 -0.28449672, %v6127_v32  ;;  %v5670_v25 = vsel %vm15541_vm6, %v15427_v49, %v5666_v12  ;;  %v6065_v53 = vmul.f32 %v8868_v52, %v15488_v10 }
 0xdbb   : > { %v5674_v63 = vor.u32 1.1754944e-38, %v5673_v22  ;;  %v6064_v62 = vmul.f32 %v8867_v14, %v15491_v51  ;;  %v6067_v32 = vmul.f32 %v8870_v40, %v15496_v9  ;;  %v6220_v52 = vadd.f32 0.2548296, %v6188_v28 }
 0xdbc   : > { %v5428_v2 = vand.u32 2147483647, %v15546_v33  ;;  %v6289_v22 = vsub.f32 0.0, %v15203_v29  ;;  %vm5712_vm11 = vweird.f32 %v15433_v59  ;;  %v5716_v14 = vand.u32 2147483647, %v15433_v59 }
 0xdbd   : > { %v15485_v3 = vpop.eup %9829  ;;  %v15562_v49 = vsel %vm5672_vm7, %v5674_v63, %v5670_v25  ;;  %v6191_v40 = vmul.f32 %v8898_v19, %v15391_v36  ;;  %v6097_v5 = vadd.f32 1.4214138, %v6065_v53  ;;  %v6096_v38 = vadd.f32 1.4214138, %v6064_v62 }
 0xdbe   : > { %v5708_v20 = vmul.f32 %v15485_v3, %v15433_v59  ;;  %vm5713_vm8 = vweird.f32 %v15485_v3  ;;  %v5460_v12 = vmul.f32 0.3275911, %v5428_v2  ;;  %v6002_v63 = vmul.f32 1.0614054, %v15562_v49 }
 0xdbf   : > { %vm15581_vm12 = vmor %vm5712_vm11, %vm5713_vm8  ;;  %v6509_v19 = vsub.f32 0.0, %v6445_v8  ;;  %v6252_v53 = vmul.f32 %v6220_v52, %v15352_v47  ;;  %vm5717_vm13 = vcmp.eq.f32.partialorder %v5716_v14, 8.507059e+37  ;;  %v6129_v6 = vmul.f32 %v6097_v5, %v15488_v10 }
 0xdc0   : > { %v5709_v43 = vsub.f32 1.0, %v5708_v20  ;;  %v15535_v20 = vpop.eup %9831  ;;  %v15585_v28 = vadd.f32 1.0, %v5460_v12  ;;  %v6321_v12 = vmul.f32 %v6289_v22, %v15203_v29  ;;  %v6291_v62 = vsub.f32 0.0, %v15220_v45 }
 0xdc1   : > { %v5109_v41 = vmul.f32 %v15535_v20, %v15483_v37  ;;  %v6356_v47 = vmul.f32 1.442695, %v6318_v23  ;;  %v6128_v52 = vmul.f32 %v6096_v38, %v15491_v51  ;;  %v6541_v14 = vsel %vm6477_vm9, %v6445_v8, %v6509_v19 }
 0xdc2   : > { %v5710_v7 = vmul.f32 %v15485_v3, %v5709_v43  ;;  %v6126_v43 = vmul.f32 %v6094_v13, %v15424_v48  ;;  %v5718_v13 = vand.u32 2147483648, %v15433_v59  ;;  %9833 = vrcp.f32 %v15585_v28 }
 0xdc3   : > { %v5110_v2 = vmul.f32 %v15535_v20, %v5109_v41  ;;  %v6288_v41 = vsub.f32 0.0, %v15210_v15  ;;  %v6362_v5 = vmul.f32 1.442695, %v6321_v12  ;;  %v6323_v38 = vmul.f32 %v6291_v62, %v15220_v45 }
 0xdc4   : > { %v5711_v4 = vadd.f32 %v15485_v3, %v5710_v7  ;;  %v5107_v7 = vsel %vm15569_vm10, %v15326_v55, %v15531_v39  ;;  %v8897_v25 = vadd.f32 -0.28449672, %v6126_v43  ;;  %v6099_v55 = vadd.f32 1.4214138, %v6067_v32 }
 0xdc5   : > { %v5719_v39 = vor.u32 1.1754944e-38, %v5718_v13  ;;  %v6223_v43 = vadd.f32 0.2548296, %v6191_v40  ;;  %v5111_v32 = vmul.f32 0.5, %v5110_v2  ;;  %v15608_v40 = vmul.f32 %v5107_v7, %v14885_v60 }
 0xdc6   : > { %v5715_v59 = vsel %vm15581_vm12, %v15485_v3, %v5711_v4  ;;  %v6632_v3 = vpack.c.bf16 %v15506_v24, %v15309_v50  ;;  %v8869_v4 = vadd.f32 -1.4531521, %v6002_v63  ;;  %v6190_v13 = vmul.f32 %v8897_v25, %v15424_v48 }
 0xdc7   : > { %v15597_v44 = vsel %vm5717_vm13, %v5719_v39, %v5715_v59  ;;  %v6131_v22 = vmul.f32 %v6099_v55, %v15496_v9  ;;  %v15614_v63 = vmul.f32 %v15389_v0, %v6252_v53  ;;  %v6255_v23 = vmul.f32 %v6223_v43, %v15391_v36 }
 0xdc8   : > { %v6005_v46 = vmul.f32 1.0614054, %v15597_v44  ;;  %v15611_v59 = vpop.eup %9833  ;;  %v8900_v25 = vadd.f32 -0.28449672, %v6129_v6  ;;  %v6320_v2 = vmul.f32 %v6288_v41, %v15210_v15  ;;  %v6066_v26 = vmul.f32 %v8869_v4, %v15562_v49 }
 0xdc9   : > { %v5112_v8 = vsub.f32 1.5, %v5111_v32  ;;  %v5693_v60 = vmul.f32 %v15611_v59, %v15585_v28  ;;  %v6222_v7 = vadd.f32 0.2548296, %v6190_v13  ;;  %9835 = vpow2.f32 %v6356_v47 }
 0xdca   : > { %v8899_v55 = vadd.f32 -0.28449672, %v6128_v52  ;;  %v8902_v39 = vadd.f32 -0.28449672, %v6131_v22  ;;  %v15622_v19 = vadd.f32 1.0, %v6541_v14  ;;  %9837 = vpow2.f32 %v6362_v5  ;;  %v9187_v22 = vld [vmem:[%s17423_s8 + $0x68] sm:$0xff]  ;;  %v5329_v14 = vpop.f32.mrf.mxu1 }
 0xdcb   : > { %v8872_v0 = vadd.f32 -1.4531521, %v6005_v46  ;;  %v5694_v36 = vsub.f32 1.0, %v5693_v60  ;;  %v6444_v6 = vsub.f32 1.0, %v15614_v63  ;;  %v15626_v53 = vmul.f32 %v15457_v58, %v6255_v23  ;;  %v9179_v58 = vld [vmem:[%s17423_s8 + $0x28] sm:$0xff]  ;;  %6828 = vmatpush.bf16.msrb.mxu1 %v9187_v22  ;;  %v9185_v63 = vld [vmem:[%s17423_s8 + $0x58] sm:$0xff] }
 0xdcc   : > { %v6193_v12 = vmul.f32 %v8900_v25, %v15488_v10  ;;  %v6360_v43 = vmul.f32 1.442695, %v6320_v2  ;;  %v6366_v41 = vmul.f32 1.442695, %v6323_v38  ;;  %v6098_v62 = vadd.f32 1.4214138, %v6066_v26  ;;  %6779 = vmatpush.bf16.msra.mxu2 %v9179_v58 }
 0xdcd   : > { %v5113_v4 = vmul.f32 %v15535_v20, %v5112_v8  ;;  %vm5115_vm14 = vweird.f32 %v15535_v20  ;;  %v6254_v32 = vmul.f32 %v6222_v7, %v15424_v48  ;;  %v6192_v13 = vmul.f32 %v8899_v55, %v15491_v51 }
 0xdce   : > { %v6195_v47 = vmul.f32 %v8902_v39, %v15496_v9  ;;  %v6290_v52 = vsub.f32 0.0, %v15279_v30  ;;  %vm5114_vm15 = vweird.f32 %v15483_v37  ;;  %v6069_v5 = vmul.f32 %v8872_v0, %v15597_v44 }
 0xdcf   : > { %v5695_v48 = vmul.f32 %v15611_v59, %v5694_v36  ;;  %v15645_v46 = vadd.f32 %v5329_v14, %v14928_v61  ;;  %v9836_v23 = vpop.eup %9835  ;;  %v15649_v25 = vsub.f32 0.0, %v6444_v6  ;;  %v6447_v2 = vsub.f32 1.0, %v15626_v53  ;;  %vm15654_vm1 = vmor %vm5114_vm15, %vm5115_vm14  ;;  %v5280_v53 = vpop.f32.mrf.mxu2 }
 0xdd0   : > { %v6225_v38 = vadd.f32 0.2548296, %v6193_v12  ;;  %9839 = vpow2.f32 %v6360_v43  ;;  %v9838_v26 = vpop.eup %9837  ;;  %v6130_v8 = vmul.f32 %v6098_v62, %v15562_v49  ;;  %v5117_v60 = vsel %vm15654_vm1, %v15535_v20, %v5113_v4 }
 0xdd1   : > { %9841 = vpow2.f32 %v6366_v41  ;;  %v15663_v7 = vmul.f32 0.70710677, %v15645_v46  ;;  %v15665_v55 = vmul.f32 %v9836_v23, %v6254_v32  ;;  %v6224_v39 = vadd.f32 0.2548296, %v6192_v13 }
 0xdd2   : > { %v6227_v0 = vadd.f32 0.2548296, %v6195_v47  ;;  %v6322_v36 = vmul.f32 %v6290_v52, %v15279_v30  ;;  %v6101_v12 = vadd.f32 1.4214138, %v6069_v5  ;;  %v5696_v43 = vadd.f32 %v15611_v59, %v5695_v48 }
 0xdd3   : > { %vm5698_vm2 = vweird.f32 %v15611_v59  ;;  %v5431_v41 = vand.u32 2147483647, %v15663_v7  ;;  %v6257_v20 = vmul.f32 %v6225_v38, %v15488_v10  ;;  %v5133_v62 = vmul.f32 %v5117_v60, %v14907_v18 }
 0xdd4   : > { %v5703_v4 = vand.u32 2147483648, %v15585_v28  ;;  %v5149_v32 = vmul.f32 %v14806_v57, %v15608_v40  ;;  %v8901_v13 = vadd.f32 -0.28449672, %v6130_v8  ;;  %vm5697_vm5 = vweird.f32 %v15585_v28 }
 0xdd5   : > { %v5701_v47 = vand.u32 2147483647, %v15585_v28  ;;  %v5463_v52 = vmul.f32 0.3275911, %v5431_v41  ;;  %v6511_v22 = vsub.f32 0.0, %v6447_v2  ;;  %v6256_v14 = vmul.f32 %v6224_v39, %v15491_v51  ;;  %vm15686_vm6 = vmor %vm5697_vm5, %vm5698_vm2 }
 0xdd6   : > { %v9840_v58 = vpop.eup %9839  ;;  %v6259_v10 = vmul.f32 %v6227_v0, %v15496_v9  ;;  %v6364_v18 = vmul.f32 1.442695, %v6322_v36  ;;  %vm6478_vm7 = vcmp.ge.f32.partialorder %v15149_v27, 0.0  ;;  %v6133_v28 = vmul.f32 %v6101_v12, %v15597_v44 }
 0xdd7   : > { %v9842_v40 = vpop.eup %9841  ;;  %v6293_v48 = vsub.f32 0.0, %v15405_v31  ;;  %v5700_v51 = vsel %vm15686_vm6, %v15611_v59, %v5696_v43  ;;  %v15696_v23 = vadd.f32 1.0, %v5463_v52  ;;  %v6446_v9 = vsub.f32 1.0, %v15665_v55  ;;  %v9178_v59 = vld [vmem:[%s17423_s8 + $0x20] sm:$0xff] }
 0xdd8   : > { %v5704_v38 = vor.u32 1.1754944e-38, %v5703_v4  ;;  %v5150_v37 = vmul.f32 %v14806_v57, %v5133_v62  ;;  %v15701_v8 = vadd.f32 %v14818_v42, %v5149_v32  ;;  %v15703_v60 = vmul.f32 %v9838_v26, %v6257_v20  ;;  %v9186_v55 = vld [vmem:[%s17423_s8 + $0x60] sm:$0xff]  ;;  %6780 = vmatpush.bf16.msra.mxu2 %v9178_v59  ;;  %v17818_v62 = vld [vmem:[#allocation60_spill] sm:$0xff] }
 0xdd9   : > { %v6194_v39 = vmul.f32 %v8901_v13, %v15562_v49  ;;  %vm5702_vm8 = vcmp.eq.f32.partialorder %v5701_v47, 8.507059e+37  ;;  %9843 = vrcp.f32 %v15696_v23  ;;  %v15713_v0 = vmul.f32 %v9840_v58, %v6256_v14  ;;  %6829 = vmatpush.bf16.msrb.mxu1 %v9186_v55  ;;  %v17819_v13 = vld [vmem:[#allocation12_spill] sm:$0xff]  ;;  %v9177_v58 = vld [vmem:[%s17423_s8 + $0x18] sm:$0xff] }
 0xdda   : > { %v15715_v57 = vmul.f32 %v9842_v40, %v6259_v10  ;;  %v15717_v36 = vsel %vm5702_vm8, %v5704_v38, %v5700_v51  ;;  %v15720_v26 = vadd.f32 %v14818_v42, %v5150_v37  ;;  %v15723_v12 = vmul.f32 0.5, %v15181_v34  ;;  %v9184_v55 = vld [vmem:[%s17423_s8 + $0x50] sm:$0xff] }
 0xddb   : > { %v15726_v43 = vmul.f32 0.5, %v15188_v54  ;;  %v8904_v41 = vadd.f32 -0.28449672, %v6133_v28  ;;  %v6325_v20 = vmul.f32 %v6293_v48, %v15405_v31  ;;  %v15731_v4 = vmul.f32 %v15622_v19, %v17818_v62  ;;  %v5332_v28 = vpop.f32.mrf.mxu1 }
 0xddc   : > { %v6510_v32 = vsub.f32 0.0, %v6446_v9  ;;  %v15734_v47 = vmul.f32 0.5, %v17819_v13  ;;  %v5175_v42 = vpack.c.bf16 %v15720_v26, %v15701_v8  ;;  %v6540_v34 = vsel %vm6476_vm3, %v6444_v6, %v15649_v25  ;;  %6781 = vmatpush.bf16.msra.mxu2 %v9177_v58 }
 0xddd   : > { %v6543_v54 = vsel %vm6479_vm4, %v6447_v2, %v6511_v22  ;;  %vm6481_vm9 = vcmp.ge.f32.partialorder %v15203_v29, 0.0  ;;  %v6226_v19 = vadd.f32 0.2548296, %v6194_v39  ;;  %v6004_v52 = vmul.f32 1.0614054, %v15717_v36  ;;  %6830 = vmatpush.bf16.msrb.mxu1 %v9185_v63 }
 0xdde   : > { %v6449_v16 = vsub.f32 1.0, %v15703_v60  ;;  %v6448_v6 = vsub.f32 1.0, %v15713_v0  ;;  %vm6480_vm10 = vcmp.ge.f32.partialorder %v15210_v15, 0.0  ;;  %v6451_v21 = vsub.f32 1.0, %v15715_v57  ;;  %8850 = vmatmul.msk.bf16.gmra.mxu2 %vm754_vm0, %v5175_v42  ;;  %8858 = vmatmul.msk.bf16.gmra.mxu1 %vm754_vm0, %v5175_v42  ;;  %v9176_v60 = vld [vmem:[%s17423_s8 + $0x10] sm:$0xff] }
 0xddf   : > { %9845 = vpow2.f32 %v6364_v18  ;;  %v9844_v25 = vpop.eup %9843  ;;  %vm6483_vm11 = vcmp.ge.f32.partialorder %v15220_v45, 0.0  ;;  %v6197_v2 = vmul.f32 %v8904_v41, %v15597_v44  ;;  %v6370_v22 = vmul.f32 1.442695, %v6325_v20  ;;  %v9182_v45 = vld [vmem:[%s17423_s8 + $0x40] sm:$0xff] }
 0xde0   : > { %v15764_v14 = vadd.f32 %v5280_v53, %v14933_v17  ;;  %v6572_v10 = vadd.f32 1.0, %v6540_v34  ;;  %v15766_v5 = vadd.f32 1.0, %v6543_v54  ;;  %v6542_v18 = vsel %vm6478_vm7, %v6446_v9, %v6510_v32  ;;  %6782 = vmatpush.bf16.msra.mxu2 %v9176_v60 }
 0xde1   : > { %v5738_v40 = vmul.f32 %v9844_v25, %v15696_v23  ;;  %v6258_v48 = vmul.f32 %v6226_v19, %v15562_v49  ;;  %v8871_v51 = vadd.f32 -1.4531521, %v6004_v52  ;;  %v15776_v37 = vadd.f32 %v5332_v28, %v14928_v61  ;;  %6831 = vmatpush.bf16.msrb.mxu1 %v9184_v55  ;;  %v9175_v19 = vld [vmem:[%s17423_s8 + $0x8] sm:$0xff]  ;;  %v5283_v28 = vpop.f32.mrf.mxu2 }
 0xde2   : > { %v15773_v38 = vmul.f32 0.70710677, %v15764_v14  ;;  %v6513_v39 = vsub.f32 0.0, %v6449_v16  ;;  %v6512_v59 = vsub.f32 0.0, %v6448_v6  ;;  %v6515_v27 = vsub.f32 0.0, %v6451_v21  ;;  %v9183_v52 = vld [vmem:[%s17423_s8 + $0x48] sm:$0xff] }
 0xde3   : > { %v5739_v9 = vsub.f32 1.0, %v5738_v40  ;;  %v6229_v49 = vadd.f32 0.2548296, %v6197_v2  ;;  %9847 = vpow2.f32 %v6370_v22  ;;  %v5748_v0 = vand.u32 2147483648, %v15696_v23 }
 0xde4   : > { %v5430_v57 = vand.u32 2147483647, %v15773_v38  ;;  %vm5743_vm12 = vweird.f32 %v9844_v25  ;;  %v5746_v62 = vand.u32 2147483647, %v15696_v23  ;;  %v15788_v32 = vmul.f32 0.70710677, %v15776_v37  ;;  %6783 = vmatpush.bf16.msra.mxu2 %v9175_v19 }
 0xde5   : > { %v9846_v41 = vpop.eup %9845  ;;  %v5740_v20 = vmul.f32 %v9844_v25, %v5739_v9  ;;  %v6574_v13 = vadd.f32 1.0, %v6542_v18  ;;  %v6068_v34 = vmul.f32 %v8871_v51, %v15717_v36  ;;  %v6545_v58 = vsel %vm6481_vm9, %v6449_v16, %v6513_v39  ;;  %6832 = vmatpush.bf16.msrb.mxu1 %v9183_v52 }
 0xde6   : > { %v15790_v42 = vmul.f32 %v9846_v41, %v6258_v48  ;;  %v5462_v54 = vmul.f32 0.3275911, %v5430_v57  ;;  %vm5742_vm13 = vweird.f32 %v15696_v23  ;;  %v5433_v53 = vand.u32 2147483647, %v15788_v32  ;;  %v5334_v57 = vpop.f32.mrf.mxu1  ;;  %v17821_v41 = vld [vmem:[#allocation37_spill] sm:$0xff] }
 0xde7   : > { %v5741_v63 = vadd.f32 %v9844_v25, %v5740_v20  ;;  %v6544_v2 = vsel %vm6480_vm10, %v6448_v6, %v6512_v59  ;;  %v6261_v22 = vmul.f32 %v6229_v49, %v15597_v44  ;;  %vm5744_vm14 = vmor %vm5742_vm13, %vm5743_vm12  ;;  %v5749_v18 = vor.u32 1.1754944e-38, %v5748_v0  ;;  %v9174_v44 = vld [vmem:[%s17423_s8] sm:$0xff] }
 0xde8   : > { %v15807_v40 = vadd.f32 1.0, %v5462_v54  ;;  %v6547_v29 = vsel %vm6483_vm11, %v6451_v21, %v6515_v27  ;;  %vm5747_vm15 = vcmp.eq.f32.partialorder %v5746_v62, 8.507059e+37  ;;  %v5465_v23 = vmul.f32 0.3275911, %v5433_v53  ;;  %6784 = vmatpush.bf16.msra.mxu2 %v9174_v44 }
 0xde9   : > { %v5745_v16 = vsel %vm5744_vm14, %v9844_v25, %v5741_v63  ;;  %v9848_v48 = vpop.eup %9847  ;;  %v6450_v15 = vsub.f32 1.0, %v15790_v42  ;;  %v6100_v6 = vadd.f32 1.4214138, %v6068_v34  ;;  %v15822_v21 = vmul.f32 %v6572_v10, %v15253_v11  ;;  %v17820_v10 = vld [vmem:[#allocation21_spill] sm:$0xff]  ;;  %6833 = vmatpush.bf16.msrb.mxu1 %v9182_v45  ;;  %v17822_v34 = vld [vmem:[#allocation28_spill] sm:$0xff] }
 0xdea   : > { %v15812_v51 = vsel %vm5747_vm15, %v5749_v18, %v5745_v16  ;;  %9849 = vrcp.f32 %v15807_v40  ;;  %v6292_v25 = vsub.f32 0.0, %v15546_v33  ;;  %v15827_v39 = vadd.f32 %v5283_v28, %v14933_v17  ;;  %v5285_v16 = vpop.f32.mrf.mxu2 }
 0xdeb   : > { %v6007_v60 = vmul.f32 1.0614054, %v15812_v51  ;;  %v6577_v59 = vadd.f32 1.0, %v6545_v58  ;;  %v6576_v27 = vadd.f32 1.0, %v6544_v2  ;;  %v15829_v9 = vmul.f32 %v9848_v48, %v6261_v22 }
 0xdec   : > { %v15831_v55 = vadd.f32 1.0, %v5465_v23  ;;  %v15835_v49 = vmul.f32 %v15766_v5, %v15345_v1  ;;  %v6579_v11 = vadd.f32 1.0, %v6547_v29  ;;  %v15838_v0 = vmul.f32 0.5, %v17820_v10 }
 0xded   : > { %vm6482_vm1 = vcmp.ge.f32.partialorder %v15279_v30, 0.0  ;;  %v15842_v20 = vmul.f32 %v6574_v13, %v17821_v41  ;;  %v6514_v62 = vsub.f32 0.0, %v6450_v15  ;;  %v6132_v42 = vmul.f32 %v6100_v6, %v15717_v36 }
 0xdee   : > { %9851 = vrcp.f32 %v15831_v55  ;;  %v15847_v54 = vmul.f32 0.5, %v17822_v34  ;;  %v6324_v1 = vmul.f32 %v6292_v25, %v15546_v33  ;;  %v8874_v5 = vadd.f32 -1.4531521, %v6007_v60  ;;  %6785 = vmatmul.bf16.vlgmr.msra.gmra.mxu2 %v6632_v3 }
 0xdef   : > { %v15851_v19 = vmul.f32 0.70710677, %v15827_v39  ;;  %v15857_v52 = vmul.f32 %v6577_v59, %v15723_v12  ;;  %v15860_v58 = vmul.f32 %v6576_v27, %v15726_v43  ;;  %v6453_v63 = vsub.f32 1.0, %v15829_v9 }
 0xdf0   : > { %v9850_v13 = vpop.eup %9849  ;;  %v15864_v53 = vadd.f32 %v5334_v57, %v14928_v61  ;;  %v17823_v2 = vpack.c.bf16 %v15412_v56, %v15262_v35  ;;  %v15870_v22 = vmul.f32 %v6579_v11, %v15734_v47  ;;  %v6635_v3 = vpack.c.bf16 %v15835_v49, %v15731_v4 }
 0xdf1   : > { %v5723_v50 = vmul.f32 %v9850_v13, %v15807_v40  ;;  %v5432_v24 = vand.u32 2147483647, %v15851_v19  ;;  %v6546_v12 = vsel %vm6482_vm1, %v6450_v15, %v6514_v62  ;;  %v8903_v43 = vadd.f32 -0.28449672, %v6132_v42 }
 0xdf2   : > { %6834 = vmatmul.bf16.vlgmr.msrb.gmra.mxu1 %v17823_v2  ;;  %v15879_v18 = vmul.f32 0.70710677, %v15864_v53  ;;  %v6634_v35 = vpack.c.bf16 %v15842_v20, %v15822_v21  ;;  %vm6485_vm2 = vcmp.ge.f32.partialorder %v15405_v31, 0.0  ;;  %v6368_v56 = vmul.f32 1.442695, %v6324_v1 }
 0xdf3   : > { %v6071_v47 = vmul.f32 %v8874_v5, %v15812_v51  ;;  %v5724_v28 = vsub.f32 1.0, %v5723_v50  ;;  %v5464_v29 = vmul.f32 0.3275911, %v5432_v24  ;;  %v6517_v48 = vsub.f32 0.0, %v6453_v63 }
 0xdf4   : > { %v9852_v23 = vpop.eup %9851  ;;  %v5731_v30 = vand.u32 2147483647, %v15807_v40  ;;  %v5733_v15 = vand.u32 2147483648, %v15807_v40  ;;  %v5435_v6 = vand.u32 2147483647, %v15879_v18  ;;  %v6295_v44 = vsub.f32 0.0, %v15663_v7 }
 0xdf5   : > { %v5725_v45 = vmul.f32 %v9850_v13, %v5724_v28  ;;  %vm5728_vm3 = vweird.f32 %v9850_v13  ;;  %v5768_v21 = vmul.f32 %v9852_v23, %v15831_v55  ;;  %v6196_v25 = vmul.f32 %v8903_v43, %v15717_v36 }
 0xdf6   : > { %v15891_v60 = vadd.f32 1.0, %v5464_v29  ;;  %v5467_v59 = vmul.f32 0.3275911, %v5435_v6  ;;  %v15894_v27 = vadd.f32 %v5285_v16, %v14933_v17  ;;  %v6103_v9 = vadd.f32 1.4214138, %v6071_v47 }
 0xdf7   : > { %v5726_v11 = vadd.f32 %v9850_v13, %v5725_v45  ;;  %vm5727_vm4 = vweird.f32 %v15807_v40  ;;  %v5769_v10 = vsub.f32 1.0, %v5768_v21  ;;  %vm5732_vm6 = vcmp.eq.f32.partialorder %v5731_v30, 8.507059e+37 }
 0xdf8   : > { %vm5729_vm5 = vmor %vm5727_vm4, %vm5728_vm3  ;;  %v5734_v57 = vor.u32 1.1754944e-38, %v5733_v15  ;;  %v5778_v41 = vand.u32 2147483648, %v15831_v55  ;;  %9853 = vrcp.f32 %v15891_v60  ;;  %vm5773_vm7 = vweird.f32 %v9852_v23 }
 0xdf9   : > { %v5730_v20 = vsel %vm5729_vm5, %v9850_v13, %v5726_v11  ;;  %v5770_v62 = vmul.f32 %v9852_v23, %v5769_v10  ;;  %v5776_v42 = vand.u32 2147483647, %v15831_v55  ;;  %v6327_v34 = vmul.f32 %v6295_v44, %v15663_v7 }
 0xdfa   : > { %v15901_v1 = vsel %vm5732_vm6, %v5734_v57, %v5730_v20  ;;  %v15903_v5 = vadd.f32 1.0, %v5467_v59  ;;  %v15906_v40 = vmul.f32 0.70710677, %v15894_v27  ;;  %v6135_v2 = vmul.f32 %v6103_v9, %v15812_v51 }
 0xdfb   : > { %v6006_v50 = vmul.f32 1.0614054, %v15901_v1  ;;  %v5771_v24 = vadd.f32 %v9852_v23, %v5770_v62  ;;  %vm5772_vm8 = vweird.f32 %v15831_v55  ;;  %v6578_v13 = vadd.f32 1.0, %v6546_v12  ;;  %v17824_v55 = vld [vmem:[#allocation36_spill] sm:$0xff] }
 0xdfc   : > { %v6549_v43 = vsel %vm6485_vm2, %v6453_v63, %v6517_v48  ;;  %vm5774_vm9 = vmor %vm5772_vm8, %vm5773_vm7  ;;  %v5779_v47 = vor.u32 1.1754944e-38, %v5778_v41  ;;  %9855 = vrcp.f32 %v15903_v5  ;;  %v6228_v28 = vadd.f32 0.2548296, %v6196_v25 }
 0xdfd   : > { %v8873_v29 = vadd.f32 -1.4531521, %v6006_v50  ;;  %v5775_v16 = vsel %vm5774_vm9, %v9852_v23, %v5771_v24  ;;  %vm5777_vm10 = vcmp.eq.f32.partialorder %v5776_v42, 8.507059e+37  ;;  %9857 = vpow2.f32 %v6368_v56 }
 0xdfe   : > { %v9854_v30 = vpop.eup %9853  ;;  %v6374_v15 = vmul.f32 1.442695, %v6327_v34  ;;  %v15914_v6 = vsel %vm5777_vm10, %v5779_v47, %v5775_v16  ;;  %v5434_v44 = vand.u32 2147483647, %v15906_v40  ;;  %v15918_v12 = vmul.f32 0.5, %v17824_v55  ;;  %6790 = vmatmul.bf16.gmra.mxu2 %v6634_v35 }
 0xdff   : > { %v8906_v31 = vadd.f32 -0.28449672, %v6135_v2  ;;  %v6009_v63 = vmul.f32 1.0614054, %v15914_v6  ;;  %v5753_v48 = vmul.f32 %v9854_v30, %v15891_v60  ;;  %v15923_v45 = vmul.f32 %v6578_v13, %v15838_v0 }
 0xe00   : > { %v15925_v23 = vadd.f32 1.0, %v6549_v43  ;;  %v15928_v56 = vmul.f32 0.5, %v15645_v46  ;;  %v5466_v21 = vmul.f32 0.3275911, %v5434_v44  ;;  %v6260_v25 = vmul.f32 %v6228_v28, %v15717_v36  ;;  %v5337_v36 = vpop.f32.mrf.mxu1 }
 0xe01   : > { %v6070_v59 = vmul.f32 %v8873_v29, %v15901_v1  ;;  %v5754_v9 = vsub.f32 1.0, %v5753_v48  ;;  %v6637_v35 = vpack.c.bf16 %v15870_v22, %v15857_v52  ;;  %9859 = vpow2.f32 %v6374_v15 }
 0xe02   : > { %6839 = vmatmul.bf16.gmra.mxu1 %v6635_v3  ;;  %v9856_v0 = vpop.eup %9855  ;;  %v8876_v11 = vadd.f32 -1.4531521, %v6009_v63  ;;  %v5763_v10 = vand.u32 2147483648, %v15891_v60  ;;  %v15938_v46 = vadd.f32 1.0, %v5466_v21  ;;  %v6199_v57 = vmul.f32 %v8906_v31, %v15812_v51 }
 0xe03   : > { %v5755_v41 = vmul.f32 %v9854_v30, %v5754_v9  ;;  %vm5758_vm11 = vweird.f32 %v9854_v30  ;;  %v5761_v4 = vand.u32 2147483647, %v15891_v60  ;;  %v9858_v49 = vpop.eup %9857  ;;  %v6294_v3 = vsub.f32 0.0, %v15773_v38 }
 0xe04   : > { %v5798_v20 = vmul.f32 %v9856_v0, %v15903_v5  ;;  %9861 = vrcp.f32 %v15938_v46  ;;  %v6636_v62 = vpack.c.bf16 %v15923_v45, %v15860_v58  ;;  %v15947_v42 = vmul.f32 %v9858_v49, %v6260_v25 }
 0xe05   : > { %v6102_v34 = vadd.f32 1.4214138, %v6070_v59  ;;  %v5756_v2 = vadd.f32 %v9854_v30, %v5755_v41  ;;  %vm5757_vm12 = vweird.f32 %v15891_v60  ;;  %v6073_v50 = vmul.f32 %v8876_v11, %v15914_v6 }
 0xe06   : > { %vm5759_vm13 = vmor %vm5757_vm12, %vm5758_vm11  ;;  %v5764_v24 = vor.u32 1.1754944e-38, %v5763_v10  ;;  %v5799_v13 = vsub.f32 1.0, %v5798_v20  ;;  %v15952_v43 = vadd.f32 %v5337_v36, %v14928_v61  ;;  %v6231_v47 = vadd.f32 0.2548296, %v6199_v57 }
 0xe07   : > { %v5760_v28 = vsel %vm5759_vm13, %v9854_v30, %v5756_v2  ;;  %vm5762_vm14 = vcmp.eq.f32.partialorder %v5761_v4, 8.507059e+37  ;;  %v5808_v29 = vand.u32 2147483648, %v15903_v5  ;;  %v9860_v58 = vpop.eup %9859  ;;  %vm5803_vm15 = vweird.f32 %v9856_v0  ;;  %v5288_v4 = vpop.f32.mrf.mxu2 }
 0xe08   : > { %v15955_v16 = vsel %vm5762_vm14, %v5764_v24, %v5760_v28  ;;  %v5800_v15 = vmul.f32 %v9856_v0, %v5799_v13  ;;  %v5806_v60 = vand.u32 2147483647, %v15903_v5  ;;  %v6134_v44 = vmul.f32 %v6102_v34, %v15901_v1 }
 0xe09   : > { %v6326_v55 = vmul.f32 %v6294_v3, %v15773_v38  ;;  %v6297_v31 = vsub.f32 0.0, %v15788_v32  ;;  %v6008_v63 = vmul.f32 1.0614054, %v15955_v16  ;;  %v6105_v30 = vadd.f32 1.4214138, %v6073_v50 }
 0xe0a   : > { %v9862_v48 = vpop.eup %9861  ;;  %v5801_v45 = vadd.f32 %v9856_v0, %v5800_v15  ;;  %vm5802_vm1 = vweird.f32 %v15903_v5  ;;  %v15964_v21 = vmul.f32 0.70710677, %v15952_v43  ;;  %v6263_v25 = vmul.f32 %v6231_v47, %v15812_v51 }
 0xe0b   : > { %v8875_v59 = vadd.f32 -1.4531521, %v6008_v63  ;;  %vm5804_vm2 = vmor %vm5802_vm1, %vm5803_vm15  ;;  %v5809_v9 = vor.u32 1.1754944e-38, %v5808_v29  ;;  %v5783_v11 = vmul.f32 %v9862_v48, %v15938_v46  ;;  %v6452_v10 = vsub.f32 1.0, %v15947_v42 }
 0xe0c   : > { %v5805_v57 = vsel %vm5804_vm2, %v9856_v0, %v5801_v45  ;;  %vm5807_vm3 = vcmp.eq.f32.partialorder %v5806_v60, 8.507059e+37  ;;  %v5437_v41 = vand.u32 2147483647, %v15964_v21  ;;  %v8905_v36 = vadd.f32 -0.28449672, %v6134_v44 }
 0xe0d   : > { %v6372_v49 = vmul.f32 1.442695, %v6326_v55  ;;  %v6072_v5 = vmul.f32 %v8875_v59, %v15955_v16  ;;  %v15971_v3 = vsel %vm5807_vm3, %v5809_v9, %v5805_v57  ;;  %vm6484_vm4 = vcmp.ge.f32.partialorder %v15546_v33, 0.0 }
 0xe0e   : > { %v6137_v51 = vmul.f32 %v6105_v30, %v15914_v6  ;;  %v6011_v20 = vmul.f32 1.0614054, %v15971_v3  ;;  %v5784_v34 = vsub.f32 1.0, %v5783_v11  ;;  %v5469_v2 = vmul.f32 0.3275911, %v5437_v41  ;;  %6795 = vmatmul.bf16.gmra.mxu2 %v6636_v62 }
 0xe0f   : > { %v6423_v42 = vmul.f32 %v9860_v58, %v6263_v25  ;;  %v6104_v0 = vadd.f32 1.4214138, %v6072_v5  ;;  %v5793_v50 = vand.u32 2147483648, %v15938_v46  ;;  %v15978_v24 = vadd.f32 %v5288_v4, %v14933_v17 }
 0xe10   : > { %v5785_v13 = vmul.f32 %v9862_v48, %v5784_v34  ;;  %vm5788_vm5 = vweird.f32 %v9862_v48  ;;  %v5791_v47 = vand.u32 2147483647, %v15938_v46  ;;  %v15981_v28 = vadd.f32 1.0, %v5469_v2 }
 0xe11   : > { %v6516_v29 = vsub.f32 0.0, %v6452_v10  ;;  %v6198_v58 = vmul.f32 %v8905_v36, %v15901_v1  ;;  %v6329_v15 = vmul.f32 %v6297_v31, %v15788_v32  ;;  %vm5787_vm6 = vweird.f32 %v15938_v46 }
 0xe12   : > { %6844 = vmatmul.bf16.gmra.mxu1 %v6637_v35  ;;  %v8908_v60 = vadd.f32 -0.28449672, %v6137_v51  ;;  %v8878_v44 = vadd.f32 -1.4531521, %v6011_v20  ;;  %v5786_v62 = vadd.f32 %v9862_v48, %v5785_v13  ;;  %9863 = vrcp.f32 %v15981_v28  ;;  %vm5789_vm7 = vmor %vm5787_vm6, %vm5788_vm5 }
 0xe13   : > { %v6136_v55 = vmul.f32 %v6104_v0, %v15955_v16  ;;  %v6296_v63 = vsub.f32 0.0, %v15851_v19  ;;  %v5794_v30 = vor.u32 1.1754944e-38, %v5793_v50  ;;  %v15993_v52 = vmul.f32 0.70710677, %v15978_v24  ;;  %v5339_v0 = vpop.f32.mrf.mxu1 }
 0xe14   : > { %v6455_v22 = vsub.f32 1.0, %v6423_v42  ;;  %v6299_v35 = vsub.f32 0.0, %v15879_v18  ;;  %v5790_v31 = vsel %vm5789_vm7, %v9862_v48, %v5786_v62  ;;  %vm5792_vm8 = vcmp.eq.f32.partialorder %v5791_v47, 8.507059e+37 }
 0xe15   : > { %v15998_v46 = vmul.f32 %v15925_v23, %v15847_v54  ;;  %vm6487_vm9 = vcmp.ge.f32.partialorder %v15663_v7, 0.0  ;;  %v6230_v45 = vadd.f32 0.2548296, %v6198_v58  ;;  %v16001_v25 = vsel %vm5792_vm8, %v5794_v30, %v5790_v31 }
 0xe16   : > { %9865 = vpow2.f32 %v6372_v49  ;;  %v6201_v59 = vmul.f32 %v8908_v60, %v15914_v6  ;;  %v6378_v9 = vmul.f32 1.442695, %v6329_v15  ;;  %v6075_v11 = vmul.f32 %v8878_v44, %v15971_v3 }
 0xe17   : > { %v6548_v57 = vsel %vm6484_vm4, %v6452_v10, %v6516_v29  ;;  %v8907_v48 = vadd.f32 -0.28449672, %v6136_v55  ;;  %v6010_v41 = vmul.f32 1.0614054, %v16001_v25  ;;  %v5436_v54 = vand.u32 2147483647, %v15993_v52 }
 0xe18   : > { %v16009_v23 = vpop.eup %9863  ;;  %v6519_v4 = vsub.f32 0.0, %v6455_v22  ;;  %v16012_v36 = vmul.f32 0.5, %v15764_v14  ;;  %v6328_v49 = vmul.f32 %v6296_v63, %v15851_v19  ;;  %v6331_v5 = vmul.f32 %v6299_v35, %v15879_v18 }
 0xe19   : > { %v6262_v51 = vmul.f32 %v6230_v45, %v15901_v1  ;;  %v16018_v33 = vmul.f32 0.5, %v15776_v37  ;;  %v5828_v10 = vmul.f32 %v16009_v23, %v15981_v28  ;;  %v5468_v20 = vmul.f32 0.3275911, %v5436_v54 }
 0xe1a   : > { %v6580_v34 = vadd.f32 1.0, %v6548_v57  ;;  %v6233_v2 = vadd.f32 0.2548296, %v6201_v59  ;;  %9867 = vpow2.f32 %v6378_v9  ;;  %v6107_v42 = vadd.f32 1.4214138, %v6075_v11 }
 0xe1b   : > { %v6200_v14 = vmul.f32 %v8907_v48, %v15955_v16  ;;  %v8877_v50 = vadd.f32 -1.4531521, %v6010_v41  ;;  %v5829_v13 = vsub.f32 1.0, %v5828_v10  ;;  %v16023_v47 = vadd.f32 1.0, %v5468_v20 }
 0xe1c   : > { %v9866_v29 = vpop.eup %9865  ;;  %v6551_v37 = vsel %vm6487_vm9, %v6455_v22, %v6519_v4  ;;  %v16028_v1 = vmul.f32 0.5, %v15827_v39  ;;  %v6376_v58 = vmul.f32 1.442695, %v6328_v49  ;;  %v6382_v15 = vmul.f32 1.442695, %v6331_v5 }
 0xe1d   : > { %v16030_v60 = vmul.f32 %v9866_v29, %v6262_v51  ;;  %v5830_v44 = vmul.f32 %v16009_v23, %v5829_v13  ;;  %9869 = vrcp.f32 %v16023_v47  ;;  %v16035_v62 = vadd.f32 %v5339_v0, %v14928_v61 }
 0xe1e   : > { %v16038_v55 = vmul.f32 %v6580_v34, %v15918_v12  ;;  %v6265_v7 = vmul.f32 %v6233_v2, %v15914_v6  ;;  %v16042_v63 = vmul.f32 0.5, %v15864_v53  ;;  %v6139_v39 = vmul.f32 %v6107_v42, %v15971_v3 }
 0xe1f   : > { %v6232_v30 = vadd.f32 0.2548296, %v6200_v14  ;;  %v16046_v22 = vmul.f32 0.5, %v15894_v27  ;;  %v6074_v35 = vmul.f32 %v8877_v50, %v16001_v25  ;;  %v6298_v31 = vsub.f32 0.0, %v15906_v40  ;;  %v5290_v27 = vpop.f32.mrf.mxu2 }
 0xe20   : > { %v9868_v45 = vpop.eup %9867  ;;  %v6583_v59 = vadd.f32 1.0, %v6551_v37  ;;  %9871 = vpow2.f32 %v6376_v58  ;;  %v5831_v12 = vadd.f32 %v16009_v23, %v5830_v44  ;;  %vm5833_vm10 = vweird.f32 %v16009_v23 }
 0xe21   : > { %v6454_v53 = vsub.f32 1.0, %v16030_v60  ;;  %9873 = vpow2.f32 %v6382_v15  ;;  %v5838_v6 = vand.u32 2147483648, %v15981_v28  ;;  %v16055_v9 = vmul.f32 0.70710677, %v16035_v62 }
 0xe22   : > { %vm6486_vm11 = vcmp.ge.f32.partialorder %v15773_v38, 0.0  ;;  %v6425_v11 = vmul.f32 %v9868_v45, %v6265_v7  ;;  %v8910_v57 = vadd.f32 -0.28449672, %v6139_v39  ;;  %vm5832_vm12 = vweird.f32 %v15981_v28 }
 0xe23   : > { %v5836_v48 = vand.u32 2147483647, %v15981_v28  ;;  %v9870_v41 = vpop.eup %9869  ;;  %v6264_v54 = vmul.f32 %v6232_v30, %v15955_v16  ;;  %v6106_v4 = vadd.f32 1.4214138, %v6074_v35  ;;  %v6330_v49 = vmul.f32 %v6298_v31, %v15906_v40  ;;  %vm16064_vm13 = vmor %vm5832_vm12, %vm5833_vm10  ;;  %v5342_v31 = vpop.f32.mrf.mxu1 }
 0xe24   : > { %v5439_v51 = vand.u32 2147483647, %v16055_v9  ;;  %v16070_v10 = vmul.f32 %v6583_v59, %v15928_v56  ;;  %v5835_v28 = vsel %vm16064_vm13, %v16009_v23, %v5831_v12  ;;  %v5813_v16 = vmul.f32 %v9870_v41, %v16023_v47 }
 0xe25   : > { %v16077_v20 = vadd.f32 %v5290_v27, %v14933_v17  ;;  %v6518_v34 = vsub.f32 0.0, %v6454_v53  ;;  %vm6489_vm14 = vcmp.ge.f32.partialorder %v15788_v32, 0.0  ;;  %v5839_v2 = vor.u32 1.1754944e-38, %v5838_v6 }
 0xe26   : > { %v6301_v42 = vsub.f32 0.0, %v15964_v21  ;;  %v5471_v0 = vmul.f32 0.3275911, %v5439_v51  ;;  %v9872_v14 = vpop.eup %9871  ;;  %v6457_v50 = vsub.f32 1.0, %v6425_v11  ;;  %v6203_v56 = vmul.f32 %v8910_v57, %v15971_v3 }
 0xe27   : > { %vm5837_vm15 = vcmp.eq.f32.partialorder %v5836_v48, 8.507059e+37  ;;  %v5814_v13 = vsub.f32 1.0, %v5813_v16  ;;  %v9874_v29 = vpop.eup %9873  ;;  %v6424_v23 = vmul.f32 %v9872_v14, %v6264_v54  ;;  %v6138_v37 = vmul.f32 %v6106_v4, %v16001_v25 }
 0xe28   : > { %v16083_v58 = vsel %vm5837_vm15, %v5839_v2, %v5835_v28  ;;  %v16085_v15 = vadd.f32 1.0, %v5471_v0  ;;  %vm5818_vm1 = vweird.f32 %v9870_v41  ;;  %v5823_v44 = vand.u32 2147483648, %v16023_v47 }
 0xe29   : > { %v5815_v60 = vmul.f32 %v9870_v41, %v5814_v13  ;;  %v16089_v7 = vmul.f32 0.70710677, %v16077_v20  ;;  %v6380_v39 = vmul.f32 1.442695, %v6330_v49  ;;  %v6333_v30 = vmul.f32 %v6301_v42, %v15964_v21 }
 0xe2a   : > { %v5821_v35 = vand.u32 2147483647, %v16023_v47  ;;  %9875 = vrcp.f32 %v16085_v15  ;;  %v6521_v45 = vsub.f32 0.0, %v6457_v50  ;;  %vm6488_vm2 = vcmp.ge.f32.partialorder %v15851_v19, 0.0 }
 0xe2b   : > { %v6013_v59 = vmul.f32 1.0614054, %v16083_v58  ;;  %v5816_v12 = vadd.f32 %v9870_v41, %v5815_v60  ;;  %vm5817_vm3 = vweird.f32 %v16023_v47  ;;  %v6550_v6 = vsel %vm6486_vm11, %v6454_v53, %v6518_v34 }
 0xe2c   : > { %v6456_v27 = vsub.f32 1.0, %v6424_v23  ;;  %v6235_v11 = vadd.f32 0.2548296, %v6203_v56  ;;  %vm5819_vm4 = vmor %vm5817_vm3, %vm5818_vm1  ;;  %v5438_v57 = vand.u32 2147483647, %v16089_v7  ;;  %v5824_v4 = vor.u32 1.1754944e-38, %v5823_v44 }
 0xe2d   : > { %v8909_v48 = vadd.f32 -0.28449672, %v6138_v37  ;;  %v5820_v54 = vsel %vm5819_vm4, %v9870_v41, %v5816_v12  ;;  %v16102_v49 = vadd.f32 %v5342_v31, %v14928_v61  ;;  %v6386_v5 = vmul.f32 1.442695, %v6333_v30 }
 0xe2e   : > { %vm5822_vm5 = vcmp.eq.f32.partialorder %v5821_v35, 8.507059e+37  ;;  %v6300_v51 = vsub.f32 0.0, %v15993_v52  ;;  %v5470_v47 = vmul.f32 0.3275911, %v5438_v57  ;;  %v6582_v28 = vadd.f32 1.0, %v6550_v6 }
 0xe2f   : > { %v6553_v38 = vsel %vm6489_vm14, %v6457_v50, %v6521_v45  ;;  %v8880_v53 = vadd.f32 -1.4531521, %v6013_v59  ;;  %v16107_v16 = vsel %vm5822_vm5, %v5824_v4, %v5820_v54  ;;  %v6520_v2 = vsub.f32 0.0, %v6456_v27 }
 0xe30   : > { %v9876_v34 = vpop.eup %9875  ;;  %v6267_v41 = vmul.f32 %v6235_v11, %v15971_v3  ;;  %9877 = vpow2.f32 %v6380_v39  ;;  %v16110_v42 = vadd.f32 1.0, %v5470_v47  ;;  %v6202_v0 = vmul.f32 %v8909_v48, %v16001_v25 }
 0xe31   : > { %v16114_v14 = vmul.f32 0.5, %v15978_v24  ;;  %v5858_v56 = vmul.f32 %v9876_v34, %v16085_v15  ;;  %v16118_v32 = vmul.f32 0.70710677, %v16102_v49  ;;  %v6585_v50 = vadd.f32 1.0, %v6553_v38 }
 0xe32   : > { %v6012_v13 = vmul.f32 1.0614054, %v16107_v16  ;;  %v6332_v23 = vmul.f32 %v6300_v51, %v15993_v52  ;;  %9879 = vrcp.f32 %v16110_v42  ;;  %v16124_v3 = vmul.f32 %v6582_v28, %v16012_v36 }
 0xe33   : > { %v6077_v37 = vmul.f32 %v8880_v53, %v16083_v58  ;;  %9881 = vpow2.f32 %v6386_v5  ;;  %v5859_v24 = vsub.f32 1.0, %v5858_v56  ;;  %v6552_v60 = vsel %vm6488_vm2, %v6456_v27, %v6520_v2  ;;  %v5293_v27 = vpop.f32.mrf.mxu2 }
 0xe34   : > { %v6427_v44 = vmul.f32 %v9874_v29, %v6267_v41  ;;  %v5868_v39 = vand.u32 2147483648, %v16085_v15  ;;  %v5441_v30 = vand.u32 2147483647, %v16118_v32  ;;  %v6234_v35 = vadd.f32 0.2548296, %v6202_v0  ;;  %v5344_v41 = vpop.f32.mrf.mxu1 }
 0xe35   : > { %v5860_v31 = vmul.f32 %v9876_v34, %v5859_v24  ;;  %vm5863_vm6 = vweird.f32 %v9876_v34  ;;  %v5866_v45 = vand.u32 2147483647, %v16085_v15  ;;  %v16133_v36 = vmul.f32 %v6585_v50, %v16018_v33 }
 0xe36   : > { %v9878_v59 = vpop.eup %9877  ;;  %v8879_v12 = vadd.f32 -1.4531521, %v6012_v13  ;;  %v6384_v6 = vmul.f32 1.442695, %v6332_v23  ;;  %v5473_v11 = vmul.f32 0.3275911, %v5441_v30  ;;  %vm5862_vm8 = vweird.f32 %v16085_v15 }
 0xe37   : > { %v6584_v57 = vadd.f32 1.0, %v6552_v60  ;;  %vm6491_vm7 = vcmp.ge.f32.partialorder %v15879_v18, 0.0  ;;  %v6109_v19 = vadd.f32 1.4214138, %v6077_v37  ;;  %v5861_v29 = vadd.f32 %v9876_v34, %v5860_v31  ;;  %vm5864_vm9 = vmor %vm5862_vm8, %vm5863_vm6 }
 0xe38   : > { %v9880_v48 = vpop.eup %9879  ;;  %v6459_v54 = vsub.f32 1.0, %v6427_v44  ;;  %v5869_v4 = vor.u32 1.1754944e-38, %v5868_v39  ;;  %v6303_v5 = vsub.f32 0.0, %v16055_v9  ;;  %v16139_v33 = vadd.f32 1.0, %v5473_v11 }
 0xe39   : > { %v16141_v51 = vpop.eup %9881  ;;  %v6266_v47 = vmul.f32 %v6234_v35, %v16001_v25  ;;  %v5865_v28 = vsel %vm5864_vm9, %v9876_v34, %v5861_v29  ;;  %vm5867_vm10 = vcmp.eq.f32.partialorder %v5866_v45, 8.507059e+37  ;;  %v5843_v38 = vmul.f32 %v9880_v48, %v16110_v42 }
 0xe3a   : > { %v6076_v15 = vmul.f32 %v8879_v12, %v16107_v16  ;;  %v16146_v53 = vsel %vm5867_vm10, %v5869_v4, %v5865_v28  ;;  %9883 = vrcp.f32 %v16139_v33  ;;  %v16150_v2 = vadd.f32 %v5293_v27, %v14933_v17 }
 0xe3b   : > { %v6141_v0 = vmul.f32 %v6109_v19, %v16083_v58  ;;  %9885 = vpow2.f32 %v6384_v6  ;;  %v6015_v56 = vmul.f32 1.0614054, %v16146_v53  ;;  %v5844_v25 = vsub.f32 1.0, %v5843_v38 }
 0xe3c   : > { %v16155_v34 = vmul.f32 %v6584_v57, %v16028_v1  ;;  %v6523_v50 = vsub.f32 0.0, %v6459_v54  ;;  %v5851_v13 = vand.u32 2147483647, %v16110_v42  ;;  %v5853_v23 = vand.u32 2147483648, %v16110_v42 }
 0xe3d   : > { %v8882_v37 = vadd.f32 -1.4531521, %v6015_v56  ;;  %v5845_v24 = vmul.f32 %v9880_v48, %v5844_v25  ;;  %vm5848_vm11 = vweird.f32 %v9880_v48  ;;  %v16160_v60 = vadd.f32 %v5344_v41, %v14928_v61 }
 0xe3e   : > { %v16162_v44 = vmul.f32 %v9878_v59, %v6266_v47  ;;  %v6108_v39 = vadd.f32 1.4214138, %v6076_v15  ;;  %v6335_v30 = vmul.f32 %v6303_v5, %v16055_v9  ;;  %v16166_v35 = vmul.f32 0.70710677, %v16150_v2 }
 0xe3f   : > { %v8912_v1 = vadd.f32 -0.28449672, %v6141_v0  ;;  %v5846_v31 = vadd.f32 %v9880_v48, %v5845_v24  ;;  %vm5847_vm12 = vweird.f32 %v16110_v42  ;;  %v6302_v45 = vsub.f32 0.0, %v16089_v7 }
 0xe40   : > { %v9884_v12 = vpop.eup %9883  ;;  %v6555_v6 = vsel %vm6491_vm7, %v6459_v54, %v6523_v50  ;;  %v6079_v11 = vmul.f32 %v8882_v37, %v16146_v53  ;;  %vm5849_vm13 = vmor %vm5847_vm12, %vm5848_vm11  ;;  %v5854_v59 = vor.u32 1.1754944e-38, %v5853_v23  ;;  %v5440_v57 = vand.u32 2147483647, %v16166_v35  ;;  %v5295_v23 = vpop.f32.mrf.mxu2 }
 0xe41   : > { %v16174_v19 = vpop.eup %9885  ;;  %v5850_v29 = vsel %vm5849_vm13, %v9880_v48, %v5846_v31  ;;  %vm5852_vm14 = vcmp.eq.f32.partialorder %v5851_v13, 8.507059e+37  ;;  %v5888_v27 = vmul.f32 %v9884_v12, %v16139_v33  ;;  %v16178_v42 = vmul.f32 0.70710677, %v16160_v60 }
 0xe42   : > { %v6458_v4 = vsub.f32 1.0, %v16162_v44  ;;  %v6140_v18 = vmul.f32 %v6108_v39, %v16107_v16  ;;  %v16182_v54 = vsel %vm5852_vm14, %v5854_v59, %v5850_v29  ;;  %v5472_v5 = vmul.f32 0.3275911, %v5440_v57 }
 0xe43   : > { %v6205_v47 = vmul.f32 %v8912_v1, %v16083_v58  ;;  %v6014_v28 = vmul.f32 1.0614054, %v16182_v54  ;;  %v6334_v38 = vmul.f32 %v6302_v45, %v16089_v7  ;;  %v5889_v48 = vsub.f32 1.0, %v5888_v27 }
 0xe44   : > { %vm6490_vm15 = vcmp.ge.f32.partialorder %v15906_v40, 0.0  ;;  %v6111_v15 = vadd.f32 1.4214138, %v6079_v11  ;;  %v5896_v41 = vand.u32 2147483647, %v16139_v33  ;;  %v5898_v0 = vand.u32 2147483648, %v16139_v33 }
 0xe45   : > { %v16190_v56 = vadd.f32 1.0, %v5472_v5  ;;  %v8881_v25 = vadd.f32 -1.4531521, %v6014_v28  ;;  %v5890_v50 = vmul.f32 %v9884_v12, %v5889_v48  ;;  %vm5893_vm1 = vweird.f32 %v9884_v12 }
 0xe46   : > { %v5443_v13 = vand.u32 2147483647, %v16178_v42  ;;  %v6587_v37 = vadd.f32 1.0, %v6555_v6  ;;  %v6522_v24 = vsub.f32 0.0, %v6458_v4  ;;  %v8911_v44 = vadd.f32 -0.28449672, %v6140_v18 }
 0xe47   : > { %9887 = vrcp.f32 %v16190_v56  ;;  %v6237_v39 = vadd.f32 0.2548296, %v6205_v47  ;;  %v6078_v1 = vmul.f32 %v8881_v25, %v16182_v54  ;;  %v5891_v31 = vadd.f32 %v9884_v12, %v5890_v50 }
 0xe48   : > { %vm5892_vm2 = vweird.f32 %v16139_v33  ;;  %v6143_v45 = vmul.f32 %v6111_v15, %v16146_v53  ;;  %v6388_v11 = vmul.f32 1.442695, %v6334_v38  ;;  %v5899_v59 = vor.u32 1.1754944e-38, %v5898_v0 }
 0xe49   : > { %vm5894_vm3 = vmor %vm5892_vm2, %vm5893_vm1  ;;  %v16198_v57 = vadd.f32 %v5295_v23, %v14933_v17  ;;  %v6110_v29 = vadd.f32 1.4214138, %v6078_v1  ;;  %vm5897_vm4 = vcmp.eq.f32.partialorder %v5896_v41, 8.507059e+37  ;;  %v5475_v27 = vmul.f32 0.3275911, %v5443_v13 }
 0xe4a   : > { %v5895_v6 = vsel %vm5894_vm3, %v9884_v12, %v5891_v31  ;;  %v6204_v18 = vmul.f32 %v8911_v44, %v16107_v16  ;;  %v6390_v5 = vmul.f32 1.442695, %v6335_v30  ;;  %v16202_v47 = vmul.f32 0.5, %v16077_v20 }
 0xe4b   : > { %v16204_v28 = vsel %vm5897_vm4, %v5899_v59, %v5895_v6  ;;  %v6269_v33 = vmul.f32 %v6237_v39, %v16083_v58  ;;  %v6142_v38 = vmul.f32 %v6110_v29, %v16182_v54  ;;  %v16209_v15 = vadd.f32 1.0, %v5475_v27 }
 0xe4c   : > { %v6017_v48 = vmul.f32 1.0614054, %v16204_v28  ;;  %v16212_v12 = vmul.f32 %v6587_v37, %v16042_v63  ;;  %v8914_v41 = vadd.f32 -0.28449672, %v6143_v45  ;;  %v16215_v30 = vmul.f32 0.70710677, %v16198_v57 }
 0xe4d   : > { %v9888_v0 = vpop.eup %9887  ;;  %v6638_v20 = vpack.c.bf16 %v16124_v3, %v16038_v55  ;;  %v6554_v58 = vsel %vm6490_vm15, %v6458_v4, %v6522_v24  ;;  %v8913_v25 = vadd.f32 -0.28449672, %v6142_v38  ;;  %9889 = vpow2.f32 %v6388_v11 }
 0xe4e   : > { %v5873_v50 = vmul.f32 %v9888_v0, %v16190_v56  ;;  %v6236_v13 = vadd.f32 0.2548296, %v6204_v18  ;;  %v8884_v23 = vadd.f32 -1.4531521, %v6017_v48  ;;  %v6305_v44 = vsub.f32 0.0, %v16118_v32 }
 0xe4f   : > { %9891 = vrcp.f32 %v16209_v15  ;;  %6800 = vmatmul.bf16.gmra.mxu2 %v6638_v20  ;;  %v16225_v63 = vmul.f32 %v16141_v51, %v6269_v33  ;;  %v6206_v55 = vmul.f32 %v8913_v25, %v16182_v54  ;;  %v6586_v40 = vadd.f32 1.0, %v6554_v58 }
 0xe50   : > { %9893 = vpow2.f32 %v6390_v5  ;;  %v5874_v3 = vsub.f32 1.0, %v5873_v50  ;;  %v6207_v4 = vmul.f32 %v8914_v41, %v16146_v53  ;;  %v5883_v37 = vand.u32 2147483648, %v16190_v56 }
 0xe51   : > { %v5442_v24 = vand.u32 2147483647, %v16215_v30  ;;  %v6238_v39 = vadd.f32 0.2548296, %v6206_v55  ;;  %vm5878_vm5 = vweird.f32 %v9888_v0  ;;  %v5881_v31 = vand.u32 2147483647, %v16190_v56 }
 0xe52   : > { %v5875_v1 = vmul.f32 %v9888_v0, %v5874_v3  ;;  %v6268_v45 = vmul.f32 %v6236_v13, %v16107_v16  ;;  %v6081_v51 = vmul.f32 %v8884_v23, %v16204_v28  ;;  %v6337_v11 = vmul.f32 %v6305_v44, %v16118_v32 }
 0xe53   : > { %v5474_v59 = vmul.f32 0.3275911, %v5442_v24  ;;  %v9890_v29 = vpop.eup %9889  ;;  %v6461_v6 = vsub.f32 1.0, %v16225_v63  ;;  %v6270_v27 = vmul.f32 %v6238_v39, %v16182_v54  ;;  %vm5877_vm6 = vweird.f32 %v16190_v56 }
 0xe54   : > { %v5876_v18 = vadd.f32 %v9888_v0, %v5875_v1  ;;  %v6239_v33 = vadd.f32 0.2548296, %v6207_v4  ;;  %vm5879_vm7 = vmor %vm5877_vm6, %vm5878_vm5  ;;  %v5884_v38 = vor.u32 1.1754944e-38, %v5883_v37  ;;  %v6639_v16 = vpack.c.bf16 %v16070_v10, %v15998_v46 }
 0xe55   : > { %v9892_v5 = vpop.eup %9891  ;;  %v16238_v48 = vadd.f32 1.0, %v5474_v59  ;;  %v6430_v20 = vmul.f32 %v9890_v29, %v6270_v27  ;;  %vm5882_vm8 = vcmp.eq.f32.partialorder %v5881_v31, 8.507059e+37  ;;  %v6428_v54 = vmul.f32 %v16174_v19, %v6268_v45 }
 0xe56   : > { %v9894_v41 = vpop.eup %9893  ;;  %v5880_v58 = vsel %vm5879_vm7, %v9888_v0, %v5876_v18  ;;  %v5918_v25 = vmul.f32 %v9892_v5, %v16209_v15  ;;  %v6113_v50 = vadd.f32 1.4214138, %v6081_v51  ;;  %6849 = vmatmul.bf16.gmra.mxu1 %v6639_v16  ;;  %vm6494_vm9 = vcmp.ge.f32.partialorder %v16089_v7, 0.0 }
 0xe57   : > { %v16244_v13 = vsel %vm5882_vm8, %v5884_v38, %v5880_v58  ;;  %9895 = vrcp.f32 %v16238_v48  ;;  %v6304_v46 = vsub.f32 0.0, %v16166_v35  ;;  %v6618_v0 = vmul.f32 %v6586_v40, %v16046_v22 }
 0xe58   : > { %v6016_v56 = vmul.f32 1.0614054, %v16244_v13  ;;  %v5919_v10 = vsub.f32 1.0, %v5918_v25  ;;  %v6271_v23 = vmul.f32 %v6239_v33, %v16146_v53  ;;  %v6462_v44 = vsub.f32 1.0, %v6430_v20 }
 0xe59   : > { %v5928_v19 = vand.u32 2147483648, %v16209_v15  ;;  %vm6492_vm10 = vcmp.ge.f32.partialorder %v15993_v52, 0.0  ;;  %vm5923_vm11 = vweird.f32 %v9892_v5  ;;  %v5926_v4 = vand.u32 2147483647, %v16209_v15 }
 0xe5a   : > { %v8883_v55 = vadd.f32 -1.4531521, %v6016_v56  ;;  %v5920_v3 = vmul.f32 %v9892_v5, %v5919_v10  ;;  %v16257_v37 = vsub.f32 0.0, %v6461_v6  ;;  %v6460_v24 = vsub.f32 1.0, %v6428_v54 }
 0xe5b   : > { %v6145_v39 = vmul.f32 %v6113_v50, %v16204_v28  ;;  %v6394_v22 = vmul.f32 1.442695, %v6337_v11  ;;  %v6336_v40 = vmul.f32 %v6304_v46, %v16166_v35  ;;  %vm5922_vm12 = vweird.f32 %v16209_v15 }
 0xe5c   : > { %v6080_v53 = vmul.f32 %v8883_v55, %v16244_v13  ;;  %v5921_v1 = vadd.f32 %v9892_v5, %v5920_v3  ;;  %v6431_v45 = vmul.f32 %v9894_v41, %v6271_v23  ;;  %v6526_v51 = vsub.f32 0.0, %v6462_v44  ;;  %vm5924_vm13 = vmor %vm5922_vm12, %vm5923_vm11 }
 0xe5d   : > { %v9896_v31 = vpop.eup %9895  ;;  %v5929_v59 = vor.u32 1.1754944e-38, %v5928_v19  ;;  %v6640_v29 = vpack.c.bf16 %v6618_v0, %v16155_v34  ;;  %vm5927_vm14 = vcmp.eq.f32.partialorder %v5926_v4, 8.507059e+37  ;;  %v6524_v11 = vsub.f32 0.0, %v6460_v24 }
 0xe5e   : > { %v6112_v27 = vadd.f32 1.4214138, %v6080_v53  ;;  %v5925_v18 = vsel %vm5924_vm13, %v9892_v5, %v5921_v1  ;;  %v5903_v33 = vmul.f32 %v9896_v31, %v16238_v48  ;;  %v8916_v38 = vadd.f32 -0.28449672, %v6145_v39 }
 0xe5f   : > { %v16265_v16 = vsel %vm5927_vm14, %v5929_v59, %v5925_v18  ;;  %v6307_v20 = vsub.f32 0.0, %v16178_v42  ;;  %6805 = vmatmul.bf16.gmra.mxu2 %v6640_v29  ;;  %9897 = vpow2.f32 %v6394_v22  ;;  %v6463_v25 = vsub.f32 1.0, %v6431_v45  ;;  %v5347_v29 = vpop.f32.mrf.mxu1 }
 0xe60   : > { %v6144_v15 = vmul.f32 %v6112_v27, %v16244_v13  ;;  %v6019_v41 = vmul.f32 1.0614054, %v16265_v16  ;;  %v5904_v58 = vsub.f32 1.0, %v5903_v33  ;;  %v6558_v34 = vsel %vm6494_vm9, %v6462_v44, %v6526_v51 }
 0xe61   : > { %v5911_v5 = vand.u32 2147483647, %v16238_v48  ;;  %v5913_v54 = vand.u32 2147483648, %v16238_v48  ;;  %vm5908_vm15 = vweird.f32 %v9896_v31  ;;  %v6556_v10 = vsel %vm6492_vm10, %v6460_v24, %v6524_v11 }
 0xe62   : > { %v8915_v50 = vadd.f32 -0.28449672, %v6144_v15  ;;  %v8886_v56 = vadd.f32 -1.4531521, %v6019_v41  ;;  %v5905_v46 = vmul.f32 %v9896_v31, %v5904_v58  ;;  %v6209_v0 = vmul.f32 %v8916_v38, %v16204_v28 }
 0xe63   : > { %v6392_v23 = vmul.f32 1.442695, %v6336_v40  ;;  %v6339_v19 = vmul.f32 %v6307_v20, %v16178_v42  ;;  %vm5907_vm1 = vweird.f32 %v16238_v48  ;;  %v6527_v3 = vsub.f32 0.0, %v6463_v25 }
 0xe64   : > { %v6208_v55 = vmul.f32 %v8915_v50, %v16244_v13  ;;  %v6083_v7 = vmul.f32 %v8886_v56, %v16265_v16  ;;  %v5906_v44 = vadd.f32 %v9896_v31, %v5905_v46  ;;  %v6590_v4 = vadd.f32 1.0, %v6558_v34  ;;  %vm5909_vm2 = vmor %vm5907_vm1, %vm5908_vm15 }
 0xe65   : > { %v5914_v39 = vor.u32 1.1754944e-38, %v5913_v54  ;;  %v6641_v52 = vpack.c.bf16 %v16212_v12, %v16133_v36  ;;  %v9898_v24 = vpop.eup %9897  ;;  %vm5912_vm3 = vcmp.eq.f32.partialorder %v5911_v5, 8.507059e+37  ;;  %v6306_v40 = vsub.f32 0.0, %v16215_v30 }
 0xe66   : > { %v6115_v22 = vadd.f32 1.4214138, %v6083_v7  ;;  %v5910_v53 = vsel %vm5909_vm2, %v9896_v31, %v5906_v44  ;;  %v6588_v1 = vadd.f32 1.0, %v6556_v10  ;;  %v6241_v45 = vadd.f32 0.2548296, %v6209_v0 }
 0xe67   : > { %v6398_v51 = vmul.f32 1.442695, %v6339_v19  ;;  %v5915_v59 = vsel %vm5912_vm3, %v5914_v39, %v5910_v53  ;;  %6854 = vmatmul.bf16.gmra.mxu1 %v6641_v52  ;;  %v6240_v48 = vadd.f32 0.2548296, %v6208_v55  ;;  %v16286_v33 = vadd.f32 %v5347_v29, %v14928_v61 }
 0xe68   : > { %v6147_v27 = vmul.f32 %v6115_v22, %v16265_v16  ;;  %v6018_v18 = vmul.f32 1.0614054, %v5915_v59  ;;  %vm6493_vm4 = vcmp.ge.f32.partialorder %v15964_v21, 0.0  ;;  %vm6495_vm5 = vcmp.ge.f32.partialorder %v16055_v9, 0.0 }
 0xe69   : > { %v6622_v36 = vmul.f32 %v6590_v4, %v16202_v47  ;;  %9899 = vpow2.f32 %v6392_v23  ;;  %v6559_v12 = vsel %vm6495_vm5, %v6463_v25, %v6527_v3  ;;  %v6338_v38 = vmul.f32 %v6306_v40, %v16215_v30 }
 0xe6a   : > { %v8918_v31 = vadd.f32 -0.28449672, %v6147_v27  ;;  %v8885_v11 = vadd.f32 -1.4531521, %v6018_v18  ;;  %v6557_v20 = vsel %vm6493_vm4, %v6461_v6, %v16257_v37  ;;  %v6620_v15 = vmul.f32 %v6588_v1, %v16114_v14 }
 0xe6b   : > { %9901 = vpow2.f32 %v6398_v51  ;;  %v16297_v41 = vmul.f32 0.70710677, %v16286_v33  ;;  %v6273_v21 = vmul.f32 %v6241_v45, %v16204_v28  ;;  %v6272_v9 = vmul.f32 %v6240_v48, %v16244_v13 }
 0xe6c   : > { %v6211_v47 = vmul.f32 %v8918_v31, %v16265_v16  ;;  %v6082_v58 = vmul.f32 %v8885_v11, %v5915_v59  ;;  %v6591_v25 = vadd.f32 1.0, %v6559_v12  ;;  %v6642_v34 = vpack.c.bf16 %v6622_v36, %v6620_v15 }
 0xe6d   : > { %v5445_v5 = vand.u32 2147483647, %v16297_v41  ;;  %v6396_v6 = vmul.f32 1.442695, %v6338_v38  ;;  %v6589_v14 = vadd.f32 1.0, %v6557_v20  ;;  %v5375_v50 = vmul.f32 0.5, %v16035_v62 }
 0xe6e   : > { %v6243_v54 = vadd.f32 0.2548296, %v6211_v47  ;;  %v6114_v63 = vadd.f32 1.4214138, %v6082_v58  ;;  %v6433_v46 = vmul.f32 %v9898_v24, %v6273_v21  ;;  %v5373_v23 = vmul.f32 0.5, %v15952_v43 }
 0xe6f   : > { %v9900_v37 = vpop.eup %9899  ;;  %6810 = vmatmul.bf16.gmra.mxu2 %v6642_v34  ;;  %v5477_v56 = vmul.f32 0.3275911, %v5445_v5  ;;  %v6623_v19 = vmul.f32 %v6591_v25, %v5375_v50  ;;  %9903 = vpow2.f32 %v6396_v6  ;;  %vm6499_vm6 = vcmp.ge.f32.partialorder %v16178_v42, 0.0 }
 0xe70   : > { %v6432_v28 = vmul.f32 %v9900_v37, %v6272_v9  ;;  %v6275_v13 = vmul.f32 %v6243_v54, %v16265_v16  ;;  %v6146_v10 = vmul.f32 %v6114_v63, %v5915_v59  ;;  %v6621_v3 = vmul.f32 %v6589_v14, %v5373_v23 }
 0xe71   : > { %v9902_v0 = vpop.eup %9901  ;;  %v5509_v55 = vadd.f32 1.0, %v5477_v56  ;;  %v6465_v4 = vsub.f32 1.0, %v6433_v46  ;;  %vm6497_vm7 = vcmp.ge.f32.partialorder %v16118_v32, 0.0  ;;  %vm6496_vm8 = vcmp.ge.f32.partialorder %v16166_v35, 0.0  ;;  %v5298_v35 = vpop.f32.mrf.mxu2 }
 0xe72   : > { %v6435_v7 = vmul.f32 %v9902_v0, %v6275_v13  ;;  %v8917_v44 = vadd.f32 -0.28449672, %v6146_v10  ;;  %v6464_v39 = vsub.f32 1.0, %v6432_v28  ;;  %v6643_v22 = vpack.c.bf16 %v6623_v19, %v6621_v3  ;;  %v5349_v28 = vpop.f32.mrf.mxu1 }
 0xe73   : > { %9905 = vrcp.f32 %v5509_v55  ;;  %v6529_v40 = vsub.f32 0.0, %v6465_v4  ;;  %v5377_v31 = vmul.f32 0.5, %v16102_v49  ;;  %v5376_v11 = vmul.f32 0.5, %v16150_v2 }
 0xe74   : > { %v6467_v62 = vsub.f32 1.0, %v6435_v7  ;;  %v6210_v52 = vmul.f32 %v8917_v44, %v5915_v59  ;;  %v6528_v1 = vsub.f32 0.0, %v6464_v39  ;;  %v5956_v42 = vand.u32 2147483647, %v5509_v55 }
 0xe75   : > { %v9904_v16 = vpop.eup %9903  ;;  %v6561_v27 = vsel %vm6497_vm7, %v6465_v4, %v6529_v40  ;;  %v5379_v32 = vmul.f32 0.5, %v16160_v60  ;;  %vm6498_vm10 = vcmp.ge.f32.partialorder %v16215_v30, 0.0  ;;  %vm5952_vm11 = vweird.f32 %v5509_v55 }
 0xe76   : > { %v6531_v24 = vsub.f32 0.0, %v6467_v62  ;;  %v6242_v53 = vadd.f32 0.2548296, %v6210_v52  ;;  %v6560_v18 = vsel %vm6496_vm8, %v6464_v39, %v6528_v1  ;;  %v6593_v21 = vadd.f32 1.0, %v6561_v27 }
 0xe77   : > { %6859 = vmatmul.bf16.gmra.mxu1 %v6643_v22  ;;  %v6592_v9 = vadd.f32 1.0, %v6560_v18  ;;  %v16314_v49 = vadd.f32 %v5298_v35, %v14933_v17  ;;  %v5378_v25 = vmul.f32 0.5, %v16198_v57  ;;  %vm5957_vm13 = vcmp.eq.f32.partialorder %v5956_v42, 8.507059e+37 }
 0xe78   : > { %v6274_v45 = vmul.f32 %v6242_v53, %v5915_v59  ;;  %v6563_v51 = vsel %vm6499_vm6, %v6467_v62, %v6531_v24  ;;  %v5958_v59 = vand.u32 2147483648, %v5509_v55  ;;  %v6625_v60 = vmul.f32 %v6593_v21, %v5377_v31 }
 0xe79   : > { %v9906_v43 = vpop.eup %9905  ;;  %v6595_v38 = vadd.f32 1.0, %v6563_v51  ;;  %v16318_v63 = vmul.f32 0.70710677, %v16314_v49  ;;  %v6624_v30 = vmul.f32 %v6592_v9, %v5376_v11  ;;  %v16325_v10 = vadd.f32 %v5349_v28, %v14928_v61  ;;  %v5300_v19 = vpop.f32.mrf.mxu2 }
 0xe7a   : > { %v6434_v29 = vmul.f32 %v9904_v16, %v6274_v45  ;;  %v5948_v48 = vmul.f32 %v9906_v43, %v5509_v55  ;;  %vm5953_vm9 = vweird.f32 %v9906_v43  ;;  %v5959_v5 = vor.u32 1.1754944e-38, %v5958_v59  ;;  %v6835_v3 = vpop.f32.mrf.mxu1  ;;  %v16341_v16 = vld [vmem:[%s17428_s13 + $0x8] sm:$0xff] }
 0xe7b   : > { %v6627_v2 = vmul.f32 %v6595_v38, %v5379_v32  ;;  %vm5954_vm12 = vmor %vm5952_vm11, %vm5953_vm9  ;;  %v5444_v14 = vand.u32 2147483647, %v16318_v63  ;;  %v16328_v23 = vmul.f32 0.70710677, %v16325_v10  ;;  %v16333_v44 = vadd.f32 %v5300_v19, %v14933_v17 }
 0xe7c   : > { %v6466_v36 = vsub.f32 1.0, %v6434_v29  ;;  %v5949_v12 = vsub.f32 1.0, %v5948_v48  ;;  %v16346_v48 = vperm.slane %v16341_v16, 0  ;;  %v6309_v18 = vsub.f32 0.0, %v16297_v41 }
 0xe7d   : > { %v6645_v56 = vpack.c.bf16 %v6627_v2, %v6625_v60  ;;  %v5476_v57 = vmul.f32 0.3275911, %v5444_v14  ;;  %v5447_v7 = vand.u32 2147483647, %v16328_v23  ;;  %v16336_v24 = vmul.f32 0.70710677, %v16333_v44 }
 0xe7e   : > { %v6530_v20 = vsub.f32 0.0, %v6466_v36  ;;  %v5950_v15 = vmul.f32 %v9906_v43, %v5949_v12  ;;  %v6341_v21 = vmul.f32 %v6309_v18, %v16297_v41  ;;  %v17827_v14 = vld [vmem:[#allocation18_spill] sm:$0xff]  ;;  %v6311_v28 = vsub.f32 0.0, %v16328_v23 }
 0xe7f   : > { %v5508_v13 = vadd.f32 1.0, %v5476_v57  ;;  %v5479_v39 = vmul.f32 0.3275911, %v5447_v7  ;;  %v5446_v1 = vand.u32 2147483647, %v16336_v24  ;;  %v17828_v7 = vld [vmem:[#allocation45_spill] sm:$0xff] }
 0xe80   : > { %v6562_v47 = vsel %vm6498_vm10, %v6466_v36, %v6530_v20  ;;  %v5951_v58 = vadd.f32 %v9906_v43, %v5950_v15  ;;  %v6402_v60 = vmul.f32 1.442695, %v6341_v21  ;;  %vm6501_vm11 = vcmp.ge.f32.partialorder %v16297_v41, 0.0 }
 0xe81   : > { %v6594_v34 = vadd.f32 1.0, %v6562_v47  ;;  %9907 = vrcp.f32 %v5508_v13  ;;  %v5511_v61 = vadd.f32 1.0, %v5479_v39  ;;  %v5943_v53 = vand.u32 2147483648, %v5508_v13  ;;  %v6786_v45 = vpop.f32.mrf.mxu2 }
 0xe82   : > { %v5955_v54 = vsel %vm5954_vm12, %v9906_v43, %v5951_v58  ;;  %v5941_v17 = vand.u32 2147483647, %v5508_v13  ;;  %vm5937_vm15 = vweird.f32 %v5508_v13  ;;  %v5478_v29 = vmul.f32 0.3275911, %v5446_v1  ;;  %v6837_v27 = vpop.f32.mrf.mxu1 }
 0xe83   : > { %v6626_v6 = vmul.f32 %v6594_v34, %v5378_v25  ;;  %v16320_v37 = vsel %vm5957_vm13, %v5959_v5, %v5955_v54  ;;  %9909 = vrcp.f32 %v5511_v61  ;;  %v5944_v36 = vor.u32 1.1754944e-38, %v5943_v53 }
 0xe84   : > { %v6021_v46 = vmul.f32 1.0614054, %v16320_v37  ;;  %vm5942_vm2 = vcmp.eq.f32.partialorder %v5941_v17, 8.507059e+37  ;;  %v16349_v31 = vadd.f32 1.0, %v5478_v29  ;;  %v6787_v20 = vadd.f32 %v6786_v45, %v16346_v48 }
 0xe85   : > { %v6644_v50 = vpack.c.bf16 %v6626_v6, %v6624_v30  ;;  %v5988_v58 = vand.u32 2147483648, %v5511_v61  ;;  %v5986_v54 = vand.u32 2147483647, %v5511_v61  ;;  %v6308_v30 = vsub.f32 0.0, %v16318_v63 }
 0xe86   : > { %v8888_v0 = vadd.f32 -1.4531521, %v6021_v46  ;;  %9911 = vrcp.f32 %v16349_v31  ;;  %v6836_v2 = vadd.f32 %v6835_v3, %v6787_v20  ;;  %vm5982_vm4 = vweird.f32 %v5511_v61 }
 0xe87   : > { %6815 = vmatmul.bf16.gmra.mxu2 %v6644_v50  ;;  %6864 = vmatmul.bf16.gmra.mxu1 %v6645_v56  ;;  %v9908_v4 = vpop.eup %9907  ;;  %vm5987_vm6 = vcmp.eq.f32.partialorder %v5986_v54, 8.507059e+37  ;;  %9913 = vpow2.f32 %v6402_v60  ;;  %v5973_v1 = vand.u32 2147483648, %v16349_v31  ;;  %vm5967_vm8 = vweird.f32 %v16349_v31 }
 0xe88   : > { %v6085_v55 = vmul.f32 %v8888_v0, %v16320_v37  ;;  %v5933_v62 = vmul.f32 %v9908_v4, %v5508_v13  ;;  %vm5938_vm14 = vweird.f32 %v9908_v4  ;;  %v16362_v50 = vadd.f32 %v6836_v2, %v17827_v14 }
 0xe89   : > { %vm5939_vm1 = vmor %vm5937_vm15, %vm5938_vm14  ;;  %v9910_v11 = vpop.eup %9909  ;;  %v6788_v35 = vpop.f32.mrf.mxu2  ;;  %v5989_v0 = vor.u32 1.1754944e-38, %v5988_v58  ;;  %v6310_v2 = vsub.f32 0.0, %v16336_v24  ;;  %vm6503_vm12 = vcmp.ge.f32.partialorder %v16328_v23, 0.0  ;;  %vm6500_vm13 = vcmp.ge.f32.partialorder %v16318_v63, 0.0 }
 0xe8a   : > { %v6117_v52 = vadd.f32 1.4214138, %v6085_v55  ;;  %v5934_v22 = vsub.f32 1.0, %v5933_v62  ;;  %v5978_v42 = vmul.f32 %v9910_v11, %v5511_v61  ;;  %v6789_v25 = vadd.f32 %v6788_v35, %v16346_v48  ;;  %v6840_v13 = vpop.f32.mrf.mxu1 }
 0xe8b   : > { %vm5983_vm3 = vweird.f32 %v9910_v11  ;;  %v6891_v55 = vsel %vm754_vm0, %v16362_v50, 0.0  ;;  %vm6502_vm14 = vcmp.ge.f32.partialorder %v16336_v24, 0.0 }
 0xe8c   : > { %v5935_v40 = vmul.f32 %v9908_v4, %v5934_v22  ;;  %v6149_v43 = vmul.f32 %v6117_v52, %v16320_v37  ;;  %v5979_v32 = vsub.f32 1.0, %v5978_v42  ;;  %v6838_v6 = vadd.f32 %v6837_v27, %v6789_v25  ;;  %v9912_v56 = vpop.eup %9911  ;;  %vm5984_vm5 = vmor %vm5982_vm4, %vm5983_vm3  ;;  %6892 = vadd.xlane.f32.xlu0 %v6891_v55 }
 0xe8d   : > { %v5963_v19 = vmul.f32 %v9912_v56, %v16349_v31  ;;  %vm5968_vm7 = vweird.f32 %v9912_v56  ;;  %v5974_v42 = vor.u32 1.1754944e-38, %v5973_v1  ;;  %v9914_v21 = vpop.eup %9913 }
 0xe8e   : > { %v5936_v51 = vadd.f32 %v9908_v4, %v5935_v40  ;;  %v8920_v38 = vadd.f32 -0.28449672, %v6149_v43  ;;  %v5980_v5 = vmul.f32 %v9910_v11, %v5979_v32  ;;  %v16369_v3 = vadd.f32 %v6838_v6, %v17828_v7  ;;  %vm5969_vm9 = vmor %vm5967_vm8, %vm5968_vm7  ;;  %v17829_v32 = vld [vmem:[#allocation44_spill] sm:$0xff]  ;;  %v17830_v7 = vld [vmem:[#allocation27_spill] sm:$0xff] }
 0xe8f   : > { %v5964_v61 = vsub.f32 1.0, %v5963_v19  ;;  %v6340_v40 = vmul.f32 %v6308_v30, %v16318_v63  ;;  %v5380_v63 = vmul.f32 0.5, %v16314_v49 }
 0xe90   : > { %v5940_v12 = vsel %vm5939_vm1, %v9908_v4, %v5936_v51  ;;  %v6213_v47 = vmul.f32 %v8920_v38, %v16320_v37  ;;  %v5981_v57 = vadd.f32 %v9910_v11, %v5980_v5  ;;  %v6894_v22 = vsel %vm754_vm0, %v16369_v3, 0.0 }
 0xe91   : > { %v16351_v59 = vsel %vm5942_vm2, %v5944_v36, %v5940_v12  ;;  %v6791_v45 = vpop.f32.mrf.mxu2  ;;  %6895 = vadd.xlane.f32.xlu1 %v6894_v22  ;;  %v5965_v43 = vmul.f32 %v9912_v56, %v5964_v61  ;;  %v5971_v51 = vand.u32 2147483647, %v16349_v31  ;;  %v6343_v36 = vmul.f32 %v6311_v28, %v16328_v23 }
 0xe92   : > { %v6020_v15 = vmul.f32 1.0614054, %v16351_v59  ;;  %v6245_v4 = vadd.f32 0.2548296, %v6213_v47  ;;  %v5985_v62 = vsel %vm5984_vm5, %v9910_v11, %v5981_v57  ;;  %v6792_v29 = vadd.f32 %v6791_v45, %v16346_v48  ;;  %v6842_v25 = vpop.f32.mrf.mxu1 }
 0xe93   : > { %v5990_v52 = vsel %vm5987_vm6, %v5989_v0, %v5985_v62  ;;  %v5966_v11 = vadd.f32 %v9912_v56, %v5965_v43  ;;  %v6400_v20 = vmul.f32 1.442695, %v6340_v40  ;;  %vm5972_vm10 = vcmp.eq.f32.partialorder %v5971_v51, 8.507059e+37 }
 0xe94   : > { %v8887_v9 = vadd.f32 -1.4531521, %v6020_v15  ;;  %v6023_v17 = vmul.f32 1.0614054, %v5990_v52  ;;  %v6277_v27 = vmul.f32 %v6245_v4, %v16320_v37  ;;  %v6841_v38 = vadd.f32 %v6840_v13, %v6792_v29 }
 0xe95   : > { %v6406_v47 = vmul.f32 1.442695, %v6343_v36  ;;  %9915 = vpow2.f32 %v6400_v20  ;;  %vm7277_vm1 = vcmask 517121  }
 0xe96   : > { %v6084_v34 = vmul.f32 %v8887_v9, %v16351_v59  ;;  %v8890_v18 = vadd.f32 -1.4531521, %v6023_v17  ;;  %v5970_v9 = vsel %vm5969_vm9, %v9912_v56, %v5966_v11  ;;  %v16383_v35 = vadd.f32 %v6841_v38, %v17829_v32 }
 0xe97   : > { %v5975_v58 = vsel %vm5972_vm10, %v5974_v42, %v5970_v9  ;;  %9917 = vpow2.f32 %v6406_v47  ;;  %v5381_v47 = vmul.f32 0.5, %v16286_v33  ;;  %v17832_v33 = vld [vmem:[#allocation35_spill] sm:$0xff] }
 0xe98   : > { %v6116_v46 = vadd.f32 1.4214138, %v6084_v34  ;;  %v6087_v15 = vmul.f32 %v8890_v18, %v5990_v52  ;;  %v6437_v34 = vmul.f32 %v9914_v21, %v6277_v27  ;;  %v6022_v31 = vmul.f32 1.0614054, %v5975_v58 }
 0xe99   : > { %v6897_v54 = vsel %vm754_vm0, %v16383_v35, 0.0  ;;  %v6793_v30 = vpop.f32.mrf.mxu2 }
 0xe9a   : > { %v6148_v39 = vmul.f32 %v6116_v46, %v16351_v59  ;;  %v6119_v37 = vadd.f32 1.4214138, %v6087_v15  ;;  %6898 = vadd.xlane.f32.xlu2 %v6897_v54  ;;  %v8889_v6 = vadd.f32 -1.4531521, %v6022_v31  ;;  %v6794_v14 = vadd.f32 %v6793_v30, %v16346_v48  ;;  %v6845_v43 = vpop.f32.mrf.mxu1  ;;  %v17831_v15 = vld [vmem:[#allocation26_spill] sm:$0xff] }
 0xe9b   : > { %v6342_v46 = vmul.f32 %v6310_v2, %v16336_v24  ;;  %v6469_v57 = vsub.f32 1.0, %v6437_v34  ;;  %v5383_v34 = vmul.f32 0.5, %v16325_v10 }
 0xe9c   : > { %v8919_v53 = vadd.f32 -0.28449672, %v6148_v39  ;;  %v6151_v60 = vmul.f32 %v6119_v37, %v5990_v52  ;;  %v6086_v13 = vmul.f32 %v8889_v6, %v5975_v58  ;;  %v6843_v0 = vadd.f32 %v6842_v25, %v6794_v14  ;;  %v9916_v39 = vpop.eup %9915 }
 0xe9d   : > { %v6404_v61 = vmul.f32 1.442695, %v6342_v46  ;;  %v6533_v22 = vsub.f32 0.0, %v6469_v57  ;;  %v9918_v1 = vpop.eup %9917 }
 0xe9e   : > { %v6212_v12 = vmul.f32 %v8919_v53, %v16351_v59  ;;  %v8922_v56 = vadd.f32 -0.28449672, %v6151_v60  ;;  %v6118_v55 = vadd.f32 1.4214138, %v6086_v13  ;;  %v16392_v4 = vadd.f32 %v6843_v0, %v17830_v7 }
 0xe9f   : > { %9919 = vpow2.f32 %v6404_v61  ;;  %v6565_v18 = vsel %vm6501_vm11, %v6469_v57, %v6533_v22  ;;  %v5382_v0 = vmul.f32 0.5, %v16333_v44 }
 0xea0   : > { %v6244_v5 = vadd.f32 0.2548296, %v6212_v12  ;;  %v6215_v19 = vmul.f32 %v8922_v56, %v5990_v52  ;;  %v6150_v40 = vmul.f32 %v6118_v55, %v5975_v58  ;;  %v6900_v17 = vsel %vm754_vm0, %v16392_v4, 0.0 }
 0xea1   : > { %6901 = vadd.xlane.f32.xlu0 %v6900_v17 }
 0xea2   : > { %v6276_v28 = vmul.f32 %v6244_v5, %v16351_v59  ;;  %v6247_v62 = vadd.f32 0.2548296, %v6215_v19  ;;  %v6796_v59 = vpop.f32.mrf.mxu2  ;;  %v8921_v51 = vadd.f32 -0.28449672, %v6150_v40  ;;  %v6847_v23 = vpop.f32.mrf.mxu1 }
 0xea3   : > { %v6797_v29 = vadd.f32 %v6796_v59, %v16346_v48  ;;  %v17834_v59 = vld [vmem:[#allocation19_spill] sm:$0xff] }
 0xea4   : > { %v6436_v53 = vmul.f32 %v9916_v39, %v6276_v28  ;;  %v6279_v45 = vmul.f32 %v6247_v62, %v5990_v52  ;;  %v6214_v12 = vmul.f32 %v8921_v51, %v5975_v58  ;;  %v6597_v52 = vadd.f32 1.0, %v6565_v18 }
 0xea5   : > { %v6846_v11 = vadd.f32 %v6845_v43, %v6797_v29  ;;  %v9920_v37 = vpop.eup %9919 }
 0xea6   : > { %v6439_v27 = vmul.f32 %v9918_v1, %v6279_v45  ;;  %v6468_v36 = vsub.f32 1.0, %v6436_v53  ;;  %v6246_v20 = vadd.f32 0.2548296, %v6214_v12  ;;  %v6629_v60 = vmul.f32 %v6597_v52, %v5381_v47  ;;  %v17833_v53 = vld [vmem:[#allocation34_spill] sm:$0xff] }
 0xea7   : > { %v16399_v42 = vadd.f32 %v6846_v11, %v17831_v15 }
 0xea8   : > { %v6471_v38 = vsub.f32 1.0, %v6439_v27  ;;  %v6532_v9 = vsub.f32 0.0, %v6468_v36  ;;  %v6278_v32 = vmul.f32 %v6246_v20, %v5975_v58 }
 0xea9   : > { %v6903_v41 = vsel %vm754_vm0, %v16399_v42, 0.0 }
 0xeaa   : > { %v6535_v21 = vsub.f32 0.0, %v6471_v38  ;;  %v6798_v25 = vpop.f32.mrf.mxu2  ;;  %6904 = vadd.xlane.f32.xlu1 %v6903_v41  ;;  %v6438_v31 = vmul.f32 %v9920_v37, %v6278_v32  ;;  %v6564_v58 = vsel %vm6500_vm13, %v6468_v36, %v6532_v9  ;;  %v17835_v41 = vld [vmem:[#allocation43_spill] sm:$0xff] }
 0xeab   : > { %v6799_v54 = vadd.f32 %v6798_v25, %v16346_v48  ;;  %v6596_v28 = vadd.f32 1.0, %v6564_v58  ;;  %v17836_v58 = vld [vmem:[#allocation53_spill] sm:$0xff] }
 0xeac   : > { %v6567_v2 = vsel %vm6503_vm12, %v6471_v38, %v6535_v21  ;;  %v6470_v6 = vsub.f32 1.0, %v6438_v31 }
 0xead   : > { %v6599_v5 = vadd.f32 1.0, %v6567_v2  ;;  %v6848_v14 = vadd.f32 %v6847_v23, %v6799_v54  ;;  %v6628_v55 = vmul.f32 %v6596_v28, %v5380_v63 }
 0xeae   : > { %v6534_v56 = vsub.f32 0.0, %v6470_v6 }
 0xeaf   : > { %v6631_v30 = vmul.f32 %v6599_v5, %v5383_v34  ;;  %v16409_v57 = vadd.f32 %v6848_v14, %v17832_v33 }
 0xeb0   : > { %v6566_v10 = vsel %vm6502_vm14, %v6470_v6, %v6534_v56 }
 0xeb1   : > { %v6647_v46 = vpack.c.bf16 %v6631_v30, %v6629_v60  ;;  %v6906_v13 = vsel %vm754_vm0, %v16409_v57, 0.0  ;;  %v6598_v19 = vadd.f32 1.0, %v6566_v10 }
 0xeb2   : > { %6907 = vadd.xlane.f32.xlu2 %v6906_v13 }
 0xeb3   : > { %6869 = vmatmul.bf16.gmra.mxu1 %v6647_v46  ;;  %v6630_v7 = vmul.f32 %v6598_v19, %v5382_v0  ;;  %v17837_v46 = vld [vmem:[#allocation42_spill] sm:$0xff] }
 0xeb5   : > { %v6646_v39 = vpack.c.bf16 %v6630_v7, %v6628_v55 }
 0xeb7   : > { %6820 = vmatmul.bf16.gmra.mxu2 %v6646_v39 }
 0xed2   : > { %v6801_v62 = vpop.f32.mrf.mxu2 }
 0xed3   : > { %v6802_v61 = vadd.f32 %v6801_v62, %v16346_v48  ;;  %v6850_v22 = vpop.f32.mrf.mxu1  ;;  %v17838_v62 = vld [vmem:[#allocation52_spill] sm:$0xff] }
 0xed5   : > { %v6851_v24 = vadd.f32 %v6850_v22, %v6802_v61 }
 0xed7   : > { %v16418_v40 = vadd.f32 %v6851_v24, %v17833_v53 }
 0xed9   : > { %v6909_v17 = vsel %vm754_vm0, %v16418_v40, 0.0 }
 0xeda   : > { %6910 = vadd.xlane.f32.xlu2 %v6909_v17  ;;  %v6803_v49 = vpop.f32.mrf.mxu2 }
 0xedb   : > { %v6852_v44 = vpop.f32.mrf.mxu1  ;;  %v6804_v27 = vadd.f32 %v6803_v49, %v16346_v48 }
 0xedd   : > { %v6853_v20 = vadd.f32 %v6852_v44, %v6804_v27 }
 0xedf   : > { %v16440_v37 = vadd.f32 %v6853_v20, %v17835_v41 }
 0xee1   : > { %v6912_v5 = vsel %vm754_vm0, %v16440_v37, 0.0 }
 0xee2   : > { %v6806_v1 = vpop.f32.mrf.mxu2 }
 0xee3   : > { %v6807_v32 = vadd.f32 %v6806_v1, %v16346_v48 }
 0xee4   : > { %v6855_v45 = vpop.f32.mrf.mxu1 }
 0xee5   : > { %v6856_v34 = vadd.f32 %v6855_v45, %v6807_v32 }
 0xee7   : > { %v16452_v30 = vadd.f32 %v6856_v34, %v17836_v58 }
 0xee9   : > { %v6915_v28 = vsel %vm754_vm0, %v16452_v30, 0.0 }
 0xeea   : > { %v6808_v12 = vpop.f32.mrf.mxu2 }
 0xeeb   : > { %v6809_v47 = vadd.f32 %v6808_v12, %v16346_v48 }
 0xef2   : > { %v6811_v25 = vpop.f32.mrf.mxu2 }
 0xef3   : > { %v6812_v14 = vadd.f32 %v6811_v25, %v16346_v48 }
 0xefa   : > { %v6813_v13 = vpop.f32.mrf.mxu2 }
 0xefb   : > { %v6814_v7 = vadd.f32 %v6813_v13, %v16346_v48 }
 0xeff   : > { %v6893_v43 = vpop.xlane.xlu0 %6892 }
 0xf00   : > { %v6939_v51 = vmul.f32 %v6893_v43, %v17834_v59 }
 0xf02   : > { %v16425_v18 = vsub.f32 %v16362_v50, %v6939_v51  ;;  %v6857_v50 = vpop.f32.mrf.mxu1  ;;  %v17839_v51 = vld [vmem:[#allocation13_spill] sm:$0xff] }
 0xf03   : > { %v6858_v54 = vadd.f32 %v6857_v50, %v6809_v47 }
 0xf04   : > { %v6896_v29 = vpop.xlane.xlu1 %6895  ;;  %v6971_v38 = vmul.f32 %v16425_v18, %v16425_v18 }
 0xf05   : > { %v6940_v36 = vmul.f32 %v6896_v29, %v17834_v59  ;;  %v16460_v33 = vadd.f32 %v6858_v54, %v17837_v46 }
 0xf06   : > { %v6987_v15 = vsel %vm754_vm0, %v6971_v38, 0.0 }
 0xf07   : > { %v16429_v11 = vsub.f32 %v16369_v3, %v6940_v36  ;;  %6988 = vadd.xlane.f32.xlu0 %v6987_v15  ;;  %v6918_v0 = vsel %vm754_vm0, %v16460_v33, 0.0  ;;  %v17840_v15 = vld [vmem:[#allocation20_spill] sm:$0xff] }
 0xf09   : > { %v6972_v52 = vmul.f32 %v16429_v11, %v16429_v11 }
 0xf0a   : > { %v6860_v6 = vpop.f32.mrf.mxu1  ;;  %v6816_v44 = vpop.f32.mrf.mxu2 }
 0xf0b   : > { %v6990_v21 = vsel %vm754_vm0, %v6972_v52, 0.0  ;;  %v6861_v63 = vadd.f32 %v6860_v6, %v6812_v14  ;;  %v6817_v45 = vadd.f32 %v6816_v44, %v16346_v48 }
 0xf0c   : > { %6991 = vadd.xlane.f32.xlu1 %v6990_v21 }
 0xf0d   : > { %v6899_v9 = vpop.xlane.xlu2 %6898  ;;  %v16475_v61 = vadd.f32 %v6861_v63, %v17838_v62 }
 0xf0e   : > { %v6941_v3 = vmul.f32 %v6899_v9, %v17834_v59 }
 0xf0f   : > { %6913 = vadd.xlane.f32.xlu0 %v6912_v5  ;;  %v6921_v17 = vsel %vm754_vm0, %v16475_v61, 0.0  ;;  %v17841_v5 = vld [vmem:[#allocation29_spill] sm:$0xff] }
 0xf10   : > { %v16444_v2 = vsub.f32 %v16383_v35, %v6941_v3 }
 0xf12   : > { %v6973_v31 = vmul.f32 %v16444_v2, %v16444_v2  ;;  %v6862_v22 = vpop.f32.mrf.mxu1  ;;  %v6818_v21 = vpop.f32.mrf.mxu2 }
 0xf13   : > { %v6863_v53 = vadd.f32 %v6862_v22, %v6814_v7  ;;  %v6819_v32 = vadd.f32 %v6818_v21, %v16346_v48 }
 0xf14   : > { %v6993_v60 = vsel %vm754_vm0, %v6973_v31, 0.0  ;;  %v6902_v23 = vpop.xlane.xlu0 %6901 }
 0xf15   : > { %6994 = vadd.xlane.f32.xlu1 %v6993_v60  ;;  %v6942_v35 = vmul.f32 %v6902_v23, %v17834_v59  ;;  %v16488_v29 = vadd.f32 %v6863_v53, %v17839_v51 }
 0xf17   : > { %v16457_v56 = vsub.f32 %v16392_v4, %v6942_v35  ;;  %6916 = vadd.xlane.f32.xlu0 %v6915_v28  ;;  %v6924_v20 = vsel %vm754_vm0, %v16488_v29, 0.0 }
 0xf19   : > { %v6974_v10 = vmul.f32 %v16457_v56, %v16457_v56 }
 0xf1a   : > { %v6865_v36 = vpop.f32.mrf.mxu1 }
 0xf1b   : > { %v6996_v19 = vsel %vm754_vm0, %v6974_v10, 0.0  ;;  %v6866_v12 = vadd.f32 %v6865_v36, %v6817_v45 }
 0xf1c   : > { %6997 = vadd.xlane.f32.xlu2 %v6996_v19 }
 0xf1d   : > { %6919 = vadd.xlane.f32.xlu1 %v6918_v0  ;;  %v6905_v4 = vpop.xlane.xlu1 %6904  ;;  %v16496_v52 = vadd.f32 %v6866_v12, %v17840_v15 }
 0xf1e   : > { %v6943_v55 = vmul.f32 %v6905_v4, %v17834_v59 }
 0xf20   : > { %v16472_v39 = vsub.f32 %v16399_v42, %v6943_v55 }
 0xf22   : > { %v6975_v24 = vmul.f32 %v16472_v39, %v16472_v39  ;;  %v6867_v47 = vpop.f32.mrf.mxu1 }
 0xf23   : > { %v6868_v25 = vadd.f32 %v6867_v47, %v6819_v32 }
 0xf24   : > { %v6999_v49 = vsel %vm754_vm0, %v6975_v24, 0.0 }
 0xf25   : > { %v6908_v1 = vpop.xlane.xlu2 %6907  ;;  %6922 = vadd.xlane.f32.xlu1 %v6921_v17  ;;  %7000 = vadd.xlane.f32.xlu2 %v6999_v49  ;;  %v16509_v31 = vadd.f32 %v6868_v25, %v17841_v5 }
 0xf26   : > { %v6944_v42 = vmul.f32 %v6908_v1, %v17834_v59 }
 0xf27   : > { %v6930_v54 = vsel %vm754_vm0, %v16509_v31, 0.0 }
 0xf28   : > { %v16485_v43 = vsub.f32 %v16409_v57, %v6944_v42  ;;  %v6927_v57 = vsel %vm754_vm0, %v16496_v52, 0.0 }
 0xf2a   : > { %v6976_v27 = vmul.f32 %v16485_v43, %v16485_v43 }
 0xf2c   : > { %v7002_v38 = vsel %vm754_vm0, %v6976_v27, 0.0 }
 0xf2d   : > { %7003 = vadd.xlane.f32.xlu0 %v7002_v38  ;;  %6925 = vadd.xlane.f32.xlu2 %v6924_v20 }
 0xf30   : > { %v6870_v19 = vpop.f32.mrf.mxu1 }
 0xf35   : > { %6928 = vadd.xlane.f32.xlu2 %v6927_v57 }
 0xf38   : > { %v6872_v25 = vpop.f32.mrf.mxu1 }
 0xf3a   : > { %v6821_v6 = vpop.f32.mrf.mxu2 }
 0xf3b   : > { %v6822_v7 = vadd.f32 %v6821_v6, %v16346_v48 }
 0xf3d   : > { %v6871_v42 = vadd.f32 %v6870_v19, %v6822_v7 }
 0xf42   : > { %v6823_v24 = vpop.f32.mrf.mxu2 }
 0xf43   : > { %v6824_v45 = vadd.f32 %v6823_v24, %v16346_v48 }
 0xf4d   : > { %v6911_v50 = vpop.xlane.xlu2 %6910 }
 0xf4e   : > { %v6945_v9 = vmul.f32 %v6911_v50, %v17834_v59 }
 0xf50   : > { %v16503_v3 = vsub.f32 %v16418_v40, %v6945_v9 }
 0xf52   : > { %v6977_v41 = vmul.f32 %v16503_v3, %v16503_v3 }
 0xf54   : > { %v7005_v34 = vsel %vm754_vm0, %v6977_v41, 0.0 }
 0xf55   : > { %7006 = vadd.xlane.f32.xlu0 %v7005_v34 }
 0xf5d   : > { %6931 = vadd.xlane.f32.xlu0 %v6930_v54 }
 0xf7a   : > { %v6989_v60 = vpop.xlane.xlu0 %6988 }
 0xf7b   : > { %v7035_v23 = vmul.f32 %v6989_v60, %v17834_v59 }
 0xf7d   : > { %v7051_v58 = vadd.f32 1e-05, %v7035_v23  ;;  %v6873_v23 = vadd.f32 %v6872_v25, %v6824_v45 }
 0xf7f   : > { %v6992_v40 = vpop.xlane.xlu1 %6991  ;;  %9921 = vrsqrt.f32 %v7051_v58  ;;  %vm7073_vm2 = vweird.f32 %v7051_v58  ;;  %v16584_v24 = vadd.f32 %v6873_v23, %v15720_v26 }
 0xf80   : > { %v7036_v35 = vmul.f32 %v6992_v40, %v17834_v59 }
 0xf82   : > { %v7052_v14 = vadd.f32 1e-05, %v7036_v35  ;;  %v6914_v46 = vpop.xlane.xlu0 %6913 }
 0xf83   : > { %v6946_v28 = vmul.f32 %v6914_v46, %v17834_v59 }
 0xf84   : > { %9923 = vrsqrt.f32 %v7052_v14  ;;  %vm7083_vm3 = vweird.f32 %v7052_v14 }
 0xf85   : > { %v9922_v13 = vpop.eup %9921  ;;  %v16517_v63 = vsub.f32 %v16440_v37, %v6946_v28 }
 0xf86   : > { %v7068_v4 = vmul.f32 %v9922_v13, %v7051_v58  ;;  %vm7074_vm15 = vweird.f32 %v9922_v13 }
 0xf87   : > { %v6978_v22 = vmul.f32 %v16517_v63, %v16517_v63  ;;  %vm16539_vm5 = vmor %vm7073_vm2, %vm7074_vm15 }
 0xf88   : > { %v6995_v10 = vpop.xlane.xlu1 %6994  ;;  %v7069_v53 = vmul.f32 %v9922_v13, %v7068_v4  ;;  %v16578_v4 = vadd.f32 %v6871_v42, %v15701_v8 }
 0xf89   : > { %v7037_v0 = vmul.f32 %v6995_v10, %v17834_v59  ;;  %v7008_v37 = vsel %vm754_vm0, %v6978_v22, 0.0 }
 0xf8a   : > { %v16520_v55 = vpop.eup %9923  ;;  %v7070_v49 = vmul.f32 0.5, %v7069_v53  ;;  %7009 = vadd.xlane.f32.xlu1 %v7008_v37  ;;  %v6917_v1 = vpop.xlane.xlu0 %6916 }
 0xf8b   : > { %v16523_v62 = vadd.f32 1e-05, %v7037_v0  ;;  %v7078_v17 = vmul.f32 %v16520_v55, %v7052_v14  ;;  %v6947_v51 = vmul.f32 %v6917_v1, %v17834_v59  ;;  %vm7084_vm4 = vweird.f32 %v16520_v55 }
 0xf8c   : > { %v7071_v27 = vsub.f32 1.5, %v7070_v49  ;;  %vm16562_vm6 = vmor %vm7083_vm3, %vm7084_vm4 }
 0xf8d   : > { %9925 = vrsqrt.f32 %v16523_v62  ;;  %v7079_v44 = vmul.f32 %v16520_v55, %v7078_v17  ;;  %v16534_v20 = vsub.f32 %v16452_v30, %v6947_v51  ;;  %v7278_v30 = vsel %vm7277_vm1, %v16341_v16, 0.0 }
 0xf8e   : > { %v7072_v21 = vmul.f32 %v9922_v13, %v7071_v27  ;;  %vm7093_vm8 = vweird.f32 %v16523_v62 }
 0xf8f   : > { %v7080_v36 = vmul.f32 0.5, %v7079_v44  ;;  %v6998_v38 = vpop.xlane.xlu2 %6997  ;;  %v6979_v47 = vmul.f32 %v16534_v20, %v16534_v20 }
 0xf90   : > { %v6920_v12 = vpop.xlane.xlu1 %6919  ;;  %v7038_v57 = vmul.f32 %v6998_v38, %v17834_v59  ;;  %v7076_v54 = vsel %vm16539_vm5, %v9922_v13, %v7072_v21 }
 0xf91   : > { %v6948_v15 = vmul.f32 %v6920_v12, %v17834_v59  ;;  %v7081_v50 = vsub.f32 1.5, %v7080_v36  ;;  %v7011_v58 = vsel %vm754_vm0, %v6979_v47, 0.0  ;;  %v7227_v46 = vmul.f32 %v7076_v54, %v16425_v18 }
 0xf92   : > { %v16546_v41 = vadd.f32 1e-05, %v7038_v57  ;;  %7279 = vadd.xlane.f32.xlu1 %v7278_v30  ;;  %7012 = vadd.xlane.f32.xlu2 %v7011_v58 }
 0xf93   : > { %v9926_v48 = vpop.eup %9925  ;;  %v16544_v32 = vsub.f32 %v16460_v33, %v6948_v15  ;;  %v7082_v34 = vmul.f32 %v16520_v55, %v7081_v50  ;;  %v10154_v33 = vld [vmem:[%s17428_s13] sm:$0xff] }
 0xf94   : > { %v7088_v5 = vmul.f32 %v9926_v48, %v16523_v62  ;;  %v16559_v60 = vperm.slane %v10154_v33, 6  ;;  %9927 = vrsqrt.f32 %v16546_v41  ;;  %v16575_v10 = vperm.slane %v10154_v33, 7 }
 0xf95   : > { %v6980_v35 = vmul.f32 %v16544_v32, %v16544_v32  ;;  %v7086_v14 = vsel %vm16562_vm6, %v16520_v55, %v7082_v34  ;;  %vm7094_vm7 = vweird.f32 %v9926_v48  ;;  %vm7103_vm11 = vweird.f32 %v16546_v41 }
 0xf96   : > { %v7089_v6 = vmul.f32 %v9926_v48, %v7088_v5  ;;  %v7244_v7 = vmul.f32 %v16559_v60, %v7227_v46  ;;  %v7228_v55 = vmul.f32 %v7086_v14, %v16429_v11  ;;  %vm16595_vm9 = vmor %vm7093_vm8, %vm7094_vm7  ;;  %v6936_v11 = vsel %vm754_vm0, %v16584_v24, 0.0 }
 0xf97   : > { %v7014_v28 = vsel %vm754_vm0, %v6980_v35, 0.0 }
 0xf98   : > { %v7090_v13 = vmul.f32 0.5, %v7089_v6  ;;  %v6923_v0 = vpop.xlane.xlu1 %6922  ;;  %7015 = vadd.xlane.f32.xlu0 %v7014_v28  ;;  %v7001_v19 = vpop.xlane.xlu2 %7000  ;;  %v16591_v8 = vadd.f32 %v16575_v10, %v7244_v7  ;;  %v7245_v42 = vmul.f32 %v16559_v60, %v7228_v55 }
 0xf99   : > { %v6949_v22 = vmul.f32 %v6923_v0, %v17834_v59  ;;  %v7039_v18 = vmul.f32 %v7001_v19, %v17834_v59 }
 0xf9a   : > { %v7091_v53 = vsub.f32 1.5, %v7090_v13  ;;  %v9928_v17 = vpop.eup %9927  ;;  %6937 = vadd.xlane.f32.xlu2 %v6936_v11  ;;  %v7307_v51 = vsel %vm754_vm0, %v16591_v8, 0.0  ;;  %v16613_v21 = vadd.f32 %v16575_v10, %v7245_v42 }
 0xf9b   : > { %v16588_v37 = vsub.f32 %v16475_v61, %v6949_v22  ;;  %v7055_v49 = vadd.f32 1e-05, %v7039_v18  ;;  %v7098_v1 = vmul.f32 %v9928_v17, %v16546_v41  ;;  %v6933_v61 = vsel %vm754_vm0, %v16578_v4, 0.0 }
 0xf9c   : > { %v7092_v44 = vmul.f32 %v9926_v48, %v7091_v53  ;;  %6934 = vadd.xlane.f32.xlu1 %v6933_v61  ;;  %vm7104_vm10 = vweird.f32 %v9928_v17  ;;  %v7310_v54 = vsel %vm754_vm0, %v16613_v21, 0.0 }
 0xf9d   : > { %9929 = vrsqrt.f32 %v7055_v49  ;;  %v7099_v45 = vmul.f32 %v9928_v17, %v7098_v1  ;;  %v6981_v27 = vmul.f32 %v16588_v37, %v16588_v37  ;;  %vm7105_vm12 = vmor %vm7103_vm11, %vm7104_vm10  ;;  %vm7113_vm14 = vweird.f32 %v7055_v49 }
 0xf9e   : > { %v7096_v62 = vsel %vm16595_vm9, %v9926_v48, %v7092_v44 }
 0xf9f   : > { %v7100_v36 = vmul.f32 0.5, %v7099_v45  ;;  %v7229_v50 = vmul.f32 %v7096_v62, %v16444_v2  ;;  %v7017_v25 = vsel %vm754_vm0, %v6981_v27, 0.0 }
 0xfa0   : > { %v6926_v12 = vpop.xlane.xlu2 %6925  ;;  %7308 = vadd.xlane.f32.xlu0 %v7307_v51  ;;  %v7004_v38 = vpop.xlane.xlu0 %7003 }
 0xfa1   : > { %v6950_v15 = vmul.f32 %v6926_v12, %v17834_v59  ;;  %v7040_v57 = vmul.f32 %v7004_v38, %v17834_v59  ;;  %v7101_v48 = vsub.f32 1.5, %v7100_v36  ;;  %v7246_v33 = vmul.f32 %v16559_v60, %v7229_v50 }
 0xfa2   : > { %7018 = vadd.xlane.f32.xlu2 %v7017_v25 }
 0xfa3   : > { %v9930_v9 = vpop.eup %9929  ;;  %v16617_v30 = vsub.f32 %v16488_v29, %v6950_v15  ;;  %v7056_v47 = vadd.f32 1e-05, %v7040_v57  ;;  %v7102_v34 = vmul.f32 %v9928_v17, %v7101_v48  ;;  %v16630_v46 = vadd.f32 %v16575_v10, %v7246_v33 }
 0xfa4   : > { %v7108_v5 = vmul.f32 %v9930_v9, %v7055_v49  ;;  %7311 = vadd.xlane.f32.xlu1 %v7310_v54  ;;  %vm7114_vm13 = vweird.f32 %v9930_v9 }
 0xfa5   : > { %9931 = vrsqrt.f32 %v7056_v47  ;;  %v6982_v2 = vmul.f32 %v16617_v30, %v16617_v30  ;;  %v7106_v29 = vsel %vm7105_vm12, %v9928_v17, %v7102_v34  ;;  %vm7115_vm15 = vmor %vm7113_vm14, %vm7114_vm13  ;;  %v7313_v22 = vsel %vm754_vm0, %v16630_v46, 0.0 }
 0xfa6   : > { %v7109_v23 = vmul.f32 %v9930_v9, %v7108_v5  ;;  %v7230_v58 = vmul.f32 %v7106_v29, %v16457_v56  ;;  %vm7123_vm3 = vweird.f32 %v7056_v47 }
 0xfa7   : > { %v7020_v40 = vsel %vm754_vm0, %v6982_v2, 0.0 }
 0xfa8   : > { %v7110_v41 = vmul.f32 0.5, %v7109_v23  ;;  %v6929_v35 = vpop.xlane.xlu2 %6928  ;;  %7021 = vadd.xlane.f32.xlu0 %v7020_v40  ;;  %v7247_v14 = vmul.f32 %v16559_v60, %v7230_v58 }
 0xfa9   : > { %v6951_v6 = vmul.f32 %v6929_v35, %v17834_v59 }
 0xfaa   : > { %v7111_v28 = vsub.f32 1.5, %v7110_v41  ;;  %v16637_v19 = vadd.f32 %v16575_v10, %v7247_v14 }
 0xfab   : > { %v9932_v13 = vpop.eup %9931  ;;  %v16634_v0 = vsub.f32 %v16496_v52, %v6951_v6 }
 0xfac   : > { %v7112_v56 = vmul.f32 %v9930_v9, %v7111_v28  ;;  %v7118_v7 = vmul.f32 %v9932_v13, %v7056_v47  ;;  %v7316_v18 = vsel %vm754_vm0, %v16637_v19, 0.0  ;;  %7314 = vadd.xlane.f32.xlu1 %v7313_v22  ;;  %vm7124_vm2 = vweird.f32 %v9932_v13 }
 0xfad   : > { %v6983_v55 = vmul.f32 %v16634_v0, %v16634_v0  ;;  %7317 = vadd.xlane.f32.xlu2 %v7316_v18  ;;  %vm7125_vm4 = vmor %vm7123_vm3, %vm7124_vm2 }
 0xfae   : > { %v7119_v53 = vmul.f32 %v9932_v13, %v7118_v7  ;;  %v7116_v52 = vsel %vm7115_vm15, %v9930_v9, %v7112_v56 }
 0xfaf   : > { %v7023_v17 = vsel %vm754_vm0, %v6983_v55, 0.0  ;;  %v7231_v44 = vmul.f32 %v7116_v52, %v16472_v39 }
 0xfb0   : > { %7024 = vadd.xlane.f32.xlu0 %v7023_v17  ;;  %v7120_v49 = vmul.f32 0.5, %v7119_v53 }
 0xfb1   : > { %v7248_v1 = vmul.f32 %v16559_v60, %v7231_v44 }
 0xfb2   : > { %v7121_v11 = vsub.f32 1.5, %v7120_v49 }
 0xfb3   : > { %v16649_v26 = vadd.f32 %v16575_v10, %v7248_v1 }
 0xfb4   : > { %v7122_v45 = vmul.f32 %v9932_v13, %v7121_v11 }
 0xfb5   : > { %v7319_v42 = vsel %vm754_vm0, %v16649_v26, 0.0 }
 0xfb6   : > { %v7126_v51 = vsel %vm7125_vm4, %v9932_v13, %v7122_v45 }
 0xfb7   : > { %v7232_v36 = vmul.f32 %v7126_v51, %v16485_v43 }
 0xfb8   : > { %7320 = vadd.xlane.f32.xlu0 %v7319_v42 }
 0xfb9   : > { %v7249_v15 = vmul.f32 %v16559_v60, %v7232_v36 }
 0xfbb   : > { %v16663_v57 = vadd.f32 %v16575_v10, %v7249_v15 }
 0xfbd   : > { %v7322_v50 = vsel %vm754_vm0, %v16663_v57, 0.0 }
 0xfc8   : > { %v7007_v61 = vpop.xlane.xlu0 %7006 }
 0xfd0   : > { %v6932_v62 = vpop.xlane.xlu0 %6931 }
 0xfd1   : > { %v6952_v39 = vmul.f32 %v6932_v62, %v17834_v59 }
 0xfd3   : > { %v16655_v27 = vsub.f32 %v16509_v31, %v6952_v39  ;;  %v7041_v31 = vmul.f32 %v7007_v61, %v17834_v59 }
 0xfd5   : > { %v6984_v12 = vmul.f32 %v16655_v27, %v16655_v27  ;;  %v7057_v48 = vadd.f32 1e-05, %v7041_v31 }
 0xfd7   : > { %v7026_v38 = vsel %vm754_vm0, %v6984_v12, 0.0  ;;  %9933 = vrsqrt.f32 %v7057_v48  ;;  %vm7133_vm6 = vweird.f32 %v7057_v48 }
 0xfd8   : > { %7027 = vadd.xlane.f32.xlu1 %v7026_v38 }
 0xfdd   : > { %v9934_v43 = vpop.eup %9933 }
 0xfde   : > { %v7128_v9 = vmul.f32 %v9934_v43, %v7057_v48  ;;  %vm7134_vm5 = vweird.f32 %v9934_v43 }
 0xfdf   : > { %vm7135_vm7 = vmor %vm7133_vm6, %vm7134_vm5 }
 0xfe0   : > { %7323 = vadd.xlane.f32.xlu1 %v7322_v50  ;;  %v7129_v47 = vmul.f32 %v9934_v43, %v7128_v9 }
 0xfe2   : > { %v7130_v5 = vmul.f32 0.5, %v7129_v47 }
 0xfe4   : > { %v7131_v2 = vsub.f32 1.5, %v7130_v5 }
 0xfe6   : > { %v7132_v35 = vmul.f32 %v9934_v43, %v7131_v2 }
 0xfe8   : > { %v7136_v18 = vsel %vm7135_vm7, %v9934_v43, %v7132_v35 }
 0xfe9   : > { %v7233_v11 = vmul.f32 %v7136_v18, %v16503_v3 }
 0xfeb   : > { %v7250_v15 = vmul.f32 %v16559_v60, %v7233_v11 }
 0xfed   : > { %v16724_v35 = vadd.f32 %v16575_v10, %v7250_v15 }
 0xffd   : > { %v7010_v25 = vpop.xlane.xlu1 %7009 }
 0xffe   : > { %v7042_v34 = vmul.f32 %v7010_v25, %v17834_v59 }
0x1000   : > { %v7058_v54 = vadd.f32 1e-05, %v7042_v34 }
0x1002   : > { %9935 = vrsqrt.f32 %v7058_v54 }
0x1005   : > { %v7280_v33 = vpop.xlane.xlu1 %7279  ;;  %v7013_v23 = vpop.xlane.xlu2 %7012 }
0x1006   : > { %v7281_v29 = vmul.f32 %v7280_v33, %v17834_v59  ;;  %v7043_v40 = vmul.f32 %v7013_v23, %v17834_v59 }
0x1008   : > { %v9936_v41 = vpop.eup %9935  ;;  %v16672_v6 = vsub.f32 %v16341_v16, %v7281_v29  ;;  %v16674_v14 = vadd.f32 1e-05, %v7043_v40 }
0x1009   : > { %v7138_v13 = vmul.f32 %v9936_v41, %v7058_v54  ;;  %vm7144_vm8 = vweird.f32 %v9936_v41 }
0x100a   : > { %9937 = vrsqrt.f32 %v16674_v14  ;;  %v7283_v7 = vmul.f32 %v16672_v6, %v16672_v6  ;;  %vm7153_vm11 = vweird.f32 %v16674_v14 }
0x100b   : > { %v7016_v58 = vpop.xlane.xlu0 %7015  ;;  %v7139_v22 = vmul.f32 %v9936_v41, %v7138_v13 }
0x100c   : > { %v7044_v28 = vmul.f32 %v7016_v58, %v17834_v59  ;;  %v7284_v16 = vsel %vm7277_vm1, %v7283_v7, 0.0  ;;  %vm7143_vm1 = vweird.f32 %v7058_v54 }
0x100d   : > { %v7140_v55 = vmul.f32 0.5, %v7139_v22  ;;  %7285 = vadd.xlane.f32.xlu2 %v7284_v16  ;;  %v6938_v53 = vpop.xlane.xlu2 %6937  ;;  %vm7145_vm9 = vmor %vm7143_vm1, %vm7144_vm8 }
0x100e   : > { %v16678_v56 = vadd.f32 1e-05, %v7044_v28  ;;  %v6954_v17 = vmul.f32 %v6938_v53, %v17834_v59 }
0x100f   : > { %v6935_v52 = vpop.xlane.xlu1 %6934  ;;  %v7141_v49 = vsub.f32 1.5, %v7140_v55  ;;  %v7325_v55 = vsel %vm754_vm0, %v16724_v35, 0.0 }
0x1010   : > { %9939 = vrsqrt.f32 %v16678_v56  ;;  %v6953_v44 = vmul.f32 %v6935_v52, %v17834_v59  ;;  %v9938_v61 = vpop.eup %9937  ;;  %v16688_v42 = vsub.f32 %v16584_v24, %v6954_v17  ;;  %vm7163_vm14 = vweird.f32 %v16678_v56 }
0x1011   : > { %v7142_v51 = vmul.f32 %v9936_v41, %v7141_v49  ;;  %v7148_v39 = vmul.f32 %v9938_v61, %v16674_v14  ;;  %vm7154_vm10 = vweird.f32 %v9938_v61 }
0x1012   : > { %v16691_v45 = vsub.f32 %v16578_v4, %v6953_v44  ;;  %v6986_v3 = vmul.f32 %v16688_v42, %v16688_v42  ;;  %vm7155_vm13 = vmor %vm7153_vm11, %vm7154_vm10 }
0x1013   : > { %v7309_v1 = vpop.xlane.xlu0 %7308  ;;  %v7149_v4 = vmul.f32 %v9938_v61, %v7148_v39  ;;  %v7146_v50 = vsel %vm7145_vm9, %v9936_v41, %v7142_v51 }
0x1014   : > { %v7355_v62 = vmul.f32 %v7309_v1, %v17834_v59  ;;  %v6985_v24 = vmul.f32 %v16691_v45, %v16691_v45  ;;  %v7032_v31 = vsel %vm754_vm0, %v6986_v3, 0.0  ;;  %v7234_v43 = vmul.f32 %v7146_v50, %v16517_v63 }
0x1015   : > { %v7150_v9 = vmul.f32 0.5, %v7149_v4  ;;  %7033 = vadd.xlane.f32.xlu0 %v7032_v31  ;;  %v7019_v25 = vpop.xlane.xlu2 %7018 }
0x1016   : > { %v16695_v36 = vpop.eup %9939  ;;  %v16698_v12 = vsub.f32 %v16591_v8, %v7355_v62  ;;  %v7029_v48 = vsel %vm754_vm0, %v6985_v24, 0.0  ;;  %v7045_v5 = vmul.f32 %v7019_v25, %v17834_v59  ;;  %v7251_v33 = vmul.f32 %v16559_v60, %v7234_v43 }
0x1017   : > { %v7158_v38 = vmul.f32 %v16695_v36, %v16678_v56  ;;  %7030 = vadd.xlane.f32.xlu2 %v7029_v48  ;;  %v7312_v34 = vpop.xlane.xlu1 %7311  ;;  %v7151_v23 = vsub.f32 1.5, %v7150_v9  ;;  %vm7164_vm12 = vweird.f32 %v16695_v36 }
0x1018   : > { %v7387_v8 = vmul.f32 %v16698_v12, %v16698_v12  ;;  %v7356_v54 = vmul.f32 %v7312_v34, %v17834_v59  ;;  %v16717_v63 = vadd.f32 1e-05, %v7045_v5  ;;  %v16734_v22 = vadd.f32 %v16575_v10, %v7251_v33  ;;  %vm16738_vm15 = vmor %vm7163_vm14, %vm7164_vm12 }
0x1019   : > { %v7159_v47 = vmul.f32 %v16695_v36, %v7158_v38  ;;  %v7152_v28 = vmul.f32 %v9938_v61, %v7151_v23 }
0x101a   : > { %v7403_v2 = vsel %vm754_vm0, %v7387_v8, 0.0  ;;  %v16720_v58 = vsub.f32 %v16613_v21, %v7356_v54  ;;  %9941 = vrsqrt.f32 %v16717_v63  ;;  %v7328_v11 = vsel %vm754_vm0, %v16734_v22, 0.0 }
0x101b   : > { %v7160_v29 = vmul.f32 0.5, %v7159_v47  ;;  %v7022_v40 = vpop.xlane.xlu0 %7021  ;;  %7404 = vadd.xlane.f32.xlu1 %v7403_v2  ;;  %v7156_v18 = vsel %vm7155_vm13, %v9938_v61, %v7152_v28  ;;  %vm7173_vm3 = vweird.f32 %v16717_v63 }
0x101c   : > { %v7046_v41 = vmul.f32 %v7022_v40, %v17834_v59  ;;  %v7388_v21 = vmul.f32 %v16720_v58, %v16720_v58  ;;  %v7235_v52 = vmul.f32 %v7156_v18, %v16534_v20 }
0x101d   : > { %v7161_v13 = vsub.f32 1.5, %v7160_v29  ;;  %7326 = vadd.xlane.f32.xlu0 %v7325_v55 }
0x101e   : > { %v16729_v7 = vadd.f32 1e-05, %v7046_v41  ;;  %v7406_v53 = vsel %vm754_vm0, %v7388_v21, 0.0  ;;  %v7252_v61 = vmul.f32 %v16559_v60, %v7235_v52 }
0x101f   : > { %v7162_v16 = vmul.f32 %v16695_v36, %v7161_v13  ;;  %7407 = vadd.xlane.f32.xlu2 %v7406_v53  ;;  %v7315_v17 = vpop.xlane.xlu1 %7314 }
0x1020   : > { %9943 = vrsqrt.f32 %v16729_v7  ;;  %v7318_v44 = vpop.xlane.xlu2 %7317  ;;  %v7357_v49 = vmul.f32 %v7315_v17, %v17834_v59  ;;  %v9942_v20 = vpop.eup %9941  ;;  %vm7183_vm6 = vweird.f32 %v16729_v7 }
0x1021   : > { %v7166_v56 = vsel %vm16738_vm15, %v16695_v36, %v7162_v16  ;;  %v7358_v1 = vmul.f32 %v7318_v44, %v17834_v59  ;;  %v7168_v24 = vmul.f32 %v9942_v20, %v16717_v63  ;;  %vm7174_vm2 = vweird.f32 %v9942_v20 }
0x1022   : > { %v16756_v51 = vsub.f32 %v16630_v46, %v7357_v49  ;;  %v7236_v3 = vmul.f32 %v7166_v56, %v16544_v32  ;;  %v16769_v46 = vadd.f32 %v16575_v10, %v7252_v61  ;;  %vm7175_vm5 = vmor %vm7173_vm3, %vm7174_vm2 }
0x1023   : > { %v7025_v62 = vpop.xlane.xlu0 %7024  ;;  %7329 = vadd.xlane.f32.xlu1 %v7328_v11  ;;  %v16759_v39 = vsub.f32 %v16637_v19, %v7358_v1  ;;  %v7169_v31 = vmul.f32 %v9942_v20, %v7168_v24 }
0x1024   : > { %v7047_v36 = vmul.f32 %v7025_v62, %v17834_v59  ;;  %v7389_v15 = vmul.f32 %v16756_v51, %v16756_v51  ;;  %v7253_v8 = vmul.f32 %v16559_v60, %v7236_v3  ;;  %v7331_v47 = vsel %vm754_vm0, %v16769_v46, 0.0 }
0x1025   : > { %v7390_v50 = vmul.f32 %v16759_v39, %v16759_v39  ;;  %v7170_v43 = vmul.f32 0.5, %v7169_v31 }
0x1026   : > { %v9944_v4 = vpop.eup %9943  ;;  %v7063_v38 = vadd.f32 1e-05, %v7047_v36  ;;  %v7409_v48 = vsel %vm754_vm0, %v7389_v15, 0.0  ;;  %v16779_v2 = vadd.f32 %v16575_v10, %v7253_v8 }
0x1027   : > { %v7178_v19 = vmul.f32 %v9944_v4, %v16729_v7  ;;  %v7412_v32 = vsel %vm754_vm0, %v7390_v50, 0.0  ;;  %7410 = vadd.xlane.f32.xlu2 %v7409_v48  ;;  %v7171_v25 = vsub.f32 1.5, %v7170_v43  ;;  %vm7184_vm4 = vweird.f32 %v9944_v4 }
0x1028   : > { %9945 = vrsqrt.f32 %v7063_v38  ;;  %7413 = vadd.xlane.f32.xlu0 %v7412_v32  ;;  %vm7185_vm7 = vmor %vm7183_vm6, %vm7184_vm4  ;;  %v7334_v21 = vsel %vm754_vm0, %v16779_v2, 0.0  ;;  %vm7193_vm1 = vweird.f32 %v7063_v38 }
0x1029   : > { %v7179_v9 = vmul.f32 %v9944_v4, %v7178_v19  ;;  %v7172_v33 = vmul.f32 %v9942_v20, %v7171_v25 }
0x102b   : > { %v7180_v34 = vmul.f32 0.5, %v7179_v9  ;;  %v7321_v5 = vpop.xlane.xlu0 %7320  ;;  %7332 = vadd.xlane.f32.xlu1 %v7331_v47  ;;  %v7176_v13 = vsel %vm7175_vm5, %v9942_v20, %v7172_v33 }
0x102c   : > { %v7359_v54 = vmul.f32 %v7321_v5, %v17834_v59  ;;  %v7237_v63 = vmul.f32 %v7176_v13, %v16588_v37 }
0x102d   : > { %v7181_v23 = vsub.f32 1.5, %v7180_v34 }
0x102e   : > { %v9946_v29 = vpop.eup %9945  ;;  %v16783_v40 = vsub.f32 %v16649_v26, %v7359_v54  ;;  %v7254_v55 = vmul.f32 %v16559_v60, %v7237_v63 }
0x102f   : > { %v7182_v41 = vmul.f32 %v9944_v4, %v7181_v23  ;;  %v7188_v28 = vmul.f32 %v9946_v29, %v7063_v38  ;;  %7335 = vadd.xlane.f32.xlu2 %v7334_v21  ;;  %vm7194_vm8 = vweird.f32 %v9946_v29 }
0x1030   : > { %v7391_v16 = vmul.f32 %v16783_v40, %v16783_v40  ;;  %v16795_v52 = vadd.f32 %v16575_v10, %v7254_v55  ;;  %vm7195_vm9 = vmor %vm7193_vm1, %vm7194_vm8 }
0x1031   : > { %v7189_v18 = vmul.f32 %v9946_v29, %v7188_v28  ;;  %v7186_v14 = vsel %vm7185_vm7, %v9944_v4, %v7182_v41  ;;  %v9193_v41 = vld [vmem:[%s17424_s9 + $0x18] sm:$0xff] }
0x1032   : > { %v7415_v26 = vsel %vm754_vm0, %v7391_v16, 0.0  ;;  %v7238_v7 = vmul.f32 %v7186_v14, %v16617_v30  ;;  %v7337_v1 = vsel %vm754_vm0, %v16795_v52, 0.0  ;;  %7746 = vmatpush.bf16.msrb.mxu2 %v9193_v41 }
0x1033   : > { %v7190_v53 = vmul.f32 0.5, %v7189_v18  ;;  %7416 = vadd.xlane.f32.xlu0 %v7415_v26 }
0x1034   : > { %v7255_v17 = vmul.f32 %v16559_v60, %v7238_v7 }
0x1035   : > { %v7191_v44 = vsub.f32 1.5, %v7190_v53 }
0x1036   : > { %v16799_v37 = vadd.f32 %v16575_v10, %v7255_v17  ;;  %v9191_v17 = vld [vmem:[%s17424_s9 + $0x8] sm:$0xff] }
0x1037   : > { %v7192_v56 = vmul.f32 %v9946_v29, %v7191_v44  ;;  %7338 = vadd.xlane.f32.xlu2 %v7337_v1 }
0x1038   : > { %v7340_v11 = vsel %vm754_vm0, %v16799_v37, 0.0 }
0x1039   : > { %v7196_v30 = vsel %vm7195_vm9, %v9946_v29, %v7192_v56 }
0x103a   : > { %v7239_v61 = vmul.f32 %v7196_v30, %v16634_v0 }
0x103b   : > { %7341 = vadd.xlane.f32.xlu0 %v7340_v11  ;;  %v9201_v11 = vld [vmem:[%s17426_s11 + $0x18] sm:$0xff] }
0x103c   : > { %v7256_v62 = vmul.f32 %v16559_v60, %v7239_v61  ;;  %7906 = vmatpush.bf16.msra.mxu1 %v9201_v11 }
0x103e   : > { %v16808_v20 = vadd.f32 %v16575_v10, %v7256_v62 }
0x1040   : > { %v7343_v24 = vsel %vm754_vm0, %v16808_v20, 0.0 }
0x1043   : > { %7344 = vadd.xlane.f32.xlu0 %v7343_v24 }
0x104b   : > { %v7028_v49 = vpop.xlane.xlu1 %7027 }
0x104c   : > { %v7048_v15 = vmul.f32 %v7028_v49, %v17834_v59 }
0x104e   : > { %v7064_v50 = vadd.f32 1e-05, %v7048_v15 }
0x1050   : > { %9947 = vrsqrt.f32 %v7064_v50  ;;  %vm7203_vm11 = vweird.f32 %v7064_v50 }
0x1053   : > { %v7324_v36 = vpop.xlane.xlu1 %7323 }
0x1054   : > { %v7360_v3 = vmul.f32 %v7324_v36, %v17834_v59 }
0x1056   : > { %v16814_v4 = vsub.f32 %v16663_v57, %v7360_v3  ;;  %v9948_v31 = vpop.eup %9947 }
0x1057   : > { %v7198_v19 = vmul.f32 %v9948_v31, %v7064_v50  ;;  %vm7204_vm10 = vweird.f32 %v9948_v31 }
0x1058   : > { %v7392_v38 = vmul.f32 %v16814_v4, %v16814_v4  ;;  %vm7205_vm12 = vmor %vm7203_vm11, %vm7204_vm10 }
0x1059   : > { %v7199_v48 = vmul.f32 %v9948_v31, %v7198_v19  ;;  %v9200_v19 = vld [vmem:[%s17426_s11 + $0x10] sm:$0xff] }
0x105a   : > { %v7418_v0 = vsel %vm754_vm0, %v7392_v38, 0.0  ;;  %v16865_v38 = vld [vmem:[%s17428_s13 + $0x8] sm:$0xff]  ;;  %7907 = vmatpush.bf16.msra.mxu1 %v9200_v19 }
0x105b   : > { %7419 = vadd.xlane.f32.xlu1 %v7418_v0  ;;  %v7200_v32 = vmul.f32 0.5, %v7199_v48  ;;  %v7301_v0 = vrot.slane %v16865_v38, 1  ;;  %v7304_v15 = vrot.slane %v16865_v38, 2 }
0x105d   : > { %v7201_v8 = vsub.f32 1.5, %v7200_v32 }
0x105f   : > { %v7202_v9 = vmul.f32 %v9948_v31, %v7201_v8 }
0x1061   : > { %v7206_v25 = vsel %vm7205_vm12, %v9948_v31, %v7202_v9  ;;  %v9190_v31 = vld [vmem:[%s17424_s9] sm:$0xff] }
0x1062   : > { %v7240_v23 = vmul.f32 %v7206_v25, %v16655_v27  ;;  %v9192_v27 = vld [vmem:[%s17424_s9 + $0x10] sm:$0xff] }
0x1063   : > { %7747 = vmatpush.bf16.msrb.mxu2 %v9192_v27  ;;  %v9196_v27 = vld [vmem:[%s17425_s10 + $0x10] sm:$0xff] }
0x1064   : > { %v7257_v14 = vmul.f32 %v16559_v60, %v7240_v23 }
0x1066   : > { %v16847_v49 = vadd.f32 %v16575_v10, %v7257_v14 }
0x1067   : > { %7748 = vmatpush.bf16.msrb.mxu2 %v9191_v17 }
0x1068   : > { %v16887_v8 = vsel %vm754_vm0, %v16847_v49, 0.0 }
0x106b   : > { %7749 = vmatpush.bf16.msrb.mxu2 %v9190_v31 }
0x1080   : > { %v7286_v43 = vpop.xlane.xlu2 %7285 }
0x1081   : > { %v7287_v57 = vmul.f32 %v7286_v43, %v17834_v59  ;;  %v9197_v43 = vld [vmem:[%s17425_s10 + $0x18] sm:$0xff] }
0x1082   : > { %7816 = vmatpush.bf16.msra.mxu2 %v9197_v43 }
0x1083   : > { %v7288_v47 = vadd.f32 1e-06, %v7287_v57 }
0x1085   : > { %9949 = vrsqrt.f32 %v7288_v47  ;;  %vm7295_vm13 = vweird.f32 %v7288_v47 }
0x1086   : > { %7817 = vmatpush.bf16.msra.mxu2 %v9196_v27 }
0x1088   : > { %v7034_v34 = vpop.xlane.xlu0 %7033 }
0x1089   : > { %v7050_v54 = vmul.f32 %v7034_v34, %v17834_v59 }
0x108a   : > { %v7031_v5 = vpop.xlane.xlu2 %7030 }
0x108b   : > { %v7049_v33 = vmul.f32 %v7031_v5, %v17834_v59  ;;  %v9950_v28 = vpop.eup %9949  ;;  %v16827_v13 = vadd.f32 1e-05, %v7050_v54 }
0x108c   : > { %v7290_v63 = vmul.f32 %v9950_v28, %v7288_v47  ;;  %vm7296_vm14 = vweird.f32 %v9950_v28 }
0x108d   : > { %v16829_v21 = vadd.f32 1e-05, %v7049_v33  ;;  %9951 = vrsqrt.f32 %v16827_v13  ;;  %vm7297_vm15 = vmor %vm7295_vm13, %vm7296_vm14  ;;  %vm7223_vm2 = vweird.f32 %v16827_v13 }
0x108e   : > { %v7405_v29 = vpop.xlane.xlu1 %7404  ;;  %v7291_v26 = vmul.f32 %v9950_v28, %v7290_v63 }
0x108f   : > { %v7451_v16 = vmul.f32 %v7405_v29, %v17834_v59  ;;  %9953 = vrsqrt.f32 %v16829_v21  ;;  %vm7213_vm3 = vweird.f32 %v16829_v21 }
0x1090   : > { %v7292_v55 = vmul.f32 0.5, %v7291_v26  ;;  %v7327_v7 = vpop.xlane.xlu0 %7326 }
0x1091   : > { %v16833_v18 = vadd.f32 1e-06, %v7451_v16  ;;  %v7361_v44 = vmul.f32 %v7327_v7, %v17834_v59 }
0x1092   : > { %v7408_v53 = vpop.xlane.xlu2 %7407  ;;  %v7293_v1 = vsub.f32 1.5, %v7292_v55 }
0x1093   : > { %9955 = vrsqrt.f32 %v16833_v18  ;;  %v7452_v56 = vmul.f32 %v7408_v53, %v17834_v59  ;;  %v16852_v61 = vpop.eup %9951  ;;  %v16855_v62 = vsub.f32 %v16724_v35, %v7361_v44  ;;  %vm7489_vm8 = vweird.f32 %v16833_v18 }
0x1094   : > { %v7294_v50 = vmul.f32 %v9950_v28, %v7293_v1  ;;  %v7218_v35 = vmul.f32 %v16852_v61, %v16827_v13  ;;  %vm7224_vm4 = vweird.f32 %v16852_v61 }
0x1095   : > { %v16857_v36 = vadd.f32 1e-06, %v7452_v56  ;;  %v16860_v24 = vpop.eup %9953  ;;  %v7393_v5 = vmul.f32 %v16855_v62, %v16855_v62  ;;  %vm16933_vm7 = vmor %vm7223_vm2, %vm7224_vm4 }
0x1096   : > { %v7330_v30 = vpop.xlane.xlu1 %7329  ;;  %v7208_v32 = vmul.f32 %v16860_v24, %v16829_v21  ;;  %v7298_v57 = vsel %vm7297_vm15, %v9950_v28, %v7294_v50  ;;  %v7219_v9 = vmul.f32 %v16852_v61, %v7218_v35  ;;  %vm7214_vm5 = vweird.f32 %v16860_v24  ;;  %v9198_v50 = vld [vmem:[%s17426_s11] sm:$0xff] }
0x1097   : > { %v7362_v3 = vmul.f32 %v7330_v30, %v17834_v59  ;;  %9957 = vrsqrt.f32 %v16857_v36  ;;  %v7299_v25 = vmul.f32 %v7298_v57, %v16672_v6  ;;  %v9199_v6 = vld [vmem:[%s17426_s11 + $0x8] sm:$0xff]  ;;  %v7421_v63 = vsel %vm754_vm0, %v7393_v5, 0.0  ;;  %vm16944_vm1 = vmor %vm7213_vm3, %vm7214_vm5 }
0x1098   : > { %v7209_v34 = vmul.f32 %v16860_v24, %v7208_v32  ;;  %v7220_v33 = vmul.f32 0.5, %v7219_v9  ;;  %7422 = vadd.xlane.f32.xlu1 %v7421_v63  ;;  %7908 = vmatpush.bf16.msra.mxu1 %v9199_v6  ;;  %vm7499_vm11 = vweird.f32 %v16857_v36 }
0x1099   : > { %v16877_v48 = vpop.eup %9955  ;;  %v16901_v54 = vsub.f32 %v16734_v22, %v7362_v3  ;;  %v7303_v28 = vmul.f32 %v7301_v0, %v7299_v25 }
0x109a   : > { %v7484_v47 = vmul.f32 %v16877_v48, %v16833_v18  ;;  %v7411_v29 = vpop.xlane.xlu2 %7410  ;;  %v7210_v16 = vmul.f32 0.5, %v7209_v34  ;;  %v7221_v14 = vsub.f32 1.5, %v7220_v33  ;;  %vm7490_vm6 = vweird.f32 %v16877_v48  ;;  %v9195_v18 = vld [vmem:[%s17425_s10 + $0x8] sm:$0xff] }
0x109b   : > { %v7414_v41 = vpop.xlane.xlu0 %7413  ;;  %v7453_v22 = vmul.f32 %v7411_v29, %v17834_v59  ;;  %v7394_v7 = vmul.f32 %v16901_v54, %v16901_v54  ;;  %v7306_v44 = vadd.f32 %v7304_v15, %v7303_v28  ;;  %vm7491_vm9 = vmor %vm7489_vm8, %vm7490_vm6  ;;  %v16968_v34 = vperm.slane %v16865_v38, 4  ;;  %7818 = vmatpush.bf16.msra.mxu2 %v9195_v18 }
0x109c   : > { %v7485_v23 = vmul.f32 %v16877_v48, %v7484_v47  ;;  %v7454_v55 = vmul.f32 %v7414_v41, %v17834_v59  ;;  %v7211_v56 = vsub.f32 1.5, %v7210_v16  ;;  %v7222_v11 = vmul.f32 %v16852_v61, %v7221_v14  ;;  %7909 = vmatpush.bf16.msra.mxu1 %v9198_v50 }
0x109d   : > { %v16917_v17 = vpop.eup %9957  ;;  %v16919_v1 = vadd.f32 1e-06, %v7453_v22  ;;  %v7701_v35 = vpack.c.bf16 %v7306_v44, %v7306_v44  ;;  %v7424_v57 = vsel %vm754_vm0, %v7394_v7, 0.0  ;;  %v16979_v41 = vperm.slane %v16865_v38, 5 }
0x109e   : > { %v7486_v26 = vmul.f32 0.5, %v7485_v23  ;;  %v7333_v53 = vpop.xlane.xlu1 %7332  ;;  %v7494_v3 = vmul.f32 %v16917_v17, %v16857_v36  ;;  %v7212_v31 = vmul.f32 %v16860_v24, %v7211_v56  ;;  %v16950_v43 = vadd.f32 1e-06, %v7454_v55  ;;  %7425 = vadd.xlane.f32.xlu2 %v7424_v57 }
0x109f   : > { %v7363_v30 = vmul.f32 %v7333_v53, %v17834_v59  ;;  %9959 = vrsqrt.f32 %v16919_v1  ;;  %v7711_v9 = vshrl.u32 %v7701_v35, 16  ;;  %v7226_v25 = vsel %vm16933_vm7, %v16852_v61, %v7222_v11 }
0x10a0   : > { %v7487_v0 = vsub.f32 1.5, %v7486_v26  ;;  %v7495_v13 = vmul.f32 %v16917_v17, %v7494_v3  ;;  %v7216_v47 = vsel %vm16944_vm1, %v16860_v24, %v7212_v31  ;;  %9961 = vrsqrt.f32 %v16950_v43  ;;  %7347 = vadd.xlane.f32.xlu1 %v16887_v8 }
0x10a1   : > { %v16959_v21 = vsub.f32 %v16769_v46, %v7363_v30  ;;  %9003 = vmatmul.msk.bf16.vlgmr.msrb.gmra.mxu2 %vm754_vm0, %v7711_v9  ;;  %v7241_v24 = vmul.f32 %v7216_v47, %v16691_v45  ;;  %vm7500_vm10 = vweird.f32 %v16917_v17  ;;  %v7242_v28 = vmul.f32 %v7226_v25, %v16688_v42 }
0x10a2   : > { %v7488_v32 = vmul.f32 %v16877_v48, %v7487_v0  ;;  %v7496_v5 = vmul.f32 0.5, %v7495_v13  ;;  %v7336_v23 = vpop.xlane.xlu2 %7335  ;;  %vm7501_vm12 = vmor %vm7499_vm11, %vm7500_vm10  ;;  %vm7509_vm15 = vweird.f32 %v16919_v1  ;;  %vm7519_vm3 = vweird.f32 %v16950_v43 }
0x10a3   : > { %v7364_v29 = vmul.f32 %v7336_v23, %v17834_v59  ;;  %v7395_v61 = vmul.f32 %v16959_v21, %v16959_v21  ;;  %v7258_v63 = vmul.f32 %v16559_v60, %v7241_v24  ;;  %v7259_v44 = vmul.f32 %v16559_v60, %v7242_v28 }
0x10a4   : > { %v7492_v33 = vsel %vm7491_vm9, %v16877_v48, %v7488_v32  ;;  %v7497_v6 = vsub.f32 1.5, %v7496_v5 }
0x10a5   : > { %v7643_v46 = vmul.f32 %v7492_v33, %v16698_v12  ;;  %v9194_v12 = vld [vmem:[%s17425_s10] sm:$0xff]  ;;  %v16987_v45 = vpop.eup %9959  ;;  %v16991_v16 = vsub.f32 %v16779_v2, %v7364_v29  ;;  %v7427_v42 = vsel %vm754_vm0, %v7395_v61, 0.0  ;;  %v17005_v36 = vadd.f32 %v16575_v10, %v7258_v63 }
0x10a6   : > { %v7417_v48 = vpop.xlane.xlu0 %7416  ;;  %v7498_v8 = vmul.f32 %v16917_v17, %v7497_v6  ;;  %v7504_v14 = vmul.f32 %v16987_v45, %v16919_v1  ;;  %v9962_v26 = vpop.eup %9961  ;;  %7819 = vmatpush.bf16.msra.mxu2 %v9194_v12  ;;  %7428 = vadd.xlane.f32.xlu2 %v7427_v42  ;;  %v17022_v19 = vadd.f32 %v16575_v10, %v7259_v44  ;;  %vm7510_vm13 = vweird.f32 %v16987_v45 }
0x10a7   : > { %v7455_v22 = vmul.f32 %v7417_v48, %v17834_v59  ;;  %v7660_v27 = vmul.f32 %v16968_v34, %v7643_v46  ;;  %v7396_v2 = vmul.f32 %v16991_v16, %v16991_v16  ;;  %v7514_v30 = vmul.f32 %v9962_v26, %v16950_v43  ;;  %vm17039_vm2 = vmor %vm7509_vm15, %vm7510_vm13 }
0x10a8   : > { %v7502_v55 = vsel %vm7501_vm12, %v16917_v17, %v7498_v8  ;;  %v7505_v7 = vmul.f32 %v16987_v45, %v7504_v14  ;;  %v7349_v60 = vsel %vm754_vm0, %v17005_v36, 0.0  ;;  %vm7520_vm14 = vweird.f32 %v9962_v26 }
0x10a9   : > { %v17009_v53 = vadd.f32 1e-06, %v7455_v22  ;;  %v7644_v56 = vmul.f32 %v7502_v55, %v16720_v58  ;;  %v7677_v11 = vadd.f32 %v16979_v41, %v7660_v27  ;;  %v7430_v0 = vsel %vm754_vm0, %v7396_v2, 0.0  ;;  %7350 = vadd.xlane.f32.xlu1 %v7349_v60  ;;  %vm7521_vm4 = vmor %vm7519_vm3, %vm7520_vm14 }
0x10aa   : > { %v7506_v3 = vmul.f32 0.5, %v7505_v7  ;;  %v7339_v50 = vpop.xlane.xlu2 %7338  ;;  %v7515_v35 = vmul.f32 %v9962_v26, %v7514_v30  ;;  %7431 = vadd.xlane.f32.xlu0 %v7430_v0 }
0x10ab   : > { %v7661_v17 = vmul.f32 %v16968_v34, %v7644_v56  ;;  %v7365_v15 = vmul.f32 %v7339_v50, %v17834_v59  ;;  %9963 = vrsqrt.f32 %v17009_v53  ;;  %vm7529_vm6 = vweird.f32 %v17009_v53 }
0x10ac   : > { %v7507_v31 = vsub.f32 1.5, %v7506_v3  ;;  %v7516_v32 = vmul.f32 0.5, %v7515_v35 }
0x10ad   : > { %v7678_v13 = vadd.f32 %v16979_v41, %v7661_v17  ;;  %v17026_v57 = vsub.f32 %v16795_v52, %v7365_v15  ;;  %v7352_v52 = vsel %vm754_vm0, %v17022_v19, 0.0 }
0x10ae   : > { %v7342_v58 = vpop.xlane.xlu0 %7341  ;;  %v7508_v9 = vmul.f32 %v16987_v45, %v7507_v31  ;;  %v7517_v25 = vsub.f32 1.5, %v7516_v32  ;;  %7353 = vadd.xlane.f32.xlu2 %v7352_v52 }
0x10af   : > { %v7366_v18 = vmul.f32 %v7342_v58, %v17834_v59  ;;  %v7693_v47 = vpack.c.bf16 %v7678_v13, %v7677_v11  ;;  %v7397_v10 = vmul.f32 %v17026_v57, %v17026_v57 }
0x10b0   : > { %v7518_v23 = vmul.f32 %v9962_v26, %v7517_v25  ;;  %v7512_v1 = vsel %vm17039_vm2, %v16987_v45, %v7508_v9 }
0x10b1   : > { %v17032_v5 = vsub.f32 %v16799_v37, %v7366_v18  ;;  %9044 = vmatmul.msk.bf16.vlgmr.msra.gmra.mxu1 %vm754_vm0, %v7693_v47  ;;  %v7433_v37 = vsel %vm754_vm0, %v7397_v10, 0.0  ;;  %v9964_v29 = vpop.eup %9963  ;;  %9020 = vmatmul.msk.bf16.vlgmr.msra.gmra.mxu2 %vm754_vm0, %v7693_v47  ;;  %v7645_v48 = vmul.f32 %v7512_v1, %v16756_v51 }
0x10b2   : > { %v7522_v24 = vsel %vm7521_vm4, %v9962_v26, %v7518_v23  ;;  %7434 = vadd.xlane.f32.xlu0 %v7433_v37  ;;  %v7524_v12 = vmul.f32 %v9964_v29, %v17009_v53  ;;  %vm7530_vm5 = vweird.f32 %v9964_v29 }
0x10b3   : > { %v7398_v46 = vmul.f32 %v17032_v5, %v17032_v5  ;;  %v7646_v61 = vmul.f32 %v7522_v24, %v16759_v39  ;;  %v7662_v27 = vmul.f32 %v16968_v34, %v7645_v48  ;;  %vm7531_vm7 = vmor %vm7529_vm6, %vm7530_vm5 }
0x10b4   : > { %v7525_v63 = vmul.f32 %v9964_v29, %v7524_v12 }
0x10b5   : > { %v7436_v43 = vsel %vm754_vm0, %v7398_v46, 0.0  ;;  %v7663_v22 = vmul.f32 %v16968_v34, %v7646_v61 }
0x10b6   : > { %v7345_v6 = vpop.xlane.xlu0 %7344  ;;  %7437 = vadd.xlane.f32.xlu1 %v7436_v43  ;;  %v7526_v26 = vmul.f32 0.5, %v7525_v63 }
0x10b7   : > { %v7367_v28 = vmul.f32 %v7345_v6, %v17834_v59  ;;  %v7680_v51 = vadd.f32 %v16979_v41, %v7663_v22 }
0x10b8   : > { %v7527_v7 = vsub.f32 1.5, %v7526_v26 }
0x10b9   : > { %v17059_v45 = vsub.f32 %v16808_v20, %v7367_v28  ;;  %v7679_v20 = vadd.f32 %v16979_v41, %v7662_v27 }
0x10ba   : > { %v7528_v56 = vmul.f32 %v9964_v29, %v7527_v7 }
0x10bb   : > { %v7399_v39 = vmul.f32 %v17059_v45, %v17059_v45  ;;  %v7694_v55 = vpack.c.bf16 %v7680_v51, %v7679_v20 }
0x10bc   : > { %v7532_v3 = vsel %vm7531_vm7, %v9964_v29, %v7528_v56 }
0x10bd   : > { %v7439_v42 = vsel %vm754_vm0, %v7399_v39, 0.0  ;;  %v7647_v17 = vmul.f32 %v7532_v3, %v16783_v40 }
0x10be   : > { %7440 = vadd.xlane.f32.xlu2 %v7439_v42 }
0x10bf   : > { %v7664_v31 = vmul.f32 %v16968_v34, %v7647_v17 }
0x10c1   : > { %9045 = vmatmul.msk.bf16.gmra.mxu1 %vm754_vm0, %v7694_v55  ;;  %9021 = vmatmul.msk.bf16.gmra.mxu2 %vm754_vm0, %v7694_v55  ;;  %v7681_v53 = vadd.f32 %v16979_v41, %v7664_v31 }
0x10ce   : > { %v7420_v8 = vpop.xlane.xlu1 %7419 }
0x10cf   : > { %v7456_v14 = vmul.f32 %v7420_v8, %v17834_v59 }
0x10d1   : > { %v7472_v2 = vadd.f32 1e-06, %v7456_v14 }
0x10d3   : > { %9965 = vrsqrt.f32 %v7472_v2  ;;  %vm7539_vm1 = vweird.f32 %v7472_v2 }
0x10d9   : > { %v9966_v44 = vpop.eup %9965 }
0x10da   : > { %v7534_v30 = vmul.f32 %v9966_v44, %v7472_v2  ;;  %vm7540_vm8 = vweird.f32 %v9966_v44 }
0x10db   : > { %vm7541_vm9 = vmor %vm7539_vm1, %vm7540_vm8 }
0x10dc   : > { %v7535_v11 = vmul.f32 %v9966_v44, %v7534_v30 }
0x10de   : > { %v7536_v0 = vmul.f32 0.5, %v7535_v11 }
0x10e0   : > { %v7537_v50 = vsub.f32 1.5, %v7536_v0 }
0x10e2   : > { %v7538_v35 = vmul.f32 %v9966_v44, %v7537_v50 }
0x10e4   : > { %v7542_v15 = vsel %vm7541_vm9, %v9966_v44, %v7538_v35 }
0x10e5   : > { %v7648_v60 = vmul.f32 %v7542_v15, %v16814_v4 }
0x10e7   : > { %v7665_v58 = vmul.f32 %v16968_v34, %v7648_v60 }
0x10e9   : > { %v7682_v13 = vadd.f32 %v16979_v41, %v7665_v58 }
0x10eb   : > { %v7695_v32 = vpack.c.bf16 %v7682_v13, %v7681_v53 }
0x10ed   : > { %9046 = vmatmul.msk.bf16.gmra.mxu1 %vm754_vm0, %v7695_v32  ;;  %9022 = vmatmul.msk.bf16.gmra.mxu2 %vm754_vm0, %v7695_v32 }
0x110b   : > { %v7423_v40 = vpop.xlane.xlu1 %7422 }
0x110c   : > { %v7457_v18 = vmul.f32 %v7423_v40, %v17834_v59 }
0x110e   : > { %v7473_v9 = vadd.f32 1e-06, %v7457_v18 }
0x1110   : > { %9967 = vrsqrt.f32 %v7473_v9  ;;  %vm7549_vm11 = vweird.f32 %v7473_v9 }
0x1111   : > { %v7426_v47 = vpop.xlane.xlu2 %7425 }
0x1112   : > { %v7458_v4 = vmul.f32 %v7426_v47, %v17834_v59 }
0x1113   : > { %v7348_v10 = vpop.xlane.xlu1 %7347 }
0x1114   : > { %v7474_v25 = vadd.f32 1e-06, %v7458_v4  ;;  %v7368_v52 = vmul.f32 %v7348_v10, %v17834_v59 }
0x1116   : > { %9969 = vrsqrt.f32 %v7474_v25  ;;  %v9968_v33 = vpop.eup %9967  ;;  %v17084_v23 = vsub.f32 %v16847_v49, %v7368_v52  ;;  %vm7559_vm14 = vweird.f32 %v7474_v25 }
0x1117   : > { %v7544_v37 = vmul.f32 %v9968_v33, %v7473_v9  ;;  %vm7550_vm10 = vweird.f32 %v9968_v33 }
0x1118   : > { %v7400_v29 = vmul.f32 %v17084_v23, %v17084_v23  ;;  %vm7551_vm12 = vmor %vm7549_vm11, %vm7550_vm10 }
0x1119   : > { %v7429_v46 = vpop.xlane.xlu2 %7428  ;;  %v7545_v1 = vmul.f32 %v9968_v33, %v7544_v37 }
0x111a   : > { %v7459_v24 = vmul.f32 %v7429_v46, %v17834_v59  ;;  %v7442_v61 = vsel %vm754_vm0, %v7400_v29, 0.0 }
0x111b   : > { %v7546_v48 = vmul.f32 0.5, %v7545_v1  ;;  %7443 = vadd.xlane.f32.xlu0 %v7442_v61  ;;  %v17131_v1 = vld [vmem:[%s17428_s13 + $0x10] sm:$0xff] }
0x111c   : > { %v9970_v6 = vpop.eup %9969  ;;  %v17091_v28 = vadd.f32 1e-06, %v7459_v24  ;;  %v7351_v49 = vpop.xlane.xlu1 %7350 }
0x111d   : > { %v7432_v43 = vpop.xlane.xlu0 %7431  ;;  %v7554_v22 = vmul.f32 %v9970_v6, %v7474_v25  ;;  %v7369_v63 = vmul.f32 %v7351_v49, %v17834_v59  ;;  %v7547_v8 = vsub.f32 1.5, %v7546_v48  ;;  %vm7560_vm13 = vweird.f32 %v9970_v6 }
0x111e   : > { %v7460_v12 = vmul.f32 %v7432_v43, %v17834_v59  ;;  %9971 = vrsqrt.f32 %v17091_v28  ;;  %vm7561_vm15 = vmor %vm7559_vm14, %vm7560_vm13  ;;  %vm7569_vm4 = vweird.f32 %v17091_v28 }
0x111f   : > { %v7555_v39 = vmul.f32 %v9970_v6, %v7554_v22  ;;  %v17098_v14 = vsub.f32 %v17005_v36, %v7369_v63  ;;  %v7548_v51 = vmul.f32 %v9968_v33, %v7547_v8 }
0x1120   : > { %v17094_v27 = vadd.f32 1e-06, %v7460_v12  ;;  %v17136_v12 = vperm.slane %v17131_v1, 0 }
0x1121   : > { %v7556_v42 = vmul.f32 0.5, %v7555_v39  ;;  %v7354_v2 = vpop.xlane.xlu2 %7353  ;;  %v7401_v26 = vmul.f32 %v17098_v14, %v17098_v14  ;;  %v7552_v20 = vsel %vm7551_vm12, %v9968_v33, %v7548_v51 }
0x1122   : > { %9973 = vrsqrt.f32 %v17094_v27  ;;  %v7370_v55 = vmul.f32 %v7354_v2, %v17834_v59  ;;  %v7649_v11 = vmul.f32 %v7552_v20, %v16855_v62  ;;  %vm7579_vm6 = vweird.f32 %v17094_v27 }
0x1123   : > { %v7557_v7 = vsub.f32 1.5, %v7556_v42  ;;  %v7445_v56 = vsel %vm754_vm0, %v7401_v26, 0.0 }
0x1124   : > { %v17105_v36 = vpop.f32.mrf.mxu2  ;;  %v9972_v30 = vpop.eup %9971  ;;  %v17110_v0 = vsub.f32 %v17022_v19, %v7370_v55  ;;  %7446 = vadd.xlane.f32.xlu1 %v7445_v56  ;;  %v7666_v40 = vmul.f32 %v16968_v34, %v7649_v11 }
0x1125   : > { %v7435_v44 = vpop.xlane.xlu0 %7434  ;;  %v7558_v17 = vmul.f32 %v9970_v6, %v7557_v7  ;;  %v7564_v35 = vmul.f32 %v9972_v30, %v17091_v28  ;;  %vm7570_vm2 = vweird.f32 %v9972_v30 }
0x1126   : > { %v7461_v3 = vmul.f32 %v7435_v44, %v17834_v59  ;;  %v7402_v62 = vmul.f32 %v17110_v0, %v17110_v0  ;;  %vm7571_vm5 = vmor %vm7569_vm4, %vm7570_vm2 }
0x1127   : > { %v7562_v58 = vsel %vm7561_vm15, %v9970_v6, %v7558_v17  ;;  %v7565_v53 = vmul.f32 %v9972_v30, %v7564_v35 }
0x1128   : > { %v9974_v60 = vpop.eup %9973  ;;  %v17115_v31 = vadd.f32 1e-06, %v7461_v3  ;;  %v7650_v13 = vmul.f32 %v7562_v58, %v16901_v54  ;;  %v7448_v32 = vsel %vm754_vm0, %v7402_v62, 0.0  ;;  %v7683_v54 = vadd.f32 %v16979_v41, %v7666_v40 }
0x1129   : > { %v7438_v50 = vpop.xlane.xlu1 %7437  ;;  %v7574_v19 = vmul.f32 %v9974_v60, %v17094_v27  ;;  %v7566_v9 = vmul.f32 0.5, %v7565_v53  ;;  %7449 = vadd.xlane.f32.xlu2 %v7448_v32  ;;  %vm7580_vm3 = vweird.f32 %v9974_v60 }
0x112a   : > { %v7462_v15 = vmul.f32 %v7438_v50, %v17834_v59  ;;  %9975 = vrsqrt.f32 %v17115_v31  ;;  %v7667_v4 = vmul.f32 %v16968_v34, %v7650_v13  ;;  %vm7581_vm7 = vmor %vm7579_vm6, %vm7580_vm3  ;;  %vm7589_vm11 = vweird.f32 %v17115_v31 }
0x112b   : > { %v7575_v18 = vmul.f32 %v9974_v60, %v7574_v19  ;;  %v7567_v10 = vsub.f32 1.5, %v7566_v9 }
0x112c   : > { %v7478_v47 = vadd.f32 1e-06, %v7462_v15  ;;  %v7753_v52 = vpop.f32.mrf.mxu2  ;;  %v7684_v37 = vadd.f32 %v16979_v41, %v7667_v4 }
0x112d   : > { %v7576_v25 = vmul.f32 0.5, %v7575_v18  ;;  %v7568_v29 = vmul.f32 %v9972_v30, %v7567_v10 }
0x112e   : > { %9977 = vrsqrt.f32 %v7478_v47  ;;  %v7911_v33 = vpop.f32.mrf.mxu1  ;;  %v7696_v43 = vpack.c.bf16 %v7684_v37, %v7683_v54  ;;  %vm7599_vm9 = vweird.f32 %v7478_v47 }
0x112f   : > { %v7577_v46 = vsub.f32 1.5, %v7576_v25  ;;  %v7572_v6 = vsel %vm7571_vm5, %v9972_v30, %v7568_v29  ;;  %v17143_v42 = vadd.f32 %v7911_v33, %v17136_v12 }
0x1130   : > { %v9976_v24 = vpop.eup %9975  ;;  %9023 = vmatmul.msk.bf16.gmra.mxu2 %vm754_vm0, %v7696_v43  ;;  %9047 = vmatmul.msk.bf16.gmra.mxu1 %vm754_vm0, %v7696_v43  ;;  %v7651_v8 = vmul.f32 %v7572_v6, %v16959_v21 }
0x1131   : > { %v7578_v61 = vmul.f32 %v9974_v60, %v7577_v46  ;;  %v7584_v48 = vmul.f32 %v9976_v24, %v17115_v31  ;;  %vm7590_vm1 = vweird.f32 %v9976_v24 }
0x1132   : > { %v7668_v55 = vmul.f32 %v16968_v34, %v7651_v8  ;;  %vm7591_vm12 = vmor %vm7589_vm11, %vm7590_vm1 }
0x1133   : > { %v7582_v49 = vsel %vm7581_vm7, %v9974_v60, %v7578_v61  ;;  %v7585_v22 = vmul.f32 %v9976_v24, %v7584_v48 }
0x1134   : > { %v9978_v28 = vpop.eup %9977  ;;  %v7652_v63 = vmul.f32 %v7582_v49, %v16991_v16  ;;  %v7685_v56 = vadd.f32 %v16979_v41, %v7668_v55  ;;  %v17173_v9 = vpop.f32.mrf.mxu2 }
0x1135   : > { %v7594_v39 = vmul.f32 %v9978_v28, %v7478_v47  ;;  %v7586_v26 = vmul.f32 0.5, %v7585_v22  ;;  %vm7600_vm8 = vweird.f32 %v9978_v28 }
0x1136   : > { %v7913_v27 = vpop.f32.mrf.mxu1  ;;  %v7669_v7 = vmul.f32 %v16968_v34, %v7652_v63  ;;  %vm7601_vm10 = vmor %vm7599_vm9, %vm7600_vm8 }
0x1137   : > { %v7595_v51 = vmul.f32 %v9978_v28, %v7594_v39  ;;  %v17146_v2 = vadd.f32 %v7913_v27, %v17136_v12  ;;  %v7587_v21 = vsub.f32 1.5, %v7586_v26 }
0x1138   : > { %v7686_v30 = vadd.f32 %v16979_v41, %v7669_v7 }
0x1139   : > { %v7596_v20 = vmul.f32 0.5, %v7595_v51  ;;  %v7951_v16 = vpack.c.bf16 %v17146_v2, %v17143_v42  ;;  %v7588_v50 = vmul.f32 %v9976_v24, %v7587_v21 }
0x113a   : > { %v7697_v17 = vpack.c.bf16 %v7686_v30, %v7685_v56 }
0x113b   : > { %v7597_v44 = vsub.f32 1.5, %v7596_v20  ;;  %v7592_v15 = vsel %vm7591_vm12, %v9976_v24, %v7588_v50 }
0x113c   : > { %v7653_v58 = vmul.f32 %v7592_v15, %v17026_v57  ;;  %v7441_v57 = vpop.xlane.xlu2 %7440  ;;  %v17176_v25 = vpop.f32.mrf.mxu2 }
0x113d   : > { %v7598_v11 = vmul.f32 %v9978_v28, %v7597_v44  ;;  %v7463_v47 = vmul.f32 %v7441_v57, %v17834_v59 }
0x113e   : > { %v7916_v3 = vpop.f32.mrf.mxu1  ;;  %v7670_v32 = vmul.f32 %v16968_v34, %v7653_v58 }
0x113f   : > { %v7602_v35 = vsel %vm7601_vm10, %v9978_v28, %v7598_v11  ;;  %v17160_v19 = vadd.f32 %v7916_v3, %v17136_v12  ;;  %v7479_v4 = vadd.f32 1e-06, %v7463_v47 }
0x1140   : > { %9024 = vmatmul.msk.bf16.gmra.mxu2 %vm754_vm0, %v7697_v17  ;;  %9048 = vmatmul.msk.bf16.gmra.mxu1 %vm754_vm0, %v7697_v17  ;;  %v7654_v60 = vmul.f32 %v7602_v35, %v17032_v5  ;;  %v7687_v5 = vadd.f32 %v16979_v41, %v7670_v32 }
0x1141   : > { %9979 = vrsqrt.f32 %v7479_v4  ;;  %vm7609_vm14 = vweird.f32 %v7479_v4 }
0x1142   : > { %v7671_v31 = vmul.f32 %v16968_v34, %v7654_v60 }
0x1144   : > { %v7688_v40 = vadd.f32 %v16979_v41, %v7671_v31  ;;  %v17178_v33 = vpop.f32.mrf.mxu2 }
0x1146   : > { %v7918_v62 = vpop.f32.mrf.mxu1  ;;  %v7698_v18 = vpack.c.bf16 %v7688_v40, %v7687_v5 }
0x1147   : > { %v17163_v53 = vadd.f32 %v7918_v62, %v17136_v12  ;;  %v9980_v10 = vpop.eup %9979 }
0x1148   : > { %v7604_v52 = vmul.f32 %v9980_v10, %v7479_v4  ;;  %vm7610_vm13 = vweird.f32 %v9980_v10 }
0x1149   : > { %v7952_v13 = vpack.c.bf16 %v17163_v53, %v17160_v19  ;;  %vm7611_vm15 = vmor %vm7609_vm14, %vm7610_vm13 }
0x114a   : > { %v7605_v54 = vmul.f32 %v9980_v10, %v7604_v52 }
0x114c   : > { %v7606_v24 = vmul.f32 0.5, %v7605_v54  ;;  %v17181_v61 = vpop.f32.mrf.mxu2 }
0x114e   : > { %v7607_v43 = vsub.f32 1.5, %v7606_v24 }
0x1150   : > { %9025 = vmatmul.msk.bf16.gmra.mxu2 %vm754_vm0, %v7698_v18  ;;  %9049 = vmatmul.msk.bf16.gmra.mxu1 %vm754_vm0, %v7698_v18  ;;  %v7608_v22 = vmul.f32 %v9980_v10, %v7607_v43 }
0x1152   : > { %v7612_v26 = vsel %vm7611_vm15, %v9980_v10, %v7608_v22 }
0x1153   : > { %v7655_v56 = vmul.f32 %v7612_v26, %v17059_v45 }
0x1155   : > { %v7672_v15 = vmul.f32 %v16968_v34, %v7655_v56 }
0x1157   : > { %v7689_v40 = vadd.f32 %v16979_v41, %v7672_v15 }
0x116a   : > { %v17184_v63 = vpop.f32.mrf.mxu1 }
0x1170   : > { %v17187_v7 = vpop.f32.mrf.mxu2 }
0x1172   : > { %v17190_v3 = vpop.f32.mrf.mxu1 }
0x1178   : > { %v17197_v18 = vpop.f32.mrf.mxu2 }
0x118e   : > { %v7444_v37 = vpop.xlane.xlu0 %7443 }
0x118f   : > { %v7464_v46 = vmul.f32 %v7444_v37, %v17834_v59 }
0x1191   : > { %v7480_v29 = vadd.f32 1e-06, %v7464_v46 }
0x1193   : > { %9981 = vrsqrt.f32 %v7480_v29  ;;  %vm7619_vm3 = vweird.f32 %v7480_v29 }
0x1197   : > { %v7447_v6 = vpop.xlane.xlu1 %7446 }
0x1198   : > { %v7465_v48 = vmul.f32 %v7447_v6, %v17834_v59 }
0x1199   : > { %v9982_v28 = vpop.eup %9981 }
0x119a   : > { %v7481_v49 = vadd.f32 1e-06, %v7465_v48  ;;  %v7614_v8 = vmul.f32 %v9982_v28, %v7480_v29  ;;  %vm7620_vm2 = vweird.f32 %v9982_v28 }
0x119b   : > { %vm7621_vm4 = vmor %vm7619_vm3, %vm7620_vm2 }
0x119c   : > { %9983 = vrsqrt.f32 %v7481_v49  ;;  %v7450_v39 = vpop.xlane.xlu2 %7449  ;;  %v7615_v27 = vmul.f32 %v9982_v28, %v7614_v8  ;;  %vm7629_vm6 = vweird.f32 %v7481_v49 }
0x119d   : > { %v7466_v51 = vmul.f32 %v7450_v39, %v17834_v59  ;;  %v17210_v39 = vperm.slane %v16865_v38, 7 }
0x119e   : > { %v7616_v20 = vmul.f32 0.5, %v7615_v27 }
0x119f   : > { %v7482_v55 = vadd.f32 1e-06, %v7466_v51  ;;  %v7832_v19 = vadd.f32 %v17187_v7, %v17210_v39  ;;  %v7829_v42 = vadd.f32 %v17181_v61, %v17210_v39  ;;  %v7822_v61 = vadd.f32 %v17173_v9, %v17210_v39 }
0x11a0   : > { %v7617_v44 = vsub.f32 1.5, %v7616_v20 }
0x11a1   : > { %9985 = vrsqrt.f32 %v7482_v55  ;;  %vm7639_vm1 = vweird.f32 %v7482_v55 }
0x11a2   : > { %v9984_v21 = vpop.eup %9983  ;;  %v7618_v30 = vmul.f32 %v9982_v28, %v7617_v44 }
0x11a3   : > { %v7624_v11 = vmul.f32 %v9984_v21, %v7481_v49  ;;  %vm7630_vm5 = vweird.f32 %v9984_v21 }
0x11a4   : > { %v7622_v50 = vsel %vm7621_vm4, %v9982_v28, %v7618_v30  ;;  %vm7631_vm7 = vmor %vm7629_vm6, %vm7630_vm5 }
0x11a5   : > { %v7625_v17 = vmul.f32 %v9984_v21, %v7624_v11  ;;  %v7656_v35 = vmul.f32 %v7622_v50, %v17084_v23 }
0x11a7   : > { %v9986_v60 = vpop.eup %9985  ;;  %v7626_v62 = vmul.f32 0.5, %v7625_v17  ;;  %v7673_v31 = vmul.f32 %v16968_v34, %v7656_v35 }
0x11a8   : > { %v7634_v58 = vmul.f32 %v9986_v60, %v7482_v55  ;;  %vm7640_vm8 = vweird.f32 %v9986_v60 }
0x11a9   : > { %v7627_v32 = vsub.f32 1.5, %v7626_v62  ;;  %v7690_v5 = vadd.f32 %v16979_v41, %v7673_v31  ;;  %vm7641_vm9 = vmor %vm7639_vm1, %vm7640_vm8 }
0x11aa   : > { %v7635_v45 = vmul.f32 %v9986_v60, %v7634_v58 }
0x11ab   : > { %v7628_v57 = vmul.f32 %v9984_v21, %v7627_v32  ;;  %v7699_v47 = vpack.c.bf16 %v7690_v5, %v7689_v40 }
0x11ac   : > { %v7636_v23 = vmul.f32 0.5, %v7635_v45 }
0x11ad   : > { %v7632_v4 = vsel %vm7631_vm7, %v9984_v21, %v7628_v57  ;;  %v7926_v10 = vpop.f32.mrf.mxu1  ;;  %9026 = vmatmul.msk.bf16.gmra.mxu2 %vm754_vm0, %v7699_v47  ;;  %9050 = vmatmul.msk.bf16.gmra.mxu1 %vm754_vm0, %v7699_v47 }
0x11ae   : > { %v7637_v52 = vsub.f32 1.5, %v7636_v23  ;;  %v7657_v54 = vmul.f32 %v7632_v4, %v17098_v14  ;;  %v7927_v28 = vadd.f32 %v7926_v10, %v17136_v12 }
0x11b0   : > { %v7638_v37 = vmul.f32 %v9986_v60, %v7637_v52  ;;  %v7674_v43 = vmul.f32 %v16968_v34, %v7657_v54 }
0x11b2   : > { %v7642_v46 = vsel %vm7641_vm9, %v9986_v60, %v7638_v37  ;;  %v7691_v14 = vadd.f32 %v16979_v41, %v7674_v43 }
0x11b3   : > { %v7658_v29 = vmul.f32 %v7642_v46, %v17110_v0  ;;  %v7836_v24 = vpop.f32.mrf.mxu2 }
0x11b4   : > { %v17213_v51 = vadd.f32 %v7836_v24, %v17210_v39 }
0x11b5   : > { %v7928_v6 = vpop.f32.mrf.mxu1  ;;  %v7675_v48 = vmul.f32 %v16968_v34, %v7658_v29 }
0x11b6   : > { %v7929_v49 = vadd.f32 %v7928_v6, %v17136_v12 }
0x11b7   : > { %v7692_v22 = vadd.f32 %v16979_v41, %v7675_v48 }
0x11b8   : > { %v7954_v8 = vpack.c.bf16 %v7929_v49, %v7927_v28 }
0x11b9   : > { %v7700_v27 = vpack.c.bf16 %v7692_v22, %v7691_v14 }
0x11bb   : > { %v7838_v0 = vpop.f32.mrf.mxu2 }
0x11bc   : > { %v17216_v26 = vadd.f32 %v7838_v0, %v17210_v39 }
0x11bd   : > { %9027 = vmatmul.msk.bf16.gmra.mxu2 %vm754_vm0, %v7700_v27  ;;  %9051 = vmatmul.msk.bf16.gmra.mxu1 %vm754_vm0, %v7700_v27  ;;  %v7931_v56 = vpop.f32.mrf.mxu1  ;;  %v7924_v27 = vadd.f32 %v17190_v3, %v17136_v12 }
0x11be   : > { %v7864_v34 = vpack.c.bf16 %v17216_v26, %v17213_v51  ;;  %v7932_v28 = vadd.f32 %v7931_v56, %v17136_v12 }
0x11c3   : > { %v7841_v41 = vpop.f32.mrf.mxu2 }
0x11c4   : > { %v7842_v55 = vadd.f32 %v7841_v41, %v17210_v39 }
0x11c5   : > { %v7933_v30 = vpop.f32.mrf.mxu1 }
0x11c6   : > { %v7934_v24 = vadd.f32 %v7933_v30, %v17136_v12 }
0x11c8   : > { %v7955_v14 = vpack.c.bf16 %v7934_v24, %v7932_v28  ;;  %v7982_v24 = vld [vmem:[%s17433_s18 + $0x10] sm:$0xff]  ;;  %v7983_v28 = vld [vmem:[%s17433_s18 + $0x18] sm:$0xff] }
0x11cb   : > { %v7843_v20 = vpop.f32.mrf.mxu2 }
0x11cc   : > { %v7844_v44 = vadd.f32 %v7843_v20, %v17210_v39  ;;  %v7922_v20 = vadd.f32 %v17184_v63, %v17136_v12  ;;  %v8010_v63 = vsel %vm754_vm0, %v7864_v34, 0 }
0x11cd   : > { %v7936_v11 = vpop.f32.mrf.mxu1 }
0x11ce   : > { %v7865_v21 = vpack.c.bf16 %v7844_v44, %v7842_v55  ;;  %v7937_v46 = vadd.f32 %v7936_v11, %v17136_v12  ;;  %v7953_v56 = vpack.c.bf16 %v7924_v27, %v7922_v20  ;;  %v17294_v11 = vld [vmem:[%s17432_s17 + $0x18] sm:$0xff]  ;;  %v7984_v27 = vld [vmem:[%s17433_s18 + $0x20] sm:$0xff] }
0x11d0   : > { %v8013_v3 = vsel %vm754_vm0, %v7865_v21, 0 }
0x11d3   : > { %v7846_v50 = vpop.f32.mrf.mxu2 }
0x11d4   : > { %v7847_v55 = vadd.f32 %v7846_v50, %v17210_v39 }
0x11d5   : > { %v7938_v17 = vpop.f32.mrf.mxu1 }
0x11d6   : > { %v7939_v10 = vadd.f32 %v7938_v17, %v17136_v12 }
0x11d8   : > { %v7956_v48 = vpack.c.bf16 %v7939_v10, %v7937_v46  ;;  %v10156_v10 = vld [vmem:[%s10849_s28] ss:$0 sm:$0xff]  ;;  %s8283_s28 = scalar_lea.hbm %s17435_s20, %s9075_s23 }
0x11d9   : > { %s8287_s27 = sshll.u32 %s8283_s28, 4  ;;  %s8288_s27 = int_to_ptr.hbm [resolvable:$true] %s8287_s27 }
0x11da   : > { %s10171_s30 = sshra.s32 %s8288_s27, 4  ;;  %s10172_s30 = int_to_ptr.hbm [resolvable:$true] %s10171_s30 }
0x11db   : > { %v7848_v35 = vpop.f32.mrf.mxu2  ;;  %s10173_s0 = scalar_lea.hbm %s10172_s30, 8  ;;  %p10178_p1 = scmp.lt.s32.totalorder %s10172_s30, %s17435_s20 }
0x11dc   : > { %v7849_v0 = vadd.f32 %v7848_v35, %v17210_v39  ;;  %p10174_p12 = scmp.ne.s32.totalorder %s10172_s30, %s10173_s0  ;;  %p10179_p2 = scmp.lt.s32.totalorder %s10177_s21, %s10173_s0 }
0x11de   : > { %v7866_v44 = vpack.c.bf16 %v7849_v0, %v7847_v55  ;;  %v7985_v55 = vld [vmem:[%s17433_s18 + $0x28] sm:$0xff]  ;;  %p10175_p13 = pnand %p10174_p12, %p10365_p5  ;;  %p10180_p3 = por %p10179_p2, %p10178_p1 }
0x11e0   : > { %v8016_v30 = vsel %vm754_vm0, %v7866_v44, 0  ;;  %p10176_p0 = pneg %p10175_p13 }
0x11e2   : > { %p10181_p4 = pnand %p10180_p3, %p10176_p0 }
0x122a   : > { %v7941_v15 = vpop.f32.mrf.mxu1 }
0x122b   : > { %v7942_v47 = vadd.f32 %v7941_v15, %v17136_v12  ;;  %v17302_v15 = vld [vmem:[%s17432_s17 + $0x20] sm:$0xff] }
0x1230   : > { %v7851_v60 = vpop.f32.mrf.mxu2 }
0x1231   : > { %v7852_v49 = vadd.f32 %v7851_v60, %v17210_v39  ;;  %v17307_v60 = vld [vmem:[%s17432_s17 + $0x28] sm:$0xff] }
0x1232   : > { %v7943_v62 = vpop.f32.mrf.mxu1 }
0x1233   : > { %v7944_v57 = vadd.f32 %v7943_v62, %v17136_v12 }
0x1235   : > { %v7957_v37 = vpack.c.bf16 %v7944_v57, %v7942_v47 }
0x1238   : > { %v7853_v58 = vpop.f32.mrf.mxu2 }
0x1239   : > { %v7854_v43 = vadd.f32 %v7853_v58, %v17210_v39 }
0x123a   : > { %v7946_v31 = vpop.f32.mrf.mxu1 }
0x123b   : > { %v7947_v40 = vadd.f32 %v7946_v31, %v17136_v12  ;;  %v7867_v22 = vpack.c.bf16 %v7854_v43, %v7852_v49 }
0x123d   : > { %v8019_v41 = vsel %vm754_vm0, %v7867_v22, 0 }
0x1240   : > { %v7856_v32 = vpop.f32.mrf.mxu2 }
0x1241   : > { %v7857_v52 = vadd.f32 %v7856_v32, %v17210_v39  ;;  %v17315_v32 = vld [vmem:[%s17432_s17 + $0x30] sm:$0xff] }
0x1242   : > { %v7948_v45 = vpop.f32.mrf.mxu1 }
0x1243   : > { %v7949_v5 = vadd.f32 %v7948_v45, %v17136_v12  ;;  %v7834_v12 = vadd.f32 %v17197_v18, %v17210_v39  ;;  %v7737_v18 = vrot.slane %v16865_v38, 6  ;;  %v17280_v38 = vld [vmem:[%s17432_s17 + $0x8] sm:$0xff]  ;;  %v17320_v45 = vld [vmem:[%s17432_s17 + $0x38] sm:$0xff] }
0x1245   : > { %v7958_v23 = vpack.c.bf16 %v7949_v5, %v7947_v40  ;;  %v7863_v53 = vpack.c.bf16 %v7834_v12, %v7832_v19  ;;  %v7752_v7 = vadd.f32 %v17105_v36, %v7737_v18 }
0x1247   : > { %8137 = vmatpush.bf16.msrb.mxu3 %v7958_v23  ;;  %v8007_v2 = vsel %vm754_vm0, %v7863_v53, 0  ;;  %v7959_v34 = vperm.slane %v7752_v7, 0  ;;  %v7980_v23 = vld [vmem:[%s17433_s18] sm:$0xff]  ;;  %v7987_v53 = vld [vmem:[%s17433_s18 + $0x38] sm:$0xff] }
0x1248   : > { %v7858_v4 = vpop.f32.mrf.mxu2 }
0x1249   : > { %v7859_v54 = vadd.f32 %v7858_v4, %v17210_v39  ;;  %v7969_v21 = vmul.f32 %v17280_v38, %v7959_v34  ;;  %v7971_v17 = vmul.f32 %v17294_v11, %v7959_v34  ;;  %v7972_v62 = vmul.f32 %v17302_v15, %v7959_v34 }
0x124a   : > { %v7973_v58 = vmul.f32 %v17307_v60, %v7959_v34  ;;  %v7974_v40 = vmul.f32 %v17315_v32, %v7959_v34  ;;  %v7975_v5 = vmul.f32 %v17320_v45, %v7959_v34 }
0x124b   : > { %v7868_v29 = vpack.c.bf16 %v7859_v54, %v7857_v52  ;;  %8138 = vmatpush.bf16.msrb.mxu3 %v7957_v37  ;;  %v7981_v54 = vld [vmem:[%s17433_s18 + $0x8] sm:$0xff] }
0x124c   : > { %v7978_v31 = vpack.c.bf16 %v7973_v58, %v7972_v62  ;;  %v7979_v57 = vpack.c.bf16 %v7975_v5, %v7974_v40 }
0x124d   : > { %v8022_v6 = vsel %vm754_vm0, %v7868_v29, 0 }
0x124e   : > { %8024 = vmatpush.bf16.xpose.msrb.mxu2 %v8022_v6 }
0x124f   : > { %8139 = vmatpush.bf16.msrb.mxu3 %v7956_v48 }
0x1253   : > { %8140 = vmatpush.bf16.msrb.mxu3 %v7955_v14 }
0x1256   : > { %8025 = vmatpush.bf16.xpose.msrb.mxu2 %v8019_v41 }
0x1257   : > { %8141 = vmatpush.bf16.msrb.mxu3 %v7954_v8  ;;  %v7824_v8 = vadd.f32 %v17176_v25, %v17210_v39 }
0x1259   : > { %v7861_v26 = vpack.c.bf16 %v7824_v8, %v7822_v61 }
0x125b   : > { %8142 = vmatpush.bf16.msrb.mxu3 %v7953_v56  ;;  %v8001_v25 = vsel %vm754_vm0, %v7861_v26, 0 }
0x125e   : > { %8026 = vmatpush.bf16.xpose.msrb.mxu2 %v8016_v30 }
0x125f   : > { %8143 = vmatpush.bf16.msrb.mxu3 %v7952_v13 }
0x1263   : > { %8144 = vmatpush.bf16.msrb.mxu3 %v7951_v16  ;;  %v7827_v16 = vadd.f32 %v17178_v33, %v17210_v39  ;;  %v17275_v33 = vld [vmem:[%s17432_s17] sm:$0xff]  ;;  %v17289_v39 = vld [vmem:[%s17432_s17 + $0x10] sm:$0xff] }
0x1264   : > { %v7968_v36 = vmul.f32 %v17275_v33, %v7959_v34  ;;  %v7970_v50 = vmul.f32 %v17289_v39, %v7959_v34 }
0x1265   : > { %v7862_v13 = vpack.c.bf16 %v7829_v42, %v7827_v16 }
0x1266   : > { %8027 = vmatpush.bf16.xpose.msrb.mxu2 %v8013_v3  ;;  %v7976_v9 = vpack.c.bf16 %v7969_v21, %v7968_v36  ;;  %v7977_v35 = vpack.c.bf16 %v7971_v17, %v7970_v50  ;;  %v7986_v3 = vld [vmem:[%s17433_s18 + $0x30] sm:$0xff] }
0x1267   : > { %v8004_v51 = vsel %vm754_vm0, %v7862_v13, 0 }
0x126e   : > { %8028 = vmatpush.bf16.xpose.msrb.mxu2 %v8010_v63 }
0x1276   : > { %8029 = vmatpush.bf16.xpose.msrb.mxu2 %v8007_v2 }
0x127e   : > { %8030 = vmatpush.bf16.xpose.msrb.mxu2 %v8004_v51 }
0x1286   : > { %8031 = vmatpush.bf16.xpose.msrb.mxu2 %v8001_v25 }
0x128d   : > { %9052 = vmatmul.msk.bf16.vlgmr.msrb.gmra.mxu2 %vm754_vm0, %v7976_v9 }
0x129d   : > { %9053 = vmatmul.msk.bf16.gmra.mxu2 %vm754_vm0, %v7977_v35 }
0x12ad   : > { %9054 = vmatmul.msk.bf16.gmra.mxu2 %vm754_vm0, %v7978_v31 }
0x12bd   : > { %9055 = vmatmul.msk.bf16.gmra.mxu2 %vm754_vm0, %v7979_v57 }
0x1310   : > { %v8033_v47 = vpop.f32.mrf.mxu2 }
0x1311   : > { %v8034_v4 = vadd.f32 %v8033_v47, %v7980_v23 }
0x1313   : > { %v8053_v52 = vadd.f32 %v10156_v10, %v8034_v4 }
0x1315   : > { %8061 = vmax.xlane.f32.xlu0 %v8053_v52 }
0x1318   : > { %v8035_v37 = vpop.f32.mrf.mxu2 }
0x1319   : > { %v8036_v46 = vadd.f32 %v8035_v37, %v7981_v54 }
0x131b   : > { %v8054_v29 = vadd.f32 %v10156_v10, %v8036_v46 }
0x131d   : > { %8063 = vmax.xlane.f32.xlu1 %v8054_v29 }
0x1320   : > { %v8038_v43 = vpop.f32.mrf.mxu2 }
0x1321   : > { %v8039_v6 = vadd.f32 %v8038_v43, %v7982_v24 }
0x1323   : > { %v8055_v48 = vadd.f32 %v10156_v10, %v8039_v6 }
0x1325   : > { %8065 = vmax.xlane.f32.xlu2 %v8055_v48 }
0x1328   : > { %v8040_v49 = vpop.f32.mrf.mxu2 }
0x1329   : > { %v8041_v22 = vadd.f32 %v8040_v49, %v7983_v28 }
0x132b   : > { %v8056_v14 = vadd.f32 %v10156_v10, %v8041_v22 }
0x132d   : > { %8067 = vmax.xlane.f32.xlu0 %v8056_v14 }
0x1330   : > { %v8043_v0 = vpop.f32.mrf.mxu2 }
0x1331   : > { %v8044_v41 = vadd.f32 %v8043_v0, %v7984_v27 }
0x1333   : > { %v8057_v20 = vadd.f32 %v10156_v10, %v8044_v41 }
0x1335   : > { %8069 = vmax.xlane.f32.xlu1 %v8057_v20 }
0x1338   : > { %v8045_v44 = vpop.f32.mrf.mxu2 }
0x1339   : > { %v8046_v56 = vadd.f32 %v8045_v44, %v7985_v55 }
0x133b   : > { %v8058_v30 = vadd.f32 %v10156_v10, %v8046_v56 }
0x133d   : > { %8071 = vmax.xlane.f32.xlu2 %v8058_v30 }
0x1340   : > { %v8048_v12 = vpop.f32.mrf.mxu2 }
0x1341   : > { %v8049_v63 = vadd.f32 %v8048_v12, %v7986_v3 }
0x1343   : > { %v8059_v19 = vadd.f32 %v10156_v10, %v8049_v63 }
0x1345   : > { %8073 = vmax.xlane.f32.xlu0 %v8059_v19 }
0x1348   : > { %v8050_v42 = vpop.f32.mrf.mxu2 }
0x1349   : > { %v8051_v2 = vadd.f32 %v8050_v42, %v7987_v53 }
0x134b   : > { %v8060_v16 = vadd.f32 %v10156_v10, %v8051_v2 }
0x134d   : > { %8075 = vmax.xlane.f32.xlu1 %v8060_v16 }
0x1388   : > { %v8062_v13 = vpop.xlane.xlu0 %8061 }
0x1389   : > { %v8077_v18 = vsub.f32 %v8053_v52, %v8062_v13 }
0x138b   : > { %v8085_v8 = vmul.f32 1.442695, %v8077_v18 }
0x138d   : > { %9987 = vpow2.f32 %v8085_v8 }
0x1390   : > { %v8064_v51 = vpop.xlane.xlu1 %8063 }
0x1391   : > { %v8078_v7 = vsub.f32 %v8054_v29, %v8064_v51 }
0x1393   : > { %v9988_v61 = vpop.eup %9987  ;;  %v8087_v26 = vmul.f32 1.442695, %v8078_v7 }
0x1394   : > { %8101 = vadd.xlane.f32.xlu2 %v9988_v61 }
0x1395   : > { %9989 = vpow2.f32 %v8087_v26 }
0x1398   : > { %v8066_v34 = vpop.xlane.xlu2 %8065 }
0x1399   : > { %v8079_v25 = vsub.f32 %v8055_v48, %v8066_v34 }
0x139b   : > { %v9990_v36 = vpop.eup %9989  ;;  %v8089_v21 = vmul.f32 1.442695, %v8079_v25 }
0x139c   : > { %8103 = vadd.xlane.f32.xlu0 %v9990_v36 }
0x139d   : > { %9991 = vpow2.f32 %v8089_v21 }
0x13a0   : > { %v8068_v9 = vpop.xlane.xlu0 %8067 }
0x13a1   : > { %v8080_v50 = vsub.f32 %v8056_v14, %v8068_v9 }
0x13a3   : > { %v9992_v17 = vpop.eup %9991  ;;  %v8091_v35 = vmul.f32 1.442695, %v8080_v50 }
0x13a4   : > { %8105 = vadd.xlane.f32.xlu1 %v9992_v17 }
0x13a5   : > { %9993 = vpow2.f32 %v8091_v35 }
0x13a8   : > { %v8070_v62 = vpop.xlane.xlu1 %8069 }
0x13a9   : > { %v8081_v58 = vsub.f32 %v8057_v20, %v8070_v62 }
0x13ab   : > { %v9994_v31 = vpop.eup %9993  ;;  %v8093_v40 = vmul.f32 1.442695, %v8081_v58 }
0x13ac   : > { %8107 = vadd.xlane.f32.xlu2 %v9994_v31 }
0x13ad   : > { %9995 = vpow2.f32 %v8093_v40 }
0x13b0   : > { %v8072_v5 = vpop.xlane.xlu2 %8071 }
0x13b1   : > { %v8082_v57 = vsub.f32 %v8058_v30, %v8072_v5 }
0x13b3   : > { %v9996_v23 = vpop.eup %9995  ;;  %v8095_v47 = vmul.f32 1.442695, %v8082_v57 }
0x13b4   : > { %8109 = vadd.xlane.f32.xlu0 %v9996_v23 }
0x13b5   : > { %9997 = vpow2.f32 %v8095_v47 }
0x13b8   : > { %v8074_v4 = vpop.xlane.xlu0 %8073 }
0x13b9   : > { %v8083_v10 = vsub.f32 %v8059_v19, %v8074_v4 }
0x13bb   : > { %v9998_v52 = vpop.eup %9997  ;;  %v8097_v54 = vmul.f32 1.442695, %v8083_v10 }
0x13bc   : > { %8111 = vadd.xlane.f32.xlu1 %v9998_v52 }
0x13bd   : > { %9999 = vpow2.f32 %v8097_v54  ;;  %v8204_v54 = vperm.slane %v17131_v1, 1 }
0x13c0   : > { %v8076_v37 = vpop.xlane.xlu1 %8075 }
0x13c1   : > { %v8084_v46 = vsub.f32 %v8060_v16, %v8076_v37 }
0x13c3   : > { %v10000_v29 = vpop.eup %9999  ;;  %v8099_v24 = vmul.f32 1.442695, %v8084_v46 }
0x13c4   : > { %8113 = vadd.xlane.f32.xlu2 %v10000_v29 }
0x13c5   : > { %10001 = vpow2.f32 %v8099_v24 }
0x13cb   : > { %v10002_v43 = vpop.eup %10001 }
0x13cc   : > { %8115 = vadd.xlane.f32.xlu0 %v10002_v43 }
0x1407   : > { %v8102_v6 = vpop.xlane.xlu2 %8101 }
0x1408   : > { %10003 = vrcp.f32 %v8102_v6 }
0x140e   : > { %v10004_v28 = vpop.eup %10003 }
0x140f   : > { %v8104_v48 = vpop.xlane.xlu0 %8103  ;;  %v8125_v22 = vmul.f32 %v10004_v28, %v9988_v61 }
0x1410   : > { %10005 = vrcp.f32 %v8104_v48 }
0x1416   : > { %v10006_v49 = vpop.eup %10005 }
0x1417   : > { %v8126_v14 = vmul.f32 %v10006_v49, %v9990_v36  ;;  %v8106_v0 = vpop.xlane.xlu1 %8105 }
0x1418   : > { %10007 = vrcp.f32 %v8106_v0 }
0x1419   : > { %v8133_v27 = vpack.c.bf16 %v8126_v14, %v8125_v22 }
0x141b   : > { %8145 = vmatmul.bf16.vlgmr.msrb.gmra.mxu3 %v8133_v27 }
0x141e   : > { %v10008_v20 = vpop.eup %10007 }
0x141f   : > { %v8108_v41 = vpop.xlane.xlu2 %8107  ;;  %v8127_v44 = vmul.f32 %v10008_v20, %v9992_v17 }
0x1420   : > { %10009 = vrcp.f32 %v8108_v41 }
0x1426   : > { %v10010_v55 = vpop.eup %10009 }
0x1427   : > { %v8128_v56 = vmul.f32 %v10010_v55, %v9994_v31  ;;  %v8110_v3 = vpop.xlane.xlu0 %8109 }
0x1428   : > { %10011 = vrcp.f32 %v8110_v3 }
0x1429   : > { %v8134_v30 = vpack.c.bf16 %v8128_v56, %v8127_v44 }
0x142b   : > { %8150 = vmatmul.bf16.gmra.mxu3 %v8134_v30  ;;  %v8267_v30 = vperm.slane %v17131_v1, 2 }
0x142e   : > { %v10012_v63 = vpop.eup %10011 }
0x142f   : > { %v8112_v12 = vpop.xlane.xlu1 %8111  ;;  %v8129_v53 = vmul.f32 %v10012_v63, %v9996_v23 }
0x1430   : > { %10013 = vrcp.f32 %v8112_v12  ;;  %v8269_v12 = vperm.slane %v17131_v1, 3 }
0x1436   : > { %v10014_v19 = vpop.eup %10013 }
0x1437   : > { %v8130_v42 = vmul.f32 %v10014_v19, %v9998_v52  ;;  %v8114_v16 = vpop.xlane.xlu2 %8113 }
0x1438   : > { %10015 = vrcp.f32 %v8114_v16 }
0x1439   : > { %v8135_v2 = vpack.c.bf16 %v8130_v42, %v8129_v53 }
0x143b   : > { %8155 = vmatmul.bf16.gmra.mxu3 %v8135_v2 }
0x143e   : > { %v10016_v18 = vpop.eup %10015 }
0x143f   : > { %v8116_v13 = vpop.xlane.xlu0 %8115  ;;  %v8131_v51 = vmul.f32 %v10016_v18, %v10000_v29 }
0x1440   : > { %10017 = vrcp.f32 %v8116_v13 }
0x1446   : > { %v10018_v8 = vpop.eup %10017 }
0x1447   : > { %v8132_v7 = vmul.f32 %v10018_v8, %v10002_v43 }
0x1449   : > { %v8136_v61 = vpack.c.bf16 %v8132_v7, %v8131_v51 }
0x144b   : > { %8160 = vmatmul.bf16.gmra.mxu3 %v8136_v61 }
0x149e   : > { %v8146_v26 = vpop.f32.mrf.mxu3 }
0x149f   : > { %v8166_v10 = vmul.f32 %v8146_v26, %v17275_v33  ;;  %v9203_v33 = vld [vmem:[%s17427_s12 + $0x8] sm:$0xff] }
0x14a6   : > { %v8148_v34 = vpop.f32.mrf.mxu3 }
0x14a7   : > { %v8167_v47 = vmul.f32 %v8148_v34, %v17280_v38  ;;  %v9202_v38 = vld [vmem:[%s17427_s12] sm:$0xff] }
0x14ae   : > { %v8151_v25 = vpop.f32.mrf.mxu3 }
0x14af   : > { %v8168_v23 = vmul.f32 %v8151_v25, %v17289_v39  ;;  %v9204_v39 = vld [vmem:[%s17427_s12 + $0x10] sm:$0xff] }
0x14b6   : > { %v8153_v36 = vpop.f32.mrf.mxu3 }
0x14b7   : > { %v8169_v5 = vmul.f32 %v8153_v36, %v17294_v11  ;;  %v8178_v11 = vld [vmem:[%s17434_s19] sm:$0xf] }
0x14b9   : > { %v8175_v4 = vpack.c.bf16 %v8169_v5, %v8168_v23 }
0x14be   : > { %v8156_v21 = vpop.f32.mrf.mxu3 }
0x14bf   : > { %v8170_v40 = vmul.f32 %v8156_v21, %v17302_v15 }
0x14c6   : > { %v8158_v9 = vpop.f32.mrf.mxu3 }
0x14c7   : > { %v8171_v58 = vmul.f32 %v8158_v9, %v17307_v60  ;;  %v9205_v60 = vld [vmem:[%s17427_s12 + $0x18] sm:$0xff] }
0x14c9   : > { %v8176_v57 = vpack.c.bf16 %v8171_v58, %v8170_v40 }
0x14ce   : > { %v8161_v50 = vpop.f32.mrf.mxu3 }
0x14cf   : > { %v8172_v35 = vmul.f32 %v8161_v50, %v17315_v32  ;;  %v8174_v32 = vpack.c.bf16 %v8167_v47, %v8166_v10 }
0x14d6   : > { %v8163_v17 = vpop.f32.mrf.mxu3 }
0x14d7   : > { %v8173_v62 = vmul.f32 %v8163_v17, %v17320_v45 }
0x14d9   : > { %v8177_v31 = vpack.c.bf16 %v8173_v62, %v8172_v35 }
0x14db   : > { %8186 = vmatpush.bf16.msra.mxu2 %v8177_v31 }
0x14df   : > { %8187 = vmatpush.bf16.msra.mxu2 %v8176_v57 }
0x14e3   : > { %8188 = vmatpush.bf16.msra.mxu2 %v8175_v4 }
0x14e7   : > { %8189 = vmatpush.bf16.msra.mxu2 %v8174_v32 }
0x14ea   : > { %9056 = vmatmul.msk.bf16.vlgmr.msra.gmra.mxu2 %vm754_vm0, %v8178_v11 }
0x14eb   : > { %8236 = vmatpush.bf16.msrb.mxu2 %v9205_v60 }
0x14ef   : > { %8237 = vmatpush.bf16.msrb.mxu2 %v9204_v39 }
0x14f3   : > { %8238 = vmatpush.bf16.msrb.mxu2 %v9203_v33 }
0x14f7   : > { %8239 = vmatpush.bf16.msrb.mxu2 %v9202_v38 }
0x156d   : > { %v8191_v15 = vpop.f32.mrf.mxu2 }
0x156e   : > { %v8195_v45 = vpack.c.bf16 %v8191_v15, %v8191_v15 }
0x1570   : > { %9073 = vmatmul.msk.bf16.vlgmr.msrb.gmra.mxu2 %vm754_vm0, %v8195_v45 }
0x1575   : > { %v8193_v52 = vpop.f32.mrf.mxu2 }
0x15f3   : > { %v8241_v37 = vpop.f32.mrf.mxu2 }
0x15f4   : > { %v8242_v46 = vadd.f32 %v8241_v37, %v8204_v54 }
0x15f6   : > { %v8245_v29 = vsel %vm754_vm0, %v8242_v46, 0.0 }
0x15f7   : > { %8246 = vadd.xlane.f32.xlu1 %v8245_v29 }
0x15fb   : > { %v8243_v24 = vpop.f32.mrf.mxu2 }
0x166a   : > { %v8247_v43 = vpop.xlane.xlu1 %8246 }
0x166b   : > { %v8248_v6 = vmul.f32 %v8247_v43, %v17834_v59 }
0x166d   : > { %v8249_v48 = vsub.f32 %v8242_v46, %v8248_v6 }
0x166f   : > { %v8250_v28 = vmul.f32 %v8249_v48, %v8249_v48 }
0x1671   : > { %v8251_v49 = vsel %vm754_vm0, %v8250_v28, 0.0 }
0x1672   : > { %8252 = vadd.xlane.f32.xlu2 %v8251_v49 }
0x16e5   : > { %v8253_v22 = vpop.xlane.xlu2 %8252 }
0x16e6   : > { %v8254_v14 = vmul.f32 %v8253_v22, %v17834_v59 }
0x16e8   : > { %v8255_v27 = vadd.f32 1e-06, %v8254_v14 }
0x16ea   : > { %10019 = vrsqrt.f32 %v8255_v27  ;;  %vm8262_vm11 = vweird.f32 %v8255_v27 }
0x16f0   : > { %v10020_v0 = vpop.eup %10019 }
0x16f1   : > { %v8257_v41 = vmul.f32 %v10020_v0, %v8255_v27  ;;  %vm8263_vm10 = vweird.f32 %v10020_v0 }
0x16f2   : > { %vm8264_vm12 = vmor %vm8262_vm11, %vm8263_vm10 }
0x16f3   : > { %v8258_v20 = vmul.f32 %v10020_v0, %v8257_v41 }
0x16f5   : > { %v8259_v55 = vmul.f32 0.5, %v8258_v20 }
0x16f7   : > { %v8260_v44 = vsub.f32 1.5, %v8259_v55 }
0x16f9   : > { %v8261_v56 = vmul.f32 %v10020_v0, %v8260_v44 }
0x16fb   : > { %v8265_v59 = vsel %vm8264_vm12, %v10020_v0, %v8261_v56 }
0x16fc   : > { %v8266_v3 = vmul.f32 %v8265_v59, %v8249_v48 }
0x16fe   : > { %v8268_v63 = vmul.f32 %v8267_v30, %v8266_v3 }
0x1700   : > { %v8270_v19 = vadd.f32 %v8269_v12, %v8268_v63 }
0x1702   : > { %8271 = vst.msk [vmem:[%s634_s26] sm:$0xff] %vm754_vm0, %v8270_v19 }
0x1703   : > { %10184 = shalt.err (!%p10181_p4)
}
0x1704   : > { %9206 = dma.vmem_to_hbm [thread:$0]  (%p10365_p5), %s8286_s4, 128, %s8288_s27, %s8273_s2  }
0x1705 PF: > { %s17857_s1 = sld [smem:[#allocation7_spill]] }
0x1706   : > { %s17858_s26 = sld [smem:[#allocation5_spill]] }
0x170b   : > { %p9212_p7 = scmp.ge.s32.totalorder %s17857_s1, 2 }
0x170c   : > { %s8299_s6 = sand.u32 1, %s17858_s26  }
0x170d   : > { %p9209_p8 = pnand %p9212_p7, %p10369_p6  ;;  %s8300_s23 = scalar_lea.sflag [#allocation3], %s8299_s6 }
0x170f   : > { %p9210_p9 = pneg %p9209_p8 }
0x1711   : > { %10202 = dma.done.wait (%p9210_p9), %s8300_s23, 128  }
0x1712   : > { %10204 = vsyncadd (%p9210_p9), %s8300_s23, 4294967168  ;;  %s17860_s24 = sld [smem:[#allocation8_spill]]  ;;  %s17863_s1 = smov %s10211_s22 }
0x1713   : > { %s17861_s30 = sld [smem:[#allocation6_spill]] }
0x1714   : > { %s17862_s23 = sld [smem:[#allocation9_spill]] }
0x1718   : > { %p30_p10 = scmp.ge.s32.totalorder %s17860_s24, 4  }
0x1719   : > { %s17864_s22 = smov %s17861_s30 }
0x171a   :  { %32 = sbr.rel (!%p30_p10) target bundleno = 11 (0xb), region = 138 }
0x171f   :  { %8306 = vsyncpa [#allocation3], 1 }
0x1720   :  { %8308 = vsyncpa [#allocation3 + $0x1], 1 }

</bundles_post_ra>
